<compile_context>
chip_gen: v7x
topology: tpu7x:2x2x1
jax: 0.10.0
libtpu: 0.0.40
codegen_flags: <defaults>
</compile_context>

<pallas_src>
import functools
import math

import jax
import jax.numpy as jnp
from jax import lax
from jax.experimental import pallas as pl
from jax.experimental.pallas import tpu as pltpu


_LANE = 128                            # feature dims padded to a multiple of this
_NEG = float(jnp.finfo(jnp.float32).min)
_VMEM_LIMIT = 32 * 1024 * 1024         # explicit scoped-VMEM budget (v5e..v7x safe)
_FUSE_VMEM_BUDGET = 16 * 1024 * 1024   # fuse the whole stack if estimate fits here


# --------------------------- small helpers -----------------------------------

def _round_up(v, m):
    return ((v + m - 1) // m) * m


def _pad_to(a, shape):
    widths = [(0, t - s) for s, t in zip(a.shape, shape)]
    if all(w == (0, 0) for w in widths):
        return a
    return jnp.pad(a, widths)


def _maxk_threshold(hv, k):
    """k-th largest (distinct) value per row of hv via k serial row-maxes."""
    def body(_, carry):
        work, _ = carry
        m = jnp.max(work, axis=-1, keepdims=True)
        return jnp.where(work == m, _NEG, work), m

    _, thr = lax.fori_loop(
        0, k, body,
        (hv, jnp.full((hv.shape[0], 1), _NEG, jnp.float32)),
        unroll=True)
    return thr


# ----------------------------- kernels ----------------------------------------

def _linear_act_kernel(x_ref, w_ref, b_ref, m_ref, o_ref, *, act, k):
    """o = act(x @ W^T + b) for one row tile.  w_ref already holds W^T (bf16).

    m_ref is a (1, fout) f32 additive lane mask: 0 on valid lanes, very
    negative on zero-padded lanes (only used by the MaxK branch).
    """
    h = jnp.dot(x_ref[...], w_ref[...], preferred_element_type=jnp.float32)
    h = h + b_ref[...]                       # bias kept f32

    if act == "relu":
        h = jnp.maximum(h, 0.0)
    elif act == "maxk":
        hv = h + m_ref[...]                  # exclude padded lanes via add, no iota
        thr = _maxk_threshold(hv, k)
        h = jnp.where(hv >= thr, h, 0.0)
    # act == "none": plain linear

    o_ref[...] = h.astype(o_ref.dtype)


def _gin_agg_kernel(hd_ref, a_ref, hs_ref, eps_ref, o_ref, acc_ref):
    """out = (1 + eps) * h + A @ h, tiled over (dst rows, src rows).

    Grid = (dst_tiles [parallel], src_tiles [arbitrary]).  The (1+eps)*h term
    is folded into the accumulator init; A arrives as int8 {0,1} and is
    widened to bf16 per tile right before the MXU dot.
    """
    j = pl.program_id(1)

    @pl.when(j == 0)
    def _():
        acc_ref[...] = (1.0 + eps_ref[0]) * hd_ref[...].astype(jnp.float32)

    a = a_ref[...].astype(jnp.bfloat16)      # int8 {0,1} -> bf16, lossless
    acc_ref[...] += jnp.dot(a, hs_ref[...], preferred_element_type=jnp.float32)

    @pl.when(j == pl.num_programs(1) - 1)
    def _():
        o_ref[...] = acc_ref[...].astype(o_ref.dtype)


def _gin_fused_kernel(x_ref, adj_ref, win_ref, bin_ref, wh_ref, bh_ref,
                      wout_ref, bout_ref, mask_ref, eps_ref, o_ref,
                      a_vmem, h_vmem, *, num_layers, k):
    """Whole GIN stack in one kernel: A, h and all weights stay VMEM-resident."""
    # Widen the {0,1} int8 adjacency to bf16 once; reused by every layer.
    a_vmem[...] = adj_ref[...].astype(jnp.bfloat16)

    # Input projection + relu.
    h = jnp.dot(x_ref[...], win_ref[...], preferred_element_type=jnp.float32)
    h = jnp.maximum(h + bin_ref[...], 0.0)
    h_vmem[...] = h.astype(jnp.bfloat16)

    for i in range(num_layers):              # static & small -> unrolled
        z = jnp.dot(h_vmem[...], wh_ref[i], preferred_element_type=jnp.float32)
        z = z + bh_ref[i]
        # MaxK (top-k per row, rest zeroed); padded lanes excluded via mask.
        hv = z + mask_ref[...]
        thr = _maxk_threshold(hv, k)
        z = jnp.where(hv >= thr, z, 0.0)
        # dropout: identity at inference
        zb = z.astype(jnp.bfloat16)          # rounding point matches tiled path
        agg = jnp.dot(a_vmem[...], zb, preferred_element_type=jnp.float32)
        hnew = (1.0 + eps_ref[i]) * zb.astype(jnp.float32) + agg
        h_vmem[...] = hnew.astype(jnp.bfloat16)

    out = jnp.dot(h_vmem[...], wout_ref[...], preferred_element_type=jnp.float32)
    o_ref[...] = (out + bout_ref[...]).astype(o_ref.dtype)


# ----------------------------- pallas wrappers --------------------------------

def pallas_linear_act(x, w_t, b, mask, *, act, k=0, tm, out_dtype=jnp.bfloat16):
    """x:(N,Fin) bf16, w_t:(Fin,Fout) bf16, b/mask:(1,Fout) f32 -> (N,Fout)."""
    n, fin = x.shape
    fout = w_t.shape[1]
    assert n % tm == 0 and fin % _LANE == 0 and fout % _LANE == 0
    kern = functools.partial(_linear_act_kernel, act=act, k=k)
    return pl.pallas_call(
        kern,
        out_shape=jax.ShapeDtypeStruct((n, fout), out_dtype),
        grid=(n // tm,),
        in_specs=[
            pl.BlockSpec((tm, fin), lambda i: (i, 0)),
            pl.BlockSpec((fin, fout), lambda i: (0, 0)),
            pl.BlockSpec((1, fout), lambda i: (0, 0)),
            pl.BlockSpec((1, fout), lambda i: (0, 0)),
        ],
        out_specs=pl.BlockSpec((tm, fout), lambda i: (i, 0)),
        compiler_params=pltpu.CompilerParams(
            dimension_semantics=("parallel",),
            vmem_limit_bytes=_VMEM_LIMIT),
    )(x, w_t, b, mask)


def pallas_gin_aggregate(h, adj_i8, eps, *, tm, ts, out_dtype=jnp.bfloat16):
    """h:(N,F) bf16, adj_i8:(N,N) int8, eps:(1,) f32 -> (1+eps)*h + adj@h."""
    n, f = h.shape
    assert n % tm == 0 and n % ts == 0 and f % _LANE == 0
    assert adj_i8.shape == (n, n) and adj_i8.dtype == jnp.int8
    return pl.pallas_call(
        _gin_agg_kernel,
        out_shape=jax.ShapeDtypeStruct((n, f), out_dtype),
        grid=(n // tm, n // ts),
        in_specs=[
            pl.BlockSpec((tm, f), lambda i, j: (i, 0)),      # h, dst-row view
            pl.BlockSpec((tm, ts), lambda i, j: (i, j)),     # A tile (int8)
            pl.BlockSpec((ts, f), lambda i, j: (j, 0)),      # h, src-row view
            pl.BlockSpec(memory_space=pltpu.MemorySpace.SMEM),  # eps scalar
        ],
        out_specs=pl.BlockSpec((tm, f), lambda i, j: (i, 0)),
        scratch_shapes=[pltpu.VMEM((tm, f), jnp.float32)],
        compiler_params=pltpu.CompilerParams(
            dimension_semantics=("parallel", "arbitrary"),
            vmem_limit_bytes=_VMEM_LIMIT),
    )(h, adj_i8, h, eps)


def pallas_gin_fused(xp, prepped):
    """Single pallas_call for the whole stack (small-graph path)."""
    n_pad = prepped["n_pad"]
    hid_pad = prepped["hid_pad"]
    out_pad = prepped["out_pad"]
    kern = functools.partial(_gin_fused_kernel,
                             num_layers=prepped["num_layers"],
                             k=prepped["maxk"])
    vmem_spec = pl.BlockSpec(memory_space=pltpu.MemorySpace.VMEM)
    smem_spec = pl.BlockSpec(memory_space=pltpu.MemorySpace.SMEM)
    return pl.pallas_call(
        kern,
        out_shape=jax.ShapeDtypeStruct((n_pad, out_pad), jnp.float32),
        in_specs=[vmem_spec] * 9 + [smem_spec],
        out_specs=vmem_spec,
        scratch_shapes=[
            pltpu.VMEM((n_pad, n_pad), jnp.bfloat16),   # bf16 adjacency
            pltpu.VMEM((n_pad, hid_pad), jnp.bfloat16), # resident h
        ],
        compiler_params=pltpu.CompilerParams(vmem_limit_bytes=_VMEM_LIMIT),
    )(xp, prepped["adj"], prepped["win"], prepped["bin"],
      prepped["wh"], prepped["bh"], prepped["wout"], prepped["bout"],
      prepped["mask_hid"], prepped["eps"])


# ----------------------- one-time preparation (hoisted) ------------------------

def prepare_gin(adj, params, *, in_size, hid_size, out_size, maxk):
    """Pad/cast adjacency, weights, biases and the MaxK lane mask ONCE."""
    num_layers = len(params["w_t"])
    assert num_layers >= 1
    # k >= n_valid would collapse the MaxK threshold to -inf; forbid it.
    assert 0 < maxk < hid_size

    n = adj.shape[0]
    row_tile = 256 if n >= 512 else 128       # 256 matches v6e/v7x MXU width
    n_pad = _round_up(n, row_tile)
    fin_pad = _round_up(in_size, _LANE)
    hid_pad = _round_up(hid_size, _LANE)
    out_pad = _round_up(out_size, _LANE)

    adj_p = _pad_to(adj, (n_pad, n_pad)).astype(jnp.int8)     # {0,1}, lossless

    def prep_w(w_t, rows, cols):
        return _pad_to(w_t, (rows, cols)).astype(jnp.bfloat16)

    def prep_b(b, cols):
        return _pad_to(b.reshape(1, -1), (1, cols)).astype(jnp.float32)

    wh_list = [prep_w(w, hid_pad, hid_pad) for w in params["w_t"]]
    bh_list = [prep_b(b, hid_pad) for b in params["b"]]
    eps_list = [e.reshape(1).astype(jnp.float32) for e in params["eps"]]

    lane = jnp.arange(hid_pad)
    mask_hid = jnp.where(lane < hid_size, 0.0, _NEG).reshape(1, hid_pad)
    mask_hid = mask_hid.astype(jnp.float32)

    prepped = {
        "n": n, "n_pad": n_pad, "row_tile": row_tile,
        "hid_size": hid_size, "out_size": out_size,
        "fin_pad": fin_pad, "hid_pad": hid_pad, "out_pad": out_pad,
        "num_layers": num_layers, "maxk": maxk,
        "adj": adj_p,
        "win": prep_w(params["win_t"], fin_pad, hid_pad),
        "bin": prep_b(params["bin"], hid_pad),
        "wh": jnp.stack(wh_list),             # (L, H, H) bf16, for fused path
        "bh": jnp.stack(bh_list),             # (L, 1, H) f32
        "eps": jnp.concatenate(eps_list),     # (L,) f32, SMEM in fused path
        "wh_list": wh_list, "bh_list": bh_list, "eps_list": eps_list,
        "wout": prep_w(params["wout_t"], hid_pad, out_pad),
        "bout": prep_b(params["bout"], out_pad),
        "mask_hid": mask_hid,
        "zeros_hid": jnp.zeros((1, hid_pad), jnp.float32),
        "zeros_out": jnp.zeros((1, out_pad), jnp.float32),
    }

    # Rough VMEM estimate for the fused path (inputs + scratch + f32 temps).
    est = (n_pad * n_pad * (1 + 2)                 # int8 A in + bf16 A scratch
           + n_pad * hid_pad * 2                   # resident h scratch
           + n_pad * fin_pad * 2                   # x input
           + n_pad * out_pad * 4                   # output
           + (fin_pad * hid_pad + num_layers * hid_pad * hid_pad
              + hid_pad * out_pad) * 2             # weights
           + 8 * n_pad * hid_pad * 4)              # f32 intermediates headroom
    prepped["fits_fused"] = est <= _FUSE_VMEM_BUDGET
    return prepped


# ------------------------------- forward --------------------------------------

def gin_forward(x, prepped, *, force_tiled=False):
    """Pallas forward.  x:(N,in) f32.  Returns (N,out) f32."""
    n_pad, fin_pad = prepped["n_pad"], prepped["fin_pad"]
    xp = _pad_to(x, (n_pad, fin_pad)).astype(jnp.bfloat16)

    if prepped["fits_fused"] and not force_tiled:
        out = pallas_gin_fused(xp, prepped)
    else:
        tm = prepped["row_tile"]
        h = pallas_linear_act(xp, prepped["win"], prepped["bin"],
                              prepped["zeros_hid"], act="relu", tm=tm)
        for i in range(prepped["num_layers"]):
            h = pallas_linear_act(h, prepped["wh_list"][i], prepped["bh_list"][i],
                                  prepped["mask_hid"], act="maxk",
                                  k=prepped["maxk"], tm=tm)
            # dropout: identity at inference
            h = pallas_gin_aggregate(h, prepped["adj"], prepped["eps_list"][i],
                                     tm=tm, ts=tm)
        out = pallas_linear_act(h, prepped["wout"], prepped["bout"],
                                prepped["zeros_out"], act="none", tm=tm,
                                out_dtype=jnp.float32)
    return out[:prepped["n"], :prepped["out_size"]]


# --------------------------- param init (deterministic) ------------------------

def xavier_uniform(key, fan_out, fan_in):
    bound = math.sqrt(6.0 / (fan_in + fan_out))
    return jax.random.uniform(
        key, (fan_out, fan_in), jnp.float32, minval=-bound, maxval=bound)


def linear_bias(key, fan_in, fan_out):
    bound = 1.0 / math.sqrt(fan_in)
    return jax.random.uniform(
        key, (fan_out,), jnp.float32, minval=-bound, maxval=bound)


def make_params(key, in_size, hid_size, num_layers, out_size):
    keys = jax.random.split(key, 4 + 2 * num_layers)
    p = {
        "win_t": xavier_uniform(keys[0], hid_size, in_size).T,
        "bin": linear_bias(keys[1], in_size, hid_size),
        "wout_t": xavier_uniform(keys[2], out_size, hid_size).T,
        "bout": linear_bias(keys[3], hid_size, out_size),
        "w_t": [],
        "b": [],
        "eps": [],
    }
    for i in range(num_layers):
        p["w_t"].append(xavier_uniform(keys[4 + 2 * i], hid_size, hid_size).T)
        p["b"].append(linear_bias(keys[5 + 2 * i], hid_size, hid_size))
        p["eps"].append(jnp.zeros((1,), jnp.float32))   # DGL init_eps = 0
    return p


# --------------------------- pure-JAX reference --------------------------------

def ref_forward(x, adj, params, *, maxk):
    """f32 reference that mirrors the kernels' bf16 rounding points."""
    r = lambda a: a.astype(jnp.bfloat16).astype(jnp.float32)
    xb, ab = r(x), r(adj)
    h = r(jnp.maximum(xb @ r(params["win_t"]) + params["bin"], 0.0))
    for i in range(len(params["w_t"])):
        z = h @ r(params["w_t"][i]) + params["b"][i]
        thr = lax.top_k(z, maxk)[0][:, maxk - 1:maxk]
        z = r(jnp.where(z >= thr, z, 0.0))
        h = r((1.0 + params["eps"][i][0]) * z + ab @ z)
    return h @ r(params["wout_t"]) + params["bout"]


# ----------------------------------- main --------------------------------------

if __name__ == "__main__":
    IN_SIZE, HID_SIZE, NUM_LAYERS, OUT_SIZE = 16, 32, 2, 8
    MAXK = 8
    N_NODES = 200   # deliberately not a multiple of 128 -> exercises padding

    key = jax.random.PRNGKey(0)
    kx, ka, kp = jax.random.split(key, 3)

    x = jax.random.normal(kx, (N_NODES, IN_SIZE), jnp.float32)
    # deterministic sparse-ish directed graph as dense 0/1 adjacency
    adj = (jax.random.uniform(ka, (N_NODES, N_NODES)) < 0.05).astype(jnp.float32)

    params = make_params(kp, IN_SIZE, HID_SIZE, NUM_LAYERS, OUT_SIZE)
    prepped = prepare_gin(adj, params, in_size=IN_SIZE, hid_size=HID_SIZE,
                          out_size=OUT_SIZE, maxk=MAXK)

    # Fused (small-graph) path and tiled (large-graph) path both exercised.
    out_fused = jax.block_until_ready(gin_forward(x, prepped))
    out_tiled = jax.block_until_ready(gin_forward(x, prepped, force_tiled=True))

    ref = ref_forward(x, adj, params, maxk=MAXK)
    assert out_fused.shape == (N_NODES, OUT_SIZE)
    assert out_tiled.shape == (N_NODES, OUT_SIZE)

    scale = float(jnp.max(jnp.abs(ref))) + 1e-6
    tol = 2e-3 * scale + 1e-2
    err_f = float(jnp.max(jnp.abs(out_fused - ref)))
    err_t = float(jnp.max(jnp.abs(out_tiled - ref)))
    assert err_f <= tol, f"fused path mismatch: {err_f} (scale {scale})"
    assert err_t <= tol, f"tiled path mismatch: {err_t} (scale {scale})"

    print("KERNEL_OK")
</pallas_src>

<mosaic_0001>
module attributes {stable_mosaic.version = 11 : i64} {
  func.func @_gin_fused_kernel(%arg0: memref<256x128xbf16, #tpu.memory_space<vmem>>, %arg1: memref<256x256xi8, #tpu.memory_space<vmem>>, %arg2: memref<128x128xbf16, #tpu.memory_space<vmem>>, %arg3: memref<1x128xf32, #tpu.memory_space<vmem>>, %arg4: memref<2x128x128xbf16, #tpu.memory_space<vmem>>, %arg5: memref<2x1x128xf32, #tpu.memory_space<vmem>>, %arg6: memref<128x128xbf16, #tpu.memory_space<vmem>>, %arg7: memref<1x128xf32, #tpu.memory_space<vmem>>, %arg8: memref<1x128xf32, #tpu.memory_space<vmem>>, %arg9: memref<2xf32, #tpu.memory_space<smem>>, %arg10: memref<256x128xf32, #tpu.memory_space<vmem>>, %arg11: memref<256x256xbf16, #tpu.memory_space<vmem>>, %arg12: memref<256x128xbf16, #tpu.memory_space<vmem>>) attributes {dimension_semantics = [], scalar_prefetch = 0 : i64, scratch_operands = 2 : i64, tpu.core_type = #tpu.core_type<tc>} {
    %c0 = arith.constant 0 : index
    %c0_0 = arith.constant 0 : index
    %0 = vector.load %arg1[%c0, %c0_0] : memref<256x256xi8, #tpu.memory_space<vmem>>, vector<256x256xi8>
    %1 = arith.sitofp %0 : vector<256x256xi8> to vector<256x256xbf16>
    %c0_1 = arith.constant 0 : index
    %c0_2 = arith.constant 0 : index
    %2 = vector.load %arg11[%c0_1, %c0_2] : memref<256x256xbf16, #tpu.memory_space<vmem>>, vector<256x256xbf16>
    tpu.vector_store %arg11[%c0_1, %c0_2], %1 {strides = array<i32>} : memref<256x256xbf16, #tpu.memory_space<vmem>>, vector<256x256xbf16>,
    %c0_3 = arith.constant 0 : index
    %c0_4 = arith.constant 0 : index
    %3 = vector.load %arg0[%c0_3, %c0_4] : memref<256x128xbf16, #tpu.memory_space<vmem>>, vector<256x128xbf16>
    %c0_5 = arith.constant 0 : index
    %c0_6 = arith.constant 0 : index
    %4 = vector.load %arg2[%c0_5, %c0_6] : memref<128x128xbf16, #tpu.memory_space<vmem>>, vector<128x128xbf16>
    %cst = arith.constant dense<0.000000e+00> : vector<256x128xf32>
    %5 = tpu.matmul %3, %4, %cst {dimension_numbers = #tpu.dot_dimension_numbers<[1], [0], [0], [1], [0, 0, 1, 1], [], []>} : vector<256x128xbf16>, vector<128x128xbf16>, vector<256x128xf32> -> vector<256x128xf32>
    %c0_7 = arith.constant 0 : index
    %c0_8 = arith.constant 0 : index
    %6 = vector.load %arg3[%c0_7, %c0_8] : memref<1x128xf32, #tpu.memory_space<vmem>>, vector<1x128xf32>
    %7 = vector.broadcast %6 : vector<1x128xf32> to vector<256x128xf32>
    %8 = arith.addf %5, %7 : vector<256x128xf32>
    %cst_9 = arith.constant 0.000000e+00 : f32
    %9 = vector.broadcast %cst_9 : f32 to vector<256x128xf32>
    %10 = arith.maximumf %8, %9 : vector<256x128xf32>
    %11 = arith.truncf %10 : vector<256x128xf32> to vector<256x128xbf16>
    %c0_10 = arith.constant 0 : index
    %c0_11 = arith.constant 0 : index
    %12 = vector.load %arg12[%c0_10, %c0_11] : memref<256x128xbf16, #tpu.memory_space<vmem>>, vector<256x128xbf16>
    tpu.vector_store %arg12[%c0_10, %c0_11], %11 {strides = array<i32>} : memref<256x128xbf16, #tpu.memory_space<vmem>>, vector<256x128xbf16>,
    %c0_12 = arith.constant 0 : index
    %c0_13 = arith.constant 0 : index
    %13 = vector.load %arg12[%c0_12, %c0_13] : memref<256x128xbf16, #tpu.memory_space<vmem>>, vector<256x128xbf16>
    %c0_14 = arith.constant 0 : index
    %c0_15 = arith.constant 0 : index
    %c0_16 = arith.constant 0 : index
    %14 = vector.load %arg4[%c0_14, %c0_15, %c0_16] : memref<2x128x128xbf16, #tpu.memory_space<vmem>>, vector<1x128x128xbf16>
    %15 = vector.shape_cast %14 : vector<1x128x128xbf16> to vector<128x128xbf16>
    %cst_17 = arith.constant dense<0.000000e+00> : vector<256x128xf32>
    %16 = tpu.matmul %13, %15, %cst_17 {dimension_numbers = #tpu.dot_dimension_numbers<[1], [0], [0], [1], [0, 0, 1, 1], [], []>} : vector<256x128xbf16>, vector<128x128xbf16>, vector<256x128xf32> -> vector<256x128xf32>
    %c0_18 = arith.constant 0 : index
    %c0_19 = arith.constant 0 : index
    %c0_20 = arith.constant 0 : index
    %17 = vector.load %arg5[%c0_18, %c0_19, %c0_20] : memref<2x1x128xf32, #tpu.memory_space<vmem>>, vector<1x1x128xf32>
    %18 = vector.shape_cast %17 : vector<1x1x128xf32> to vector<1x128xf32>
    %19 = vector.broadcast %18 : vector<1x128xf32> to vector<256x128xf32>
    %20 = arith.addf %16, %19 : vector<256x128xf32>
    %c0_21 = arith.constant 0 : index
    %c0_22 = arith.constant 0 : index
    %21 = vector.load %arg8[%c0_21, %c0_22] : memref<1x128xf32, #tpu.memory_space<vmem>>, vector<1x128xf32>
    %22 = vector.broadcast %21 : vector<1x128xf32> to vector<256x128xf32>
    %23 = arith.addf %20, %22 : vector<256x128xf32>
    %cst_23 = arith.constant -3.40282347E+38 : f32
    %24 = vector.broadcast %cst_23 : f32 to vector<256x1xf32>
    %c0_i32 = arith.constant 0 : i32
    %cst_24 = arith.constant dense<0xFF800000> : vector<256xf32>
    %25 = vector.multi_reduction <maximumf>, %23, %cst_24 [1] : vector<256x128xf32> to vector<256xf32>
    %26 = vector.shape_cast %25 : vector<256xf32> to vector<256x1xf32>
    %27 = vector.broadcast %26 : vector<256x1xf32> to vector<256x128xf32>
    %28 = arith.cmpf oeq, %23, %27 : vector<256x128xf32>
    %cst_25 = arith.constant -3.40282347E+38 : f32
    %29 = vector.broadcast %cst_25 : f32 to vector<256x128xf32>
    %30 = arith.select %28, %29, %23 : vector<256x128xi1>, vector<256x128xf32>
    %c1_i32 = arith.constant 1 : i32
    %cst_26 = arith.constant dense<0xFF800000> : vector<256xf32>
    %31 = vector.multi_reduction <maximumf>, %30, %cst_26 [1] : vector<256x128xf32> to vector<256xf32>
    %32 = vector.shape_cast %31 : vector<256xf32> to vector<256x1xf32>
    %33 = vector.broadcast %32 : vector<256x1xf32> to vector<256x128xf32>
    %34 = arith.cmpf oeq, %30, %33 : vector<256x128xf32>
    %cst_27 = arith.constant -3.40282347E+38 : f32
    %35 = vector.broadcast %cst_27 : f32 to vector<256x128xf32>
    %36 = arith.select %34, %35, %30 : vector<256x128xi1>, vector<256x128xf32>
    %c2_i32 = arith.constant 2 : i32
    %cst_28 = arith.constant dense<0xFF800000> : vector<256xf32>
    %37 = vector.multi_reduction <maximumf>, %36, %cst_28 [1] : vector<256x128xf32> to vector<256xf32>
    %38 = vector.shape_cast %37 : vector<256xf32> to vector<256x1xf32>
    %39 = vector.broadcast %38 : vector<256x1xf32> to vector<256x128xf32>
    %40 = arith.cmpf oeq, %36, %39 : vector<256x128xf32>
    %cst_29 = arith.constant -3.40282347E+38 : f32
    %41 = vector.broadcast %cst_29 : f32 to vector<256x128xf32>
    %42 = arith.select %40, %41, %36 : vector<256x128xi1>, vector<256x128xf32>
    %c3_i32 = arith.constant 3 : i32
    %cst_30 = arith.constant dense<0xFF800000> : vector<256xf32>
    %43 = vector.multi_reduction <maximumf>, %42, %cst_30 [1] : vector<256x128xf32> to vector<256xf32>
    %44 = vector.shape_cast %43 : vector<256xf32> to vector<256x1xf32>
    %45 = vector.broadcast %44 : vector<256x1xf32> to vector<256x128xf32>
    %46 = arith.cmpf oeq, %42, %45 : vector<256x128xf32>
    %cst_31 = arith.constant -3.40282347E+38 : f32
    %47 = vector.broadcast %cst_31 : f32 to vector<256x128xf32>
    %48 = arith.select %46, %47, %42 : vector<256x128xi1>, vector<256x128xf32>
    %c4_i32 = arith.constant 4 : i32
    %cst_32 = arith.constant dense<0xFF800000> : vector<256xf32>
    %49 = vector.multi_reduction <maximumf>, %48, %cst_32 [1] : vector<256x128xf32> to vector<256xf32>
    %50 = vector.shape_cast %49 : vector<256xf32> to vector<256x1xf32>
    %51 = vector.broadcast %50 : vector<256x1xf32> to vector<256x128xf32>
    %52 = arith.cmpf oeq, %48, %51 : vector<256x128xf32>
    %cst_33 = arith.constant -3.40282347E+38 : f32
    %53 = vector.broadcast %cst_33 : f32 to vector<256x128xf32>
    %54 = arith.select %52, %53, %48 : vector<256x128xi1>, vector<256x128xf32>
    %c5_i32 = arith.constant 5 : i32
    %cst_34 = arith.constant dense<0xFF800000> : vector<256xf32>
    %55 = vector.multi_reduction <maximumf>, %54, %cst_34 [1] : vector<256x128xf32> to vector<256xf32>
    %56 = vector.shape_cast %55 : vector<256xf32> to vector<256x1xf32>
    %57 = vector.broadcast %56 : vector<256x1xf32> to vector<256x128xf32>
    %58 = arith.cmpf oeq, %54, %57 : vector<256x128xf32>
    %cst_35 = arith.constant -3.40282347E+38 : f32
    %59 = vector.broadcast %cst_35 : f32 to vector<256x128xf32>
    %60 = arith.select %58, %59, %54 : vector<256x128xi1>, vector<256x128xf32>
    %c6_i32 = arith.constant 6 : i32
    %cst_36 = arith.constant dense<0xFF800000> : vector<256xf32>
    %61 = vector.multi_reduction <maximumf>, %60, %cst_36 [1] : vector<256x128xf32> to vector<256xf32>
    %62 = vector.shape_cast %61 : vector<256xf32> to vector<256x1xf32>
    %63 = vector.broadcast %62 : vector<256x1xf32> to vector<256x128xf32>
    %64 = arith.cmpf oeq, %60, %63 : vector<256x128xf32>
    %cst_37 = arith.constant -3.40282347E+38 : f32
    %65 = vector.broadcast %cst_37 : f32 to vector<256x128xf32>
    %66 = arith.select %64, %65, %60 : vector<256x128xi1>, vector<256x128xf32>
    %c7_i32 = arith.constant 7 : i32
    %cst_38 = arith.constant dense<0xFF800000> : vector<256xf32>
    %67 = vector.multi_reduction <maximumf>, %66, %cst_38 [1] : vector<256x128xf32> to vector<256xf32>
    %68 = vector.shape_cast %67 : vector<256xf32> to vector<256x1xf32>
    %69 = vector.broadcast %68 : vector<256x1xf32> to vector<256x128xf32>
    %70 = arith.cmpf oeq, %66, %69 : vector<256x128xf32>
    %cst_39 = arith.constant -3.40282347E+38 : f32
    %71 = vector.broadcast %cst_39 : f32 to vector<256x128xf32>
    %72 = arith.select %70, %71, %66 : vector<256x128xi1>, vector<256x128xf32>
    %73 = vector.broadcast %68 : vector<256x1xf32> to vector<256x128xf32>
    %74 = arith.cmpf oge, %23, %73 : vector<256x128xf32>
    %cst_40 = arith.constant 0.000000e+00 : f32
    %75 = vector.broadcast %cst_40 : f32 to vector<256x128xf32>
    %76 = arith.select %74, %20, %75 : vector<256x128xi1>, vector<256x128xf32>
    %77 = arith.truncf %76 : vector<256x128xf32> to vector<256x128xbf16>
    %c0_41 = arith.constant 0 : index
    %c0_42 = arith.constant 0 : index
    %78 = vector.load %arg11[%c0_41, %c0_42] : memref<256x256xbf16, #tpu.memory_space<vmem>>, vector<256x256xbf16>
    %cst_43 = arith.constant dense<0.000000e+00> : vector<256x128xf32>
    %79 = tpu.matmul %78, %77, %cst_43 {dimension_numbers = #tpu.dot_dimension_numbers<[1], [0], [0], [1], [0, 0, 1, 1], [], []>} : vector<256x256xbf16>, vector<256x128xbf16>, vector<256x128xf32> -> vector<256x128xf32>
    %c0_44 = arith.constant 0 : index
    %80 = memref.load %arg9[%c0_44] : memref<2xf32, #tpu.memory_space<smem>>
    %cst_45 = arith.constant 1.000000e+00 : f32
    %81 = arith.addf %cst_45, %80 : f32
    %82 = arith.extf %77 : vector<256x128xbf16> to vector<256x128xf32>
    %83 = vector.broadcast %81 : f32 to vector<256x128xf32>
    %84 = arith.mulf %83, %82 : vector<256x128xf32>
    %85 = arith.addf %84, %79 : vector<256x128xf32>
    %86 = arith.truncf %85 : vector<256x128xf32> to vector<256x128xbf16>
    %c0_46 = arith.constant 0 : index
    %c0_47 = arith.constant 0 : index
    %87 = vector.load %arg12[%c0_46, %c0_47] : memref<256x128xbf16, #tpu.memory_space<vmem>>, vector<256x128xbf16>
    tpu.vector_store %arg12[%c0_46, %c0_47], %86 {strides = array<i32>} : memref<256x128xbf16, #tpu.memory_space<vmem>>, vector<256x128xbf16>,
    %c0_48 = arith.constant 0 : index
    %c0_49 = arith.constant 0 : index
    %88 = vector.load %arg12[%c0_48, %c0_49] : memref<256x128xbf16, #tpu.memory_space<vmem>>, vector<256x128xbf16>
    %c1 = arith.constant 1 : index
    %c0_50 = arith.constant 0 : index
    %c0_51 = arith.constant 0 : index
    %89 = vector.load %arg4[%c1, %c0_50, %c0_51] : memref<2x128x128xbf16, #tpu.memory_space<vmem>>, vector<1x128x128xbf16>
    %90 = vector.shape_cast %89 : vector<1x128x128xbf16> to vector<128x128xbf16>
    %cst_52 = arith.constant dense<0.000000e+00> : vector<256x128xf32>
    %91 = tpu.matmul %88, %90, %cst_52 {dimension_numbers = #tpu.dot_dimension_numbers<[1], [0], [0], [1], [0, 0, 1, 1], [], []>} : vector<256x128xbf16>, vector<128x128xbf16>, vector<256x128xf32> -> vector<256x128xf32>
    %c1_53 = arith.constant 1 : index
    %c0_54 = arith.constant 0 : index
    %c0_55 = arith.constant 0 : index
    %92 = vector.load %arg5[%c1_53, %c0_54, %c0_55] : memref<2x1x128xf32, #tpu.memory_space<vmem>>, vector<1x1x128xf32>
    %93 = vector.shape_cast %92 : vector<1x1x128xf32> to vector<1x128xf32>
    %94 = vector.broadcast %93 : vector<1x128xf32> to vector<256x128xf32>
    %95 = arith.addf %91, %94 : vector<256x128xf32>
    %c0_56 = arith.constant 0 : index
    %c0_57 = arith.constant 0 : index
    %96 = vector.load %arg8[%c0_56, %c0_57] : memref<1x128xf32, #tpu.memory_space<vmem>>, vector<1x128xf32>
    %97 = vector.broadcast %96 : vector<1x128xf32> to vector<256x128xf32>
    %98 = arith.addf %95, %97 : vector<256x128xf32>
    %cst_58 = arith.constant -3.40282347E+38 : f32
    %99 = vector.broadcast %cst_58 : f32 to vector<256x1xf32>
    %c0_i32_59 = arith.constant 0 : i32
    %cst_60 = arith.constant dense<0xFF800000> : vector<256xf32>
    %100 = vector.multi_reduction <maximumf>, %98, %cst_60 [1] : vector<256x128xf32> to vector<256xf32>
    %101 = vector.shape_cast %100 : vector<256xf32> to vector<256x1xf32>
    %102 = vector.broadcast %101 : vector<256x1xf32> to vector<256x128xf32>
    %103 = arith.cmpf oeq, %98, %102 : vector<256x128xf32>
    %cst_61 = arith.constant -3.40282347E+38 : f32
    %104 = vector.broadcast %cst_61 : f32 to vector<256x128xf32>
    %105 = arith.select %103, %104, %98 : vector<256x128xi1>, vector<256x128xf32>
    %c1_i32_62 = arith.constant 1 : i32
    %cst_63 = arith.constant dense<0xFF800000> : vector<256xf32>
    %106 = vector.multi_reduction <maximumf>, %105, %cst_63 [1] : vector<256x128xf32> to vector<256xf32>
    %107 = vector.shape_cast %106 : vector<256xf32> to vector<256x1xf32>
    %108 = vector.broadcast %107 : vector<256x1xf32> to vector<256x128xf32>
    %109 = arith.cmpf oeq, %105, %108 : vector<256x128xf32>
    %cst_64 = arith.constant -3.40282347E+38 : f32
    %110 = vector.broadcast %cst_64 : f32 to vector<256x128xf32>
    %111 = arith.select %109, %110, %105 : vector<256x128xi1>, vector<256x128xf32>
    %c2_i32_65 = arith.constant 2 : i32
    %cst_66 = arith.constant dense<0xFF800000> : vector<256xf32>
    %112 = vector.multi_reduction <maximumf>, %111, %cst_66 [1] : vector<256x128xf32> to vector<256xf32>
    %113 = vector.shape_cast %112 : vector<256xf32> to vector<256x1xf32>
    %114 = vector.broadcast %113 : vector<256x1xf32> to vector<256x128xf32>
    %115 = arith.cmpf oeq, %111, %114 : vector<256x128xf32>
    %cst_67 = arith.constant -3.40282347E+38 : f32
    %116 = vector.broadcast %cst_67 : f32 to vector<256x128xf32>
    %117 = arith.select %115, %116, %111 : vector<256x128xi1>, vector<256x128xf32>
    %c3_i32_68 = arith.constant 3 : i32
    %cst_69 = arith.constant dense<0xFF800000> : vector<256xf32>
    %118 = vector.multi_reduction <maximumf>, %117, %cst_69 [1] : vector<256x128xf32> to vector<256xf32>
    %119 = vector.shape_cast %118 : vector<256xf32> to vector<256x1xf32>
    %120 = vector.broadcast %119 : vector<256x1xf32> to vector<256x128xf32>
    %121 = arith.cmpf oeq, %117, %120 : vector<256x128xf32>
    %cst_70 = arith.constant -3.40282347E+38 : f32
    %122 = vector.broadcast %cst_70 : f32 to vector<256x128xf32>
    %123 = arith.select %121, %122, %117 : vector<256x128xi1>, vector<256x128xf32>
    %c4_i32_71 = arith.constant 4 : i32
    %cst_72 = arith.constant dense<0xFF800000> : vector<256xf32>
    %124 = vector.multi_reduction <maximumf>, %123, %cst_72 [1] : vector<256x128xf32> to vector<256xf32>
    %125 = vector.shape_cast %124 : vector<256xf32> to vector<256x1xf32>
    %126 = vector.broadcast %125 : vector<256x1xf32> to vector<256x128xf32>
    %127 = arith.cmpf oeq, %123, %126 : vector<256x128xf32>
    %cst_73 = arith.constant -3.40282347E+38 : f32
    %128 = vector.broadcast %cst_73 : f32 to vector<256x128xf32>
    %129 = arith.select %127, %128, %123 : vector<256x128xi1>, vector<256x128xf32>
    %c5_i32_74 = arith.constant 5 : i32
    %cst_75 = arith.constant dense<0xFF800000> : vector<256xf32>
    %130 = vector.multi_reduction <maximumf>, %129, %cst_75 [1] : vector<256x128xf32> to vector<256xf32>
    %131 = vector.shape_cast %130 : vector<256xf32> to vector<256x1xf32>
    %132 = vector.broadcast %131 : vector<256x1xf32> to vector<256x128xf32>
    %133 = arith.cmpf oeq, %129, %132 : vector<256x128xf32>
    %cst_76 = arith.constant -3.40282347E+38 : f32
    %134 = vector.broadcast %cst_76 : f32 to vector<256x128xf32>
    %135 = arith.select %133, %134, %129 : vector<256x128xi1>, vector<256x128xf32>
    %c6_i32_77 = arith.constant 6 : i32
    %cst_78 = arith.constant dense<0xFF800000> : vector<256xf32>
    %136 = vector.multi_reduction <maximumf>, %135, %cst_78 [1] : vector<256x128xf32> to vector<256xf32>
    %137 = vector.shape_cast %136 : vector<256xf32> to vector<256x1xf32>
    %138 = vector.broadcast %137 : vector<256x1xf32> to vector<256x128xf32>
    %139 = arith.cmpf oeq, %135, %138 : vector<256x128xf32>
    %cst_79 = arith.constant -3.40282347E+38 : f32
    %140 = vector.broadcast %cst_79 : f32 to vector<256x128xf32>
    %141 = arith.select %139, %140, %135 : vector<256x128xi1>, vector<256x128xf32>
    %c7_i32_80 = arith.constant 7 : i32
    %cst_81 = arith.constant dense<0xFF800000> : vector<256xf32>
    %142 = vector.multi_reduction <maximumf>, %141, %cst_81 [1] : vector<256x128xf32> to vector<256xf32>
    %143 = vector.shape_cast %142 : vector<256xf32> to vector<256x1xf32>
    %144 = vector.broadcast %143 : vector<256x1xf32> to vector<256x128xf32>
    %145 = arith.cmpf oeq, %141, %144 : vector<256x128xf32>
    %cst_82 = arith.constant -3.40282347E+38 : f32
    %146 = vector.broadcast %cst_82 : f32 to vector<256x128xf32>
    %147 = arith.select %145, %146, %141 : vector<256x128xi1>, vector<256x128xf32>
    %148 = vector.broadcast %143 : vector<256x1xf32> to vector<256x128xf32>
    %149 = arith.cmpf oge, %98, %148 : vector<256x128xf32>
    %cst_83 = arith.constant 0.000000e+00 : f32
    %150 = vector.broadcast %cst_83 : f32 to vector<256x128xf32>
    %151 = arith.select %149, %95, %150 : vector<256x128xi1>, vector<256x128xf32>
    %152 = arith.truncf %151 : vector<256x128xf32> to vector<256x128xbf16>
    %c0_84 = arith.constant 0 : index
    %c0_85 = arith.constant 0 : index
    %153 = vector.load %arg11[%c0_84, %c0_85] : memref<256x256xbf16, #tpu.memory_space<vmem>>, vector<256x256xbf16>
    %cst_86 = arith.constant dense<0.000000e+00> : vector<256x128xf32>
    %154 = tpu.matmul %153, %152, %cst_86 {dimension_numbers = #tpu.dot_dimension_numbers<[1], [0], [0], [1], [0, 0, 1, 1], [], []>} : vector<256x256xbf16>, vector<256x128xbf16>, vector<256x128xf32> -> vector<256x128xf32>
    %c1_87 = arith.constant 1 : index
    %155 = memref.load %arg9[%c1_87] : memref<2xf32, #tpu.memory_space<smem>>
    %cst_88 = arith.constant 1.000000e+00 : f32
    %156 = arith.addf %cst_88, %155 : f32
    %157 = arith.extf %152 : vector<256x128xbf16> to vector<256x128xf32>
    %158 = vector.broadcast %156 : f32 to vector<256x128xf32>
    %159 = arith.mulf %158, %157 : vector<256x128xf32>
    %160 = arith.addf %159, %154 : vector<256x128xf32>
    %161 = arith.truncf %160 : vector<256x128xf32> to vector<256x128xbf16>
    %c0_89 = arith.constant 0 : index
    %c0_90 = arith.constant 0 : index
    %162 = vector.load %arg12[%c0_89, %c0_90] : memref<256x128xbf16, #tpu.memory_space<vmem>>, vector<256x128xbf16>
    tpu.vector_store %arg12[%c0_89, %c0_90], %161 {strides = array<i32>} : memref<256x128xbf16, #tpu.memory_space<vmem>>, vector<256x128xbf16>,
    %c0_91 = arith.constant 0 : index
    %c0_92 = arith.constant 0 : index
    %163 = vector.load %arg12[%c0_91, %c0_92] : memref<256x128xbf16, #tpu.memory_space<vmem>>, vector<256x128xbf16>
    %c0_93 = arith.constant 0 : index
    %c0_94 = arith.constant 0 : index
    %164 = vector.load %arg6[%c0_93, %c0_94] : memref<128x128xbf16, #tpu.memory_space<vmem>>, vector<128x128xbf16>
    %cst_95 = arith.constant dense<0.000000e+00> : vector<256x128xf32>
    %165 = tpu.matmul %163, %164, %cst_95 {dimension_numbers = #tpu.dot_dimension_numbers<[1], [0], [0], [1], [0, 0, 1, 1], [], []>} : vector<256x128xbf16>, vector<128x128xbf16>, vector<256x128xf32> -> vector<256x128xf32>
    %c0_96 = arith.constant 0 : index
    %c0_97 = arith.constant 0 : index
    %166 = vector.load %arg7[%c0_96, %c0_97] : memref<1x128xf32, #tpu.memory_space<vmem>>, vector<1x128xf32>
    %167 = vector.broadcast %166 : vector<1x128xf32> to vector<256x128xf32>
    %168 = arith.addf %165, %167 : vector<256x128xf32>
    %c0_98 = arith.constant 0 : index
    %c0_99 = arith.constant 0 : index
    %169 = vector.load %arg10[%c0_98, %c0_99] : memref<256x128xf32, #tpu.memory_space<vmem>>, vector<256x128xf32>
    tpu.vector_store %arg10[%c0_98, %c0_99], %168 {strides = array<i32>} : memref<256x128xf32, #tpu.memory_space<vmem>>, vector<256x128xf32>,
    return
  }
}

</mosaic_0001>

<bundles_post_ra>
// kernel: tpu_custom_call.1
= control target key start
LH: loop header
LB: loop body
LE: loop exit
PB: predicated region body
PF: predicated region fallthrough
CT: control target
= control target key end

     0   :  { %15 = vsyncpa [#allocation5], 0  ;;  %s8750_s0 = inlined_call_operand.hbm [shape: bf16[256,128], index: 0, kind: input, shape index: {}]   ;;  %s8751_s1 = inlined_call_operand.hbm [shape: s8[256,256], index: 1, kind: input, shape index: {}]   ;;  %s8752_s2 = inlined_call_operand.hbm [shape: bf16[128,128], index: 2, kind: input, shape index: {}]   ;;  %s8753_s3 = inlined_call_operand.vmem [shape: f32[1,128], index: 3, kind: input, shape index: {}]   ;;  %s8754_s4 = inlined_call_operand.hbm [shape: bf16[2,128,128], index: 4, kind: input, shape index: {}]   ;;  %s8755_s5 = inlined_call_operand.vmem [shape: f32[2,1,128], index: 5, kind: input, shape index: {}]   ;;  %s8756_s6 = inlined_call_operand.hbm [shape: bf16[128,128], index: 6, kind: input, shape index: {}]   ;;  %s8757_s7 = inlined_call_operand.vmem [shape: f32[1,128], index: 7, kind: input, shape index: {}]   ;;  %s8758_s8 = inlined_call_operand.vmem [shape: f32[1,128], index: 8, kind: input, shape index: {}]   ;;  %s8759_s9 = inlined_call_operand.vmem [shape: f32[2], index: 9, kind: input, shape index: {}]   ;;  %s8760_s10 = inlined_call_operand.hbm [shape: f32[256,128], index: 10, kind: output, shape index: {}]  }
   0x1   :  { %16 = vsyncpa [#allocation9], 0 }
   0x2   :  { %17 = vsyncpa [#allocation12], 0 }
   0x3   :  { %18 = vsyncpa [#allocation7], 0 }
   0x4   :  { %19 = vsyncpa [#allocation6], 0  ;;  %s5105_s13 = smov [#allocation8]   ;;  %s4951_s17 = scalar_lea.hbm %s8751_s1, 2048 }
   0x5   :  { %s37_s14 = sshll.u32 %s5105_s13, 4  ;;  %p4952_p0 = scmp.ne.s32.totalorder %s8751_s1, %s4951_s17  ;;  %s38_s14 = int_to_ptr.vmem [resolvable:$true] %s37_s14 }
   0x6   :  { %p4955_p1 = scmp.lt.u32.totalorder %s4951_s17, %s8751_s1 }
   0x8   :  { %p4957_p2 = pnand %p4955_p1, %p4952_p0 }
   0xa   :  { %4960 = shalt.err (!%p4957_p2)
}
   0xb   :  { %s4961_s22 = scalar_lea.vmem %s38_s14, 2048  ;;  %p4966_p4 = scmp.lt.s32.totalorder %s38_s14, %s38_s14 }
   0xc   :  { %p4962_p3 = scmp.ne.s32.totalorder %s38_s14, %s4961_s22  ;;  %p4967_p5 = scmp.lt.s32.totalorder %s4961_s22, %s4961_s22 }
   0xe   :  { %p4968_p6 = por %p4967_p5, %p4966_p4 }
  0x10   :  { %p4969_p7 = pnand %p4968_p6, %p4962_p3 }
  0x12   :  { %4972 = shalt.err (!%p4969_p7)
}
  0x13   :  { %s5106_s23 = smov 256   ;;  %s5107_s24 = smov 16  }
  0x14   :  { %43 = dma.hbm_to_vmem [thread:$0]  %s8751_s1, 2048, %s38_s14, [#allocation9], %s5106_s23, %s5106_s23, %s5107_s24  }
  0x15   :  { %s5108_s27 = smov [#allocation11]   ;;  %s5109_s29 = smov [#allocation4]  }
  0x16   :  { %s63_s28 = sshll.u32 %s5108_s27, 4  ;;  %s25_s30 = sshll.u32 %s5109_s29, 4  ;;  %s64_s28 = int_to_ptr.vmem [resolvable:$true] %s63_s28  ;;  %s26_s30 = int_to_ptr.vmem [resolvable:$true] %s25_s30 }
  0x17   :  { %s4973_s13 = scalar_lea.hbm %s8754_s4, 2048 }
  0x18   :  { %p4974_p8 = scmp.ne.s32.totalorder %s8754_s4, %s4973_s13  ;;  %p4977_p9 = scmp.lt.u32.totalorder %s4973_s13, %s8754_s4 }
  0x1a   :  { %p4979_p10 = pnand %p4977_p9, %p4974_p8 }
  0x1c   :  { %4982 = shalt.err (!%p4979_p10)
}
  0x1d   :  { %s4983_s1 = scalar_lea.vmem %s64_s28, 2048  ;;  %p4988_p12 = scmp.lt.s32.totalorder %s64_s28, %s64_s28 }
  0x1e   :  { %p4984_p11 = scmp.ne.s32.totalorder %s64_s28, %s4983_s1  ;;  %p4989_p13 = scmp.lt.s32.totalorder %s4983_s1, %s4983_s1 }
  0x20   :  { %p4990_p0 = por %p4989_p13, %p4988_p12 }
  0x22   :  { %p4991_p1 = pnand %p4990_p0, %p4984_p11 }
  0x24   :  { %4994 = shalt.err (!%p4991_p1)
}
  0x25   :  { %s5110_s14 = smov 64   ;;  %s5111_s19 = smov 4  }
  0x26   :  { %69 = dma.hbm_to_vmem [thread:$0]  %s8754_s4, 2048, %s64_s28, [#allocation12], %s5110_s14, %s5110_s14, %s5111_s19  }
  0x27   :  { %s4995_s24 = scalar_lea.hbm %s8750_s0, 2048 }
  0x28   :  { %p4996_p2 = scmp.ne.s32.totalorder %s8750_s0, %s4995_s24  ;;  %p4999_p3 = scmp.lt.u32.totalorder %s4995_s24, %s8750_s0 }
  0x2a   :  { %p5001_p4 = pnand %p4999_p3, %p4996_p2 }
  0x2c   :  { %5004 = shalt.err (!%p5001_p4)
}
  0x2d   :  { %s5005_s11 = scalar_lea.vmem %s26_s30, 2048  ;;  %p5010_p6 = scmp.lt.s32.totalorder %s26_s30, %s26_s30 }
  0x2e   :  { %p5006_p5 = scmp.ne.s32.totalorder %s26_s30, %s5005_s11  ;;  %p5011_p7 = scmp.lt.s32.totalorder %s5005_s11, %s5005_s11 }
  0x30   :  { %p5012_p8 = por %p5011_p7, %p5010_p6 }
  0x32   :  { %p5013_p9 = pnand %p5012_p8, %p5006_p5 }
  0x34   :  { %5016 = shalt.err (!%p5013_p9)
}
  0x35   :  { %31 = dma.hbm_to_vmem [thread:$0]  %s8750_s0, 2048, %s26_s30, [#allocation5], %s5110_s14, %s5110_s14, %s5111_s19  }
  0x36   :  { %s5112_s12 = smov [#allocation10]   ;;  %s5113_s15 = smov [#allocation13]  }
  0x37   :  { %s49_s13 = sshll.u32 %s5112_s12, 4  ;;  %s77_s16 = sshll.u32 %s5113_s15, 4  ;;  %s50_s13 = int_to_ptr.vmem [resolvable:$true] %s49_s13  ;;  %s78_s16 = int_to_ptr.vmem [resolvable:$true] %s77_s16 }
  0x38   :  { %s5017_s1 = scalar_lea.hbm %s8752_s2, 1024 }
  0x39   :  { %p5018_p10 = scmp.ne.s32.totalorder %s8752_s2, %s5017_s1  ;;  %p5021_p11 = scmp.lt.u32.totalorder %s5017_s1, %s8752_s2 }
  0x3b   :  { %p5023_p12 = pnand %p5021_p11, %p5018_p10 }
  0x3d   :  { %5026 = shalt.err (!%p5023_p12)
}
  0x3e   :  { %s5027_s0 = scalar_lea.vmem %s50_s13, 1024  ;;  %p5032_p0 = scmp.lt.s32.totalorder %s50_s13, %s50_s13 }
  0x3f   :  { %p5028_p13 = scmp.ne.s32.totalorder %s50_s13, %s5027_s0  ;;  %p5033_p1 = scmp.lt.s32.totalorder %s5027_s0, %s5027_s0 }
  0x41   :  { %p5034_p2 = por %p5033_p1, %p5032_p0 }
  0x43   :  { %p5035_p3 = pnand %p5034_p2, %p5028_p13 }
  0x45   :  { %5038 = shalt.err (!%p5035_p3)
}
  0x46   :  { %55 = dma.hbm_to_vmem [thread:$0]  %s8752_s2, 1024, %s50_s13, [#allocation9], %s5110_s14, %s5110_s14, %s5111_s19  }
  0x47   :  { %s94_s27 = sshll.u32 %s8759_s9, 4  ;;  %s5039_s4 = scalar_lea.hbm %s8756_s6, 1024  ;;  %s95_s27 = int_to_ptr.vmem [resolvable:$true] %s94_s27 }
  0x48   :  { %p5040_p4 = scmp.ne.s32.totalorder %s8756_s6, %s5039_s4  ;;  %p5043_p5 = scmp.lt.u32.totalorder %s5039_s4, %s8756_s6 }
  0x4a   :  { %p5045_p6 = pnand %p5043_p5, %p5040_p4 }
  0x4c   :  { %5048 = shalt.err (!%p5045_p6)
}
  0x4d   :  { %s5049_s2 = scalar_lea.vmem %s78_s16, 1024  ;;  %p5054_p8 = scmp.lt.s32.totalorder %s78_s16, %s78_s16 }
  0x4e   :  { %p5050_p7 = scmp.ne.s32.totalorder %s78_s16, %s5049_s2  ;;  %p5055_p9 = scmp.lt.s32.totalorder %s5049_s2, %s5049_s2 }
  0x50   :  { %p5056_p10 = por %p5055_p9, %p5054_p8 }
  0x52   :  { %p5057_p11 = pnand %p5056_p10, %p5050_p7 }
  0x54   :  { %5060 = shalt.err (!%p5057_p11)
}
  0x55   :  { %83 = dma.hbm_to_vmem [thread:$0]  %s8756_s6, 1024, %s78_s16, [#allocation12], %s5110_s14, %s5110_s14, %s5111_s19  }
  0x56   :  { %s5061_s18 = scalar_lea.vmem %s95_s27, 16  ;;  %p5066_p13 = scmp.lt.s32.totalorder %s95_s27, %s95_s27 }
  0x57   :  { %p5062_p12 = scmp.ne.s32.totalorder %s95_s27, %s5061_s18  ;;  %p5067_p0 = scmp.lt.s32.totalorder %s5061_s18, %s5061_s18 }
  0x59   :  { %p5068_p1 = por %p5067_p0, %p5066_p13 }
  0x5b   :  { %p5069_p2 = pnand %p5068_p1, %p5062_p12 }
  0x5d   :  { %5072 = shalt.err (!%p5069_p2)
}
  0x5e   :  { %s5114_s1 = smov [#allocation14]  }
  0x5f   :  { %97 = dma.vmem_to_smem %s95_s27, 16, %s5114_s1, [#allocation7]  }
  0x60   :  { %5095 = dma.done.wait [#allocation5], 2048  }
  0x61   :  { %5096 = vsyncadd [#allocation5], 4294965248 }
  0x62   :  { %5097 = dma.done.wait [#allocation9], 3072  }
  0x63   :  { %5098 = vsyncadd [#allocation9], 4294964224 }
  0x64   :  { %5099 = dma.done.wait [#allocation12], 3072  }
  0x65   :  { %5100 = vsyncadd [#allocation12], 4294964224 }
  0x66   :  { %5101 = dma.done.wait [#allocation7], 16  }
  0x67   :  { %5102 = vsyncadd [#allocation7], 4294967280 }
  0x68   :  { %116 = sfence }
  0x69   :  { %v4903_v0 = vld [vmem:[#allocation10] sm:$0xff]   ;;  %v4904_v1 = vld [vmem:[#allocation10 + $0x8] sm:$0xff]   ;;  %v4905_v2 = vld [vmem:[#allocation10 + $0x10] sm:$0xff]   ;;  %s2142_s21 = sld [smem:[#allocation14]] }
  0x6a   :  { %4698 = vmatprep.subr.bf16.mxu0 %v4903_v0  ;;  %v4906_v3 = vld [vmem:[#allocation10 + $0x18] sm:$0xff]   ;;  %v4911_v4 = vld [vmem:[#allocation4] sm:$0xff]   ;;  %v4908_v6 = vld [vmem:[#allocation10 + $0x28] sm:$0xff]  }
  0x6b   :  { %4699 = vmatpush3.bf16.msra.mxu0 %v4903_v0  ;;  %4714 = vmatprep.mubr.bf16.mxu0 %v4911_v4  ;;  %v4907_v5 = vld [vmem:[#allocation10 + $0x20] sm:$0xff]   ;;  %v4909_v7 = vld [vmem:[#allocation10 + $0x30] sm:$0xff]   ;;  %v4910_v8 = vld [vmem:[#allocation10 + $0x38] sm:$0xff]  }
  0x6c   :  { %4700 = vmatprep.subr.bf16.mxu0 %v4904_v1  ;;  %v4927_v9 = vld [vmem:[#allocation11] sm:$0xff]   ;;  %v4928_v10 = vld [vmem:[#allocation11 + $0x8] sm:$0xff]   ;;  %v4929_v12 = vld [vmem:[#allocation11 + $0x10] sm:$0xff]  }
  0x6d   :  { %4746 = vmatprep.subr.bf16.mxu1 %v4927_v9  ;;  %v4912_v11 = vld [vmem:[#allocation4 + $0x8] sm:$0xff]   ;;  %v4913_v13 = vld [vmem:[#allocation4 + $0x10] sm:$0xff]   ;;  %v4930_v14 = vld [vmem:[#allocation11 + $0x18] sm:$0xff]  }
  0x6e   :  { %4747 = vmatpush3.bf16.msra.mxu1 %v4927_v9  ;;  %v4931_v15 = vld [vmem:[#allocation11 + $0x20] sm:$0xff]   ;;  %v4914_v16 = vld [vmem:[#allocation4 + $0x18] sm:$0xff]   ;;  %v4932_v18 = vld [vmem:[#allocation11 + $0x28] sm:$0xff]  }
  0x6f   :  { %4701 = vmatpush3.bf16.msra.mxu0 %v4904_v1  ;;  %4748 = vmatprep.subr.bf16.mxu1 %v4928_v10  ;;  %v4915_v17 = vld [vmem:[#allocation4 + $0x20] sm:$0xff]   ;;  %v4916_v19 = vld [vmem:[#allocation4 + $0x28] sm:$0xff]   ;;  %v4917_v20 = vld [vmem:[#allocation4 + $0x30] sm:$0xff]   ;;  %s2143_s22 = sadd.f32 1.0, %s2142_s21 }
  0x70   :  { %4702 = vmatprep.subr.bf16.mxu0 %v4905_v2  ;;  %v4918_v21 = vld [vmem:[#allocation4 + $0x38] sm:$0xff]   ;;  %v4919_v22 = vld [vmem:[#allocation4 + $0x40] sm:$0xff]   ;;  %v4920_v23 = vld [vmem:[#allocation4 + $0x48] sm:$0xff]  }
  0x71   :  { %v4921_v24 = vld [vmem:[#allocation4 + $0x50] sm:$0xff]   ;;  %v4922_v25 = vld [vmem:[#allocation4 + $0x58] sm:$0xff]   ;;  %v4923_v26 = vld [vmem:[#allocation4 + $0x60] sm:$0xff]  }
  0x72   :  { %4749 = vmatpush3.bf16.msra.mxu1 %v4928_v10  ;;  %v4924_v27 = vld [vmem:[#allocation4 + $0x68] sm:$0xff]   ;;  %v4925_v28 = vld [vmem:[#allocation4 + $0x70] sm:$0xff]   ;;  %v4926_v29 = vld [vmem:[#allocation4 + $0x78] sm:$0xff]  }
  0x73   :  { %4703 = vmatpush3.bf16.msra.mxu0 %v4905_v2  ;;  %4750 = vmatprep.subr.bf16.mxu1 %v4929_v12  ;;  %v4933_v30 = vld [vmem:[#allocation11 + $0x30] sm:$0xff]   ;;  %v4934_v31 = vld [vmem:[#allocation11 + $0x38] sm:$0xff]   ;;  %v5251_v32 = vld [vmem:[%s8753_s3] ss:$0 sm:$0xff] }
  0x74   :  { %4704 = vmatprep.subr.bf16.mxu0 %v4906_v3 }
  0x76   :  { %4751 = vmatpush3.bf16.msra.mxu1 %v4929_v12 }
  0x77   :  { %4705 = vmatpush3.bf16.msra.mxu0 %v4906_v3  ;;  %4752 = vmatprep.subr.bf16.mxu1 %v4930_v14 }
  0x78   :  { %4706 = vmatprep.subr.bf16.mxu0 %v4907_v5 }
  0x7a   :  { %4753 = vmatpush3.bf16.msra.mxu1 %v4930_v14 }
  0x7b   :  { %4707 = vmatpush3.bf16.msra.mxu0 %v4907_v5  ;;  %4754 = vmatprep.subr.bf16.mxu1 %v4931_v15 }
  0x7c   :  { %4708 = vmatprep.subr.bf16.mxu0 %v4908_v6 }
  0x7e   :  { %4755 = vmatpush3.bf16.msra.mxu1 %v4931_v15 }
  0x7f   :  { %4709 = vmatpush3.bf16.msra.mxu0 %v4908_v6  ;;  %4756 = vmatprep.subr.bf16.mxu1 %v4932_v18 }
  0x80   :  { %4710 = vmatprep.subr.bf16.mxu0 %v4909_v7 }
  0x82   :  { %4757 = vmatpush3.bf16.msra.mxu1 %v4932_v18 }
  0x83   :  { %4711 = vmatpush3.bf16.msra.mxu0 %v4909_v7  ;;  %4758 = vmatprep.subr.bf16.mxu1 %v4933_v30 }
  0x84   :  { %4712 = vmatprep.subr.bf16.mxu0 %v4910_v8 }
  0x86   :  { %4759 = vmatpush3.bf16.msra.mxu1 %v4933_v30 }
  0x87   :  { %4713 = vmatpush3.bf16.msra.mxu0 %v4910_v8  ;;  %4760 = vmatprep.subr.bf16.mxu1 %v4934_v31 }
  0x8a   :  { %4715 = vmatmul.mubr.bf16.vlgmr.msra.gmra.mrb[0].mxu0 %v4912_v11  ;;  %4761 = vmatpush3.bf16.msra.mxu1 %v4934_v31 }
  0x8b   :  { %4718 = vmatprep.mubr.bf16.mxu0 %v4913_v13 }
  0x92   :  { %4719 = vmatmul.mubr.bf16.gmra.mrb[4].mxu0 %v4914_v16 }
  0x93   :  { %4722 = vmatprep.mubr.bf16.mxu0 %v4915_v17 }
  0x9a   :  { %4723 = vmatmul.mubr.bf16.gmra.mrb[8].mxu0 %v4916_v19 }
  0x9b   :  { %4726 = vmatprep.mubr.bf16.mxu0 %v4917_v20 }
  0xa2   :  { %4727 = vmatmul.mubr.bf16.gmra.mrb[12].mxu0 %v4918_v21 }
  0xa3   :  { %4730 = vmatprep.mubr.bf16.mxu0 %v4919_v22 }
  0xaa   :  { %4731 = vmatmul.mubr.bf16.gmra.mrb[16].mxu0 %v4920_v23 }
  0xab   :  { %4734 = vmatprep.mubr.bf16.mxu0 %v4921_v24 }
  0xb2   :  { %4735 = vmatmul.mubr.bf16.gmra.mrb[20].mxu0 %v4922_v25 }
  0xb3   :  { %4738 = vmatprep.mubr.bf16.mxu0 %v4923_v26 }
  0xba   :  { %4739 = vmatmul.mubr.bf16.gmra.mrb[24].mxu0 %v4924_v27 }
  0xbb   :  { %4742 = vmatprep.mubr.bf16.mxu0 %v4925_v28 }
  0xc2   :  { %4743 = vmatmul.mubr.bf16.gmra.mrb[28].mxu0 %v4926_v29 }
 0x15d   :  { %v4716_v33 = vpop.f32.mrb[0].mxu0 }
 0x15e   :  { %v440_v34 = vadd.f32 %v4716_v33, %v5251_v32  ;;  %v431_v35 = vpop.f32.mrb[1].mxu0 }
 0x15f   :  { %v432_v36 = vadd.f32 %v5251_v32, %v431_v35  ;;  %v4717_v37 = vpop.f32.mrb[2].mxu0 }
 0x160   :  { %v443_v38 = vadd.f32 %v4717_v37, %v5251_v32  ;;  %v434_v39 = vpop.f32.mrb[3].mxu0  ;;  %v560_v41 = vmax.f32 %v440_v34, 0.0 }
 0x161   :  { %v435_v40 = vadd.f32 %v5251_v32, %v434_v39  ;;  %v558_v43 = vmax.f32 %v432_v36, 0.0 }
 0x162   :  { %v561_v42 = vmax.f32 %v443_v38, 0.0 }
 0x163   :  { %v559_v44 = vmax.f32 %v435_v40, 0.0 }
 0x164   :  { %v591_v45 = vpack.c.bf16 %v561_v42, %v560_v41 }
 0x165   :  { %v4720_v46 = vpop.f32.mrb[4].mxu0  ;;  %v590_v47 = vpack.c.bf16 %v559_v44, %v558_v43 }
 0x166   :  { %v456_v48 = vadd.f32 %v4720_v46, %v5251_v32  ;;  %v447_v49 = vpop.f32.mrb[5].mxu0 }
 0x167   :  { %v448_v50 = vadd.f32 %v5251_v32, %v447_v49  ;;  %v4721_v51 = vpop.f32.mrb[6].mxu0  ;;  %4762 = vmatprep.mubr.bf16.mxu1 %v590_v47 }
 0x168   :  { %v459_v52 = vadd.f32 %v4721_v51, %v5251_v32  ;;  %v450_v53 = vpop.f32.mrb[7].mxu0  ;;  %4763 = vmatmul.mubr.bf16.vlgmr.msra.gmra.mrb[0].mxu1 %v591_v45  ;;  %v564_v55 = vmax.f32 %v456_v48, 0.0 }
 0x169   :  { %v451_v54 = vadd.f32 %v5251_v32, %v450_v53  ;;  %v562_v57 = vmax.f32 %v448_v50, 0.0 }
 0x16a   :  { %v565_v56 = vmax.f32 %v459_v52, 0.0 }
 0x16b   :  { %v563_v58 = vmax.f32 %v451_v54, 0.0 }
 0x16c   :  { %v593_v59 = vpack.c.bf16 %v565_v56, %v564_v55 }
 0x16d   :  { %v592_v60 = vpack.c.bf16 %v563_v58, %v562_v57  ;;  %v4724_v61 = vpop.f32.mrb[8].mxu0 }
 0x16e   :  { %v472_v62 = vadd.f32 %v4724_v61, %v5251_v32  ;;  %v463_v63 = vpop.f32.mrb[9].mxu0 }
 0x16f   :  { %v464_v0 = vadd.f32 %v5251_v32, %v463_v63  ;;  %v4725_v1 = vpop.f32.mrb[10].mxu0  ;;  %4766 = vmatprep.mubr.bf16.mxu1 %v592_v60 }
 0x170   :  { %v475_v2 = vadd.f32 %v4725_v1, %v5251_v32  ;;  %v466_v3 = vpop.f32.mrb[11].mxu0  ;;  %4767 = vmatmul.mubr.bf16.gmra.mrb[4].mxu1 %v593_v59  ;;  %v568_v5 = vmax.f32 %v472_v62, 0.0 }
 0x171   :  { %v467_v4 = vadd.f32 %v5251_v32, %v466_v3  ;;  %v566_v7 = vmax.f32 %v464_v0, 0.0 }
 0x172   :  { %v569_v6 = vmax.f32 %v475_v2, 0.0 }
 0x173   :  { %v567_v8 = vmax.f32 %v467_v4, 0.0 }
 0x174   :  { %v595_v9 = vpack.c.bf16 %v569_v6, %v568_v5 }
 0x175   :  { %v594_v10 = vpack.c.bf16 %v567_v8, %v566_v7  ;;  %v4728_v11 = vpop.f32.mrb[12].mxu0 }
 0x176   :  { %v488_v12 = vadd.f32 %v4728_v11, %v5251_v32  ;;  %v479_v13 = vpop.f32.mrb[13].mxu0 }
 0x177   :  { %v480_v14 = vadd.f32 %v5251_v32, %v479_v13  ;;  %v4729_v15 = vpop.f32.mrb[14].mxu0  ;;  %4770 = vmatprep.mubr.bf16.mxu1 %v594_v10 }
 0x178   :  { %v491_v16 = vadd.f32 %v4729_v15, %v5251_v32  ;;  %v482_v17 = vpop.f32.mrb[15].mxu0  ;;  %4771 = vmatmul.mubr.bf16.gmra.mrb[8].mxu1 %v595_v9  ;;  %v572_v19 = vmax.f32 %v488_v12, 0.0 }
 0x179   :  { %v483_v18 = vadd.f32 %v5251_v32, %v482_v17  ;;  %v570_v21 = vmax.f32 %v480_v14, 0.0 }
 0x17a   :  { %v573_v20 = vmax.f32 %v491_v16, 0.0 }
 0x17b   :  { %v571_v22 = vmax.f32 %v483_v18, 0.0  ;;  %v5288_v18 = vld [vmem:[%s8755_s5] ss:$0 sm:$0xff] }
 0x17c   :  { %v597_v23 = vpack.c.bf16 %v573_v20, %v572_v19  ;;  %v5293_v20 = vld [vmem:[%s8758_s8] ss:$0 sm:$0xff] }
 0x17d   :  { %v596_v24 = vpack.c.bf16 %v571_v22, %v570_v21  ;;  %v4732_v25 = vpop.f32.mrb[16].mxu0 }
 0x17e   :  { %v504_v26 = vadd.f32 %v4732_v25, %v5251_v32  ;;  %v495_v27 = vpop.f32.mrb[17].mxu0 }
 0x17f   :  { %v496_v28 = vadd.f32 %v5251_v32, %v495_v27  ;;  %v4733_v29 = vpop.f32.mrb[18].mxu0  ;;  %4774 = vmatprep.mubr.bf16.mxu1 %v596_v24 }
 0x180   :  { %v507_v30 = vadd.f32 %v4733_v29, %v5251_v32  ;;  %v498_v31 = vpop.f32.mrb[19].mxu0  ;;  %4775 = vmatmul.mubr.bf16.gmra.mrb[12].mxu1 %v597_v23  ;;  %v576_v34 = vmax.f32 %v504_v26, 0.0 }
 0x181   :  { %v499_v33 = vadd.f32 %v5251_v32, %v498_v31  ;;  %v574_v36 = vmax.f32 %v496_v28, 0.0 }
 0x182   :  { %v577_v35 = vmax.f32 %v507_v30, 0.0 }
 0x183   :  { %v575_v37 = vmax.f32 %v499_v33, 0.0 }
 0x184   :  { %v599_v38 = vpack.c.bf16 %v577_v35, %v576_v34 }
 0x185   :  { %v598_v39 = vpack.c.bf16 %v575_v37, %v574_v36  ;;  %v4736_v40 = vpop.f32.mrb[20].mxu0 }
 0x186   :  { %v520_v41 = vadd.f32 %v4736_v40, %v5251_v32  ;;  %v511_v42 = vpop.f32.mrb[21].mxu0 }
 0x187   :  { %v512_v43 = vadd.f32 %v5251_v32, %v511_v42  ;;  %v4737_v44 = vpop.f32.mrb[22].mxu0  ;;  %4778 = vmatprep.mubr.bf16.mxu1 %v598_v39 }
 0x188   :  { %v580_v45 = vmax.f32 %v520_v41, 0.0  ;;  %v523_v46 = vadd.f32 %v4737_v44, %v5251_v32  ;;  %v514_v47 = vpop.f32.mrb[23].mxu0  ;;  %4779 = vmatmul.mubr.bf16.gmra.mrb[16].mxu1 %v599_v38 }
 0x189   :  { %v578_v48 = vmax.f32 %v512_v43, 0.0  ;;  %v515_v49 = vadd.f32 %v5251_v32, %v514_v47 }
 0x18a   :  { %v581_v50 = vmax.f32 %v523_v46, 0.0 }
 0x18b   :  { %v579_v51 = vmax.f32 %v515_v49, 0.0 }
 0x18c   :  { %v601_v52 = vpack.c.bf16 %v581_v50, %v580_v45 }
 0x18d   :  { %v600_v53 = vpack.c.bf16 %v579_v51, %v578_v48  ;;  %v4740_v54 = vpop.f32.mrb[24].mxu0 }
 0x18e   :  { %v536_v55 = vadd.f32 %v4740_v54, %v5251_v32  ;;  %v527_v56 = vpop.f32.mrb[25].mxu0 }
 0x18f   :  { %v528_v57 = vadd.f32 %v5251_v32, %v527_v56  ;;  %v4741_v58 = vpop.f32.mrb[26].mxu0  ;;  %4782 = vmatprep.mubr.bf16.mxu1 %v600_v53 }
 0x190   :  { %v584_v59 = vmax.f32 %v536_v55, 0.0  ;;  %v539_v60 = vadd.f32 %v4741_v58, %v5251_v32  ;;  %v530_v61 = vpop.f32.mrb[27].mxu0  ;;  %4783 = vmatmul.mubr.bf16.gmra.mrb[20].mxu1 %v601_v52 }
 0x191   :  { %v582_v62 = vmax.f32 %v528_v57, 0.0  ;;  %v531_v63 = vadd.f32 %v5251_v32, %v530_v61 }
 0x192   :  { %v585_v0 = vmax.f32 %v539_v60, 0.0 }
 0x193   :  { %v583_v1 = vmax.f32 %v531_v63, 0.0 }
 0x194   :  { %v603_v2 = vpack.c.bf16 %v585_v0, %v584_v59 }
 0x195   :  { %v602_v3 = vpack.c.bf16 %v583_v1, %v582_v62  ;;  %v4744_v4 = vpop.f32.mrb[28].mxu0 }
 0x196   :  { %v552_v5 = vadd.f32 %v4744_v4, %v5251_v32  ;;  %v543_v6 = vpop.f32.mrb[29].mxu0 }
 0x197   :  { %4786 = vmatprep.mubr.bf16.mxu1 %v602_v3  ;;  %v544_v7 = vadd.f32 %v5251_v32, %v543_v6  ;;  %v4745_v8 = vpop.f32.mrb[30].mxu0 }
 0x198   :  { %v588_v9 = vmax.f32 %v552_v5, 0.0  ;;  %4787 = vmatmul.mubr.bf16.gmra.mrb[24].mxu1 %v603_v2  ;;  %v555_v10 = vadd.f32 %v4745_v8, %v5251_v32  ;;  %v546_v11 = vpop.f32.mrb[31].mxu0 }
 0x199   :  { %v586_v12 = vmax.f32 %v544_v7, 0.0  ;;  %v547_v13 = vadd.f32 %v5251_v32, %v546_v11 }
 0x19a   :  { %v589_v14 = vmax.f32 %v555_v10, 0.0 }
 0x19b   :  { %v587_v15 = vmax.f32 %v547_v13, 0.0 }
 0x19c   :  { %v605_v16 = vpack.c.bf16 %v589_v14, %v588_v9 }
 0x19d   :  { %v604_v17 = vpack.c.bf16 %v587_v15, %v586_v12 }
 0x19f   :  { %4790 = vmatprep.mubr.bf16.mxu1 %v604_v17 }
 0x1a0   :  { %4791 = vmatmul.mubr.bf16.gmra.mrb[28].mxu1 %v605_v16 }
 0x23b   :  { %v4764_v19 = vpop.f32.mrb[0].mxu1 }
 0x23c   :  { %v5296_v21 = vadd.f32 %v4764_v19, %v5288_v18  ;;  %v743_v32 = vpop.f32.mrb[1].mxu1 }
 0x23d   :  { %v5299_v22 = vadd.f32 %v5288_v18, %v743_v32  ;;  %v4765_v23 = vpop.f32.mrb[2].mxu1 }
 0x23e   :  { %v5303_v24 = vadd.f32 %v5293_v20, %v5296_v21  ;;  %v746_v25 = vpop.f32.mrb[3].mxu1  ;;  %v5310_v27 = vadd.f32 %v4765_v23, %v5288_v18 }
 0x23f   :  { %v5307_v26 = vadd.f32 %v5293_v20, %v5299_v22  ;;  %v5319_v29 = vadd.f32 %v5288_v18, %v746_v25 }
 0x240   :  { %913 = vmax.xlane.f32.xlu0 %v5303_v24  ;;  %v5316_v28 = vadd.f32 %v5293_v20, %v5310_v27 }
 0x241   :  { %909 = vmax.xlane.f32.xlu1 %v5307_v26  ;;  %v5334_v38 = vadd.f32 %v5293_v20, %v5319_v29 }
 0x243   :  { %v4768_v30 = vpop.f32.mrb[4].mxu1 }
 0x244   :  { %v5322_v31 = vadd.f32 %v4768_v30, %v5288_v18  ;;  %v759_v33 = vpop.f32.mrb[5].mxu1 }
 0x245   :  { %v4769_v34 = vpop.f32.mrb[6].mxu1  ;;  %915 = vmax.xlane.f32.xlu1 %v5316_v28  ;;  %v5330_v36 = vadd.f32 %v5288_v18, %v759_v33 }
 0x246   :  { %v5327_v35 = vadd.f32 %v5293_v20, %v5322_v31  ;;  %v762_v37 = vpop.f32.mrb[7].mxu1  ;;  %v5337_v39 = vadd.f32 %v4769_v34, %v5288_v18 }
 0x247   :  { %v5343_v40 = vadd.f32 %v5293_v20, %v5330_v36  ;;  %v5350_v42 = vadd.f32 %v5288_v18, %v762_v37 }
 0x248   :  { %921 = vmax.xlane.f32.xlu0 %v5327_v35  ;;  %v5347_v41 = vadd.f32 %v5293_v20, %v5337_v39 }
 0x249   :  { %911 = vmax.xlane.f32.xlu1 %v5334_v38  ;;  %v5366_v50 = vadd.f32 %v5293_v20, %v5350_v42 }
 0x24b   :  { %v4772_v43 = vpop.f32.mrb[8].mxu1 }
 0x24c   :  { %v5353_v44 = vadd.f32 %v4772_v43, %v5288_v18  ;;  %v775_v45 = vpop.f32.mrb[9].mxu1  ;;  %917 = vmax.xlane.f32.xlu0 %v5343_v40 }
 0x24d   :  { %v4773_v46 = vpop.f32.mrb[10].mxu1  ;;  %923 = vmax.xlane.f32.xlu1 %v5347_v41  ;;  %v5362_v48 = vadd.f32 %v5288_v18, %v775_v45 }
 0x24e   :  { %v5359_v47 = vadd.f32 %v5293_v20, %v5353_v44  ;;  %v778_v49 = vpop.f32.mrb[11].mxu1  ;;  %v5369_v51 = vadd.f32 %v4773_v46, %v5288_v18 }
 0x24f   :  { %v5375_v52 = vadd.f32 %v5293_v20, %v5362_v48  ;;  %v5382_v54 = vadd.f32 %v5288_v18, %v778_v49 }
 0x250   :  { %929 = vmax.xlane.f32.xlu0 %v5359_v47  ;;  %v5379_v53 = vadd.f32 %v5293_v20, %v5369_v51 }
 0x251   :  { %919 = vmax.xlane.f32.xlu1 %v5366_v50  ;;  %v5394_v61 = vadd.f32 %v5293_v20, %v5382_v54 }
 0x253   :  { %v4776_v55 = vpop.f32.mrb[12].mxu1 }
 0x254   :  { %v5385_v56 = vadd.f32 %v4776_v55, %v5288_v18  ;;  %v791_v57 = vpop.f32.mrb[13].mxu1  ;;  %925 = vmax.xlane.f32.xlu0 %v5375_v52 }
 0x255   :  { %v4777_v58 = vpop.f32.mrb[14].mxu1  ;;  %931 = vmax.xlane.f32.xlu1 %v5379_v53 }
 0x256   :  { %8963 = vst [vmem:[#allocation21_spill] sm:$0xff] %v5385_v56  ;;  %v5390_v59 = vadd.f32 %v4777_v58, %v5288_v18  ;;  %v794_v60 = vpop.f32.mrb[15].mxu1 }
 0x258   :  { %8964 = vst [vmem:[#allocation22_spill] sm:$0xff] %v5390_v59 }
 0x259   :  { %927 = vmax.xlane.f32.xlu1 %v5394_v61 }
 0x25b   :  { %v4780_v62 = vpop.f32.mrb[16].mxu1 }
 0x25c   :  { %v5398_v63 = vadd.f32 %v4780_v62, %v5288_v18  ;;  %v807_v0 = vpop.f32.mrb[17].mxu1 }
 0x25d   :  { %v4781_v1 = vpop.f32.mrb[18].mxu1  ;;  %v5405_v3 = vadd.f32 %v5288_v18, %v807_v0  ;;  %v5483_v0 = vadd.f32 %v5288_v18, %v794_v60 }
 0x25e   :  { %8965 = vst [vmem:[#allocation23_spill] sm:$0xff] %v5398_v63  ;;  %v5402_v2 = vadd.f32 %v5293_v20, %v5398_v63  ;;  %v5408_v4 = vadd.f32 %v4781_v1, %v5288_v18  ;;  %v810_v5 = vpop.f32.mrb[19].mxu1 }
 0x25f   :  { %8967 = vst [vmem:[#allocation25_spill] sm:$0xff] %v5405_v3  ;;  %v5417_v7 = vadd.f32 %v5293_v20, %v5405_v3  ;;  %v5420_v8 = vadd.f32 %v5288_v18, %v810_v5  ;;  %8987 = vst [vmem:[#allocation45_spill] sm:$0xff] %v5483_v0 }
 0x260   :  { %8966 = vst [vmem:[#allocation24_spill] sm:$0xff] %v5402_v2  ;;  %8968 = vst [vmem:[#allocation26_spill] sm:$0xff] %v5408_v4  ;;  %v5412_v6 = vadd.f32 %v5293_v20, %v5408_v4  ;;  %945 = vmax.xlane.f32.xlu0 %v5402_v2 }
 0x261   :  { %8970 = vst [vmem:[#allocation28_spill] sm:$0xff] %v5417_v7  ;;  %8971 = vst [vmem:[#allocation29_spill] sm:$0xff] %v5420_v8  ;;  %v5426_v12 = vadd.f32 %v5293_v20, %v5420_v8 }
 0x262   :  { %8969 = vst [vmem:[#allocation27_spill] sm:$0xff] %v5412_v6  ;;  %947 = vmax.xlane.f32.xlu1 %v5412_v6 }
 0x263   :  { %v4784_v9 = vpop.f32.mrb[20].mxu1  ;;  %8972 = vst [vmem:[#allocation30_spill] sm:$0xff] %v5426_v12 }
 0x264   :  { %v823_v10 = vpop.f32.mrb[21].mxu1  ;;  %941 = vmax.xlane.f32.xlu0 %v5417_v7  ;;  %v5429_v13 = vadd.f32 %v4784_v9, %v5288_v18 }
 0x265   :  { %v4785_v11 = vpop.f32.mrb[22].mxu1  ;;  %v5447_v32 = vadd.f32 %v5288_v18, %v823_v10 }
 0x266   :  { %8973 = vst [vmem:[#allocation31_spill] sm:$0xff] %v5429_v13  ;;  %v5432_v14 = vadd.f32 %v4785_v11, %v5288_v18  ;;  %v826_v15 = vpop.f32.mrb[23].mxu1  ;;  %v5444_v19 = vadd.f32 %v5293_v20, %v5429_v13 }
 0x267   :  { %v5440_v17 = vadd.f32 %v5288_v18, %v826_v15  ;;  %8978 = vst [vmem:[#allocation36_spill] sm:$0xff] %v5447_v32  ;;  %v5457_v34 = vadd.f32 %v5293_v20, %v5447_v32  ;;  %v5497_v15 = vadd.f32 %v5288_v18, %v791_v57 }
 0x268   :  { %8974 = vst [vmem:[#allocation32_spill] sm:$0xff] %v5432_v14  ;;  %v5436_v16 = vadd.f32 %v5293_v20, %v5432_v14  ;;  %943 = vmax.xlane.f32.xlu0 %v5426_v12  ;;  %8977 = vst [vmem:[#allocation35_spill] sm:$0xff] %v5444_v19 }
 0x269   :  { %8976 = vst [vmem:[#allocation34_spill] sm:$0xff] %v5440_v17  ;;  %v5452_v25 = vadd.f32 %v5293_v20, %v5440_v17  ;;  %8980 = vst [vmem:[#allocation38_spill] sm:$0xff] %v5457_v34  ;;  %v5517_v57 = vadd.f32 %v5293_v20, %v5497_v15 }
 0x26a   :  { %8975 = vst [vmem:[#allocation33_spill] sm:$0xff] %v5436_v16  ;;  %955 = vmax.xlane.f32.xlu1 %v5436_v16  ;;  %8991 = vst [vmem:[#allocation49_spill] sm:$0xff] %v5497_v15 }
 0x26b   :  { %v4788_v23 = vpop.f32.mrb[24].mxu1  ;;  %8979 = vst [vmem:[#allocation37_spill] sm:$0xff] %v5452_v25  ;;  %8996 = vst [vmem:[#allocation54_spill] sm:$0xff] %v5517_v57 }
 0x26c   :  { %v839_v30 = vpop.f32.mrb[25].mxu1  ;;  %953 = vmax.xlane.f32.xlu0 %v5444_v19  ;;  %v5460_v37 = vadd.f32 %v4788_v23, %v5288_v18 }
 0x26d   :  { %v4789_v33 = vpop.f32.mrb[26].mxu1  ;;  %v5479_v58 = vadd.f32 %v5288_v18, %v839_v30 }
 0x26e   :  { %8981 = vst [vmem:[#allocation39_spill] sm:$0xff] %v5460_v37  ;;  %v5463_v43 = vadd.f32 %v4789_v33, %v5288_v18  ;;  %951 = vmax.xlane.f32.xlu1 %v5452_v25  ;;  %v842_v45 = vpop.f32.mrb[27].mxu1  ;;  %v5476_v55 = vadd.f32 %v5293_v20, %v5460_v37  ;;  %v5509_v33 = vadd.f32 %v5293_v20, %v5483_v0 }
 0x26f   :  { %v5472_v49 = vadd.f32 %v5288_v18, %v842_v45  ;;  %8986 = vst [vmem:[#allocation44_spill] sm:$0xff] %v5479_v58  ;;  %v5501_v60 = vadd.f32 %v5293_v20, %v5479_v58 }
 0x270   :  { %8982 = vst [vmem:[#allocation40_spill] sm:$0xff] %v5463_v43  ;;  %v5468_v46 = vadd.f32 %v5293_v20, %v5463_v43  ;;  %949 = vmax.xlane.f32.xlu0 %v5457_v34  ;;  %8985 = vst [vmem:[#allocation43_spill] sm:$0xff] %v5476_v55 }
 0x271   :  { %8984 = vst [vmem:[#allocation42_spill] sm:$0xff] %v5472_v49  ;;  %v5487_v1 = vadd.f32 %v5293_v20, %v5472_v49  ;;  %8992 = vst [vmem:[#allocation50_spill] sm:$0xff] %v5501_v60 }
 0x272   :  { %8983 = vst [vmem:[#allocation41_spill] sm:$0xff] %v5468_v46  ;;  %963 = vmax.xlane.f32.xlu1 %v5468_v46  ;;  %8994 = vst [vmem:[#allocation52_spill] sm:$0xff] %v5509_v33 }
 0x273   :  { %v4792_v62 = vpop.f32.mrb[28].mxu1  ;;  %8988 = vst [vmem:[#allocation46_spill] sm:$0xff] %v5487_v1 }
 0x274   :  { %961 = vmax.xlane.f32.xlu0 %v5476_v55  ;;  %v5491_v5 = vadd.f32 %v4792_v62, %v5288_v18  ;;  %v855_v9 = vpop.f32.mrb[29].mxu1 }
 0x275   :  { %v5494_v10 = vadd.f32 %v5288_v18, %v855_v9  ;;  %v4793_v11 = vpop.f32.mrb[30].mxu1 }
 0x276   :  { %8989 = vst [vmem:[#allocation47_spill] sm:$0xff] %v5491_v5  ;;  %959 = vmax.xlane.f32.xlu1 %v5487_v1  ;;  %v5505_v23 = vadd.f32 %v4793_v11, %v5288_v18  ;;  %v858_v30 = vpop.f32.mrb[31].mxu1  ;;  %v5537_v11 = vadd.f32 %v5293_v20, %v5491_v5 }
 0x277   :  { %8990 = vst [vmem:[#allocation48_spill] sm:$0xff] %v5494_v10  ;;  %v5513_v45 = vadd.f32 %v5288_v18, %v858_v30  ;;  %v5527_v9 = vadd.f32 %v5293_v20, %v5494_v10  ;;  %v5542_v30 = vadd.f32 %v5293_v20, %v5390_v59 }
 0x278   :  { %8993 = vst [vmem:[#allocation51_spill] sm:$0xff] %v5505_v23  ;;  %957 = vmax.xlane.f32.xlu0 %v5501_v60  ;;  %v5532_v18 = vadd.f32 %v5293_v20, %v5505_v23  ;;  %9000 = vst [vmem:[#allocation58_spill] sm:$0xff] %v5537_v11 }
 0x279   :  { %8995 = vst [vmem:[#allocation53_spill] sm:$0xff] %v5513_v45  ;;  %v5522_v62 = vadd.f32 %v5293_v20, %v5513_v45  ;;  %8998 = vst [vmem:[#allocation56_spill] sm:$0xff] %v5527_v9  ;;  %v5547_v45 = vadd.f32 %v5293_v20, %v5385_v56 }
 0x27a   :  { %935 = vmax.xlane.f32.xlu1 %v5509_v33  ;;  %8999 = vst [vmem:[#allocation57_spill] sm:$0xff] %v5532_v18  ;;  %9001 = vst [vmem:[#allocation59_spill] sm:$0xff] %v5542_v30 }
 0x27b   :  { %8997 = vst [vmem:[#allocation55_spill] sm:$0xff] %v5522_v62  ;;  %9002 = vst [vmem:[#allocation60_spill] sm:$0xff] %v5547_v45 }
 0x27c   :  { %933 = vmax.xlane.f32.xlu0 %v5517_v57 }
 0x27e   :  { %967 = vmax.xlane.f32.xlu1 %v5522_v62 }
 0x280   :  { %965 = vmax.xlane.f32.xlu0 %v5527_v9 }
 0x282   :  { %971 = vmax.xlane.f32.xlu1 %v5532_v18 }
 0x284   :  { %969 = vmax.xlane.f32.xlu0 %v5537_v11 }
 0x286   :  { %939 = vmax.xlane.f32.xlu1 %v5542_v30 }
 0x288   :  { %937 = vmax.xlane.f32.xlu0 %v5547_v45 }
 0x2cd   :  { %v914_v23 = vpop.xlane.xlu0 %913 }
 0x2ce   :  { %vm975_vm0 = vcmp.eq.f32.partialorder %v5303_v24, %v914_v23  ;;  %v910_v5 = vpop.xlane.xlu1 %909 }
 0x2cf   :  { %v5553_v10 = vsel %vm975_vm0, -3.4028235e+38, %v5303_v24  ;;  %vm973_vm1 = vcmp.eq.f32.partialorder %v5307_v26, %v910_v5 }
 0x2d0   :  { %1041 = vmax.xlane.f32.xlu0 %v5553_v10  ;;  %v5559_v20 = vsel %vm973_vm1, -3.4028235e+38, %v5307_v26 }
 0x2d2   :  { %v916_v59 = vpop.xlane.xlu1 %915 }
 0x2d3   :  { %vm976_vm2 = vcmp.eq.f32.partialorder %v5316_v28, %v916_v59 }
 0x2d4   :  { %1037 = vmax.xlane.f32.xlu0 %v5559_v20  ;;  %v5563_v56 = vsel %vm976_vm2, -3.4028235e+38, %v5316_v28 }
 0x2d5   :  { %v922_v23 = vpop.xlane.xlu0 %921  ;;  %1043 = vmax.xlane.f32.xlu1 %v5563_v56 }
 0x2d6   :  { %vm979_vm3 = vcmp.eq.f32.partialorder %v5327_v35, %v922_v23  ;;  %v912_v0 = vpop.xlane.xlu1 %911 }
 0x2d7   :  { %vm974_vm4 = vcmp.eq.f32.partialorder %v5334_v38, %v912_v0  ;;  %v5569_v5 = vsel %vm979_vm3, -3.4028235e+38, %v5327_v35 }
 0x2d8   :  { %1049 = vmax.xlane.f32.xlu0 %v5569_v5  ;;  %v5573_v59 = vsel %vm974_vm4, -3.4028235e+38, %v5334_v38 }
 0x2d9   :  { %v918_v15 = vpop.xlane.xlu0 %917  ;;  %1039 = vmax.xlane.f32.xlu1 %v5573_v59 }
 0x2da   :  { %vm977_vm5 = vcmp.eq.f32.partialorder %v5343_v40, %v918_v15  ;;  %v924_v49 = vpop.xlane.xlu1 %923 }
 0x2db   :  { %vm980_vm6 = vcmp.eq.f32.partialorder %v5347_v41, %v924_v49  ;;  %v5579_v23 = vsel %vm977_vm5, -3.4028235e+38, %v5343_v40 }
 0x2dc   :  { %1045 = vmax.xlane.f32.xlu0 %v5579_v23  ;;  %v5583_v0 = vsel %vm980_vm6, -3.4028235e+38, %v5347_v41 }
 0x2dd   :  { %v930_v58 = vpop.xlane.xlu0 %929  ;;  %1051 = vmax.xlane.f32.xlu1 %v5583_v0 }
 0x2de   :  { %vm983_vm7 = vcmp.eq.f32.partialorder %v5359_v47, %v930_v58  ;;  %v920_v43 = vpop.xlane.xlu1 %919 }
 0x2df   :  { %vm978_vm8 = vcmp.eq.f32.partialorder %v5366_v50, %v920_v43  ;;  %v5589_v15 = vsel %vm983_vm7, -3.4028235e+38, %v5359_v47 }
 0x2e0   :  { %1057 = vmax.xlane.f32.xlu0 %v5589_v15  ;;  %v5593_v49 = vsel %vm978_vm8, -3.4028235e+38, %v5366_v50 }
 0x2e1   :  { %v926_v37 = vpop.xlane.xlu0 %925  ;;  %1047 = vmax.xlane.f32.xlu1 %v5593_v49 }
 0x2e2   :  { %vm981_vm9 = vcmp.eq.f32.partialorder %v5375_v52, %v926_v37  ;;  %v932_v17 = vpop.xlane.xlu1 %931 }
 0x2e3   :  { %vm984_vm10 = vcmp.eq.f32.partialorder %v5379_v53, %v932_v17  ;;  %v5599_v58 = vsel %vm981_vm9, -3.4028235e+38, %v5375_v52 }
 0x2e4   :  { %1053 = vmax.xlane.f32.xlu0 %v5599_v58  ;;  %v5603_v43 = vsel %vm984_vm10, -3.4028235e+38, %v5379_v53 }
 0x2e5   :  { %1059 = vmax.xlane.f32.xlu1 %v5603_v43 }
 0x2e6   :  { %v928_v32 = vpop.xlane.xlu1 %927 }
 0x2e7   :  { %vm982_vm11 = vcmp.eq.f32.partialorder %v5394_v61, %v928_v32 }
 0x2e8   :  { %v5608_v14 = vsel %vm982_vm11, -3.4028235e+38, %v5394_v61 }
 0x2e9   :  { %1055 = vmax.xlane.f32.xlu1 %v5608_v14 }
 0x2ed   :  { %v946_v37 = vpop.xlane.xlu0 %945 }
 0x2ee   :  { %vm991_vm12 = vcmp.eq.f32.partialorder %v5402_v2, %v946_v37 }
 0x2ef   :  { %v948_v17 = vpop.xlane.xlu1 %947  ;;  %v5613_v13 = vsel %vm991_vm12, -3.4028235e+38, %v5402_v2 }
 0x2f0   :  { %vm992_vm13 = vcmp.eq.f32.partialorder %v5412_v6, %v948_v17  ;;  %1073 = vmax.xlane.f32.xlu0 %v5613_v13 }
 0x2f1   :  { %v942_v8 = vpop.xlane.xlu0 %941  ;;  %v5618_v3 = vsel %vm992_vm13, -3.4028235e+38, %v5412_v6 }
 0x2f2   :  { %vm989_vm14 = vcmp.eq.f32.partialorder %v5417_v7, %v942_v8  ;;  %1075 = vmax.xlane.f32.xlu1 %v5618_v3 }
 0x2f3   :  { %v5623_v32 = vsel %vm989_vm14, -3.4028235e+38, %v5417_v7 }
 0x2f4   :  { %1069 = vmax.xlane.f32.xlu0 %v5623_v32 }
 0x2f5   :  { %v944_v37 = vpop.xlane.xlu0 %943 }
 0x2f6   :  { %vm990_vm15 = vcmp.eq.f32.partialorder %v5426_v12, %v944_v37 }
 0x2f7   :  { %v956_v4 = vpop.xlane.xlu1 %955  ;;  %v5628_v17 = vsel %vm990_vm15, -3.4028235e+38, %v5426_v12 }
 0x2f8   :  { %vm996_vm0 = vcmp.eq.f32.partialorder %v5436_v16, %v956_v4  ;;  %1071 = vmax.xlane.f32.xlu1 %v5628_v17 }
 0x2f9   :  { %v954_v63 = vpop.xlane.xlu0 %953  ;;  %v5637_v6 = vsel %vm996_vm0, -3.4028235e+38, %v5436_v16 }
 0x2fa   :  { %vm995_vm1 = vcmp.eq.f32.partialorder %v5444_v19, %v954_v63 }
 0x2fb   :  { %v952_v8 = vpop.xlane.xlu1 %951  ;;  %v5634_v7 = vsel %vm995_vm1, -3.4028235e+38, %v5444_v19 }
 0x2fc   :  { %vm994_vm2 = vcmp.eq.f32.partialorder %v5452_v25, %v952_v8  ;;  %1081 = vmax.xlane.f32.xlu0 %v5634_v7  ;;  %1083 = vmax.xlane.f32.xlu1 %v5637_v6 }
 0x2fd   :  { %v950_v37 = vpop.xlane.xlu0 %949  ;;  %v5647_v63 = vsel %vm994_vm2, -3.4028235e+38, %v5452_v25 }
 0x2fe   :  { %vm993_vm3 = vcmp.eq.f32.partialorder %v5457_v34, %v950_v37 }
 0x2ff   :  { %v964_v4 = vpop.xlane.xlu1 %963  ;;  %v5644_v12 = vsel %vm993_vm3, -3.4028235e+38, %v5457_v34 }
 0x300   :  { %vm1000_vm4 = vcmp.eq.f32.partialorder %v5468_v46, %v964_v4  ;;  %1077 = vmax.xlane.f32.xlu0 %v5644_v12  ;;  %1079 = vmax.xlane.f32.xlu1 %v5647_v63 }
 0x301   :  { %v962_v8 = vpop.xlane.xlu0 %961  ;;  %v5657_v37 = vsel %vm1000_vm4, -3.4028235e+38, %v5468_v46 }
 0x302   :  { %vm999_vm5 = vcmp.eq.f32.partialorder %v5476_v55, %v962_v8 }
 0x303   :  { %v960_v16 = vpop.xlane.xlu1 %959  ;;  %v5654_v19 = vsel %vm999_vm5, -3.4028235e+38, %v5476_v55 }
 0x304   :  { %vm998_vm6 = vcmp.eq.f32.partialorder %v5487_v1, %v960_v16  ;;  %1089 = vmax.xlane.f32.xlu0 %v5654_v19  ;;  %1091 = vmax.xlane.f32.xlu1 %v5657_v37 }
 0x305   :  { %v958_v4 = vpop.xlane.xlu0 %957  ;;  %v5667_v8 = vsel %vm998_vm6, -3.4028235e+38, %v5487_v1 }
 0x306   :  { %vm997_vm7 = vcmp.eq.f32.partialorder %v5501_v60, %v958_v4 }
 0x307   :  { %v936_v25 = vpop.xlane.xlu1 %935  ;;  %v5664_v34 = vsel %vm997_vm7, -3.4028235e+38, %v5501_v60 }
 0x308   :  { %vm986_vm8 = vcmp.eq.f32.partialorder %v5509_v33, %v936_v25  ;;  %1085 = vmax.xlane.f32.xlu0 %v5664_v34  ;;  %1087 = vmax.xlane.f32.xlu1 %v5667_v8 }
 0x309   :  { %v934_v16 = vpop.xlane.xlu0 %933  ;;  %v5677_v4 = vsel %vm986_vm8, -3.4028235e+38, %v5509_v33 }
 0x30a   :  { %vm985_vm9 = vcmp.eq.f32.partialorder %v5517_v57, %v934_v16 }
 0x30b   :  { %v968_v46 = vpop.xlane.xlu1 %967  ;;  %v5674_v55 = vsel %vm985_vm9, -3.4028235e+38, %v5517_v57 }
 0x30c   :  { %vm1002_vm10 = vcmp.eq.f32.partialorder %v5522_v62, %v968_v46  ;;  %1061 = vmax.xlane.f32.xlu0 %v5674_v55  ;;  %1063 = vmax.xlane.f32.xlu1 %v5677_v4 }
 0x30d   :  { %v966_v25 = vpop.xlane.xlu0 %965  ;;  %v5687_v16 = vsel %vm1002_vm10, -3.4028235e+38, %v5522_v62 }
 0x30e   :  { %vm1001_vm11 = vcmp.eq.f32.partialorder %v5527_v9, %v966_v25 }
 0x30f   :  { %v972_v1 = vpop.xlane.xlu1 %971  ;;  %v5684_v60 = vsel %vm1001_vm11, -3.4028235e+38, %v5527_v9 }
 0x310   :  { %vm1004_vm12 = vcmp.eq.f32.partialorder %v5532_v18, %v972_v1  ;;  %1093 = vmax.xlane.f32.xlu0 %v5684_v60  ;;  %1095 = vmax.xlane.f32.xlu1 %v5687_v16 }
 0x311   :  { %v970_v46 = vpop.xlane.xlu0 %969  ;;  %v5697_v25 = vsel %vm1004_vm12, -3.4028235e+38, %v5532_v18 }
 0x312   :  { %vm1003_vm13 = vcmp.eq.f32.partialorder %v5537_v11, %v970_v46 }
 0x313   :  { %v940_v33 = vpop.xlane.xlu1 %939  ;;  %v5694_v57 = vsel %vm1003_vm13, -3.4028235e+38, %v5537_v11 }
 0x314   :  { %vm988_vm14 = vcmp.eq.f32.partialorder %v5542_v30, %v940_v33  ;;  %1097 = vmax.xlane.f32.xlu0 %v5694_v57  ;;  %1099 = vmax.xlane.f32.xlu1 %v5697_v25 }
 0x315   :  { %v938_v1 = vpop.xlane.xlu0 %937  ;;  %v5707_v46 = vsel %vm988_vm14, -3.4028235e+38, %v5542_v30 }
 0x316   :  { %vm987_vm15 = vcmp.eq.f32.partialorder %v5547_v45, %v938_v1 }
 0x317   :  { %v5704_v62 = vsel %vm987_vm15, -3.4028235e+38, %v5547_v45 }
 0x318   :  { %1065 = vmax.xlane.f32.xlu0 %v5704_v62  ;;  %1067 = vmax.xlane.f32.xlu1 %v5707_v46 }
 0x35d   :  { %v1042_v18 = vpop.xlane.xlu0 %1041 }
 0x35e   :  { %vm1103_vm0 = vcmp.eq.f32.partialorder %v5553_v10, %v1042_v18 }
 0x35f   :  { %v5713_v33 = vsel %vm1103_vm0, -3.4028235e+38, %v5553_v10 }
 0x360   :  { %1169 = vmax.xlane.f32.xlu0 %v5713_v33 }
 0x361   :  { %v1038_v11 = vpop.xlane.xlu0 %1037 }
 0x362   :  { %vm1101_vm1 = vcmp.eq.f32.partialorder %v5559_v20, %v1038_v11  ;;  %v1044_v1 = vpop.xlane.xlu1 %1043 }
 0x363   :  { %vm1104_vm2 = vcmp.eq.f32.partialorder %v5563_v56, %v1044_v1  ;;  %v5719_v30 = vsel %vm1101_vm1, -3.4028235e+38, %v5559_v20 }
 0x364   :  { %1165 = vmax.xlane.f32.xlu0 %v5719_v30  ;;  %v5723_v45 = vsel %vm1104_vm2, -3.4028235e+38, %v5563_v56 }
 0x365   :  { %v1050_v18 = vpop.xlane.xlu0 %1049  ;;  %1171 = vmax.xlane.f32.xlu1 %v5723_v45 }
 0x366   :  { %vm1107_vm3 = vcmp.eq.f32.partialorder %v5569_v5, %v1050_v18  ;;  %v1040_v10 = vpop.xlane.xlu1 %1039 }
 0x367   :  { %vm1102_vm4 = vcmp.eq.f32.partialorder %v5573_v59, %v1040_v10  ;;  %v5729_v11 = vsel %vm1107_vm3, -3.4028235e+38, %v5569_v5 }
 0x368   :  { %1177 = vmax.xlane.f32.xlu0 %v5729_v11  ;;  %v5733_v20 = vsel %vm1102_vm4, -3.4028235e+38, %v5573_v59 }
 0x369   :  { %v1046_v1 = vpop.xlane.xlu0 %1045  ;;  %1167 = vmax.xlane.f32.xlu1 %v5733_v20 }
 0x36a   :  { %vm1105_vm5 = vcmp.eq.f32.partialorder %v5579_v23, %v1046_v1  ;;  %v1052_v56 = vpop.xlane.xlu1 %1051 }
 0x36b   :  { %vm1108_vm6 = vcmp.eq.f32.partialorder %v5583_v0, %v1052_v56  ;;  %v5739_v18 = vsel %vm1105_vm5, -3.4028235e+38, %v5579_v23 }
 0x36c   :  { %1173 = vmax.xlane.f32.xlu0 %v5739_v18  ;;  %v5743_v5 = vsel %vm1108_vm6, -3.4028235e+38, %v5583_v0 }
 0x36d   :  { %v1058_v10 = vpop.xlane.xlu0 %1057  ;;  %1179 = vmax.xlane.f32.xlu1 %v5743_v5 }
 0x36e   :  { %vm1111_vm7 = vcmp.eq.f32.partialorder %v5589_v15, %v1058_v10  ;;  %v1048_v59 = vpop.xlane.xlu1 %1047 }
 0x36f   :  { %vm1106_vm8 = vcmp.eq.f32.partialorder %v5593_v49, %v1048_v59  ;;  %v5749_v1 = vsel %vm1111_vm7, -3.4028235e+38, %v5589_v15 }
 0x370   :  { %1185 = vmax.xlane.f32.xlu0 %v5749_v1  ;;  %v5753_v23 = vsel %vm1106_vm8, -3.4028235e+38, %v5593_v49 }
 0x371   :  { %v1054_v56 = vpop.xlane.xlu0 %1053  ;;  %1175 = vmax.xlane.f32.xlu1 %v5753_v23 }
 0x372   :  { %vm1109_vm9 = vcmp.eq.f32.partialorder %v5599_v58, %v1054_v56  ;;  %v1060_v0 = vpop.xlane.xlu1 %1059 }
 0x373   :  { %vm1112_vm10 = vcmp.eq.f32.partialorder %v5603_v43, %v1060_v0  ;;  %v5759_v10 = vsel %vm1109_vm9, -3.4028235e+38, %v5599_v58 }
 0x374   :  { %1181 = vmax.xlane.f32.xlu0 %v5759_v10  ;;  %v5763_v15 = vsel %vm1112_vm10, -3.4028235e+38, %v5603_v43 }
 0x375   :  { %1187 = vmax.xlane.f32.xlu1 %v5763_v15 }
 0x376   :  { %v1056_v49 = vpop.xlane.xlu1 %1055 }
 0x377   :  { %vm1110_vm11 = vcmp.eq.f32.partialorder %v5608_v14, %v1056_v49 }
 0x378   :  { %v5768_v59 = vsel %vm1110_vm11, -3.4028235e+38, %v5608_v14 }
 0x379   :  { %1183 = vmax.xlane.f32.xlu1 %v5768_v59 }
 0x37d   :  { %v1074_v56 = vpop.xlane.xlu0 %1073 }
 0x37e   :  { %vm1119_vm12 = vcmp.eq.f32.partialorder %v5613_v13, %v1074_v56 }
 0x37f   :  { %v1076_v58 = vpop.xlane.xlu1 %1075  ;;  %v5773_v0 = vsel %vm1119_vm12, -3.4028235e+38, %v5613_v13 }
 0x380   :  { %vm1120_vm13 = vcmp.eq.f32.partialorder %v5618_v3, %v1076_v58  ;;  %1201 = vmax.xlane.f32.xlu0 %v5773_v0 }
 0x381   :  { %v1070_v43 = vpop.xlane.xlu0 %1069  ;;  %v5778_v9 = vsel %vm1120_vm13, -3.4028235e+38, %v5618_v3 }
 0x382   :  { %vm1117_vm14 = vcmp.eq.f32.partialorder %v5623_v32, %v1070_v43  ;;  %1203 = vmax.xlane.f32.xlu1 %v5778_v9 }
 0x383   :  { %v5783_v14 = vsel %vm1117_vm14, -3.4028235e+38, %v5623_v32 }
 0x384   :  { %1197 = vmax.xlane.f32.xlu0 %v5783_v14 }
 0x385   :  { %v1072_v49 = vpop.xlane.xlu1 %1071 }
 0x386   :  { %vm1118_vm15 = vcmp.eq.f32.partialorder %v5628_v17, %v1072_v49 }
 0x387   :  { %v5788_v13 = vsel %vm1118_vm15, -3.4028235e+38, %v5628_v17 }
 0x388   :  { %1199 = vmax.xlane.f32.xlu1 %v5788_v13 }
 0x389   :  { %v1082_v56 = vpop.xlane.xlu0 %1081  ;;  %v1084_v3 = vpop.xlane.xlu1 %1083 }
 0x38a   :  { %vm1123_vm0 = vcmp.eq.f32.partialorder %v5634_v7, %v1082_v56  ;;  %vm1124_vm1 = vcmp.eq.f32.partialorder %v5637_v6, %v1084_v3 }
 0x38b   :  { %v5794_v58 = vsel %vm1123_vm0, -3.4028235e+38, %v5634_v7  ;;  %v5797_v32 = vsel %vm1124_vm1, -3.4028235e+38, %v5637_v6 }
 0x38c   :  { %1209 = vmax.xlane.f32.xlu0 %v5794_v58  ;;  %1211 = vmax.xlane.f32.xlu1 %v5797_v32 }
 0x38d   :  { %v1078_v17 = vpop.xlane.xlu0 %1077  ;;  %v1080_v43 = vpop.xlane.xlu1 %1079 }
 0x38e   :  { %vm1121_vm2 = vcmp.eq.f32.partialorder %v5644_v12, %v1078_v17  ;;  %vm1122_vm3 = vcmp.eq.f32.partialorder %v5647_v63, %v1080_v43 }
 0x38f   :  { %v5804_v49 = vsel %vm1121_vm2, -3.4028235e+38, %v5644_v12  ;;  %v5807_v56 = vsel %vm1122_vm3, -3.4028235e+38, %v5647_v63 }
 0x390   :  { %1205 = vmax.xlane.f32.xlu0 %v5804_v49  ;;  %1207 = vmax.xlane.f32.xlu1 %v5807_v56 }
 0x391   :  { %v1090_v6 = vpop.xlane.xlu0 %1089  ;;  %v1092_v7 = vpop.xlane.xlu1 %1091 }
 0x392   :  { %vm1127_vm4 = vcmp.eq.f32.partialorder %v5654_v19, %v1090_v6  ;;  %vm1128_vm5 = vcmp.eq.f32.partialorder %v5657_v37, %v1092_v7 }
 0x393   :  { %v5814_v3 = vsel %vm1127_vm4, -3.4028235e+38, %v5654_v19  ;;  %v5817_v17 = vsel %vm1128_vm5, -3.4028235e+38, %v5657_v37 }
 0x394   :  { %1217 = vmax.xlane.f32.xlu0 %v5814_v3  ;;  %1219 = vmax.xlane.f32.xlu1 %v5817_v17 }
 0x395   :  { %v1086_v12 = vpop.xlane.xlu0 %1085  ;;  %v1088_v63 = vpop.xlane.xlu1 %1087 }
 0x396   :  { %vm1125_vm6 = vcmp.eq.f32.partialorder %v5664_v34, %v1086_v12  ;;  %vm1126_vm7 = vcmp.eq.f32.partialorder %v5667_v8, %v1088_v63 }
 0x397   :  { %v5824_v43 = vsel %vm1125_vm6, -3.4028235e+38, %v5664_v34  ;;  %v5827_v6 = vsel %vm1126_vm7, -3.4028235e+38, %v5667_v8 }
 0x398   :  { %1213 = vmax.xlane.f32.xlu0 %v5824_v43  ;;  %1215 = vmax.xlane.f32.xlu1 %v5827_v6 }
 0x399   :  { %v1062_v19 = vpop.xlane.xlu0 %1061  ;;  %v1064_v37 = vpop.xlane.xlu1 %1063 }
 0x39a   :  { %vm1113_vm8 = vcmp.eq.f32.partialorder %v5674_v55, %v1062_v19  ;;  %vm1114_vm9 = vcmp.eq.f32.partialorder %v5677_v4, %v1064_v37 }
 0x39b   :  { %v5834_v7 = vsel %vm1113_vm8, -3.4028235e+38, %v5674_v55  ;;  %v5837_v12 = vsel %vm1114_vm9, -3.4028235e+38, %v5677_v4 }
 0x39c   :  { %1189 = vmax.xlane.f32.xlu0 %v5834_v7  ;;  %1191 = vmax.xlane.f32.xlu1 %v5837_v12 }
 0x39d   :  { %v1094_v34 = vpop.xlane.xlu0 %1093  ;;  %v1096_v8 = vpop.xlane.xlu1 %1095 }
 0x39e   :  { %vm1129_vm10 = vcmp.eq.f32.partialorder %v5684_v60, %v1094_v34  ;;  %vm1130_vm11 = vcmp.eq.f32.partialorder %v5687_v16, %v1096_v8 }
 0x39f   :  { %v5844_v63 = vsel %vm1129_vm10, -3.4028235e+38, %v5684_v60  ;;  %v5847_v19 = vsel %vm1130_vm11, -3.4028235e+38, %v5687_v16 }
 0x3a0   :  { %1221 = vmax.xlane.f32.xlu0 %v5844_v63  ;;  %1223 = vmax.xlane.f32.xlu1 %v5847_v19 }
 0x3a1   :  { %v1098_v55 = vpop.xlane.xlu0 %1097  ;;  %v1100_v4 = vpop.xlane.xlu1 %1099 }
 0x3a2   :  { %vm1131_vm12 = vcmp.eq.f32.partialorder %v5694_v57, %v1098_v55  ;;  %vm1132_vm13 = vcmp.eq.f32.partialorder %v5697_v25, %v1100_v4 }
 0x3a3   :  { %v5854_v37 = vsel %vm1131_vm12, -3.4028235e+38, %v5694_v57  ;;  %v5857_v34 = vsel %vm1132_vm13, -3.4028235e+38, %v5697_v25 }
 0x3a4   :  { %1225 = vmax.xlane.f32.xlu0 %v5854_v37  ;;  %1227 = vmax.xlane.f32.xlu1 %v5857_v34 }
 0x3a5   :  { %v1066_v60 = vpop.xlane.xlu0 %1065  ;;  %v1068_v16 = vpop.xlane.xlu1 %1067 }
 0x3a6   :  { %vm1115_vm14 = vcmp.eq.f32.partialorder %v5704_v62, %v1066_v60  ;;  %vm1116_vm15 = vcmp.eq.f32.partialorder %v5707_v46, %v1068_v16 }
 0x3a7   :  { %v5864_v8 = vsel %vm1115_vm14, -3.4028235e+38, %v5704_v62  ;;  %v5867_v55 = vsel %vm1116_vm15, -3.4028235e+38, %v5707_v46 }
 0x3a8   :  { %1193 = vmax.xlane.f32.xlu0 %v5864_v8  ;;  %1195 = vmax.xlane.f32.xlu1 %v5867_v55 }
 0x3ed   :  { %v1170_v57 = vpop.xlane.xlu0 %1169 }
 0x3ee   :  { %vm1231_vm0 = vcmp.eq.f32.partialorder %v5713_v33, %v1170_v57 }
 0x3ef   :  { %v5873_v25 = vsel %vm1231_vm0, -3.4028235e+38, %v5713_v33 }
 0x3f0   :  { %1297 = vmax.xlane.f32.xlu0 %v5873_v25 }
 0x3f1   :  { %v1166_v4 = vpop.xlane.xlu0 %1165 }
 0x3f2   :  { %vm1229_vm1 = vcmp.eq.f32.partialorder %v5719_v30, %v1166_v4  ;;  %v1172_v62 = vpop.xlane.xlu1 %1171 }
 0x3f3   :  { %vm1232_vm2 = vcmp.eq.f32.partialorder %v5723_v45, %v1172_v62  ;;  %v5879_v46 = vsel %vm1229_vm1, -3.4028235e+38, %v5719_v30 }
 0x3f4   :  { %1293 = vmax.xlane.f32.xlu0 %v5879_v46  ;;  %v5883_v60 = vsel %vm1232_vm2, -3.4028235e+38, %v5723_v45 }
 0x3f5   :  { %v1178_v16 = vpop.xlane.xlu0 %1177  ;;  %1299 = vmax.xlane.f32.xlu1 %v5883_v60 }
 0x3f6   :  { %vm1235_vm3 = vcmp.eq.f32.partialorder %v5729_v11, %v1178_v16  ;;  %v1168_v33 = vpop.xlane.xlu1 %1167 }
 0x3f7   :  { %vm1230_vm4 = vcmp.eq.f32.partialorder %v5733_v20, %v1168_v33  ;;  %v5889_v57 = vsel %vm1235_vm3, -3.4028235e+38, %v5729_v11 }
 0x3f8   :  { %1305 = vmax.xlane.f32.xlu0 %v5889_v57  ;;  %v5893_v30 = vsel %vm1230_vm4, -3.4028235e+38, %v5733_v20 }
 0x3f9   :  { %v1174_v4 = vpop.xlane.xlu0 %1173  ;;  %1295 = vmax.xlane.f32.xlu1 %v5893_v30 }
 0x3fa   :  { %vm1233_vm5 = vcmp.eq.f32.partialorder %v5739_v18, %v1174_v4  ;;  %v1180_v45 = vpop.xlane.xlu1 %1179 }
 0x3fb   :  { %vm1236_vm6 = vcmp.eq.f32.partialorder %v5743_v5, %v1180_v45  ;;  %v5899_v62 = vsel %vm1233_vm5, -3.4028235e+38, %v5739_v18 }
 0x3fc   :  { %1301 = vmax.xlane.f32.xlu0 %v5899_v62  ;;  %v5903_v11 = vsel %vm1236_vm6, -3.4028235e+38, %v5743_v5 }
 0x3fd   :  { %v1186_v16 = vpop.xlane.xlu0 %1185  ;;  %1307 = vmax.xlane.f32.xlu1 %v5903_v11 }
 0x3fe   :  { %vm1239_vm7 = vcmp.eq.f32.partialorder %v5749_v1, %v1186_v16  ;;  %v1176_v20 = vpop.xlane.xlu1 %1175 }
 0x3ff   :  { %vm1234_vm8 = vcmp.eq.f32.partialorder %v5753_v23, %v1176_v20  ;;  %v5909_v33 = vsel %vm1239_vm7, -3.4028235e+38, %v5749_v1 }
 0x400   :  { %1313 = vmax.xlane.f32.xlu0 %v5909_v33  ;;  %v5913_v18 = vsel %vm1234_vm8, -3.4028235e+38, %v5753_v23 }
 0x401   :  { %v1182_v4 = vpop.xlane.xlu0 %1181  ;;  %1303 = vmax.xlane.f32.xlu1 %v5913_v18 }
 0x402   :  { %vm1237_vm9 = vcmp.eq.f32.partialorder %v5759_v10, %v1182_v4  ;;  %v1188_v5 = vpop.xlane.xlu1 %1187 }
 0x403   :  { %vm1240_vm10 = vcmp.eq.f32.partialorder %v5763_v15, %v1188_v5  ;;  %v5919_v45 = vsel %vm1237_vm9, -3.4028235e+38, %v5759_v10 }
 0x404   :  { %1309 = vmax.xlane.f32.xlu0 %v5919_v45  ;;  %v5923_v1 = vsel %vm1240_vm10, -3.4028235e+38, %v5763_v15 }
 0x405   :  { %1315 = vmax.xlane.f32.xlu1 %v5923_v1 }
 0x406   :  { %v1184_v23 = vpop.xlane.xlu1 %1183 }
 0x407   :  { %vm1238_vm11 = vcmp.eq.f32.partialorder %v5768_v59, %v1184_v23 }
 0x408   :  { %v5928_v16 = vsel %vm1238_vm11, -3.4028235e+38, %v5768_v59 }
 0x409   :  { %1311 = vmax.xlane.f32.xlu1 %v5928_v16 }
 0x40d   :  { %v1202_v20 = vpop.xlane.xlu0 %1201 }
 0x40e   :  { %vm1247_vm12 = vcmp.eq.f32.partialorder %v5773_v0, %v1202_v20 }
 0x40f   :  { %v1204_v10 = vpop.xlane.xlu1 %1203  ;;  %v5933_v4 = vsel %vm1247_vm12, -3.4028235e+38, %v5773_v0 }
 0x410   :  { %vm1248_vm13 = vcmp.eq.f32.partialorder %v5778_v9, %v1204_v10  ;;  %1329 = vmax.xlane.f32.xlu0 %v5933_v4 }
 0x411   :  { %v1198_v15 = vpop.xlane.xlu0 %1197  ;;  %v5938_v5 = vsel %vm1248_vm13, -3.4028235e+38, %v5778_v9 }
 0x412   :  { %vm1245_vm14 = vcmp.eq.f32.partialorder %v5783_v14, %v1198_v15  ;;  %1331 = vmax.xlane.f32.xlu1 %v5938_v5 }
 0x413   :  { %v5943_v59 = vsel %vm1245_vm14, -3.4028235e+38, %v5783_v14 }
 0x414   :  { %1325 = vmax.xlane.f32.xlu0 %v5943_v59 }
 0x415   :  { %v1200_v23 = vpop.xlane.xlu1 %1199 }
 0x416   :  { %vm1246_vm15 = vcmp.eq.f32.partialorder %v5788_v13, %v1200_v23 }
 0x417   :  { %v5948_v0 = vsel %vm1246_vm15, -3.4028235e+38, %v5788_v13 }
 0x418   :  { %1327 = vmax.xlane.f32.xlu1 %v5948_v0 }
 0x419   :  { %v1210_v20 = vpop.xlane.xlu0 %1209  ;;  %v1212_v9 = vpop.xlane.xlu1 %1211 }
 0x41a   :  { %vm1251_vm0 = vcmp.eq.f32.partialorder %v5794_v58, %v1210_v20  ;;  %vm1252_vm1 = vcmp.eq.f32.partialorder %v5797_v32, %v1212_v9 }
 0x41b   :  { %v5954_v10 = vsel %vm1251_vm0, -3.4028235e+38, %v5794_v58  ;;  %v5957_v14 = vsel %vm1252_vm1, -3.4028235e+38, %v5797_v32 }
 0x41c   :  { %1337 = vmax.xlane.f32.xlu0 %v5954_v10  ;;  %1339 = vmax.xlane.f32.xlu1 %v5957_v14 }
 0x41d   :  { %v1206_v13 = vpop.xlane.xlu0 %1205  ;;  %v1208_v15 = vpop.xlane.xlu1 %1207 }
 0x41e   :  { %vm1249_vm2 = vcmp.eq.f32.partialorder %v5804_v49, %v1206_v13  ;;  %vm1250_vm3 = vcmp.eq.f32.partialorder %v5807_v56, %v1208_v15 }
 0x41f   :  { %v5964_v23 = vsel %vm1249_vm2, -3.4028235e+38, %v5804_v49  ;;  %v5967_v20 = vsel %vm1250_vm3, -3.4028235e+38, %v5807_v56 }
 0x420   :  { %1333 = vmax.xlane.f32.xlu0 %v5964_v23  ;;  %1335 = vmax.xlane.f32.xlu1 %v5967_v20 }
 0x421   :  { %v1218_v58 = vpop.xlane.xlu0 %1217  ;;  %v1220_v32 = vpop.xlane.xlu1 %1219 }
 0x422   :  { %vm1255_vm4 = vcmp.eq.f32.partialorder %v5814_v3, %v1218_v58  ;;  %vm1256_vm5 = vcmp.eq.f32.partialorder %v5817_v17, %v1220_v32 }
 0x423   :  { %v5974_v9 = vsel %vm1255_vm4, -3.4028235e+38, %v5814_v3  ;;  %v5977_v13 = vsel %vm1256_vm5, -3.4028235e+38, %v5817_v17 }
 0x424   :  { %1345 = vmax.xlane.f32.xlu0 %v5974_v9  ;;  %1347 = vmax.xlane.f32.xlu1 %v5977_v13 }
 0x425   :  { %v1214_v49 = vpop.xlane.xlu0 %1213  ;;  %v1216_v56 = vpop.xlane.xlu1 %1215 }
 0x426   :  { %vm1253_vm6 = vcmp.eq.f32.partialorder %v5824_v43, %v1214_v49  ;;  %vm1254_vm7 = vcmp.eq.f32.partialorder %v5827_v6, %v1216_v56 }
 0x427   :  { %v5984_v15 = vsel %vm1253_vm6, -3.4028235e+38, %v5824_v43  ;;  %v5987_v58 = vsel %vm1254_vm7, -3.4028235e+38, %v5827_v6 }
 0x428   :  { %1341 = vmax.xlane.f32.xlu0 %v5984_v15  ;;  %1343 = vmax.xlane.f32.xlu1 %v5987_v58 }
 0x429   :  { %v1190_v3 = vpop.xlane.xlu0 %1189  ;;  %v1192_v17 = vpop.xlane.xlu1 %1191 }
 0x42a   :  { %vm1241_vm8 = vcmp.eq.f32.partialorder %v5834_v7, %v1190_v3  ;;  %vm1242_vm9 = vcmp.eq.f32.partialorder %v5837_v12, %v1192_v17 }
 0x42b   :  { %v5994_v32 = vsel %vm1241_vm8, -3.4028235e+38, %v5834_v7  ;;  %v5997_v49 = vsel %vm1242_vm9, -3.4028235e+38, %v5837_v12 }
 0x42c   :  { %1317 = vmax.xlane.f32.xlu0 %v5994_v32  ;;  %1319 = vmax.xlane.f32.xlu1 %v5997_v49 }
 0x42d   :  { %v1222_v43 = vpop.xlane.xlu0 %1221  ;;  %v1224_v6 = vpop.xlane.xlu1 %1223 }
 0x42e   :  { %vm1257_vm10 = vcmp.eq.f32.partialorder %v5844_v63, %v1222_v43  ;;  %vm1258_vm11 = vcmp.eq.f32.partialorder %v5847_v19, %v1224_v6 }
 0x42f   :  { %v6004_v56 = vsel %vm1257_vm10, -3.4028235e+38, %v5844_v63  ;;  %v6007_v3 = vsel %vm1258_vm11, -3.4028235e+38, %v5847_v19 }
 0x430   :  { %1349 = vmax.xlane.f32.xlu0 %v6004_v56  ;;  %1351 = vmax.xlane.f32.xlu1 %v6007_v3 }
 0x431   :  { %v1226_v7 = vpop.xlane.xlu0 %1225  ;;  %v1228_v12 = vpop.xlane.xlu1 %1227 }
 0x432   :  { %vm1259_vm12 = vcmp.eq.f32.partialorder %v5854_v37, %v1226_v7  ;;  %vm1260_vm13 = vcmp.eq.f32.partialorder %v5857_v34, %v1228_v12 }
 0x433   :  { %v6014_v17 = vsel %vm1259_vm12, -3.4028235e+38, %v5854_v37  ;;  %v6017_v43 = vsel %vm1260_vm13, -3.4028235e+38, %v5857_v34 }
 0x434   :  { %1353 = vmax.xlane.f32.xlu0 %v6014_v17  ;;  %1355 = vmax.xlane.f32.xlu1 %v6017_v43 }
 0x435   :  { %v1194_v63 = vpop.xlane.xlu0 %1193  ;;  %v1196_v19 = vpop.xlane.xlu1 %1195 }
 0x436   :  { %vm1243_vm14 = vcmp.eq.f32.partialorder %v5864_v8, %v1194_v63  ;;  %vm1244_vm15 = vcmp.eq.f32.partialorder %v5867_v55, %v1196_v19 }
 0x437   :  { %v6024_v6 = vsel %vm1243_vm14, -3.4028235e+38, %v5864_v8  ;;  %v6027_v7 = vsel %vm1244_vm15, -3.4028235e+38, %v5867_v55 }
 0x438   :  { %1321 = vmax.xlane.f32.xlu0 %v6024_v6  ;;  %1323 = vmax.xlane.f32.xlu1 %v6027_v7 }
 0x47d   :  { %v1298_v37 = vpop.xlane.xlu0 %1297 }
 0x47e   :  { %vm1359_vm0 = vcmp.eq.f32.partialorder %v5873_v25, %v1298_v37 }
 0x47f   :  { %v6033_v34 = vsel %vm1359_vm0, -3.4028235e+38, %v5873_v25 }
 0x480   :  { %1425 = vmax.xlane.f32.xlu0 %v6033_v34 }
 0x481   :  { %v1294_v12 = vpop.xlane.xlu0 %1293 }
 0x482   :  { %vm1357_vm1 = vcmp.eq.f32.partialorder %v5879_v46, %v1294_v12  ;;  %v1300_v8 = vpop.xlane.xlu1 %1299 }
 0x483   :  { %vm1360_vm2 = vcmp.eq.f32.partialorder %v5883_v60, %v1300_v8  ;;  %v6039_v55 = vsel %vm1357_vm1, -3.4028235e+38, %v5879_v46 }
 0x484   :  { %1421 = vmax.xlane.f32.xlu0 %v6039_v55  ;;  %v6043_v63 = vsel %vm1360_vm2, -3.4028235e+38, %v5883_v60 }
 0x485   :  { %v1306_v19 = vpop.xlane.xlu0 %1305  ;;  %1427 = vmax.xlane.f32.xlu1 %v6043_v63 }
 0x486   :  { %vm1363_vm3 = vcmp.eq.f32.partialorder %v5889_v57, %v1306_v19  ;;  %v1296_v25 = vpop.xlane.xlu1 %1295 }
 0x487   :  { %vm1358_vm4 = vcmp.eq.f32.partialorder %v5893_v30, %v1296_v25  ;;  %v6049_v37 = vsel %vm1363_vm3, -3.4028235e+38, %v5889_v57 }
 0x488   :  { %1433 = vmax.xlane.f32.xlu0 %v6049_v37  ;;  %v6053_v46 = vsel %vm1358_vm4, -3.4028235e+38, %v5893_v30 }
 0x489   :  { %v1302_v12 = vpop.xlane.xlu0 %1301  ;;  %1423 = vmax.xlane.f32.xlu1 %v6053_v46 }
 0x48a   :  { %vm1361_vm5 = vcmp.eq.f32.partialorder %v5899_v62, %v1302_v12  ;;  %v1308_v60 = vpop.xlane.xlu1 %1307 }
 0x48b   :  { %vm1364_vm6 = vcmp.eq.f32.partialorder %v5903_v11, %v1308_v60  ;;  %v6059_v8 = vsel %vm1361_vm5, -3.4028235e+38, %v5899_v62 }
 0x48c   :  { %1429 = vmax.xlane.f32.xlu0 %v6059_v8  ;;  %v6063_v57 = vsel %vm1364_vm6, -3.4028235e+38, %v5903_v11 }
 0x48d   :  { %v1314_v19 = vpop.xlane.xlu0 %1313  ;;  %1435 = vmax.xlane.f32.xlu1 %v6063_v57 }
 0x48e   :  { %vm1367_vm7 = vcmp.eq.f32.partialorder %v5909_v33, %v1314_v19  ;;  %v1304_v30 = vpop.xlane.xlu1 %1303 }
 0x48f   :  { %vm1362_vm8 = vcmp.eq.f32.partialorder %v5913_v18, %v1304_v30  ;;  %v6069_v25 = vsel %vm1367_vm7, -3.4028235e+38, %v5909_v33 }
 0x490   :  { %1441 = vmax.xlane.f32.xlu0 %v6069_v25  ;;  %v6073_v62 = vsel %vm1362_vm8, -3.4028235e+38, %v5913_v18 }
 0x491   :  { %v1310_v12 = vpop.xlane.xlu0 %1309  ;;  %1431 = vmax.xlane.f32.xlu1 %v6073_v62 }
 0x492   :  { %vm1365_vm9 = vcmp.eq.f32.partialorder %v5919_v45, %v1310_v12  ;;  %v1316_v11 = vpop.xlane.xlu1 %1315 }
 0x493   :  { %vm1368_vm10 = vcmp.eq.f32.partialorder %v5923_v1, %v1316_v11  ;;  %v6079_v60 = vsel %vm1365_vm9, -3.4028235e+38, %v5919_v45 }
 0x494   :  { %1437 = vmax.xlane.f32.xlu0 %v6079_v60  ;;  %v6083_v33 = vsel %vm1368_vm10, -3.4028235e+38, %v5923_v1 }
 0x495   :  { %1443 = vmax.xlane.f32.xlu1 %v6083_v33 }
 0x496   :  { %v1312_v18 = vpop.xlane.xlu1 %1311 }
 0x497   :  { %vm1366_vm11 = vcmp.eq.f32.partialorder %v5928_v16, %v1312_v18 }
 0x498   :  { %v6088_v19 = vsel %vm1366_vm11, -3.4028235e+38, %v5928_v16 }
 0x499   :  { %1439 = vmax.xlane.f32.xlu1 %v6088_v19 }
 0x49d   :  { %v1330_v30 = vpop.xlane.xlu0 %1329 }
 0x49e   :  { %vm1375_vm12 = vcmp.eq.f32.partialorder %v5933_v4, %v1330_v30 }
 0x49f   :  { %v1332_v45 = vpop.xlane.xlu1 %1331  ;;  %v6093_v12 = vsel %vm1375_vm12, -3.4028235e+38, %v5933_v4 }
 0x4a0   :  { %vm1376_vm13 = vcmp.eq.f32.partialorder %v5938_v5, %v1332_v45  ;;  %1457 = vmax.xlane.f32.xlu0 %v6093_v12 }
 0x4a1   :  { %v1326_v1 = vpop.xlane.xlu0 %1325  ;;  %v6098_v11 = vsel %vm1376_vm13, -3.4028235e+38, %v5938_v5 }
 0x4a2   :  { %vm1373_vm14 = vcmp.eq.f32.partialorder %v5943_v59, %v1326_v1  ;;  %1459 = vmax.xlane.f32.xlu1 %v6098_v11 }
 0x4a3   :  { %v6103_v16 = vsel %vm1373_vm14, -3.4028235e+38, %v5943_v59 }
 0x4a4   :  { %1453 = vmax.xlane.f32.xlu0 %v6103_v16 }
 0x4a5   :  { %v1328_v18 = vpop.xlane.xlu1 %1327 }
 0x4a6   :  { %vm1374_vm15 = vcmp.eq.f32.partialorder %v5948_v0, %v1328_v18 }
 0x4a7   :  { %v6108_v4 = vsel %vm1374_vm15, -3.4028235e+38, %v5948_v0 }
 0x4a8   :  { %1455 = vmax.xlane.f32.xlu1 %v6108_v4 }
 0x4a9   :  { %v1338_v30 = vpop.xlane.xlu0 %1337  ;;  %v1340_v5 = vpop.xlane.xlu1 %1339 }
 0x4aa   :  { %vm1379_vm0 = vcmp.eq.f32.partialorder %v5954_v10, %v1338_v30  ;;  %vm1380_vm1 = vcmp.eq.f32.partialorder %v5957_v14, %v1340_v5 }
 0x4ab   :  { %v6114_v45 = vsel %vm1379_vm0, -3.4028235e+38, %v5954_v10  ;;  %v6117_v59 = vsel %vm1380_vm1, -3.4028235e+38, %v5957_v14 }
 0x4ac   :  { %1465 = vmax.xlane.f32.xlu0 %v6114_v45  ;;  %1467 = vmax.xlane.f32.xlu1 %v6117_v59 }
 0x4ad   :  { %v1334_v0 = vpop.xlane.xlu0 %1333  ;;  %v1336_v1 = vpop.xlane.xlu1 %1335 }
 0x4ae   :  { %vm1377_vm2 = vcmp.eq.f32.partialorder %v5964_v23, %v1334_v0  ;;  %vm1378_vm3 = vcmp.eq.f32.partialorder %v5967_v20, %v1336_v1 }
 0x4af   :  { %v6124_v18 = vsel %vm1377_vm2, -3.4028235e+38, %v5964_v23  ;;  %v6127_v30 = vsel %vm1378_vm3, -3.4028235e+38, %v5967_v20 }
 0x4b0   :  { %1461 = vmax.xlane.f32.xlu0 %v6124_v18  ;;  %1463 = vmax.xlane.f32.xlu1 %v6127_v30 }
 0x4b1   :  { %v1346_v10 = vpop.xlane.xlu0 %1345  ;;  %v1348_v14 = vpop.xlane.xlu1 %1347 }
 0x4b2   :  { %vm1383_vm4 = vcmp.eq.f32.partialorder %v5974_v9, %v1346_v10  ;;  %vm1384_vm5 = vcmp.eq.f32.partialorder %v5977_v13, %v1348_v14 }
 0x4b3   :  { %v6134_v5 = vsel %vm1383_vm4, -3.4028235e+38, %v5974_v9  ;;  %v6137_v0 = vsel %vm1384_vm5, -3.4028235e+38, %v5977_v13 }
 0x4b4   :  { %1473 = vmax.xlane.f32.xlu0 %v6134_v5  ;;  %1475 = vmax.xlane.f32.xlu1 %v6137_v0 }
 0x4b5   :  { %v1342_v23 = vpop.xlane.xlu0 %1341  ;;  %v1344_v20 = vpop.xlane.xlu1 %1343 }
 0x4b6   :  { %vm1381_vm6 = vcmp.eq.f32.partialorder %v5984_v15, %v1342_v23  ;;  %vm1382_vm7 = vcmp.eq.f32.partialorder %v5987_v58, %v1344_v20 }
 0x4b7   :  { %v6144_v1 = vsel %vm1381_vm6, -3.4028235e+38, %v5984_v15  ;;  %v6147_v10 = vsel %vm1382_vm7, -3.4028235e+38, %v5987_v58 }
 0x4b8   :  { %1469 = vmax.xlane.f32.xlu0 %v6144_v1  ;;  %1471 = vmax.xlane.f32.xlu1 %v6147_v10 }
 0x4b9   :  { %v1318_v9 = vpop.xlane.xlu0 %1317  ;;  %v1320_v13 = vpop.xlane.xlu1 %1319 }
 0x4ba   :  { %vm1369_vm8 = vcmp.eq.f32.partialorder %v5994_v32, %v1318_v9  ;;  %vm1370_vm9 = vcmp.eq.f32.partialorder %v5997_v49, %v1320_v13 }
 0x4bb   :  { %v6154_v14 = vsel %vm1369_vm8, -3.4028235e+38, %v5994_v32  ;;  %v6157_v23 = vsel %vm1370_vm9, -3.4028235e+38, %v5997_v49 }
 0x4bc   :  { %1445 = vmax.xlane.f32.xlu0 %v6154_v14  ;;  %1447 = vmax.xlane.f32.xlu1 %v6157_v23 }
 0x4bd   :  { %v1350_v15 = vpop.xlane.xlu0 %1349  ;;  %v1352_v58 = vpop.xlane.xlu1 %1351 }
 0x4be   :  { %vm1385_vm10 = vcmp.eq.f32.partialorder %v6004_v56, %v1350_v15  ;;  %vm1386_vm11 = vcmp.eq.f32.partialorder %v6007_v3, %v1352_v58 }
 0x4bf   :  { %v6164_v20 = vsel %vm1385_vm10, -3.4028235e+38, %v6004_v56  ;;  %v6167_v9 = vsel %vm1386_vm11, -3.4028235e+38, %v6007_v3 }
 0x4c0   :  { %1477 = vmax.xlane.f32.xlu0 %v6164_v20  ;;  %1479 = vmax.xlane.f32.xlu1 %v6167_v9 }
 0x4c1   :  { %v1354_v32 = vpop.xlane.xlu0 %1353  ;;  %v1356_v49 = vpop.xlane.xlu1 %1355 }
 0x4c2   :  { %vm1387_vm12 = vcmp.eq.f32.partialorder %v6014_v17, %v1354_v32  ;;  %vm1388_vm13 = vcmp.eq.f32.partialorder %v6017_v43, %v1356_v49 }
 0x4c3   :  { %v6174_v13 = vsel %vm1387_vm12, -3.4028235e+38, %v6014_v17  ;;  %v6177_v15 = vsel %vm1388_vm13, -3.4028235e+38, %v6017_v43 }
 0x4c4   :  { %1481 = vmax.xlane.f32.xlu0 %v6174_v13  ;;  %1483 = vmax.xlane.f32.xlu1 %v6177_v15 }
 0x4c5   :  { %v1322_v56 = vpop.xlane.xlu0 %1321  ;;  %v1324_v3 = vpop.xlane.xlu1 %1323 }
 0x4c6   :  { %vm1371_vm14 = vcmp.eq.f32.partialorder %v6024_v6, %v1322_v56  ;;  %vm1372_vm15 = vcmp.eq.f32.partialorder %v6027_v7, %v1324_v3 }
 0x4c7   :  { %v6184_v58 = vsel %vm1371_vm14, -3.4028235e+38, %v6024_v6  ;;  %v6187_v32 = vsel %vm1372_vm15, -3.4028235e+38, %v6027_v7 }
 0x4c8   :  { %1449 = vmax.xlane.f32.xlu0 %v6184_v58  ;;  %1451 = vmax.xlane.f32.xlu1 %v6187_v32 }
 0x50d   :  { %v1426_v17 = vpop.xlane.xlu0 %1425 }
 0x50e   :  { %vm1487_vm0 = vcmp.eq.f32.partialorder %v6033_v34, %v1426_v17 }
 0x50f   :  { %v6193_v43 = vsel %vm1487_vm0, -3.4028235e+38, %v6033_v34 }
 0x510   :  { %1553 = vmax.xlane.f32.xlu0 %v6193_v43 }
 0x511   :  { %v1422_v49 = vpop.xlane.xlu0 %1421 }
 0x512   :  { %vm1485_vm1 = vcmp.eq.f32.partialorder %v6039_v55, %v1422_v49  ;;  %v1428_v6 = vpop.xlane.xlu1 %1427 }
 0x513   :  { %vm1488_vm2 = vcmp.eq.f32.partialorder %v6043_v63, %v1428_v6  ;;  %v6199_v7 = vsel %vm1485_vm1, -3.4028235e+38, %v6039_v55 }
 0x514   :  { %1549 = vmax.xlane.f32.xlu0 %v6199_v7  ;;  %v6203_v56 = vsel %vm1488_vm2, -3.4028235e+38, %v6043_v63 }
 0x515   :  { %v1434_v3 = vpop.xlane.xlu0 %1433  ;;  %1555 = vmax.xlane.f32.xlu1 %v6203_v56 }
 0x516   :  { %vm1491_vm3 = vcmp.eq.f32.partialorder %v6049_v37, %v1434_v3  ;;  %v1424_v34 = vpop.xlane.xlu1 %1423 }
 0x517   :  { %vm1486_vm4 = vcmp.eq.f32.partialorder %v6053_v46, %v1424_v34  ;;  %v6209_v17 = vsel %vm1491_vm3, -3.4028235e+38, %v6049_v37 }
 0x518   :  { %1561 = vmax.xlane.f32.xlu0 %v6209_v17  ;;  %v6213_v55 = vsel %vm1486_vm4, -3.4028235e+38, %v6053_v46 }
 0x519   :  { %v1430_v49 = vpop.xlane.xlu0 %1429  ;;  %1551 = vmax.xlane.f32.xlu1 %v6213_v55 }
 0x51a   :  { %vm1489_vm5 = vcmp.eq.f32.partialorder %v6059_v8, %v1430_v49  ;;  %v1436_v63 = vpop.xlane.xlu1 %1435 }
 0x51b   :  { %vm1492_vm6 = vcmp.eq.f32.partialorder %v6063_v57, %v1436_v63  ;;  %v6219_v6 = vsel %vm1489_vm5, -3.4028235e+38, %v6059_v8 }
 0x51c   :  { %1557 = vmax.xlane.f32.xlu0 %v6219_v6  ;;  %v6223_v37 = vsel %vm1492_vm6, -3.4028235e+38, %v6063_v57 }
 0x51d   :  { %v1442_v3 = vpop.xlane.xlu0 %1441  ;;  %1563 = vmax.xlane.f32.xlu1 %v6223_v37 }
 0x51e   :  { %vm1495_vm7 = vcmp.eq.f32.partialorder %v6069_v25, %v1442_v3  ;;  %v1432_v46 = vpop.xlane.xlu1 %1431 }
 0x51f   :  { %vm1490_vm8 = vcmp.eq.f32.partialorder %v6073_v62, %v1432_v46  ;;  %v6229_v34 = vsel %vm1495_vm7, -3.4028235e+38, %v6069_v25 }
 0x520   :  { %1569 = vmax.xlane.f32.xlu0 %v6229_v34  ;;  %v6233_v8 = vsel %vm1490_vm8, -3.4028235e+38, %v6073_v62 }
 0x521   :  { %v1438_v49 = vpop.xlane.xlu0 %1437  ;;  %1559 = vmax.xlane.f32.xlu1 %v6233_v8 }
 0x522   :  { %vm1493_vm9 = vcmp.eq.f32.partialorder %v6079_v60, %v1438_v49  ;;  %v1444_v57 = vpop.xlane.xlu1 %1443 }
 0x523   :  { %vm1496_vm10 = vcmp.eq.f32.partialorder %v6083_v33, %v1444_v57  ;;  %v6239_v63 = vsel %vm1493_vm9, -3.4028235e+38, %v6079_v60 }
 0x524   :  { %1565 = vmax.xlane.f32.xlu0 %v6239_v63  ;;  %v6243_v25 = vsel %vm1496_vm10, -3.4028235e+38, %v6083_v33 }
 0x525   :  { %1571 = vmax.xlane.f32.xlu1 %v6243_v25 }
 0x526   :  { %v1440_v62 = vpop.xlane.xlu1 %1439 }
 0x527   :  { %vm1494_vm11 = vcmp.eq.f32.partialorder %v6088_v19, %v1440_v62 }
 0x528   :  { %v6248_v3 = vsel %vm1494_vm11, -3.4028235e+38, %v6088_v19 }
 0x529   :  { %1567 = vmax.xlane.f32.xlu1 %v6248_v3 }
 0x52d   :  { %v1458_v46 = vpop.xlane.xlu0 %1457 }
 0x52e   :  { %vm1503_vm12 = vcmp.eq.f32.partialorder %v6093_v12, %v1458_v46 }
 0x52f   :  { %v1460_v60 = vpop.xlane.xlu1 %1459  ;;  %v6253_v49 = vsel %vm1503_vm12, -3.4028235e+38, %v6093_v12 }
 0x530   :  { %vm1504_vm13 = vcmp.eq.f32.partialorder %v6098_v11, %v1460_v60  ;;  %1585 = vmax.xlane.f32.xlu0 %v6253_v49 }
 0x531   :  { %v1454_v33 = vpop.xlane.xlu0 %1453  ;;  %v6258_v57 = vsel %vm1504_vm13, -3.4028235e+38, %v6098_v11 }
 0x532   :  { %vm1501_vm14 = vcmp.eq.f32.partialorder %v6103_v16, %v1454_v33  ;;  %1587 = vmax.xlane.f32.xlu1 %v6258_v57 }
 0x533   :  { %v6263_v19 = vsel %vm1501_vm14, -3.4028235e+38, %v6103_v16 }
 0x534   :  { %1581 = vmax.xlane.f32.xlu0 %v6263_v19 }
 0x535   :  { %v1456_v62 = vpop.xlane.xlu1 %1455 }
 0x536   :  { %vm1502_vm15 = vcmp.eq.f32.partialorder %v6108_v4, %v1456_v62 }
 0x537   :  { %v6268_v12 = vsel %vm1502_vm15, -3.4028235e+38, %v6108_v4 }
 0x538   :  { %1583 = vmax.xlane.f32.xlu1 %v6268_v12 }
 0x539   :  { %v1466_v46 = vpop.xlane.xlu0 %1465  ;;  %v1468_v11 = vpop.xlane.xlu1 %1467 }
 0x53a   :  { %vm1507_vm0 = vcmp.eq.f32.partialorder %v6114_v45, %v1466_v46  ;;  %vm1508_vm1 = vcmp.eq.f32.partialorder %v6117_v59, %v1468_v11 }
 0x53b   :  { %v6274_v60 = vsel %vm1507_vm0, -3.4028235e+38, %v6114_v45  ;;  %v6277_v16 = vsel %vm1508_vm1, -3.4028235e+38, %v6117_v59 }
 0x53c   :  { %1593 = vmax.xlane.f32.xlu0 %v6274_v60  ;;  %1595 = vmax.xlane.f32.xlu1 %v6277_v16 }
 0x53d   :  { %v1462_v4 = vpop.xlane.xlu0 %1461  ;;  %v1464_v33 = vpop.xlane.xlu1 %1463 }
 0x53e   :  { %vm1505_vm2 = vcmp.eq.f32.partialorder %v6124_v18, %v1462_v4  ;;  %vm1506_vm3 = vcmp.eq.f32.partialorder %v6127_v30, %v1464_v33 }
 0x53f   :  { %v6284_v62 = vsel %vm1505_vm2, -3.4028235e+38, %v6124_v18  ;;  %v6287_v46 = vsel %vm1506_vm3, -3.4028235e+38, %v6127_v30 }
 0x540   :  { %1589 = vmax.xlane.f32.xlu0 %v6284_v62  ;;  %1591 = vmax.xlane.f32.xlu1 %v6287_v46 }
 0x541   :  { %v1474_v45 = vpop.xlane.xlu0 %1473  ;;  %v1476_v59 = vpop.xlane.xlu1 %1475 }
 0x542   :  { %vm1511_vm4 = vcmp.eq.f32.partialorder %v6134_v5, %v1474_v45  ;;  %vm1512_vm5 = vcmp.eq.f32.partialorder %v6137_v0, %v1476_v59 }
 0x543   :  { %v6294_v11 = vsel %vm1511_vm4, -3.4028235e+38, %v6134_v5  ;;  %v6297_v4 = vsel %vm1512_vm5, -3.4028235e+38, %v6137_v0 }
 0x544   :  { %1601 = vmax.xlane.f32.xlu0 %v6294_v11  ;;  %1603 = vmax.xlane.f32.xlu1 %v6297_v4 }
 0x545   :  { %v1470_v18 = vpop.xlane.xlu0 %1469  ;;  %v1472_v30 = vpop.xlane.xlu1 %1471 }
 0x546   :  { %vm1509_vm6 = vcmp.eq.f32.partialorder %v6144_v1, %v1470_v18  ;;  %vm1510_vm7 = vcmp.eq.f32.partialorder %v6147_v10, %v1472_v30 }
 0x547   :  { %v6304_v33 = vsel %vm1509_vm6, -3.4028235e+38, %v6144_v1  ;;  %v6307_v45 = vsel %vm1510_vm7, -3.4028235e+38, %v6147_v10 }
 0x548   :  { %1597 = vmax.xlane.f32.xlu0 %v6304_v33  ;;  %1599 = vmax.xlane.f32.xlu1 %v6307_v45 }
 0x549   :  { %v1446_v5 = vpop.xlane.xlu0 %1445  ;;  %v1448_v0 = vpop.xlane.xlu1 %1447 }
 0x54a   :  { %vm1497_vm8 = vcmp.eq.f32.partialorder %v6154_v14, %v1446_v5  ;;  %vm1498_vm9 = vcmp.eq.f32.partialorder %v6157_v23, %v1448_v0 }
 0x54b   :  { %v6314_v59 = vsel %vm1497_vm8, -3.4028235e+38, %v6154_v14  ;;  %v6317_v18 = vsel %vm1498_vm9, -3.4028235e+38, %v6157_v23 }
 0x54c   :  { %1573 = vmax.xlane.f32.xlu0 %v6314_v59  ;;  %1575 = vmax.xlane.f32.xlu1 %v6317_v18 }
 0x54d   :  { %v1478_v1 = vpop.xlane.xlu0 %1477  ;;  %v1480_v10 = vpop.xlane.xlu1 %1479 }
 0x54e   :  { %vm1513_vm10 = vcmp.eq.f32.partialorder %v6164_v20, %v1478_v1  ;;  %vm1514_vm11 = vcmp.eq.f32.partialorder %v6167_v9, %v1480_v10 }
 0x54f   :  { %v6324_v30 = vsel %vm1513_vm10, -3.4028235e+38, %v6164_v20  ;;  %v6327_v5 = vsel %vm1514_vm11, -3.4028235e+38, %v6167_v9 }
 0x550   :  { %1605 = vmax.xlane.f32.xlu0 %v6324_v30  ;;  %1607 = vmax.xlane.f32.xlu1 %v6327_v5 }
 0x551   :  { %v1482_v14 = vpop.xlane.xlu0 %1481  ;;  %v1484_v23 = vpop.xlane.xlu1 %1483 }
 0x552   :  { %vm1515_vm12 = vcmp.eq.f32.partialorder %v6174_v13, %v1482_v14  ;;  %vm1516_vm13 = vcmp.eq.f32.partialorder %v6177_v15, %v1484_v23 }
 0x553   :  { %v6334_v0 = vsel %vm1515_vm12, -3.4028235e+38, %v6174_v13  ;;  %v6337_v1 = vsel %vm1516_vm13, -3.4028235e+38, %v6177_v15 }
 0x554   :  { %1609 = vmax.xlane.f32.xlu0 %v6334_v0  ;;  %1611 = vmax.xlane.f32.xlu1 %v6337_v1 }
 0x555   :  { %v1450_v20 = vpop.xlane.xlu0 %1449  ;;  %v1452_v9 = vpop.xlane.xlu1 %1451 }
 0x556   :  { %vm1499_vm14 = vcmp.eq.f32.partialorder %v6184_v58, %v1450_v20  ;;  %vm1500_vm15 = vcmp.eq.f32.partialorder %v6187_v32, %v1452_v9 }
 0x557   :  { %v6344_v10 = vsel %vm1499_vm14, -3.4028235e+38, %v6184_v58  ;;  %v6347_v14 = vsel %vm1500_vm15, -3.4028235e+38, %v6187_v32 }
 0x558   :  { %1577 = vmax.xlane.f32.xlu0 %v6344_v10  ;;  %1579 = vmax.xlane.f32.xlu1 %v6347_v14 }
 0x59d   :  { %v1554_v13 = vpop.xlane.xlu0 %1553 }
 0x59e   :  { %vm1615_vm0 = vcmp.eq.f32.partialorder %v6193_v43, %v1554_v13 }
 0x59f   :  { %v6353_v15 = vsel %vm1615_vm0, -3.4028235e+38, %v6193_v43 }
 0x5a0   :  { %1681 = vmax.xlane.f32.xlu0 %v6353_v15 }
 0x5a1   :  { %v1550_v23 = vpop.xlane.xlu0 %1549 }
 0x5a2   :  { %vm1613_vm1 = vcmp.eq.f32.partialorder %v6199_v7, %v1550_v23  ;;  %v1556_v58 = vpop.xlane.xlu1 %1555 }
 0x5a3   :  { %vm1616_vm2 = vcmp.eq.f32.partialorder %v6203_v56, %v1556_v58  ;;  %v6359_v32 = vsel %vm1613_vm1, -3.4028235e+38, %v6199_v7 }
 0x5a4   :  { %1677 = vmax.xlane.f32.xlu0 %v6359_v32  ;;  %v6363_v20 = vsel %vm1616_vm2, -3.4028235e+38, %v6203_v56 }
 0x5a5   :  { %v1562_v9 = vpop.xlane.xlu0 %1561  ;;  %1683 = vmax.xlane.f32.xlu1 %v6363_v20 }
 0x5a6   :  { %vm1619_vm3 = vcmp.eq.f32.partialorder %v6209_v17, %v1562_v9  ;;  %v1552_v43 = vpop.xlane.xlu1 %1551 }
 0x5a7   :  { %vm1614_vm4 = vcmp.eq.f32.partialorder %v6213_v55, %v1552_v43  ;;  %v6369_v13 = vsel %vm1619_vm3, -3.4028235e+38, %v6209_v17 }
 0x5a8   :  { %1689 = vmax.xlane.f32.xlu0 %v6369_v13  ;;  %v6373_v7 = vsel %vm1614_vm4, -3.4028235e+38, %v6213_v55 }
 0x5a9   :  { %v1558_v23 = vpop.xlane.xlu0 %1557  ;;  %1679 = vmax.xlane.f32.xlu1 %v6373_v7 }
 0x5aa   :  { %vm1617_vm5 = vcmp.eq.f32.partialorder %v6219_v6, %v1558_v23  ;;  %v1564_v56 = vpop.xlane.xlu1 %1563 }
 0x5ab   :  { %vm1620_vm6 = vcmp.eq.f32.partialorder %v6223_v37, %v1564_v56  ;;  %v6379_v58 = vsel %vm1617_vm5, -3.4028235e+38, %v6219_v6 }
 0x5ac   :  { %1685 = vmax.xlane.f32.xlu0 %v6379_v58  ;;  %v6383_v17 = vsel %vm1620_vm6, -3.4028235e+38, %v6223_v37 }
 0x5ad   :  { %v1570_v9 = vpop.xlane.xlu0 %1569  ;;  %1691 = vmax.xlane.f32.xlu1 %v6383_v17 }
 0x5ae   :  { %vm1623_vm7 = vcmp.eq.f32.partialorder %v6229_v34, %v1570_v9  ;;  %v1560_v55 = vpop.xlane.xlu1 %1559 }
 0x5af   :  { %vm1618_vm8 = vcmp.eq.f32.partialorder %v6233_v8, %v1560_v55  ;;  %v6389_v43 = vsel %vm1623_vm7, -3.4028235e+38, %v6229_v34 }
 0x5b0   :  { %1697 = vmax.xlane.f32.xlu0 %v6389_v43  ;;  %v6393_v6 = vsel %vm1618_vm8, -3.4028235e+38, %v6233_v8 }
 0x5b1   :  { %v1566_v23 = vpop.xlane.xlu0 %1565  ;;  %1687 = vmax.xlane.f32.xlu1 %v6393_v6 }
 0x5b2   :  { %vm1621_vm9 = vcmp.eq.f32.partialorder %v6239_v63, %v1566_v23  ;;  %v1572_v37 = vpop.xlane.xlu1 %1571 }
 0x5b3   :  { %vm1624_vm10 = vcmp.eq.f32.partialorder %v6243_v25, %v1572_v37  ;;  %v6399_v56 = vsel %vm1621_vm9, -3.4028235e+38, %v6239_v63 }
 0x5b4   :  { %1693 = vmax.xlane.f32.xlu0 %v6399_v56  ;;  %v6403_v34 = vsel %vm1624_vm10, -3.4028235e+38, %v6243_v25 }
 0x5b5   :  { %1699 = vmax.xlane.f32.xlu1 %v6403_v34 }
 0x5b6   :  { %v1568_v8 = vpop.xlane.xlu1 %1567 }
 0x5b7   :  { %vm1622_vm11 = vcmp.eq.f32.partialorder %v6248_v3, %v1568_v8 }
 0x5b8   :  { %v6408_v9 = vsel %vm1622_vm11, -3.4028235e+38, %v6248_v3 }
 0x5b9   :  { %1695 = vmax.xlane.f32.xlu1 %v6408_v9 }
 0x5bd   :  { %v1586_v55 = vpop.xlane.xlu0 %1585 }
 0x5be   :  { %vm1631_vm12 = vcmp.eq.f32.partialorder %v6253_v49, %v1586_v55 }
 0x5bf   :  { %v1588_v63 = vpop.xlane.xlu1 %1587  ;;  %v6413_v23 = vsel %vm1631_vm12, -3.4028235e+38, %v6253_v49 }
 0x5c0   :  { %vm1632_vm13 = vcmp.eq.f32.partialorder %v6258_v57, %v1588_v63  ;;  %1713 = vmax.xlane.f32.xlu0 %v6413_v23 }
 0x5c1   :  { %v1582_v25 = vpop.xlane.xlu0 %1581  ;;  %v6418_v37 = vsel %vm1632_vm13, -3.4028235e+38, %v6258_v57 }
 0x5c2   :  { %vm1629_vm14 = vcmp.eq.f32.partialorder %v6263_v19, %v1582_v25  ;;  %1715 = vmax.xlane.f32.xlu1 %v6418_v37 }
 0x5c3   :  { %v6423_v3 = vsel %vm1629_vm14, -3.4028235e+38, %v6263_v19 }
 0x5c4   :  { %1709 = vmax.xlane.f32.xlu0 %v6423_v3 }
 0x5c5   :  { %v1584_v8 = vpop.xlane.xlu1 %1583 }
 0x5c6   :  { %vm1630_vm15 = vcmp.eq.f32.partialorder %v6268_v12, %v1584_v8 }
 0x5c7   :  { %v6428_v49 = vsel %vm1630_vm15, -3.4028235e+38, %v6268_v12 }
 0x5c8   :  { %1711 = vmax.xlane.f32.xlu1 %v6428_v49 }
 0x5c9   :  { %v1594_v55 = vpop.xlane.xlu0 %1593  ;;  %v1596_v57 = vpop.xlane.xlu1 %1595 }
 0x5ca   :  { %vm1635_vm0 = vcmp.eq.f32.partialorder %v6274_v60, %v1594_v55  ;;  %vm1636_vm1 = vcmp.eq.f32.partialorder %v6277_v16, %v1596_v57 }
 0x5cb   :  { %v6434_v63 = vsel %vm1635_vm0, -3.4028235e+38, %v6274_v60  ;;  %v6437_v19 = vsel %vm1636_vm1, -3.4028235e+38, %v6277_v16 }
 0x5cc   :  { %1721 = vmax.xlane.f32.xlu0 %v6434_v63  ;;  %1723 = vmax.xlane.f32.xlu1 %v6437_v19 }
 0x5cd   :  { %v1590_v12 = vpop.xlane.xlu0 %1589  ;;  %v1592_v25 = vpop.xlane.xlu1 %1591 }
 0x5ce   :  { %vm1633_vm2 = vcmp.eq.f32.partialorder %v6284_v62, %v1590_v12  ;;  %vm1634_vm3 = vcmp.eq.f32.partialorder %v6287_v46, %v1592_v25 }
 0x5cf   :  { %v6444_v8 = vsel %vm1633_vm2, -3.4028235e+38, %v6284_v62  ;;  %v6447_v55 = vsel %vm1634_vm3, -3.4028235e+38, %v6287_v46 }
 0x5d0   :  { %1717 = vmax.xlane.f32.xlu0 %v6444_v8  ;;  %1719 = vmax.xlane.f32.xlu1 %v6447_v55 }
 0x5d1   :  { %v1602_v60 = vpop.xlane.xlu0 %1601  ;;  %v1604_v16 = vpop.xlane.xlu1 %1603 }
 0x5d2   :  { %vm1639_vm4 = vcmp.eq.f32.partialorder %v6294_v11, %v1602_v60  ;;  %vm1640_vm5 = vcmp.eq.f32.partialorder %v6297_v4, %v1604_v16 }
 0x5d3   :  { %v6454_v57 = vsel %vm1639_vm4, -3.4028235e+38, %v6294_v11  ;;  %v6457_v12 = vsel %vm1640_vm5, -3.4028235e+38, %v6297_v4 }
 0x5d4   :  { %1729 = vmax.xlane.f32.xlu0 %v6454_v57  ;;  %1731 = vmax.xlane.f32.xlu1 %v6457_v12 }
 0x5d5   :  { %v1598_v62 = vpop.xlane.xlu0 %1597  ;;  %v1600_v46 = vpop.xlane.xlu1 %1599 }
 0x5d6   :  { %vm1637_vm6 = vcmp.eq.f32.partialorder %v6304_v33, %v1598_v62  ;;  %vm1638_vm7 = vcmp.eq.f32.partialorder %v6307_v45, %v1600_v46 }
 0x5d7   :  { %v6464_v25 = vsel %vm1637_vm6, -3.4028235e+38, %v6304_v33  ;;  %v6467_v60 = vsel %vm1638_vm7, -3.4028235e+38, %v6307_v45 }
 0x5d8   :  { %1725 = vmax.xlane.f32.xlu0 %v6464_v25  ;;  %1727 = vmax.xlane.f32.xlu1 %v6467_v60 }
 0x5d9   :  { %v1574_v11 = vpop.xlane.xlu0 %1573  ;;  %v1576_v4 = vpop.xlane.xlu1 %1575 }
 0x5da   :  { %vm1625_vm8 = vcmp.eq.f32.partialorder %v6314_v59, %v1574_v11  ;;  %vm1626_vm9 = vcmp.eq.f32.partialorder %v6317_v18, %v1576_v4 }
 0x5db   :  { %v6474_v16 = vsel %vm1625_vm8, -3.4028235e+38, %v6314_v59  ;;  %v6477_v62 = vsel %vm1626_vm9, -3.4028235e+38, %v6317_v18 }
 0x5dc   :  { %1701 = vmax.xlane.f32.xlu0 %v6474_v16  ;;  %1703 = vmax.xlane.f32.xlu1 %v6477_v62 }
 0x5dd   :  { %v1606_v33 = vpop.xlane.xlu0 %1605  ;;  %v1608_v45 = vpop.xlane.xlu1 %1607 }
 0x5de   :  { %vm1641_vm10 = vcmp.eq.f32.partialorder %v6324_v30, %v1606_v33  ;;  %vm1642_vm11 = vcmp.eq.f32.partialorder %v6327_v5, %v1608_v45 }
 0x5df   :  { %v6484_v46 = vsel %vm1641_vm10, -3.4028235e+38, %v6324_v30  ;;  %v6487_v11 = vsel %vm1642_vm11, -3.4028235e+38, %v6327_v5 }
 0x5e0   :  { %1733 = vmax.xlane.f32.xlu0 %v6484_v46  ;;  %1735 = vmax.xlane.f32.xlu1 %v6487_v11 }
 0x5e1   :  { %v1610_v59 = vpop.xlane.xlu0 %1609  ;;  %v1612_v18 = vpop.xlane.xlu1 %1611 }
 0x5e2   :  { %vm1643_vm12 = vcmp.eq.f32.partialorder %v6334_v0, %v1610_v59  ;;  %vm1644_vm13 = vcmp.eq.f32.partialorder %v6337_v1, %v1612_v18 }
 0x5e3   :  { %v6494_v4 = vsel %vm1643_vm12, -3.4028235e+38, %v6334_v0  ;;  %v6497_v33 = vsel %vm1644_vm13, -3.4028235e+38, %v6337_v1 }
 0x5e4   :  { %1737 = vmax.xlane.f32.xlu0 %v6494_v4  ;;  %1739 = vmax.xlane.f32.xlu1 %v6497_v33 }
 0x5e5   :  { %v1578_v30 = vpop.xlane.xlu0 %1577  ;;  %v1580_v5 = vpop.xlane.xlu1 %1579 }
 0x5e6   :  { %vm1627_vm14 = vcmp.eq.f32.partialorder %v6344_v10, %v1578_v30  ;;  %vm1628_vm15 = vcmp.eq.f32.partialorder %v6347_v14, %v1580_v5 }
 0x5e7   :  { %v6504_v45 = vsel %vm1627_vm14, -3.4028235e+38, %v6344_v10  ;;  %v6507_v59 = vsel %vm1628_vm15, -3.4028235e+38, %v6347_v14 }
 0x5e8   :  { %1705 = vmax.xlane.f32.xlu0 %v6504_v45  ;;  %1707 = vmax.xlane.f32.xlu1 %v6507_v59 }
 0x62d   :  { %v1682_v0 = vpop.xlane.xlu0 %1681 }
 0x62e   :  { %vm1743_vm0 = vcmp.eq.f32.partialorder %v6353_v15, %v1682_v0 }
 0x62f   :  { %v1775_v1 = vsel %vm1743_vm0, -3.4028235e+38, %v6353_v15 }
 0x630   :  { %1809 = vmax.xlane.f32.xlu0 %v1775_v1 }
 0x631   :  { %v1678_v18 = vpop.xlane.xlu0 %1677 }
 0x632   :  { %vm1741_vm1 = vcmp.eq.f32.partialorder %v6359_v32, %v1678_v18  ;;  %v1684_v30 = vpop.xlane.xlu1 %1683 }
 0x633   :  { %vm1744_vm2 = vcmp.eq.f32.partialorder %v6363_v20, %v1684_v30  ;;  %v1773_v10 = vsel %vm1741_vm1, -3.4028235e+38, %v6359_v32 }
 0x634   :  { %1805 = vmax.xlane.f32.xlu0 %v1773_v10  ;;  %v1776_v14 = vsel %vm1744_vm2, -3.4028235e+38, %v6363_v20 }
 0x635   :  { %v1690_v5 = vpop.xlane.xlu0 %1689  ;;  %1811 = vmax.xlane.f32.xlu1 %v1776_v14 }
 0x636   :  { %vm1747_vm3 = vcmp.eq.f32.partialorder %v6369_v13, %v1690_v5  ;;  %v1680_v2 = vpop.xlane.xlu1 %1679 }
 0x637   :  { %vm1742_vm4 = vcmp.eq.f32.partialorder %v6373_v7, %v1680_v2  ;;  %v1779_v15 = vsel %vm1747_vm3, -3.4028235e+38, %v6369_v13 }
 0x638   :  { %1817 = vmax.xlane.f32.xlu0 %v1779_v15  ;;  %v1774_v0 = vsel %vm1742_vm4, -3.4028235e+38, %v6373_v7 }
 0x639   :  { %v1686_v1 = vpop.xlane.xlu0 %1685  ;;  %1807 = vmax.xlane.f32.xlu1 %v1774_v0 }
 0x63a   :  { %vm1745_vm5 = vcmp.eq.f32.partialorder %v6379_v58, %v1686_v1  ;;  %v1692_v32 = vpop.xlane.xlu1 %1691 }
 0x63b   :  { %vm1748_vm6 = vcmp.eq.f32.partialorder %v6383_v17, %v1692_v32  ;;  %v1777_v20 = vsel %vm1745_vm5, -3.4028235e+38, %v6379_v58 }
 0x63c   :  { %1813 = vmax.xlane.f32.xlu0 %v1777_v20  ;;  %v1780_v18 = vsel %vm1748_vm6, -3.4028235e+38, %v6383_v17 }
 0x63d   :  { %v1698_v30 = vpop.xlane.xlu0 %1697  ;;  %1819 = vmax.xlane.f32.xlu1 %v1780_v18 }
 0x63e   :  { %vm1751_vm7 = vcmp.eq.f32.partialorder %v6389_v43, %v1698_v30  ;;  %v1688_v2 = vpop.xlane.xlu1 %1687 }
 0x63f   :  { %vm1746_vm8 = vcmp.eq.f32.partialorder %v6393_v6, %v1688_v2  ;;  %v1783_v13 = vsel %vm1751_vm7, -3.4028235e+38, %v6389_v43 }
 0x640   :  { %1825 = vmax.xlane.f32.xlu0 %v1783_v13  ;;  %v1778_v7 = vsel %vm1746_vm8, -3.4028235e+38, %v6393_v6 }
 0x641   :  { %v1694_v10 = vpop.xlane.xlu0 %1693  ;;  %1815 = vmax.xlane.f32.xlu1 %v1778_v7 }
 0x642   :  { %vm1749_vm9 = vcmp.eq.f32.partialorder %v6399_v56, %v1694_v10  ;;  %v1700_v58 = vpop.xlane.xlu1 %1699 }
 0x643   :  { %vm1752_vm10 = vcmp.eq.f32.partialorder %v6403_v34, %v1700_v58  ;;  %v1781_v17 = vsel %vm1749_vm9, -3.4028235e+38, %v6399_v56 }
 0x644   :  { %1821 = vmax.xlane.f32.xlu0 %v1781_v17  ;;  %v1784_v14 = vsel %vm1752_vm10, -3.4028235e+38, %v6403_v34 }
 0x645   :  { %1827 = vmax.xlane.f32.xlu1 %v1784_v14 }
 0x646   :  { %v1696_v5 = vpop.xlane.xlu1 %1695 }
 0x647   :  { %vm1750_vm11 = vcmp.eq.f32.partialorder %v6408_v9, %v1696_v5 }
 0x648   :  { %v1782_v43 = vsel %vm1750_vm11, -3.4028235e+38, %v6408_v9 }
 0x649   :  { %1823 = vmax.xlane.f32.xlu1 %v1782_v43 }
 0x64d   :  { %v1714_v6 = vpop.xlane.xlu0 %1713 }
 0x64e   :  { %vm1759_vm12 = vcmp.eq.f32.partialorder %v6413_v23, %v1714_v6 }
 0x64f   :  { %v1716_v15 = vpop.xlane.xlu1 %1715  ;;  %v1791_v0 = vsel %vm1759_vm12, -3.4028235e+38, %v6413_v23 }
 0x650   :  { %vm1760_vm13 = vcmp.eq.f32.partialorder %v6418_v37, %v1716_v15  ;;  %1841 = vmax.xlane.f32.xlu0 %v1791_v0 }
 0x651   :  { %v1710_v56 = vpop.xlane.xlu0 %1709  ;;  %v1792_v1 = vsel %vm1760_vm13, -3.4028235e+38, %v6418_v37 }
 0x652   :  { %vm1757_vm14 = vcmp.eq.f32.partialorder %v6423_v3, %v1710_v56  ;;  %1843 = vmax.xlane.f32.xlu1 %v1792_v1  ;;  %v6575_v1 = vld [vmem:[#allocation8 + $0x8] sm:$0xff] }
 0x653   :  { %v1789_v34 = vsel %vm1757_vm14, -3.4028235e+38, %v6423_v3  ;;  %9003 = vst [vmem:[#allocation61_spill] sm:$0xff] %v6575_v1 }
 0x654   :  { %1837 = vmax.xlane.f32.xlu0 %v1789_v34 }
 0x655   :  { %v1712_v9 = vpop.xlane.xlu1 %1711 }
 0x656   :  { %vm1758_vm15 = vcmp.eq.f32.partialorder %v6428_v49, %v1712_v9 }
 0x657   :  { %v1790_v32 = vsel %vm1758_vm15, -3.4028235e+38, %v6428_v49 }
 0x658   :  { %1839 = vmax.xlane.f32.xlu1 %v1790_v32 }
 0x659   :  { %v1722_v20 = vpop.xlane.xlu0 %1721  ;;  %v1724_v23 = vpop.xlane.xlu1 %1723 }
 0x65a   :  { %vm1763_vm0 = vcmp.eq.f32.partialorder %v6434_v63, %v1722_v20  ;;  %vm1764_vm1 = vcmp.eq.f32.partialorder %v6437_v19, %v1724_v23 }
 0x65b   :  { %v1795_v37 = vsel %vm1763_vm0, -3.4028235e+38, %v6434_v63  ;;  %v1796_v18 = vsel %vm1764_vm1, -3.4028235e+38, %v6437_v19 }
 0x65c   :  { %1849 = vmax.xlane.f32.xlu0 %v1795_v37  ;;  %1851 = vmax.xlane.f32.xlu1 %v1796_v18 }
 0x65d   :  { %v1718_v3 = vpop.xlane.xlu0 %1717  ;;  %v1720_v30 = vpop.xlane.xlu1 %1719 }
 0x65e   :  { %vm1761_vm2 = vcmp.eq.f32.partialorder %v6444_v8, %v1718_v3  ;;  %vm1762_vm3 = vcmp.eq.f32.partialorder %v6447_v55, %v1720_v30 }
 0x65f   :  { %v1793_v49 = vsel %vm1761_vm2, -3.4028235e+38, %v6444_v8  ;;  %v1794_v2 = vsel %vm1762_vm3, -3.4028235e+38, %v6447_v55 }
 0x660   :  { %1845 = vmax.xlane.f32.xlu0 %v1793_v49  ;;  %1847 = vmax.xlane.f32.xlu1 %v1794_v2 }
 0x661   :  { %v1730_v13 = vpop.xlane.xlu0 %1729  ;;  %v1732_v7 = vpop.xlane.xlu1 %1731 }
 0x662   :  { %vm1767_vm4 = vcmp.eq.f32.partialorder %v6454_v57, %v1730_v13  ;;  %vm1768_vm5 = vcmp.eq.f32.partialorder %v6457_v12, %v1732_v7 }
 0x663   :  { %v1799_v63 = vsel %vm1767_vm4, -3.4028235e+38, %v6454_v57  ;;  %v1800_v19 = vsel %vm1768_vm5, -3.4028235e+38, %v6457_v12 }
 0x664   :  { %1857 = vmax.xlane.f32.xlu0 %v1799_v63  ;;  %1859 = vmax.xlane.f32.xlu1 %v1800_v19 }
 0x665   :  { %v1726_v10 = vpop.xlane.xlu0 %1725  ;;  %v1728_v58 = vpop.xlane.xlu1 %1727 }
 0x666   :  { %vm1765_vm6 = vcmp.eq.f32.partialorder %v6464_v25, %v1726_v10  ;;  %vm1766_vm7 = vcmp.eq.f32.partialorder %v6467_v60, %v1728_v58 }
 0x667   :  { %v1797_v8 = vsel %vm1765_vm6, -3.4028235e+38, %v6464_v25  ;;  %v1798_v55 = vsel %vm1766_vm7, -3.4028235e+38, %v6467_v60 }
 0x668   :  { %1853 = vmax.xlane.f32.xlu0 %v1797_v8  ;;  %1855 = vmax.xlane.f32.xlu1 %v1798_v55 }
 0x669   :  { %v1702_v17 = vpop.xlane.xlu0 %1701  ;;  %v1704_v14 = vpop.xlane.xlu1 %1703 }
 0x66a   :  { %vm1753_vm8 = vcmp.eq.f32.partialorder %v6474_v16, %v1702_v17  ;;  %vm1754_vm9 = vcmp.eq.f32.partialorder %v6477_v62, %v1704_v14 }
 0x66b   :  { %v1785_v57 = vsel %vm1753_vm8, -3.4028235e+38, %v6474_v16  ;;  %v1786_v12 = vsel %vm1754_vm9, -3.4028235e+38, %v6477_v62 }
 0x66c   :  { %1829 = vmax.xlane.f32.xlu0 %v1785_v57  ;;  %1831 = vmax.xlane.f32.xlu1 %v1786_v12 }
 0x66d   :  { %v1734_v5 = vpop.xlane.xlu0 %1733  ;;  %v1736_v43 = vpop.xlane.xlu1 %1735 }
 0x66e   :  { %vm1769_vm10 = vcmp.eq.f32.partialorder %v6484_v46, %v1734_v5  ;;  %vm1770_vm11 = vcmp.eq.f32.partialorder %v6487_v11, %v1736_v43 }
 0x66f   :  { %v1801_v25 = vsel %vm1769_vm10, -3.4028235e+38, %v6484_v46  ;;  %v1802_v60 = vsel %vm1770_vm11, -3.4028235e+38, %v6487_v11 }
 0x670   :  { %1861 = vmax.xlane.f32.xlu0 %v1801_v25  ;;  %1863 = vmax.xlane.f32.xlu1 %v1802_v60 }
 0x671   :  { %v1738_v6 = vpop.xlane.xlu0 %1737  ;;  %v1740_v15 = vpop.xlane.xlu1 %1739 }
 0x672   :  { %vm1771_vm12 = vcmp.eq.f32.partialorder %v6494_v4, %v1738_v6  ;;  %vm1772_vm13 = vcmp.eq.f32.partialorder %v6497_v33, %v1740_v15  ;;  %v9004_v15 = vld [vmem:[#allocation24_spill] sm:$0xff] }
 0x673   :  { %v1803_v16 = vsel %vm1771_vm12, -3.4028235e+38, %v6494_v4  ;;  %v1804_v62 = vsel %vm1772_vm13, -3.4028235e+38, %v6497_v33  ;;  %v135_v4 = vunpack.c.l.s8.bf16 %v6575_v1 }
 0x674   :  { %1865 = vmax.xlane.f32.xlu0 %v1803_v16  ;;  %1867 = vmax.xlane.f32.xlu1 %v1804_v62  ;;  %v9005_v62 = vld [vmem:[#allocation27_spill] sm:$0xff] }
 0x675   :  { %v1706_v0 = vpop.xlane.xlu0 %1705  ;;  %v1708_v56 = vpop.xlane.xlu1 %1707  ;;  %2013 = vmatprep.mubr.bf16.mxu0 %v135_v4 }
 0x676   :  { %vm1755_vm14 = vcmp.eq.f32.partialorder %v6504_v45, %v1706_v0  ;;  %vm1756_vm15 = vcmp.eq.f32.partialorder %v6507_v59, %v1708_v56  ;;  %v9006_v0 = vld [vmem:[#allocation23_spill] sm:$0xff] }
 0x677   :  { %v1787_v46 = vsel %vm1755_vm14, -3.4028235e+38, %v6504_v45  ;;  %v1788_v11 = vsel %vm1756_vm15, -3.4028235e+38, %v6507_v59 }
 0x678   :  { %1833 = vmax.xlane.f32.xlu0 %v1787_v46  ;;  %1835 = vmax.xlane.f32.xlu1 %v1788_v11  ;;  %v9007_v46 = vld [vmem:[#allocation26_spill] sm:$0xff] }
 0x6bd   :  { %v6580_v33 = vpop.xlane.xlu0 %1809 }
 0x6be   :  { %vm1871_vm0 = vcmp.ge.f32.partialorder %v5303_v24, %v6580_v33 }
 0x6bf   :  { %v1903_v45 = vsel %vm1871_vm0, %v5296_v21, 0.0 }
 0x6c1   :  { %v1806_v34 = vpop.xlane.xlu0 %1805 }
 0x6c2   :  { %v6584_v9 = vpop.xlane.xlu1 %1811  ;;  %vm1869_vm2 = vcmp.ge.f32.partialorder %v5307_v26, %v1806_v34  ;;  %v4265_v26 = vpack.c.bf16 %v5310_v27, %v5296_v21 }
 0x6c3   :  { %vm1872_vm1 = vcmp.ge.f32.partialorder %v5316_v28, %v6584_v9  ;;  %v1901_v37 = vsel %vm1869_vm2, %v5299_v22, 0.0 }
 0x6c4   :  { %v1904_v59 = vsel %vm1872_vm1, %v5310_v27, 0.0  ;;  %v9016_v27 = vld [vmem:[#allocation36_spill] sm:$0xff] }
 0x6c5   :  { %v6597_v32 = vpack.c.bf16 %v1904_v59, %v1903_v45  ;;  %v6599_v20 = vpop.xlane.xlu0 %1817 }
 0x6c6   :  { %v1808_v23 = vpop.xlane.xlu1 %1807  ;;  %vm1875_vm4 = vcmp.ge.f32.partialorder %v5327_v35, %v6599_v20 }
 0x6c7   :  { %vm1870_vm3 = vcmp.ge.f32.partialorder %v5334_v38, %v1808_v23  ;;  %v1907_v2 = vsel %vm1875_vm4, %v5322_v31, 0.0  ;;  %v9014_v38 = vld [vmem:[#allocation31_spill] sm:$0xff]  ;;  %v9015_v23 = vld [vmem:[#allocation32_spill] sm:$0xff] }
 0x6c8   :  { %v1902_v18 = vsel %vm1870_vm3, %v5319_v29, 0.0  ;;  %v4295_v33 = vpack.c.bf16 %v9015_v23, %v9014_v38 }
 0x6c9   :  { %v6610_v3 = vpack.c.bf16 %v1902_v18, %v1901_v37  ;;  %v6612_v30 = vpop.xlane.xlu0 %1813  ;;  %v9008_v37 = vld [vmem:[#allocation28_spill] sm:$0xff] }
 0x6ca   :  { %v6614_v49 = vpop.xlane.xlu1 %1819  ;;  %vm1873_vm6 = vcmp.ge.f32.partialorder %v5343_v40, %v6612_v30  ;;  %v4271_v40 = vpack.c.bf16 %v5337_v39, %v5322_v31 }
 0x6cb   :  { %vm1876_vm5 = vcmp.ge.f32.partialorder %v5347_v41, %v6614_v49  ;;  %v1905_v10 = vsel %vm1873_vm6, %v5330_v36, 0.0 }
 0x6cc   :  { %v1908_v13 = vsel %vm1876_vm5, %v5337_v39, 0.0  ;;  %v9024_v39 = vld [vmem:[#allocation44_spill] sm:$0xff] }
 0x6cd   :  { %v6628_v7 = vpack.c.bf16 %v1908_v13, %v1907_v2  ;;  %v6630_v63 = vpop.xlane.xlu0 %1825  ;;  %v9009_v2 = vld [vmem:[#allocation25_spill] sm:$0xff] }
 0x6ce   :  { %v1816_v19 = vpop.xlane.xlu1 %1815  ;;  %vm8830_vm8 = vcmp.ge.f32.partialorder %v5359_v47, %v6630_v63  ;;  %v9010_v13 = vld [vmem:[#allocation29_spill] sm:$0xff] }
 0x6cf   :  { %vm1874_vm7 = vcmp.ge.f32.partialorder %v5366_v50, %v1816_v19  ;;  %v1911_v14 = vsel %vm8830_vm8, %v5353_v44, 0.0  ;;  %vm4261_vm8 = vmpackc.low %vm1870_vm3, %vm1869_vm2  ;;  %v9022_v50 = vld [vmem:[#allocation39_spill] sm:$0xff]  ;;  %v9023_v19 = vld [vmem:[#allocation40_spill] sm:$0xff] }
 0x6d0   :  { %v1906_v58 = vsel %vm1874_vm7, %v5350_v42, 0.0  ;;  %vm4264_vm2 = vmpackc.low %vm1872_vm1, %vm1871_vm0  ;;  %v4301_v20 = vpack.c.bf16 %v9023_v19, %v9022_v50 }
 0x6d1   :  { %v6642_v8 = vpack.c.bf16 %v1906_v58, %v1905_v10  ;;  %v6644_v55 = vpop.xlane.xlu0 %1821  ;;  %v4286_v10 = vpack.c.bf16 %v9010_v13, %v9009_v2  ;;  %v9011_v58 = vld [vmem:[#allocation30_spill] sm:$0xff]  ;;  %vm4267_vm1 = vmpackc.low %vm1874_vm7, %vm1873_vm6 }
 0x6d2   :  { %v6646_v17 = vpop.xlane.xlu1 %1827  ;;  %vm1877_vm10 = vcmp.ge.f32.partialorder %v5375_v52, %v6644_v55  ;;  %vm4270_vm6 = vmpackc.low %vm1876_vm5, %vm1875_vm4  ;;  %v4277_v52 = vpack.c.bf16 %v5369_v51, %v5353_v44 }
 0x6d3   :  { %vm8829_vm9 = vcmp.ge.f32.partialorder %v5379_v53, %v6646_v17  ;;  %v1909_v43 = vsel %vm1877_vm10, %v5362_v48, 0.0 }
 0x6d4   :  { %v1912_v57 = vsel %vm8829_vm9, %v5369_v51, 0.0  ;;  %v9035_v51 = vld [vmem:[#allocation48_spill] sm:$0xff] }
 0x6d5   :  { %v6660_v12 = vpack.c.bf16 %v1912_v57, %v1911_v14  ;;  %v4262_v14 = vpack.c.bf16 %v5319_v29, %v5299_v22 }
 0x6d6   :  { %v6662_v5 = vpop.xlane.xlu1 %1823 }
 0x6d7   :  { %vm8831_vm11 = vcmp.ge.f32.partialorder %v5394_v61, %v6662_v5  ;;  %vm9028_vm5 = vcmp.ge.f32.partialorder %v5394_v61, %v6662_v5  ;;  %v9031_v61 = vld [vmem:[#allocation49_spill] sm:$0xff] }
 0x6d8   :  { %v1910_v25 = vsel %vm8831_vm11, %v5382_v54, 0.0  ;;  %v9032_v5 = vld [vmem:[#allocation45_spill] sm:$0xff] }
 0x6d9   :  { %v6674_v60 = vpack.c.bf16 %v1910_v25, %v1909_v43  ;;  %v4289_v25 = vpack.c.bf16 %v9007_v46, %v9006_v0 }
 0x6dd   :  { %v1842_v6 = vpop.xlane.xlu0 %1841 }
 0x6de   :  { %vm1887_vm12 = vcmp.ge.f32.partialorder %v9004_v15, %v1842_v6 }
 0x6df   :  { %v1844_v16 = vpop.xlane.xlu1 %1843  ;;  %v1919_v56 = vsel %vm1887_vm12, %v9006_v0, 0.0 }
 0x6e0   :  { %vm1888_vm13 = vcmp.ge.f32.partialorder %v9005_v62, %v1844_v16  ;;  %v9017_v62 = vld [vmem:[#allocation34_spill] sm:$0xff] }
 0x6e1   :  { %v1920_v11 = vsel %vm1888_vm13, %v9007_v46, 0.0  ;;  %v1838_v45 = vpop.xlane.xlu0 %1837  ;;  %vm4288_vm11 = vmpackc.low %vm1888_vm13, %vm1887_vm12  ;;  %v4292_v0 = vpack.c.bf16 %v9017_v62, %v9016_v27  ;;  %v9018_v46 = vld [vmem:[#allocation38_spill] sm:$0xff] }
 0x6e2   :  { %v6684_v59 = vpack.c.bf16 %v1920_v11, %v1919_v56  ;;  %vm1885_vm14 = vcmp.ge.f32.partialorder %v9008_v37, %v1838_v45  ;;  %v9012_v11 = vld [vmem:[#allocation35_spill] sm:$0xff]  ;;  %v9013_v45 = vld [vmem:[#allocation33_spill] sm:$0xff] }
 0x6e3   :  { %v1917_v57 = vsel %vm1885_vm14, %v9009_v2, 0.0  ;;  %v9019_v37 = vld [vmem:[#allocation37_spill] sm:$0xff]  ;;  %v9020_v2 = vld [vmem:[#allocation43_spill] sm:$0xff] }
 0x6e5   :  { %v1840_v18 = vpop.xlane.xlu1 %1839 }
 0x6e6   :  { %vm1886_vm15 = vcmp.ge.f32.partialorder %v9011_v58, %v1840_v18  ;;  %v4268_v18 = vpack.c.bf16 %v5350_v42, %v5330_v36 }
 0x6e7   :  { %v1918_v43 = vsel %vm1886_vm15, %v9010_v13, 0.0  ;;  %vm4285_vm9 = vmpackc.low %vm1886_vm15, %vm1885_vm14  ;;  %v9021_v13 = vld [vmem:[#allocation41_spill] sm:$0xff] }
 0x6e8   :  { %v6700_v56 = vpack.c.bf16 %v1918_v43, %v1917_v57  ;;  %4426 = vmatprep.subr.msk.bf16.mxu0 %vm4285_vm9, %v4286_v10  ;;  %v9025_v57 = vld [vmem:[#allocation42_spill] sm:$0xff] }
 0x6e9   :  { %v1850_v22 = vpop.xlane.xlu0 %1849  ;;  %4427 = vmatpush3.bf16.msk.msra.mxu0 %vm4261_vm8, %v4262_v14  ;;  %v1852_v29 = vpop.xlane.xlu1 %1851  ;;  %v4298_v43 = vpack.c.bf16 %v9025_v57, %v9024_v39 }
 0x6ea   :  { %vm1891_vm14 = vcmp.ge.f32.partialorder %v9012_v11, %v1850_v22  ;;  %vm1892_vm15 = vcmp.ge.f32.partialorder %v9013_v45, %v1852_v29  ;;  %4428 = vmatprep.subr.msk.bf16.mxu0 %vm4288_vm11, %v4289_v25  ;;  %v9026_v25 = vld [vmem:[#allocation50_spill] sm:$0xff]  ;;  %v4274_v29 = vpack.c.bf16 %v5382_v54, %v5362_v48  ;;  %v9030_v45 = vld [vmem:[#allocation52_spill] sm:$0xff] }
 0x6eb   :  { %v1923_v34 = vsel %vm1891_vm14, %v9014_v38, 0.0  ;;  %v1924_v6 = vsel %vm1892_vm15, %v9015_v23, 0.0  ;;  %vm4294_vm9 = vmpackc.low %vm1892_vm15, %vm1891_vm14  ;;  %v9027_v22 = vld [vmem:[#allocation46_spill] sm:$0xff]  ;;  %v9036_v23 = vld [vmem:[#allocation53_spill] sm:$0xff] }
 0x6ec   :  { %v6722_v15 = vpack.c.bf16 %v1924_v6, %v1923_v34  ;;  %vm4273_vm14 = vmpackc.low %vm9028_vm5, %vm1877_vm10  ;;  %v9029_v11 = vld [vmem:[#allocation54_spill] sm:$0xff]  ;;  %vm9033_vm10 = vcmp.ge.f32.partialorder %v5359_v47, %v6630_v63  ;;  %v4304_v6 = vpack.c.bf16 %v9036_v23, %v9035_v51 }
 0x6ed   :  { %v1846_v16 = vpop.xlane.xlu0 %1845  ;;  %4429 = vmatpush3.bf16.msk.msra.mxu0 %vm4264_vm2, %v4265_v26  ;;  %v1848_v21 = vpop.xlane.xlu1 %1847 }
 0x6ee   :  { %vm1889_vm3 = vcmp.ge.f32.partialorder %v9018_v46, %v1846_v16  ;;  %vm1890_vm8 = vcmp.ge.f32.partialorder %v9019_v37, %v1848_v21  ;;  %v9037_v16 = vld [vmem:[#allocation56_spill] sm:$0xff]  ;;  %v9038_v21 = vld [vmem:[#allocation55_spill] sm:$0xff] }
 0x6ef   :  { %v1921_v24 = vsel %vm1889_vm3, %v9016_v27, 0.0  ;;  %v1922_v28 = vsel %vm1890_vm8, %v9017_v62, 0.0  ;;  %vm4291_vm0 = vmpackc.low %vm1890_vm8, %vm1889_vm3  ;;  %vm9034_vm8 = vcmp.ge.f32.partialorder %v5379_v53, %v6646_v17  ;;  %v4280_v27 = vpack.c.bf16 %v9032_v5, %v9031_v61  ;;  %v9040_v46 = vld [vmem:[#allocation51_spill] sm:$0xff] }
 0x6f0   :  { %v6739_v9 = vpack.c.bf16 %v1922_v28, %v1921_v24  ;;  %4430 = vmatprep.subr.msk.bf16.mxu0 %vm4291_vm0, %v4292_v0  ;;  %vm4276_vm0 = vmpackc.low %vm9034_vm8, %vm9033_vm10  ;;  %v9039_v0 = vld [vmem:[#allocation47_spill] sm:$0xff]  ;;  %v9042_v24 = vld [vmem:[#allocation57_spill] sm:$0xff] }
 0x6f1   :  { %v1858_v36 = vpop.xlane.xlu0 %1857  ;;  %4431 = vmatpush3.bf16.msk.msra.mxu0 %vm4267_vm1, %v4268_v18  ;;  %v1860_v42 = vpop.xlane.xlu1 %1859  ;;  %v4307_v37 = vpack.c.bf16 %v9040_v46, %v9039_v0  ;;  %v9041_v18 = vld [vmem:[#allocation58_spill] sm:$0xff] }
 0x6f2   :  { %vm1895_vm11 = vcmp.ge.f32.partialorder %v9020_v2, %v1858_v36  ;;  %vm1896_vm12 = vcmp.ge.f32.partialorder %v9021_v13, %v1860_v42  ;;  %4432 = vmatprep.subr.msk.bf16.mxu0 %vm4294_vm9, %v4295_v33  ;;  %v4935_v36 = vld [vmem:[#allocation11 + $0x40] sm:$0xff]   ;;  %v4936_v42 = vld [vmem:[#allocation11 + $0x48] sm:$0xff]  }
 0x6f3   :  { %v1927_v30 = vsel %vm1895_vm11, %v9022_v50, 0.0  ;;  %v1928_v10 = vsel %vm1896_vm12, %v9023_v19, 0.0  ;;  %vm4300_vm15 = vmpackc.low %vm1896_vm12, %vm1895_vm11  ;;  %v6825_v13 = vld [vmem:[#allocation8] sm:$0xff]  ;;  %4794 = vmatprep.subr.bf16.mxu1 %v4935_v36  ;;  %v9045_v19 = vld [vmem:[#allocation22_spill] sm:$0xff] }
 0x6f4   :  { %v6761_v58 = vpack.c.bf16 %v1928_v10, %v1927_v30  ;;  %9043 = vst [vmem:[#allocation24_spill] sm:$0xff] %v6825_v13  ;;  %v9044_v30 = vld [vmem:[#allocation21_spill] sm:$0xff]  ;;  %4795 = vmatpush3.bf16.msra.mxu1 %v4935_v36  ;;  %v6921_v36 = vld [vmem:[#allocation8 + $0x68] sm:$0xff] }
 0x6f5   :  { %v1854_v14 = vpop.xlane.xlu0 %1853  ;;  %4433 = vmatpush3.bf16.msk.msra.mxu0 %vm4270_vm6, %v4271_v40  ;;  %v1856_v31 = vpop.xlane.xlu1 %1855  ;;  %v4283_v10 = vpack.c.bf16 %v9045_v19, %v9044_v30  ;;  %4796 = vmatprep.subr.bf16.mxu1 %v4936_v42  ;;  %9058 = vst [vmem:[#allocation32_spill] sm:$0xff] %v6921_v36 }
 0x6f6   :  { %vm1893_vm7 = vcmp.ge.f32.partialorder %v9026_v25, %v1854_v14  ;;  %vm1894_vm13 = vcmp.ge.f32.partialorder %v9027_v22, %v1856_v31  ;;  %v9046_v14 = vld [vmem:[#allocation60_spill] sm:$0xff]  ;;  %v9047_v31 = vld [vmem:[#allocation59_spill] sm:$0xff] }
 0x6f7   :  { %v1925_v35 = vsel %vm1893_vm7, %v9024_v39, 0.0  ;;  %v1926_v41 = vsel %vm1894_vm13, %v9025_v57, 0.0  ;;  %vm4297_vm4 = vmpackc.low %vm1894_vm13, %vm1893_vm7  ;;  %v4937_v25 = vld [vmem:[#allocation11 + $0x50] sm:$0xff]  }
 0x6f8   :  { %v6779_v49 = vpack.c.bf16 %v1926_v41, %v1925_v35  ;;  %4434 = vmatprep.subr.msk.bf16.mxu0 %vm4297_vm4, %v4298_v43  ;;  %v8862_v43 = vunpack.c.l.s8.bf16 %v6825_v13  ;;  %4797 = vmatpush3.bf16.msra.mxu1 %v4936_v42  ;;  %v4938_v35 = vld [vmem:[#allocation11 + $0x58] sm:$0xff]   ;;  %v4939_v42 = vld [vmem:[#allocation11 + $0x60] sm:$0xff]  }
 0x6f9   :  { %v1830_v48 = vpop.xlane.xlu0 %1829  ;;  %4435 = vmatpush3.bf16.msk.msra.mxu0 %vm4273_vm14, %v4274_v29  ;;  %v1832_v54 = vpop.xlane.xlu1 %1831  ;;  %v8861_v29 = vunpack.c.h.s8.bf16 %v6575_v1  ;;  %4798 = vmatprep.subr.bf16.mxu1 %v4937_v25  ;;  %v6841_v41 = vld [vmem:[#allocation8 + $0x18] sm:$0xff] }
 0x6fa   :  { %vm1881_vm2 = vcmp.ge.f32.partialorder %v9029_v11, %v1830_v48  ;;  %vm1882_vm3 = vcmp.ge.f32.partialorder %v9030_v45, %v1832_v54  ;;  %4436 = vmatprep.subr.msk.bf16.mxu0 %vm4300_vm15, %v4301_v20  ;;  %9048 = vst [vmem:[#allocation27_spill] sm:$0xff] %v6841_v41  ;;  %v8860_v20 = vunpack.c.h.s8.bf16 %v6825_v13  ;;  %v8859_v48 = vunpack.c.l.s8.bf16 %v6841_v41  ;;  %v6849_v54 = vld [vmem:[#allocation8 + $0x10] sm:$0xff] }
 0x6fb   :  { %v1913_v55 = vsel %vm1881_vm2, %v9031_v61, 0.0  ;;  %v1914_v26 = vsel %vm1882_vm3, %v9032_v5, 0.0  ;;  %vm4279_vm12 = vmpackc.low %vm1882_vm3, %vm1881_vm2  ;;  %9049 = vst [vmem:[#allocation23_spill] sm:$0xff] %v6849_v54  ;;  %v8858_v11 = vunpack.c.l.s8.bf16 %v6849_v54  ;;  %v8857_v45 = vunpack.c.h.s8.bf16 %v6841_v41  ;;  %v6865_v5 = vld [vmem:[#allocation8 + $0x20] sm:$0xff] }
 0x6fc   :  { %v6801_v38 = vpack.c.bf16 %v1914_v26, %v1913_v55  ;;  %4799 = vmatpush3.bf16.msra.mxu1 %v4937_v25  ;;  %v8856_v61 = vunpack.c.h.s8.bf16 %v6849_v54  ;;  %9051 = vst [vmem:[#allocation28_spill] sm:$0xff] %v6865_v5  ;;  %v8854_v26 = vunpack.c.l.s8.bf16 %v6865_v5 }
 0x6fd   :  { %v1862_v34 = vpop.xlane.xlu0 %1861  ;;  %4437 = vmatpush3.bf16.msk.msra.mxu0 %vm4276_vm0, %v4277_v52  ;;  %v1864_v44 = vpop.xlane.xlu1 %1863  ;;  %4800 = vmatprep.subr.bf16.mxu1 %v4938_v35  ;;  %v6857_v52 = vld [vmem:[#allocation8 + $0x28] sm:$0xff] }
 0x6fe   :  { %vm1897_vm1 = vcmp.ge.f32.partialorder %v9037_v16, %v1862_v34  ;;  %vm1898_vm9 = vcmp.ge.f32.partialorder %v9038_v21, %v1864_v44  ;;  %9050 = vst [vmem:[#allocation26_spill] sm:$0xff] %v6857_v52  ;;  %v8855_v55 = vunpack.c.l.s8.bf16 %v6857_v52  ;;  %v8853_v34 = vunpack.c.h.s8.bf16 %v6857_v52  ;;  %v6873_v44 = vld [vmem:[#allocation8 + $0x38] sm:$0xff] }
 0x6ff   :  { %v1929_v47 = vsel %vm1897_vm1, %v9035_v51, 0.0  ;;  %v1930_v53 = vsel %vm1898_vm9, %v9036_v23, 0.0  ;;  %vm4303_vm11 = vmpackc.low %vm1898_vm9, %vm1897_vm1  ;;  %9052 = vst [vmem:[#allocation25_spill] sm:$0xff] %v6873_v44  ;;  %v8852_v51 = vunpack.c.h.s8.bf16 %v6865_v5  ;;  %v8851_v23 = vunpack.c.l.s8.bf16 %v6873_v44 }
 0x700   :  { %v6815_v63 = vpack.c.bf16 %v1930_v53, %v1929_v47  ;;  %4438 = vmatprep.subr.msk.bf16.mxu0 %vm4303_vm11, %v4304_v6  ;;  %4801 = vmatpush3.bf16.msra.mxu1 %v4938_v35  ;;  %v6881_v6 = vld [vmem:[#allocation8 + $0x30] sm:$0xff]  ;;  %v8849_v21 = vunpack.c.h.s8.bf16 %v6873_v44 }
 0x701   :  { %v1866_v17 = vpop.xlane.xlu0 %1865  ;;  %4439 = vmatpush3.bf16.msk.msra.mxu0 %vm4279_vm12, %v4280_v27  ;;  %v1868_v62 = vpop.xlane.xlu1 %1867  ;;  %9053 = vst [vmem:[#allocation29_spill] sm:$0xff] %v6881_v6  ;;  %v8850_v16 = vunpack.c.l.s8.bf16 %v6881_v6  ;;  %v6889_v27 = vld [vmem:[#allocation8 + $0x48] sm:$0xff]  ;;  %v8848_v47 = vunpack.c.h.s8.bf16 %v6881_v6  ;;  %4802 = vmatprep.subr.bf16.mxu1 %v4939_v42 }
 0x702   :  { %vm1899_vm6 = vcmp.ge.f32.partialorder %v9041_v18, %v1866_v17  ;;  %vm1900_vm7 = vcmp.ge.f32.partialorder %v9042_v24, %v1868_v62  ;;  %9054 = vst [vmem:[#allocation30_spill] sm:$0xff] %v6889_v27  ;;  %v8847_v53 = vunpack.c.l.s8.bf16 %v6889_v27  ;;  %v6897_v17 = vld [vmem:[#allocation8 + $0x40] sm:$0xff]  ;;  %v6913_v24 = vld [vmem:[#allocation8 + $0x50] sm:$0xff] }
 0x703   :  { %v1931_v28 = vsel %vm1899_vm6, %v9039_v0, 0.0  ;;  %v1932_v33 = vsel %vm1900_vm7, %v9040_v46, 0.0  ;;  %vm4306_vm13 = vmpackc.low %vm1900_vm7, %vm1899_vm6  ;;  %9055 = vst [vmem:[#allocation35_spill] sm:$0xff] %v6897_v17  ;;  %v8846_v62 = vunpack.c.l.s8.bf16 %v6897_v17  ;;  %v8845_v0 = vunpack.c.h.s8.bf16 %v6889_v27  ;;  %v6905_v46 = vld [vmem:[#allocation8 + $0x58] sm:$0xff] }
 0x704   :  { %v6823_v2 = vpack.c.bf16 %v1932_v33, %v1931_v28  ;;  %4440 = vmatprep.subr.msk.bf16.mxu0 %vm4306_vm13, %v4307_v37  ;;  %9056 = vst [vmem:[#allocation33_spill] sm:$0xff] %v6905_v46  ;;  %v8843_v37 = vunpack.c.h.s8.bf16 %v6897_v17  ;;  %v8842_v18 = vunpack.c.l.s8.bf16 %v6905_v46  ;;  %9057 = vst [vmem:[#allocation31_spill] sm:$0xff] %v6913_v24  ;;  %v8841_v28 = vunpack.c.l.s8.bf16 %v6913_v24  ;;  %4803 = vmatpush3.bf16.msra.mxu1 %v4939_v42  ;;  %v6945_v42 = vld [vmem:[#allocation8 + $0x70] sm:$0xff] }
 0x705   :  { %v1834_v40 = vpop.xlane.xlu0 %1833  ;;  %v1836_v50 = vpop.xlane.xlu1 %1835  ;;  %v8839_v33 = vunpack.c.h.s8.bf16 %v6905_v46  ;;  %9061 = vst [vmem:[#allocation38_spill] sm:$0xff] %v6945_v42 }
 0x706   :  { %vm1883_vm4 = vcmp.ge.f32.partialorder %v9046_v14, %v1834_v40  ;;  %vm1884_vm5 = vcmp.ge.f32.partialorder %v9047_v31, %v1836_v50  ;;  %v8837_v40 = vunpack.c.h.s8.bf16 %v6913_v24  ;;  %v8836_v50 = vunpack.c.l.s8.bf16 %v6921_v36 }
 0x707   :  { %v1915_v39 = vsel %vm1883_vm4, %v9044_v30, 0.0  ;;  %v1916_v57 = vsel %vm1884_vm5, %v9045_v19, 0.0  ;;  %vm4282_vm14 = vmpackc.low %vm1884_vm5, %vm1883_vm4  ;;  %v4940_v30 = vld [vmem:[#allocation11 + $0x68] sm:$0xff]   ;;  %v6929_v19 = vld [vmem:[#allocation8 + $0x60] sm:$0xff]  ;;  %v8834_v31 = vunpack.c.h.s8.bf16 %v6921_v36 }
 0x708   :  { %v6834_v22 = vpack.c.bf16 %v1916_v57, %v1915_v39  ;;  %4441 = vmatpush3.bf16.msk.msra.mxu0 %vm4282_vm14, %v4283_v10  ;;  %9059 = vst [vmem:[#allocation36_spill] sm:$0xff] %v6929_v19  ;;  %4804 = vmatprep.subr.bf16.mxu1 %v4940_v30  ;;  %v4941_v10 = vld [vmem:[#allocation11 + $0x70] sm:$0xff]   ;;  %v8835_v14 = vunpack.c.l.s8.bf16 %v6929_v19  ;;  %v4942_v39 = vld [vmem:[#allocation11 + $0x78] sm:$0xff]   ;;  %v8833_v25 = vunpack.c.h.s8.bf16 %v6929_v19 }
 0x709   :  { %4805 = vmatpush3.bf16.msra.mxu1 %v4940_v30  ;;  %v6937_v57 = vld [vmem:[#allocation8 + $0x78] sm:$0xff]  ;;  %v8838_v30 = vunpack.c.l.s8.bf16 %v6945_v42 }
 0x70a   :  { %4806 = vmatprep.subr.bf16.mxu1 %v4941_v10  ;;  %9060 = vst [vmem:[#allocation34_spill] sm:$0xff] %v6937_v57  ;;  %v8832_v35 = vunpack.c.l.s8.bf16 %v6937_v57 }
 0x70b   :  { %2014 = vmatmul.mubr.bf16.vlgmr.msra.gmra.mrb[32].mxu0 %v8862_v43 }
 0x70c   :  { %2021 = vmatprep.mubr.bf16.mxu0 %v8861_v29 }
 0x70d   :  { %4807 = vmatpush3.bf16.msra.mxu1 %v4941_v10  ;;  %v8840_v10 = vunpack.c.h.s8.bf16 %v6937_v57 }
 0x70e   :  { %4808 = vmatprep.subr.bf16.mxu1 %v4942_v39 }
 0x711   :  { %4809 = vmatpush3.bf16.msra.mxu1 %v4942_v39  ;;  %v8844_v39 = vunpack.c.h.s8.bf16 %v6945_v42 }
 0x713   :  { %2022 = vmatmul.mubr.bf16.gmra.mrb[36].mxu0 %v8860_v20 }
 0x714   :  { %2029 = vmatprep.mubr.bf16.mxu0 %v8859_v48 }
 0x71b   :  { %2030 = vmatmul.mubr.bf16.gmra.mrb[40].mxu0 %v8858_v11 }
 0x71c   :  { %2037 = vmatprep.mubr.bf16.mxu0 %v8857_v45 }
 0x723   :  { %2038 = vmatmul.mubr.bf16.gmra.mrb[44].mxu0 %v8856_v61 }
 0x724   :  { %2045 = vmatprep.mubr.bf16.mxu0 %v8855_v55 }
 0x72b   :  { %2046 = vmatmul.mubr.bf16.gmra.mrb[48].mxu0 %v8854_v26 }
 0x72c   :  { %2053 = vmatprep.mubr.bf16.mxu0 %v8853_v34 }
 0x733   :  { %2054 = vmatmul.mubr.bf16.gmra.mrb[52].mxu0 %v8852_v51 }
 0x734   :  { %2061 = vmatprep.mubr.bf16.mxu0 %v8851_v23 }
 0x73b   :  { %2062 = vmatmul.mubr.bf16.gmra.mrb[56].mxu0 %v8850_v16 }
 0x73c   :  { %2069 = vmatprep.mubr.bf16.mxu0 %v8849_v21 }
 0x743   :  { %2070 = vmatmul.mubr.bf16.gmra.mrb[60].mxu0 %v8848_v47 }
 0x744   :  { %2077 = vmatprep.mubr.bf16.mxu0 %v8847_v53 }
 0x74b   :  { %2078 = vmatmul.mubr.bf16.gmra.mrb[64].mxu0 %v8846_v62  ;;  %v2147_v62 = vunpack.c.h.bf16 %v6597_v32 }
 0x74c   :  { %2085 = vmatprep.mubr.bf16.mxu0 %v8845_v0 }
 0x753   :  { %2086 = vmatmul.mubr.bf16.gmra.mrb[68].mxu0 %v8843_v37 }
 0x754   :  { %2093 = vmatprep.mubr.bf16.mxu0 %v8842_v18 }
 0x75b   :  { %2094 = vmatmul.mubr.bf16.gmra.mrb[72].mxu0 %v8841_v28 }
 0x75c   :  { %2101 = vmatprep.mubr.bf16.mxu0 %v8839_v33 }
 0x763   :  { %2102 = vmatmul.mubr.bf16.gmra.mrb[76].mxu0 %v8837_v40 }
 0x764   :  { %2109 = vmatprep.mubr.bf16.mxu0 %v8836_v50  ;;  %v6958_v50 = vstv %s2143_s22 }
 0x76b   :  { %2110 = vmatmul.mubr.bf16.gmra.mrb[80].mxu0 %v8835_v14 }
 0x76c   :  { %2117 = vmatprep.mubr.bf16.mxu0 %v8834_v31 }
 0x773   :  { %2118 = vmatmul.mubr.bf16.gmra.mrb[84].mxu0 %v8833_v25  ;;  %v2145_v25 = vunpack.c.h.bf16 %v6610_v3 }
 0x774   :  { %2125 = vmatprep.mubr.bf16.mxu0 %v8832_v35  ;;  %v2144_v35 = vunpack.c.l.bf16 %v6610_v3 }
 0x775   :  { %v2178_v37 = vmul.f32 %v6958_v50, %v2145_v25 }
 0x77b   :  { %2126 = vmatmul.mubr.bf16.gmra.mrb[88].mxu0 %v8838_v30  ;;  %v2177_v30 = vmul.f32 %v6958_v50, %v2144_v35 }
 0x77c   :  { %2133 = vmatprep.mubr.bf16.mxu0 %v8840_v10 }
 0x783   :  { %2134 = vmatmul.mubr.bf16.gmra.mrb[92].mxu0 %v8844_v39  ;;  %v2146_v39 = vunpack.c.l.bf16 %v6597_v32 }
 0x785   :  { %v2179_v16 = vmul.f32 %v6958_v50, %v2146_v39 }
 0x7de   :  { %v4442_v31 = vpop.f32.mrb[32].mxu0 }
 0x7df   :  { %v4443_v14 = vpop.f32.mrb[33].mxu0 }
 0x7e0   :  { %v4444_v40 = vadd.f32 %v4443_v14, %v4442_v31  ;;  %v4445_v33 = vpop.f32.mrb[34].mxu0 }
 0x7e1   :  { %v4446_v10 = vpop.f32.mrb[35].mxu0 }
 0x7e2   :  { %v2209_v28 = vadd.f32 %v4444_v40, %v2177_v30  ;;  %v4447_v18 = vadd.f32 %v4446_v10, %v4445_v33  ;;  %v2180_v33 = vmul.f32 %v6958_v50, %v2147_v62  ;;  %v2148_v40 = vunpack.c.l.bf16 %v6642_v8 }
 0x7e4   :  { %v2210_v0 = vadd.f32 %v4447_v18, %v2178_v37  ;;  %v2149_v37 = vunpack.c.h.bf16 %v6642_v8 }
 0x7e6   :  { %v4448_v53 = vpop.f32.mrb[36].mxu0  ;;  %v2241_v3 = vpack.c.bf16 %v2210_v0, %v2209_v28 }
 0x7e7   :  { %v4449_v47 = vpop.f32.mrb[37].mxu0 }
 0x7e8   :  { %v4450_v21 = vadd.f32 %v4449_v47, %v4448_v53  ;;  %v4451_v14 = vpop.f32.mrb[38].mxu0  ;;  %4810 = vmatprep.mubr.bf16.mxu1 %v2241_v3  ;;  %v2181_v47 = vmul.f32 %v6958_v50, %v2148_v40 }
 0x7e9   :  { %v4452_v31 = vpop.f32.mrb[39].mxu0 }
 0x7ea   :  { %v2211_v35 = vadd.f32 %v4450_v21, %v2179_v16  ;;  %v4453_v23 = vadd.f32 %v4452_v31, %v4451_v14  ;;  %v2182_v16 = vmul.f32 %v6958_v50, %v2149_v37  ;;  %v2150_v21 = vunpack.c.l.bf16 %v6628_v7 }
 0x7eb   :  { %v2152_v37 = vunpack.c.l.bf16 %v6674_v60 }
 0x7ec   :  { %v2212_v25 = vadd.f32 %v4453_v23, %v2180_v33  ;;  %v2151_v23 = vunpack.c.h.bf16 %v6628_v7 }
 0x7ee   :  { %v2242_v18 = vpack.c.bf16 %v2212_v25, %v2211_v35  ;;  %v4454_v32 = vpop.f32.mrb[40].mxu0  ;;  %v2183_v35 = vmul.f32 %v6958_v50, %v2150_v21 }
 0x7ef   :  { %v4455_v30 = vpop.f32.mrb[41].mxu0 }
 0x7f0   :  { %v4456_v0 = vadd.f32 %v4455_v30, %v4454_v32  ;;  %v4457_v53 = vpop.f32.mrb[42].mxu0  ;;  %4811 = vmatmul.mubr.bf16.vlgmr.msra.gmra.mrb[32].mxu1 %v2242_v18  ;;  %v2184_v32 = vmul.f32 %v6958_v50, %v2151_v23  ;;  %v2154_v23 = vunpack.c.l.bf16 %v6660_v12 }
 0x7f1   :  { %v4458_v28 = vpop.f32.mrb[43].mxu0 }
 0x7f2   :  { %v2213_v10 = vadd.f32 %v4456_v0, %v2181_v47  ;;  %v4459_v39 = vadd.f32 %v4458_v28, %v4457_v53  ;;  %v2153_v0 = vunpack.c.h.bf16 %v6674_v60 }
 0x7f4   :  { %v2214_v62 = vadd.f32 %v4459_v39, %v2182_v16 }
 0x7f6   :  { %v4460_v3 = vpop.f32.mrb[44].mxu0  ;;  %v2243_v8 = vpack.c.bf16 %v2214_v62, %v2213_v10  ;;  %v2185_v10 = vmul.f32 %v6958_v50, %v2152_v37 }
 0x7f7   :  { %v4461_v14 = vpop.f32.mrb[45].mxu0 }
 0x7f8   :  { %v4462_v31 = vadd.f32 %v4461_v14, %v4460_v3  ;;  %v4463_v33 = vpop.f32.mrb[46].mxu0  ;;  %4814 = vmatprep.mubr.bf16.mxu1 %v2243_v8  ;;  %v2186_v3 = vmul.f32 %v6958_v50, %v2153_v0  ;;  %v2155_v14 = vunpack.c.h.bf16 %v6660_v12  ;;  %v2156_v0 = vunpack.c.l.bf16 %v6801_v38 }
 0x7f9   :  { %v4464_v40 = vpop.f32.mrb[47].mxu0 }
 0x7fa   :  { %v2215_v25 = vadd.f32 %v4462_v31, %v2183_v35  ;;  %v4465_v18 = vadd.f32 %v4464_v40, %v4463_v33  ;;  %v2187_v40 = vmul.f32 %v6958_v50, %v2154_v23 }
 0x7fc   :  { %v2216_v30 = vadd.f32 %v4465_v18, %v2184_v32 }
 0x7fe   :  { %v4466_v47 = vpop.f32.mrb[48].mxu0  ;;  %v2244_v7 = vpack.c.bf16 %v2216_v30, %v2215_v25  ;;  %v2188_v30 = vmul.f32 %v6958_v50, %v2155_v14 }
 0x7ff   :  { %v4467_v53 = vpop.f32.mrb[49].mxu0 }
 0x800   :  { %v4468_v28 = vadd.f32 %v4467_v53, %v4466_v47  ;;  %v4469_v39 = vpop.f32.mrb[50].mxu0  ;;  %4815 = vmatmul.mubr.bf16.gmra.mrb[36].mxu1 %v2244_v7  ;;  %v2157_v7 = vunpack.c.h.bf16 %v6801_v38 }
 0x801   :  { %v4470_v16 = vpop.f32.mrb[51].mxu0 }
 0x802   :  { %v2217_v21 = vadd.f32 %v4468_v28, %v2185_v10  ;;  %v4471_v62 = vadd.f32 %v4470_v16, %v4469_v39  ;;  %v2189_v39 = vmul.f32 %v6958_v50, %v2156_v0  ;;  %v2190_v23 = vmul.f32 %v6958_v50, %v2157_v7 }
 0x803   :  { %v2160_v0 = vunpack.c.l.bf16 %v6700_v56  ;;  %v2161_v7 = vunpack.c.h.bf16 %v6700_v56 }
 0x804   :  { %v2218_v8 = vadd.f32 %v4471_v62, %v2186_v3 }
 0x806   :  { %v4472_v31 = vpop.f32.mrb[52].mxu0  ;;  %v2245_v60 = vpack.c.bf16 %v2218_v8, %v2217_v21  ;;  %v2158_v8 = vunpack.c.l.bf16 %v6834_v22 }
 0x807   :  { %v4473_v35 = vpop.f32.mrb[53].mxu0 }
 0x808   :  { %v4474_v33 = vadd.f32 %v4473_v35, %v4472_v31  ;;  %v4475_v25 = vpop.f32.mrb[54].mxu0  ;;  %4818 = vmatprep.mubr.bf16.mxu1 %v2245_v60  ;;  %v2159_v31 = vunpack.c.h.bf16 %v6834_v22 }
 0x809   :  { %v4476_v18 = vpop.f32.mrb[55].mxu0 }
 0x80a   :  { %v2219_v32 = vadd.f32 %v4474_v33, %v2187_v40  ;;  %v4477_v37 = vadd.f32 %v4476_v18, %v4475_v25  ;;  %v2191_v40 = vmul.f32 %v6958_v50, %v2158_v8 }
 0x80c   :  { %v2220_v47 = vadd.f32 %v4477_v37, %v2188_v30  ;;  %v2192_v30 = vmul.f32 %v6958_v50, %v2159_v31 }
 0x80e   :  { %v4478_v53 = vpop.f32.mrb[56].mxu0  ;;  %v2246_v12 = vpack.c.bf16 %v2220_v47, %v2219_v32 }
 0x80f   :  { %v4479_v28 = vpop.f32.mrb[57].mxu0 }
 0x810   :  { %v4480_v10 = vadd.f32 %v4479_v28, %v4478_v53  ;;  %v4481_v16 = vpop.f32.mrb[58].mxu0  ;;  %4819 = vmatmul.mubr.bf16.gmra.mrb[40].mxu1 %v2246_v12 }
 0x811   :  { %v4482_v21 = vpop.f32.mrb[59].mxu0 }
 0x812   :  { %v2221_v62 = vadd.f32 %v4480_v10, %v2189_v39  ;;  %v4483_v3 = vadd.f32 %v4482_v21, %v4481_v16  ;;  %v2193_v10 = vmul.f32 %v6958_v50, %v2160_v0  ;;  %v2165_v0 = vunpack.c.h.bf16 %v6739_v9 }
 0x814   :  { %v2222_v14 = vadd.f32 %v4483_v3, %v2190_v23  ;;  %v2194_v3 = vmul.f32 %v6958_v50, %v2161_v7  ;;  %v2162_v23 = vunpack.c.l.bf16 %v6684_v59 }
 0x816   :  { %v4484_v60 = vpop.f32.mrb[60].mxu0  ;;  %v2247_v38 = vpack.c.bf16 %v2222_v14, %v2221_v62  ;;  %v2163_v14 = vunpack.c.h.bf16 %v6684_v59 }
 0x817   :  { %v4485_v35 = vpop.f32.mrb[61].mxu0 }
 0x818   :  { %v4486_v33 = vadd.f32 %v4485_v35, %v4484_v60  ;;  %v4487_v25 = vpop.f32.mrb[62].mxu0  ;;  %4822 = vmatprep.mubr.bf16.mxu1 %v2247_v38  ;;  %v2195_v35 = vmul.f32 %v6958_v50, %v2162_v23 }
 0x819   :  { %v4488_v18 = vpop.f32.mrb[63].mxu0 }
 0x81a   :  { %v2223_v32 = vadd.f32 %v4486_v33, %v2191_v40  ;;  %v4489_v37 = vadd.f32 %v4488_v18, %v4487_v25 }
 0x81c   :  { %v2224_v47 = vadd.f32 %v4489_v37, %v2192_v30  ;;  %v2164_v37 = vunpack.c.l.bf16 %v6739_v9 }
 0x81e   :  { %v4490_v53 = vpop.f32.mrb[64].mxu0  ;;  %v2248_v22 = vpack.c.bf16 %v2224_v47, %v2223_v32  ;;  %v2196_v32 = vmul.f32 %v6958_v50, %v2163_v14 }
 0x81f   :  { %v4491_v12 = vpop.f32.mrb[65].mxu0 }
 0x820   :  { %v4492_v28 = vadd.f32 %v4491_v12, %v4490_v53  ;;  %v4493_v39 = vpop.f32.mrb[66].mxu0  ;;  %4823 = vmatmul.mubr.bf16.gmra.mrb[44].mxu1 %v2248_v22  ;;  %v2197_v22 = vmul.f32 %v6958_v50, %v2164_v37 }
 0x821   :  { %v4494_v16 = vpop.f32.mrb[67].mxu0 }
 0x822   :  { %v2225_v21 = vadd.f32 %v4492_v28, %v2193_v10  ;;  %v4495_v62 = vadd.f32 %v4494_v16, %v4493_v39  ;;  %v2198_v16 = vmul.f32 %v6958_v50, %v2165_v0 }
 0x824   :  { %v2226_v8 = vadd.f32 %v4495_v62, %v2194_v3  ;;  %v2167_v3 = vunpack.c.h.bf16 %v6722_v15 }
 0x826   :  { %v4496_v31 = vpop.f32.mrb[68].mxu0  ;;  %v2249_v56 = vpack.c.bf16 %v2226_v8, %v2225_v21  ;;  %v2166_v21 = vunpack.c.l.bf16 %v6722_v15 }
 0x827   :  { %v4497_v60 = vpop.f32.mrb[69].mxu0 }
 0x828   :  { %v4498_v38 = vadd.f32 %v4497_v60, %v4496_v31  ;;  %v4499_v33 = vpop.f32.mrb[70].mxu0  ;;  %4826 = vmatprep.mubr.bf16.mxu1 %v2249_v56  ;;  %v2199_v31 = vmul.f32 %v6958_v50, %v2166_v21 }
 0x829   :  { %v4500_v40 = vpop.f32.mrb[71].mxu0 }
 0x82a   :  { %v2227_v25 = vadd.f32 %v4498_v38, %v2195_v35  ;;  %v4501_v18 = vadd.f32 %v4500_v40, %v4499_v33  ;;  %v2200_v33 = vmul.f32 %v6958_v50, %v2167_v3  ;;  %v2168_v40 = vunpack.c.l.bf16 %v6779_v49 }
 0x82c   :  { %v2228_v30 = vadd.f32 %v4501_v18, %v2196_v32  ;;  %v2169_v18 = vunpack.c.h.bf16 %v6779_v49  ;;  %v2201_v0 = vmul.f32 %v6958_v50, %v2168_v40 }
 0x82e   :  { %v4502_v47 = vpop.f32.mrb[72].mxu0  ;;  %v2250_v59 = vpack.c.bf16 %v2228_v30, %v2227_v25 }
 0x82f   :  { %v4503_v7 = vpop.f32.mrb[73].mxu0 }
 0x830   :  { %v4504_v53 = vadd.f32 %v4503_v7, %v4502_v47  ;;  %v4505_v12 = vpop.f32.mrb[74].mxu0  ;;  %4827 = vmatmul.mubr.bf16.gmra.mrb[48].mxu1 %v2250_v59 }
 0x831   :  { %v4506_v28 = vpop.f32.mrb[75].mxu0 }
 0x832   :  { %v2229_v10 = vadd.f32 %v4504_v53, %v2197_v22  ;;  %v4507_v39 = vadd.f32 %v4506_v28, %v4505_v12  ;;  %v2202_v22 = vmul.f32 %v6958_v50, %v2169_v18  ;;  %v2170_v12 = vunpack.c.l.bf16 %v6761_v58 }
 0x834   :  { %v2230_v62 = vadd.f32 %v4507_v39, %v2198_v16 }
 0x836   :  { %v4508_v23 = vpop.f32.mrb[76].mxu0  ;;  %v2251_v9 = vpack.c.bf16 %v2230_v62, %v2229_v10  ;;  %v2171_v10 = vunpack.c.h.bf16 %v6761_v58  ;;  %v2203_v62 = vmul.f32 %v6958_v50, %v2170_v12 }
 0x837   :  { %v4509_v8 = vpop.f32.mrb[77].mxu0 }
 0x838   :  { %v4510_v14 = vadd.f32 %v4509_v8, %v4508_v23  ;;  %v4511_v56 = vpop.f32.mrb[78].mxu0  ;;  %4830 = vmatprep.mubr.bf16.mxu1 %v2251_v9 }
 0x839   :  { %v4512_v60 = vpop.f32.mrb[79].mxu0 }
 0x83a   :  { %v2231_v38 = vadd.f32 %v4510_v14, %v2199_v31  ;;  %v4513_v35 = vadd.f32 %v4512_v60, %v4511_v56  ;;  %v2204_v14 = vmul.f32 %v6958_v50, %v2171_v10  ;;  %v2172_v31 = vunpack.c.l.bf16 %v6815_v63 }
 0x83b   :  { %v2173_v60 = vunpack.c.h.bf16 %v6815_v63 }
 0x83c   :  { %v2232_v25 = vadd.f32 %v4513_v35, %v2200_v33  ;;  %v2205_v40 = vmul.f32 %v6958_v50, %v2172_v31 }
 0x83e   :  { %v4514_v32 = vpop.f32.mrb[80].mxu0  ;;  %v2252_v15 = vpack.c.bf16 %v2232_v25, %v2231_v38 }
 0x83f   :  { %v4515_v37 = vpop.f32.mrb[81].mxu0 }
 0x840   :  { %v4516_v30 = vadd.f32 %v4515_v37, %v4514_v32  ;;  %v4517_v47 = vpop.f32.mrb[82].mxu0  ;;  %4831 = vmatmul.mubr.bf16.gmra.mrb[52].mxu1 %v2252_v15  ;;  %v2206_v37 = vmul.f32 %v6958_v50, %v2173_v60 }
 0x841   :  { %v4518_v59 = vpop.f32.mrb[83].mxu0 }
 0x842   :  { %v2233_v7 = vadd.f32 %v4516_v30, %v2201_v0  ;;  %v4519_v53 = vadd.f32 %v4518_v59, %v4517_v47  ;;  %v2174_v30 = vunpack.c.l.bf16 %v6823_v2  ;;  %v2175_v47 = vunpack.c.h.bf16 %v6823_v2  ;;  %v7027_v2 = vld [vmem:[%s8755_s5 + $0x1] ss:$0 sm:$0xff]  ;;  %s4368_s5 = sld [smem:[#allocation14 + $0x1]] }
 0x844   :  { %v2234_v28 = vadd.f32 %v4519_v53, %v2202_v22  ;;  %v2207_v22 = vmul.f32 %v6958_v50, %v2174_v30 }
 0x846   :  { %v4520_v39 = vpop.f32.mrb[84].mxu0  ;;  %v2253_v49 = vpack.c.bf16 %v2234_v28, %v2233_v7 }
 0x847   :  { %v4521_v16 = vpop.f32.mrb[85].mxu0 }
 0x848   :  { %v4522_v21 = vadd.f32 %v4521_v16, %v4520_v39  ;;  %v4523_v3 = vpop.f32.mrb[86].mxu0  ;;  %4834 = vmatprep.mubr.bf16.mxu1 %v2253_v49  ;;  %v2208_v49 = vmul.f32 %v6958_v50, %v2175_v47 }
 0x849   :  { %v4524_v23 = vpop.f32.mrb[87].mxu0 }
 0x84a   :  { %v2235_v9 = vadd.f32 %v4522_v21, %v2203_v62  ;;  %v4525_v8 = vadd.f32 %v4524_v23, %v4523_v3  ;;  %v7032_v3 = vld [vmem:[%s8758_s8] ss:$0 sm:$0xff]  ;;  %s3796_s8 = sadd.f32 1.0, %s4368_s5 }
 0x84c   :  { %v2236_v56 = vadd.f32 %v4525_v8, %v2204_v14 }
 0x84e   :  { %v4526_v38 = vpop.f32.mrb[88].mxu0  ;;  %v2254_v58 = vpack.c.bf16 %v2236_v56, %v2235_v9 }
 0x84f   :  { %v4527_v35 = vpop.f32.mrb[89].mxu0 }
 0x850   :  { %v4528_v33 = vadd.f32 %v4527_v35, %v4526_v38  ;;  %v4529_v25 = vpop.f32.mrb[90].mxu0  ;;  %4835 = vmatmul.mubr.bf16.gmra.mrb[56].mxu1 %v2254_v58 }
 0x851   :  { %v4530_v18 = vpop.f32.mrb[91].mxu0 }
 0x852   :  { %v2237_v32 = vadd.f32 %v4528_v33, %v2205_v40  ;;  %v4531_v15 = vadd.f32 %v4530_v18, %v4529_v25 }
 0x854   :  { %v2238_v0 = vadd.f32 %v4531_v15, %v2206_v37 }
 0x856   :  { %v4532_v59 = vpop.f32.mrb[92].mxu0  ;;  %v2255_v63 = vpack.c.bf16 %v2238_v0, %v2237_v32 }
 0x857   :  { %v4533_v7 = vpop.f32.mrb[93].mxu0 }
 0x858   :  { %v4534_v53 = vadd.f32 %v4533_v7, %v4532_v59  ;;  %v4535_v12 = vpop.f32.mrb[94].mxu0  ;;  %4838 = vmatprep.mubr.bf16.mxu1 %v2255_v63 }
 0x859   :  { %v4536_v28 = vpop.f32.mrb[95].mxu0 }
 0x85a   :  { %v2239_v10 = vadd.f32 %v4534_v53, %v2207_v22  ;;  %v4537_v39 = vadd.f32 %v4536_v28, %v4535_v12 }
 0x85c   :  { %v2240_v16 = vadd.f32 %v4537_v39, %v2208_v49 }
 0x85e   :  { %v2256_v21 = vpack.c.bf16 %v2240_v16, %v2239_v10 }
 0x860   :  { %4839 = vmatmul.mubr.bf16.gmra.mrb[60].mxu1 %v2256_v21 }
 0x861   :  { %3666 = vmatprep.mubr.bf16.mxu1 %v135_v4 }
 0x8c3   :  { %v4812_v62 = vpop.f32.mrb[32].mxu1 }
 0x8c4   :  { %v7035_v23 = vadd.f32 %v4812_v62, %v7027_v2  ;;  %v2396_v50 = vpop.f32.mrb[33].mxu1 }
 0x8c5   :  { %v4813_v9 = vpop.f32.mrb[34].mxu1  ;;  %v7042_v4 = vadd.f32 %v7027_v2, %v2396_v50 }
 0x8c6   :  { %v7039_v8 = vadd.f32 %v7032_v3, %v7035_v23  ;;  %v7045_v14 = vadd.f32 %v4813_v9, %v7027_v2  ;;  %v2399_v31 = vpop.f32.mrb[35].mxu1 }
 0x8c7   :  { %v7052_v60 = vadd.f32 %v7027_v2, %v2399_v31  ;;  %v7057_v38 = vadd.f32 %v7032_v3, %v7042_v4 }
 0x8c8   :  { %v7049_v56 = vadd.f32 %v7032_v3, %v7045_v14  ;;  %2566 = vmax.xlane.f32.xlu0 %v7039_v8 }
 0x8c9   :  { %v7062_v58 = vadd.f32 %v7032_v3, %v7052_v60 }
 0x8ca   :  { %2568 = vmax.xlane.f32.xlu1 %v7049_v56 }
 0x8cc   :  { %2562 = vmax.xlane.f32.xlu0 %v7057_v38 }
 0x8ce   :  { %2564 = vmax.xlane.f32.xlu1 %v7062_v58 }
 0x8d3   :  { %v4816_v35 = vpop.f32.mrb[36].mxu1 }
 0x8d4   :  { %v7067_v33 = vadd.f32 %v4816_v35, %v7027_v2  ;;  %v2412_v40 = vpop.f32.mrb[37].mxu1 }
 0x8d5   :  { %v4817_v25 = vpop.f32.mrb[38].mxu1  ;;  %v7074_v32 = vadd.f32 %v7027_v2, %v2412_v40 }
 0x8d6   :  { %v7071_v18 = vadd.f32 %v7032_v3, %v7067_v33  ;;  %v7077_v15 = vadd.f32 %v4817_v25, %v7027_v2  ;;  %v2415_v37 = vpop.f32.mrb[39].mxu1 }
 0x8d7   :  { %v7084_v0 = vadd.f32 %v7027_v2, %v2415_v37  ;;  %v7089_v47 = vadd.f32 %v7032_v3, %v7074_v32 }
 0x8d8   :  { %v7081_v30 = vadd.f32 %v7032_v3, %v7077_v15  ;;  %2574 = vmax.xlane.f32.xlu0 %v7071_v18 }
 0x8d9   :  { %v7094_v59 = vadd.f32 %v7032_v3, %v7084_v0 }
 0x8da   :  { %2576 = vmax.xlane.f32.xlu1 %v7081_v30 }
 0x8dc   :  { %2570 = vmax.xlane.f32.xlu0 %v7089_v47 }
 0x8de   :  { %2572 = vmax.xlane.f32.xlu1 %v7094_v59 }
 0x8e3   :  { %v4820_v63 = vpop.f32.mrb[40].mxu1 }
 0x8e4   :  { %v7099_v7 = vadd.f32 %v4820_v63, %v7027_v2  ;;  %v2428_v53 = vpop.f32.mrb[41].mxu1 }
 0x8e5   :  { %v4821_v22 = vpop.f32.mrb[42].mxu1  ;;  %v7106_v28 = vadd.f32 %v7027_v2, %v2428_v53 }
 0x8e6   :  { %v7103_v12 = vadd.f32 %v7032_v3, %v7099_v7  ;;  %v7109_v10 = vadd.f32 %v4821_v22, %v7027_v2  ;;  %v2431_v39 = vpop.f32.mrb[43].mxu1 }
 0x8e7   :  { %v7116_v16 = vadd.f32 %v7027_v2, %v2431_v39  ;;  %v7121_v21 = vadd.f32 %v7032_v3, %v7106_v28 }
 0x8e8   :  { %v7113_v49 = vadd.f32 %v7032_v3, %v7109_v10  ;;  %2582 = vmax.xlane.f32.xlu0 %v7103_v12 }
 0x8e9   :  { %v7126_v62 = vadd.f32 %v7032_v3, %v7116_v16 }
 0x8ea   :  { %2584 = vmax.xlane.f32.xlu1 %v7113_v49 }
 0x8ec   :  { %2578 = vmax.xlane.f32.xlu0 %v7121_v21 }
 0x8ee   :  { %2580 = vmax.xlane.f32.xlu1 %v7126_v62 }
 0x8f3   :  { %v7130_v50 = vpop.f32.mrb[44].mxu1 }
 0x8f4   :  { %v2444_v9 = vpop.f32.mrb[45].mxu1 }
 0x8f5   :  { %v7132_v31 = vpop.f32.mrb[46].mxu1  ;;  %v7220_v27 = vadd.f32 %v7027_v2, %v2444_v9 }
 0x8f6   :  { %v2447_v35 = vpop.f32.mrb[47].mxu1 }
 0x8f7   :  { %9083 = vst [vmem:[#allocation21_spill] sm:$0xff] %v7220_v27 }
 0x903   :  { %v4828_v40 = vpop.f32.mrb[48].mxu1 }
 0x904   :  { %v7135_v25 = vadd.f32 %v4828_v40, %v7027_v2  ;;  %v2460_v37 = vpop.f32.mrb[49].mxu1 }
 0x905   :  { %v4829_v63 = vpop.f32.mrb[50].mxu1  ;;  %v7142_v22 = vadd.f32 %v7027_v2, %v2460_v37 }
 0x906   :  { %9062 = vst [vmem:[#allocation37_spill] sm:$0xff] %v7135_v25  ;;  %v7139_v53 = vadd.f32 %v7032_v3, %v7135_v25  ;;  %v7145_v39 = vadd.f32 %v4829_v63, %v7027_v2  ;;  %v2463_v51 = vpop.f32.mrb[51].mxu1 }
 0x907   :  { %9063 = vst [vmem:[#allocation43_spill] sm:$0xff] %v7142_v22  ;;  %v7152_v40 = vadd.f32 %v7027_v2, %v2463_v51  ;;  %v7157_v26 = vadd.f32 %v7032_v3, %v7142_v22 }
 0x908   :  { %9064 = vst [vmem:[#allocation41_spill] sm:$0xff] %v7145_v39  ;;  %v7149_v34 = vadd.f32 %v7032_v3, %v7145_v39  ;;  %2598 = vmax.xlane.f32.xlu0 %v7139_v53 }
 0x909   :  { %9066 = vst [vmem:[#allocation40_spill] sm:$0xff] %v7152_v40  ;;  %9067 = vst [vmem:[#allocation44_spill] sm:$0xff] %v7157_v26  ;;  %v7162_v37 = vadd.f32 %v7032_v3, %v7152_v40 }
 0x90a   :  { %9065 = vst [vmem:[#allocation39_spill] sm:$0xff] %v7149_v34  ;;  %2600 = vmax.xlane.f32.xlu1 %v7149_v34 }
 0x90b   :  { %9068 = vst [vmem:[#allocation42_spill] sm:$0xff] %v7162_v37 }
 0x90c   :  { %2594 = vmax.xlane.f32.xlu0 %v7157_v26 }
 0x90e   :  { %2596 = vmax.xlane.f32.xlu1 %v7162_v37 }
 0x913   :  { %v4832_v63 = vpop.f32.mrb[52].mxu1 }
 0x914   :  { %v7167_v51 = vadd.f32 %v4832_v63, %v7027_v2  ;;  %v2476_v55 = vpop.f32.mrb[53].mxu1 }
 0x915   :  { %v4833_v61 = vpop.f32.mrb[54].mxu1  ;;  %v7174_v11 = vadd.f32 %v7027_v2, %v2476_v55 }
 0x916   :  { %9069 = vst [vmem:[#allocation50_spill] sm:$0xff] %v7167_v51  ;;  %v7171_v45 = vadd.f32 %v7032_v3, %v7167_v51  ;;  %v7177_v48 = vadd.f32 %v4833_v61, %v7027_v2  ;;  %v2479_v20 = vpop.f32.mrb[55].mxu1 }
 0x917   :  { %9071 = vst [vmem:[#allocation54_spill] sm:$0xff] %v7174_v11  ;;  %v7184_v63 = vadd.f32 %v7027_v2, %v2479_v20  ;;  %v7189_v43 = vadd.f32 %v7032_v3, %v7174_v11 }
 0x918   :  { %9070 = vst [vmem:[#allocation46_spill] sm:$0xff] %v7171_v45  ;;  %9072 = vst [vmem:[#allocation52_spill] sm:$0xff] %v7177_v48  ;;  %v7181_v29 = vadd.f32 %v7032_v3, %v7177_v48  ;;  %2606 = vmax.xlane.f32.xlu0 %v7171_v45 }
 0x919   :  { %9074 = vst [vmem:[#allocation45_spill] sm:$0xff] %v7184_v63  ;;  %9075 = vst [vmem:[#allocation48_spill] sm:$0xff] %v7189_v43  ;;  %v7194_v61 = vadd.f32 %v7032_v3, %v7184_v63 }
 0x91a   :  { %9073 = vst [vmem:[#allocation49_spill] sm:$0xff] %v7181_v29  ;;  %2608 = vmax.xlane.f32.xlu1 %v7181_v29 }
 0x91b   :  { %9076 = vst [vmem:[#allocation53_spill] sm:$0xff] %v7194_v61 }
 0x91c   :  { %2602 = vmax.xlane.f32.xlu0 %v7189_v43 }
 0x91e   :  { %2604 = vmax.xlane.f32.xlu1 %v7194_v61 }
 0x923   :  { %v4836_v55 = vpop.f32.mrb[56].mxu1 }
 0x924   :  { %v7199_v20 = vadd.f32 %v4836_v55, %v7027_v2  ;;  %v2492_v42 = vpop.f32.mrb[57].mxu1 }
 0x925   :  { %v4837_v57 = vpop.f32.mrb[58].mxu1  ;;  %v7206_v36 = vadd.f32 %v7027_v2, %v2492_v42 }
 0x926   :  { %9077 = vst [vmem:[#allocation56_spill] sm:$0xff] %v7199_v20  ;;  %v7203_v19 = vadd.f32 %v7032_v3, %v7199_v20  ;;  %v7209_v24 = vadd.f32 %v4837_v57, %v7027_v2  ;;  %v2495_v46 = vpop.f32.mrb[59].mxu1  ;;  %v7228_v57 = vadd.f32 %v7027_v2, %v2447_v35 }
 0x927   :  { %9079 = vst [vmem:[#allocation47_spill] sm:$0xff] %v7206_v36  ;;  %v7216_v55 = vadd.f32 %v7027_v2, %v2495_v46  ;;  %v7224_v42 = vadd.f32 %v7032_v3, %v7206_v36  ;;  %v7237_v46 = vadd.f32 %v7032_v3, %v7220_v27 }
 0x928   :  { %9078 = vst [vmem:[#allocation55_spill] sm:$0xff] %v7203_v19  ;;  %9080 = vst [vmem:[#allocation51_spill] sm:$0xff] %v7209_v24  ;;  %v7213_v17 = vadd.f32 %v7032_v3, %v7209_v24  ;;  %2614 = vmax.xlane.f32.xlu0 %v7203_v19  ;;  %v7242_v9 = vadd.f32 %v7032_v3, %v7228_v57 }
 0x929   :  { %9082 = vst [vmem:[#allocation57_spill] sm:$0xff] %v7216_v55  ;;  %9084 = vst [vmem:[#allocation22_spill] sm:$0xff] %v7224_v42  ;;  %v7232_v6 = vadd.f32 %v7032_v3, %v7216_v55 }
 0x92a   :  { %9081 = vst [vmem:[#allocation58_spill] sm:$0xff] %v7213_v17  ;;  %2616 = vmax.xlane.f32.xlu1 %v7213_v17  ;;  %9085 = vst [vmem:[#allocation60_spill] sm:$0xff] %v7228_v57 }
 0x92b   :  { %9086 = vst [vmem:[#allocation59_spill] sm:$0xff] %v7232_v6  ;;  %9087 = vst [vmem:[#allocation62_spill] sm:$0xff] %v7237_v46 }
 0x92c   :  { %2610 = vmax.xlane.f32.xlu0 %v7224_v42  ;;  %9088 = vst [vmem:[#allocation63_spill] sm:$0xff] %v7242_v9 }
 0x92e   :  { %2612 = vmax.xlane.f32.xlu1 %v7232_v6 }
 0x930   :  { %2586 = vmax.xlane.f32.xlu0 %v7237_v46 }
 0x932   :  { %2588 = vmax.xlane.f32.xlu1 %v7242_v9 }
 0x933   :  { %v4840_v35 = vpop.f32.mrb[60].mxu1 }
 0x934   :  { %v2508_v44 = vpop.f32.mrb[61].mxu1  ;;  %v7250_v41 = vadd.f32 %v4840_v35, %v7027_v2 }
 0x935   :  { %v7247_v5 = vadd.f32 %v7027_v2, %v2508_v44  ;;  %v4841_v52 = vpop.f32.mrb[62].mxu1  ;;  %v7269_v44 = vadd.f32 %v7130_v50, %v7027_v2 }
 0x936   :  { %v2511_v54 = vpop.f32.mrb[63].mxu1  ;;  %9090 = vst [vmem:[#allocation65_spill] sm:$0xff] %v7250_v41  ;;  %v7260_v57 = vadd.f32 %v4841_v52, %v7027_v2  ;;  %v7273_v35 = vadd.f32 %v7032_v3, %v7250_v41 }
 0x937   :  { %9089 = vst [vmem:[#allocation64_spill] sm:$0xff] %v7247_v5  ;;  %v7254_v1 = vadd.f32 %v7032_v3, %v7247_v5  ;;  %v7257_v13 = vadd.f32 %v7027_v2, %v2511_v54  ;;  %9095 = vst [vmem:[#allocation70_spill] sm:$0xff] %v7269_v44  ;;  %v7278_v54 = vadd.f32 %v7132_v31, %v7027_v2 }
 0x938   :  { %9093 = vst [vmem:[#allocation68_spill] sm:$0xff] %v7260_v57  ;;  %9096 = vst [vmem:[#allocation71_spill] sm:$0xff] %v7273_v35  ;;  %v7282_v52 = vadd.f32 %v7032_v3, %v7260_v57  ;;  %v7287_v50 = vadd.f32 %v7032_v3, %v7269_v44 }
 0x939   :  { %9091 = vst [vmem:[#allocation66_spill] sm:$0xff] %v7254_v1  ;;  %9092 = vst [vmem:[#allocation67_spill] sm:$0xff] %v7257_v13  ;;  %v7264_v27 = vadd.f32 %v7032_v3, %v7257_v13  ;;  %2618 = vmax.xlane.f32.xlu0 %v7254_v1  ;;  %v7292_v41 = vadd.f32 %v7032_v3, %v7278_v54 }
 0x93a   :  { %9097 = vst [vmem:[#allocation72_spill] sm:$0xff] %v7278_v54  ;;  %9098 = vst [vmem:[#allocation73_spill] sm:$0xff] %v7282_v52 }
 0x93b   :  { %9094 = vst [vmem:[#allocation69_spill] sm:$0xff] %v7264_v27  ;;  %2620 = vmax.xlane.f32.xlu1 %v7264_v27  ;;  %9099 = vst [vmem:[#allocation74_spill] sm:$0xff] %v7287_v50 }
 0x93c   :  { %9100 = vst [vmem:[#allocation75_spill] sm:$0xff] %v7292_v41 }
 0x93d   :  { %2622 = vmax.xlane.f32.xlu0 %v7273_v35 }
 0x93f   :  { %2624 = vmax.xlane.f32.xlu1 %v7282_v52 }
 0x941   :  { %2590 = vmax.xlane.f32.xlu0 %v7287_v50 }
 0x943   :  { %2592 = vmax.xlane.f32.xlu1 %v7292_v41 }
 0x955   :  { %v2567_v2 = vpop.xlane.xlu0 %2566 }
 0x956   :  { %vm2628_vm15 = vcmp.eq.f32.partialorder %v7039_v8, %v2567_v2 }
 0x957   :  { %v2569_v31 = vpop.xlane.xlu1 %2568  ;;  %v7298_v57 = vsel %vm2628_vm15, -3.4028235e+38, %v7039_v8 }
 0x958   :  { %vm2629_vm2 = vcmp.eq.f32.partialorder %v7049_v56, %v2569_v31  ;;  %2694 = vmax.xlane.f32.xlu0 %v7298_v57 }
 0x959   :  { %v2563_v44 = vpop.xlane.xlu0 %2562  ;;  %v7303_v13 = vsel %vm2629_vm2, -3.4028235e+38, %v7049_v56 }
 0x95a   :  { %vm2626_vm3 = vcmp.eq.f32.partialorder %v7057_v38, %v2563_v44  ;;  %2696 = vmax.xlane.f32.xlu1 %v7303_v13 }
 0x95b   :  { %v2565_v3 = vpop.xlane.xlu1 %2564  ;;  %v7308_v54 = vsel %vm2626_vm3, -3.4028235e+38, %v7057_v38 }
 0x95c   :  { %vm2627_vm10 = vcmp.eq.f32.partialorder %v7062_v58, %v2565_v3  ;;  %2690 = vmax.xlane.f32.xlu0 %v7308_v54 }
 0x95d   :  { %v7313_v2 = vsel %vm2627_vm10, -3.4028235e+38, %v7062_v58 }
 0x95e   :  { %2692 = vmax.xlane.f32.xlu1 %v7313_v2 }
 0x965   :  { %v2575_v31 = vpop.xlane.xlu0 %2574 }
 0x966   :  { %vm2632_vm8 = vcmp.eq.f32.partialorder %v7071_v18, %v2575_v31 }
 0x967   :  { %v2577_v5 = vpop.xlane.xlu1 %2576  ;;  %v7318_v44 = vsel %vm2632_vm8, -3.4028235e+38, %v7071_v18 }
 0x968   :  { %vm2633_vm0 = vcmp.eq.f32.partialorder %v7081_v30, %v2577_v5  ;;  %2702 = vmax.xlane.f32.xlu0 %v7318_v44 }
 0x969   :  { %v2571_v55 = vpop.xlane.xlu0 %2570  ;;  %v7323_v3 = vsel %vm2633_vm0, -3.4028235e+38, %v7081_v30 }
 0x96a   :  { %vm2630_vm1 = vcmp.eq.f32.partialorder %v7089_v47, %v2571_v55  ;;  %2704 = vmax.xlane.f32.xlu1 %v7323_v3 }
 0x96b   :  { %v2573_v36 = vpop.xlane.xlu1 %2572  ;;  %v7328_v24 = vsel %vm2630_vm1, -3.4028235e+38, %v7089_v47 }
 0x96c   :  { %vm2631_vm9 = vcmp.eq.f32.partialorder %v7094_v59, %v2573_v36  ;;  %2698 = vmax.xlane.f32.xlu0 %v7328_v24 }
 0x96d   :  { %v7333_v5 = vsel %vm2631_vm9, -3.4028235e+38, %v7094_v59 }
 0x96e   :  { %2700 = vmax.xlane.f32.xlu1 %v7333_v5 }
 0x975   :  { %v2583_v31 = vpop.xlane.xlu0 %2582 }
 0x976   :  { %vm2636_vm11 = vcmp.eq.f32.partialorder %v7103_v12, %v2583_v31 }
 0x977   :  { %v2585_v20 = vpop.xlane.xlu1 %2584  ;;  %v7338_v55 = vsel %vm2636_vm11, -3.4028235e+38, %v7103_v12 }
 0x978   :  { %vm2637_vm12 = vcmp.eq.f32.partialorder %v7113_v49, %v2585_v20  ;;  %2710 = vmax.xlane.f32.xlu0 %v7338_v55 }
 0x979   :  { %v2579_v63 = vpop.xlane.xlu0 %2578  ;;  %v7343_v36 = vsel %vm2637_vm12, -3.4028235e+38, %v7113_v49 }
 0x97a   :  { %vm2634_vm6 = vcmp.eq.f32.partialorder %v7121_v21, %v2579_v63  ;;  %2712 = vmax.xlane.f32.xlu1 %v7343_v36 }
 0x97b   :  { %v2581_v11 = vpop.xlane.xlu1 %2580  ;;  %v7348_v48 = vsel %vm2634_vm6, -3.4028235e+38, %v7121_v21 }
 0x97c   :  { %vm2635_vm7 = vcmp.eq.f32.partialorder %v7126_v62, %v2581_v11  ;;  %2706 = vmax.xlane.f32.xlu0 %v7348_v48 }
 0x97d   :  { %v7353_v20 = vsel %vm2635_vm7, -3.4028235e+38, %v7126_v62 }
 0x97e   :  { %2708 = vmax.xlane.f32.xlu1 %v7353_v20 }
 0x995   :  { %v2599_v31 = vpop.xlane.xlu0 %2598 }
 0x996   :  { %vm2644_vm13 = vcmp.eq.f32.partialorder %v7139_v53, %v2599_v31 }
 0x997   :  { %v2601_v51 = vpop.xlane.xlu1 %2600  ;;  %v7358_v63 = vsel %vm2644_vm13, -3.4028235e+38, %v7139_v53 }
 0x998   :  { %vm2645_vm4 = vcmp.eq.f32.partialorder %v7149_v34, %v2601_v51  ;;  %2726 = vmax.xlane.f32.xlu0 %v7358_v63 }
 0x999   :  { %v2595_v40 = vpop.xlane.xlu0 %2594  ;;  %v7363_v11 = vsel %vm2645_vm4, -3.4028235e+38, %v7149_v34 }
 0x99a   :  { %vm2642_vm5 = vcmp.eq.f32.partialorder %v7157_v26, %v2595_v40  ;;  %2728 = vmax.xlane.f32.xlu1 %v7363_v11 }
 0x99b   :  { %v2597_v22 = vpop.xlane.xlu1 %2596  ;;  %v7368_v39 = vsel %vm2642_vm5, -3.4028235e+38, %v7157_v26 }
 0x99c   :  { %vm2643_vm14 = vcmp.eq.f32.partialorder %v7162_v37, %v2597_v22  ;;  %2722 = vmax.xlane.f32.xlu0 %v7368_v39 }
 0x99d   :  { %v7373_v51 = vsel %vm2643_vm14, -3.4028235e+38, %v7162_v37 }
 0x99e   :  { %2724 = vmax.xlane.f32.xlu1 %v7373_v51 }
 0x9a5   :  { %v2607_v31 = vpop.xlane.xlu0 %2606 }
 0x9a6   :  { %vm2648_vm15 = vcmp.eq.f32.partialorder %v7171_v45, %v2607_v31 }
 0x9a7   :  { %v2609_v25 = vpop.xlane.xlu1 %2608  ;;  %v7378_v40 = vsel %vm2648_vm15, -3.4028235e+38, %v7171_v45 }
 0x9a8   :  { %vm2649_vm2 = vcmp.eq.f32.partialorder %v7181_v29, %v2609_v25  ;;  %2734 = vmax.xlane.f32.xlu0 %v7378_v40 }
 0x9a9   :  { %v2603_v26 = vpop.xlane.xlu0 %2602  ;;  %v7383_v22 = vsel %vm2649_vm2, -3.4028235e+38, %v7181_v29 }
 0x9aa   :  { %vm2646_vm3 = vcmp.eq.f32.partialorder %v7189_v43, %v2603_v26  ;;  %2736 = vmax.xlane.f32.xlu1 %v7383_v22 }
 0x9ab   :  { %v2605_v37 = vpop.xlane.xlu1 %2604  ;;  %v7388_v34 = vsel %vm2646_vm3, -3.4028235e+38, %v7189_v43 }
 0x9ac   :  { %vm2647_vm10 = vcmp.eq.f32.partialorder %v7194_v61, %v2605_v37  ;;  %2730 = vmax.xlane.f32.xlu0 %v7388_v34 }
 0x9ad   :  { %v7393_v25 = vsel %vm2647_vm10, -3.4028235e+38, %v7194_v61 }
 0x9ae   :  { %2732 = vmax.xlane.f32.xlu1 %v7393_v25 }
 0x9b5   :  { %v2615_v31 = vpop.xlane.xlu0 %2614 }
 0x9b6   :  { %vm2652_vm8 = vcmp.eq.f32.partialorder %v7203_v19, %v2615_v31 }
 0x9b7   :  { %v2617_v29 = vpop.xlane.xlu1 %2616  ;;  %v7398_v26 = vsel %vm2652_vm8, -3.4028235e+38, %v7203_v19 }
 0x9b8   :  { %vm2653_vm0 = vcmp.eq.f32.partialorder %v7213_v17, %v2617_v29  ;;  %2742 = vmax.xlane.f32.xlu0 %v7398_v26 }
 0x9b9   :  { %v2611_v43 = vpop.xlane.xlu0 %2610  ;;  %v7403_v37 = vsel %vm2653_vm0, -3.4028235e+38, %v7213_v17 }
 0x9ba   :  { %vm2650_vm1 = vcmp.eq.f32.partialorder %v7224_v42, %v2611_v43  ;;  %2744 = vmax.xlane.f32.xlu1 %v7403_v37 }
 0x9bb   :  { %v2613_v61 = vpop.xlane.xlu1 %2612  ;;  %v7408_v45 = vsel %vm2650_vm1, -3.4028235e+38, %v7224_v42 }
 0x9bc   :  { %vm2651_vm9 = vcmp.eq.f32.partialorder %v7232_v6, %v2613_v61  ;;  %2738 = vmax.xlane.f32.xlu0 %v7408_v45 }
 0x9bd   :  { %v2587_v31 = vpop.xlane.xlu0 %2586  ;;  %v7413_v29 = vsel %vm2651_vm9, -3.4028235e+38, %v7232_v6 }
 0x9be   :  { %vm2638_vm11 = vcmp.eq.f32.partialorder %v7237_v46, %v2587_v31  ;;  %2740 = vmax.xlane.f32.xlu1 %v7413_v29 }
 0x9bf   :  { %v2589_v17 = vpop.xlane.xlu1 %2588  ;;  %v7418_v43 = vsel %vm2638_vm11, -3.4028235e+38, %v7237_v46 }
 0x9c0   :  { %vm2639_vm12 = vcmp.eq.f32.partialorder %v7242_v9, %v2589_v17  ;;  %2714 = vmax.xlane.f32.xlu0 %v7418_v43 }
 0x9c1   :  { %v7423_v61 = vsel %vm2639_vm12, -3.4028235e+38, %v7242_v9 }
 0x9c2   :  { %2716 = vmax.xlane.f32.xlu1 %v7423_v61 }
 0x9c6   :  { %v2619_v42 = vpop.xlane.xlu0 %2618 }
 0x9c7   :  { %vm2654_vm6 = vcmp.eq.f32.partialorder %v7254_v1, %v2619_v42 }
 0x9c8   :  { %v2621_v6 = vpop.xlane.xlu1 %2620  ;;  %v7428_v31 = vsel %vm2654_vm6, -3.4028235e+38, %v7254_v1 }
 0x9c9   :  { %vm2655_vm7 = vcmp.eq.f32.partialorder %v7264_v27, %v2621_v6  ;;  %2746 = vmax.xlane.f32.xlu0 %v7428_v31 }
 0x9ca   :  { %v2623_v46 = vpop.xlane.xlu0 %2622  ;;  %v7433_v17 = vsel %vm2655_vm7, -3.4028235e+38, %v7264_v27 }
 0x9cb   :  { %vm2656_vm13 = vcmp.eq.f32.partialorder %v7273_v35, %v2623_v46  ;;  %2748 = vmax.xlane.f32.xlu1 %v7433_v17 }
 0x9cc   :  { %v2625_v9 = vpop.xlane.xlu1 %2624  ;;  %v7438_v19 = vsel %vm2656_vm13, -3.4028235e+38, %v7273_v35 }
 0x9cd   :  { %vm2657_vm4 = vcmp.eq.f32.partialorder %v7282_v52, %v2625_v9  ;;  %2750 = vmax.xlane.f32.xlu0 %v7438_v19 }
 0x9ce   :  { %v2591_v42 = vpop.xlane.xlu0 %2590  ;;  %v7443_v6 = vsel %vm2657_vm4, -3.4028235e+38, %v7282_v52 }
 0x9cf   :  { %vm2640_vm5 = vcmp.eq.f32.partialorder %v7287_v50, %v2591_v42  ;;  %2752 = vmax.xlane.f32.xlu1 %v7443_v6 }
 0x9d0   :  { %v2593_v27 = vpop.xlane.xlu1 %2592  ;;  %v7448_v46 = vsel %vm2640_vm5, -3.4028235e+38, %v7287_v50 }
 0x9d1   :  { %vm2641_vm14 = vcmp.eq.f32.partialorder %v7292_v41, %v2593_v27  ;;  %2718 = vmax.xlane.f32.xlu0 %v7448_v46 }
 0x9d2   :  { %v7453_v9 = vsel %vm2641_vm14, -3.4028235e+38, %v7292_v41 }
 0x9d3   :  { %2720 = vmax.xlane.f32.xlu1 %v7453_v9 }
 0x9e5   :  { %v2695_v35 = vpop.xlane.xlu0 %2694 }
 0x9e6   :  { %vm2756_vm15 = vcmp.eq.f32.partialorder %v7298_v57, %v2695_v35 }
 0x9e7   :  { %v2697_v52 = vpop.xlane.xlu1 %2696  ;;  %v7458_v42 = vsel %vm2756_vm15, -3.4028235e+38, %v7298_v57 }
 0x9e8   :  { %vm2757_vm2 = vcmp.eq.f32.partialorder %v7303_v13, %v2697_v52  ;;  %2822 = vmax.xlane.f32.xlu0 %v7458_v42 }
 0x9e9   :  { %v2691_v50 = vpop.xlane.xlu0 %2690  ;;  %v7463_v27 = vsel %vm2757_vm2, -3.4028235e+38, %v7303_v13 }
 0x9ea   :  { %vm2754_vm3 = vcmp.eq.f32.partialorder %v7308_v54, %v2691_v50  ;;  %2824 = vmax.xlane.f32.xlu1 %v7463_v27 }
 0x9eb   :  { %v2693_v41 = vpop.xlane.xlu1 %2692  ;;  %v7468_v1 = vsel %vm2754_vm3, -3.4028235e+38, %v7308_v54 }
 0x9ec   :  { %vm2755_vm10 = vcmp.eq.f32.partialorder %v7313_v2, %v2693_v41  ;;  %2818 = vmax.xlane.f32.xlu0 %v7468_v1 }
 0x9ed   :  { %v7473_v57 = vsel %vm2755_vm10, -3.4028235e+38, %v7313_v2 }
 0x9ee   :  { %2820 = vmax.xlane.f32.xlu1 %v7473_v57 }
 0x9f5   :  { %v2703_v35 = vpop.xlane.xlu0 %2702 }
 0x9f6   :  { %vm2760_vm8 = vcmp.eq.f32.partialorder %v7318_v44, %v2703_v35 }
 0x9f7   :  { %v2705_v13 = vpop.xlane.xlu1 %2704  ;;  %v7478_v52 = vsel %vm2760_vm8, -3.4028235e+38, %v7318_v44 }
 0x9f8   :  { %vm2761_vm0 = vcmp.eq.f32.partialorder %v7323_v3, %v2705_v13  ;;  %2830 = vmax.xlane.f32.xlu0 %v7478_v52 }
 0x9f9   :  { %v2699_v54 = vpop.xlane.xlu0 %2698  ;;  %v7483_v41 = vsel %vm2761_vm0, -3.4028235e+38, %v7323_v3 }
 0x9fa   :  { %vm2758_vm1 = vcmp.eq.f32.partialorder %v7328_v24, %v2699_v54  ;;  %2832 = vmax.xlane.f32.xlu1 %v7483_v41 }
 0x9fb   :  { %v2701_v50 = vpop.xlane.xlu1 %2700  ;;  %v7488_v2 = vsel %vm2758_vm1, -3.4028235e+38, %v7328_v24 }
 0x9fc   :  { %vm2759_vm9 = vcmp.eq.f32.partialorder %v7333_v5, %v2701_v50  ;;  %2826 = vmax.xlane.f32.xlu0 %v7488_v2 }
 0x9fd   :  { %v7493_v44 = vsel %vm2759_vm9, -3.4028235e+38, %v7333_v5 }
 0x9fe   :  { %2828 = vmax.xlane.f32.xlu1 %v7493_v44 }
 0xa05   :  { %v2711_v35 = vpop.xlane.xlu0 %2710 }
 0xa06   :  { %vm2764_vm11 = vcmp.eq.f32.partialorder %v7338_v55, %v2711_v35 }
 0xa07   :  { %v2713_v3 = vpop.xlane.xlu1 %2712  ;;  %v7498_v13 = vsel %vm2764_vm11, -3.4028235e+38, %v7338_v55 }
 0xa08   :  { %vm2765_vm12 = vcmp.eq.f32.partialorder %v7343_v36, %v2713_v3  ;;  %2838 = vmax.xlane.f32.xlu0 %v7498_v13 }
 0xa09   :  { %v2707_v24 = vpop.xlane.xlu0 %2706  ;;  %v7503_v54 = vsel %vm2765_vm12, -3.4028235e+38, %v7343_v36 }
 0xa0a   :  { %vm2762_vm6 = vcmp.eq.f32.partialorder %v7348_v48, %v2707_v24  ;;  %2840 = vmax.xlane.f32.xlu1 %v7503_v54 }
 0xa0b   :  { %v2709_v5 = vpop.xlane.xlu1 %2708  ;;  %v7508_v50 = vsel %vm2762_vm6, -3.4028235e+38, %v7348_v48 }
 0xa0c   :  { %vm2763_vm7 = vcmp.eq.f32.partialorder %v7353_v20, %v2709_v5  ;;  %2834 = vmax.xlane.f32.xlu0 %v7508_v50 }
 0xa0d   :  { %v7513_v55 = vsel %vm2763_vm7, -3.4028235e+38, %v7353_v20 }
 0xa0e   :  { %2836 = vmax.xlane.f32.xlu1 %v7513_v55 }
 0xa25   :  { %v2727_v35 = vpop.xlane.xlu0 %2726 }
 0xa26   :  { %vm2772_vm13 = vcmp.eq.f32.partialorder %v7358_v63, %v2727_v35 }
 0xa27   :  { %v2729_v36 = vpop.xlane.xlu1 %2728  ;;  %v7518_v3 = vsel %vm2772_vm13, -3.4028235e+38, %v7358_v63 }
 0xa28   :  { %vm2773_vm4 = vcmp.eq.f32.partialorder %v7363_v11, %v2729_v36  ;;  %2854 = vmax.xlane.f32.xlu0 %v7518_v3 }
 0xa29   :  { %v2723_v48 = vpop.xlane.xlu0 %2722  ;;  %v7523_v24 = vsel %vm2773_vm4, -3.4028235e+38, %v7363_v11 }
 0xa2a   :  { %vm2770_vm5 = vcmp.eq.f32.partialorder %v7368_v39, %v2723_v48  ;;  %2856 = vmax.xlane.f32.xlu1 %v7523_v24 }
 0xa2b   :  { %v2725_v20 = vpop.xlane.xlu1 %2724  ;;  %v7528_v5 = vsel %vm2770_vm5, -3.4028235e+38, %v7368_v39 }
 0xa2c   :  { %vm2771_vm14 = vcmp.eq.f32.partialorder %v7373_v51, %v2725_v20  ;;  %2850 = vmax.xlane.f32.xlu0 %v7528_v5 }
 0xa2d   :  { %v7533_v63 = vsel %vm2771_vm14, -3.4028235e+38, %v7373_v51 }
 0xa2e   :  { %2852 = vmax.xlane.f32.xlu1 %v7533_v63 }
 0xa35   :  { %v2735_v35 = vpop.xlane.xlu0 %2734 }
 0xa36   :  { %vm2776_vm15 = vcmp.eq.f32.partialorder %v7378_v40, %v2735_v35 }
 0xa37   :  { %v2737_v11 = vpop.xlane.xlu1 %2736  ;;  %v7538_v36 = vsel %vm2776_vm15, -3.4028235e+38, %v7378_v40 }
 0xa38   :  { %vm2777_vm2 = vcmp.eq.f32.partialorder %v7383_v22, %v2737_v11  ;;  %2862 = vmax.xlane.f32.xlu0 %v7538_v36 }
 0xa39   :  { %v2731_v39 = vpop.xlane.xlu0 %2730  ;;  %v7543_v48 = vsel %vm2777_vm2, -3.4028235e+38, %v7383_v22 }
 0xa3a   :  { %vm2774_vm3 = vcmp.eq.f32.partialorder %v7388_v34, %v2731_v39  ;;  %2864 = vmax.xlane.f32.xlu1 %v7543_v48 }
 0xa3b   :  { %v2733_v51 = vpop.xlane.xlu1 %2732  ;;  %v7548_v20 = vsel %vm2774_vm3, -3.4028235e+38, %v7388_v34 }
 0xa3c   :  { %vm2775_vm10 = vcmp.eq.f32.partialorder %v7393_v25, %v2733_v51  ;;  %2858 = vmax.xlane.f32.xlu0 %v7548_v20 }
 0xa3d   :  { %v7553_v40 = vsel %vm2775_vm10, -3.4028235e+38, %v7393_v25 }
 0xa3e   :  { %2860 = vmax.xlane.f32.xlu1 %v7553_v40 }
 0xa45   :  { %v2743_v35 = vpop.xlane.xlu0 %2742 }
 0xa46   :  { %vm2780_vm8 = vcmp.eq.f32.partialorder %v7398_v26, %v2743_v35 }
 0xa47   :  { %v2745_v22 = vpop.xlane.xlu1 %2744  ;;  %v7558_v11 = vsel %vm2780_vm8, -3.4028235e+38, %v7398_v26 }
 0xa48   :  { %vm2781_vm0 = vcmp.eq.f32.partialorder %v7403_v37, %v2745_v22  ;;  %2870 = vmax.xlane.f32.xlu0 %v7558_v11 }
 0xa49   :  { %v2739_v34 = vpop.xlane.xlu0 %2738  ;;  %v7563_v39 = vsel %vm2781_vm0, -3.4028235e+38, %v7403_v37 }
 0xa4a   :  { %vm2778_vm1 = vcmp.eq.f32.partialorder %v7408_v45, %v2739_v34  ;;  %2872 = vmax.xlane.f32.xlu1 %v7563_v39 }
 0xa4b   :  { %v2741_v25 = vpop.xlane.xlu1 %2740  ;;  %v7568_v51 = vsel %vm2778_vm1, -3.4028235e+38, %v7408_v45 }
 0xa4c   :  { %vm2779_vm9 = vcmp.eq.f32.partialorder %v7413_v29, %v2741_v25  ;;  %2866 = vmax.xlane.f32.xlu0 %v7568_v51 }
 0xa4d   :  { %v2715_v26 = vpop.xlane.xlu0 %2714  ;;  %v7573_v35 = vsel %vm2779_vm9, -3.4028235e+38, %v7413_v29 }
 0xa4e   :  { %vm2766_vm11 = vcmp.eq.f32.partialorder %v7418_v43, %v2715_v26  ;;  %2868 = vmax.xlane.f32.xlu1 %v7573_v35 }
 0xa4f   :  { %v2717_v37 = vpop.xlane.xlu1 %2716  ;;  %v7578_v22 = vsel %vm2766_vm11, -3.4028235e+38, %v7418_v43 }
 0xa50   :  { %vm2767_vm12 = vcmp.eq.f32.partialorder %v7423_v61, %v2717_v37  ;;  %2842 = vmax.xlane.f32.xlu0 %v7578_v22 }
 0xa51   :  { %v7583_v45 = vsel %vm2767_vm12, -3.4028235e+38, %v7423_v61 }
 0xa52   :  { %2844 = vmax.xlane.f32.xlu1 %v7583_v45 }
 0xa56   :  { %v2747_v34 = vpop.xlane.xlu0 %2746 }
 0xa57   :  { %vm2782_vm6 = vcmp.eq.f32.partialorder %v7428_v31, %v2747_v34 }
 0xa58   :  { %v2749_v29 = vpop.xlane.xlu1 %2748  ;;  %v7588_v25 = vsel %vm2782_vm6, -3.4028235e+38, %v7428_v31 }
 0xa59   :  { %vm2783_vm7 = vcmp.eq.f32.partialorder %v7433_v17, %v2749_v29  ;;  %2874 = vmax.xlane.f32.xlu0 %v7588_v25 }
 0xa5a   :  { %v2751_v43 = vpop.xlane.xlu0 %2750  ;;  %v7593_v26 = vsel %vm2783_vm7, -3.4028235e+38, %v7433_v17 }
 0xa5b   :  { %vm2784_vm13 = vcmp.eq.f32.partialorder %v7438_v19, %v2751_v43  ;;  %2876 = vmax.xlane.f32.xlu1 %v7593_v26 }
 0xa5c   :  { %v2753_v61 = vpop.xlane.xlu1 %2752  ;;  %v7598_v37 = vsel %vm2784_vm13, -3.4028235e+38, %v7438_v19 }
 0xa5d   :  { %vm2785_vm4 = vcmp.eq.f32.partialorder %v7443_v6, %v2753_v61  ;;  %2878 = vmax.xlane.f32.xlu0 %v7598_v37 }
 0xa5e   :  { %v2719_v31 = vpop.xlane.xlu0 %2718  ;;  %v7603_v34 = vsel %vm2785_vm4, -3.4028235e+38, %v7443_v6 }
 0xa5f   :  { %vm2768_vm5 = vcmp.eq.f32.partialorder %v7448_v46, %v2719_v31  ;;  %2880 = vmax.xlane.f32.xlu1 %v7603_v34 }
 0xa60   :  { %v2721_v17 = vpop.xlane.xlu1 %2720  ;;  %v7608_v29 = vsel %vm2768_vm5, -3.4028235e+38, %v7448_v46 }
 0xa61   :  { %vm2769_vm14 = vcmp.eq.f32.partialorder %v7453_v9, %v2721_v17  ;;  %2846 = vmax.xlane.f32.xlu0 %v7608_v29 }
 0xa62   :  { %v7613_v19 = vsel %vm2769_vm14, -3.4028235e+38, %v7453_v9 }
 0xa63   :  { %2848 = vmax.xlane.f32.xlu1 %v7613_v19 }
 0xa75   :  { %v2823_v43 = vpop.xlane.xlu0 %2822 }
 0xa76   :  { %vm2884_vm15 = vcmp.eq.f32.partialorder %v7458_v42, %v2823_v43 }
 0xa77   :  { %v2825_v6 = vpop.xlane.xlu1 %2824  ;;  %v7618_v61 = vsel %vm2884_vm15, -3.4028235e+38, %v7458_v42 }
 0xa78   :  { %vm2885_vm2 = vcmp.eq.f32.partialorder %v7463_v27, %v2825_v6  ;;  %2950 = vmax.xlane.f32.xlu0 %v7618_v61 }
 0xa79   :  { %v2819_v46 = vpop.xlane.xlu0 %2818  ;;  %v7623_v31 = vsel %vm2885_vm2, -3.4028235e+38, %v7463_v27 }
 0xa7a   :  { %vm2882_vm3 = vcmp.eq.f32.partialorder %v7468_v1, %v2819_v46  ;;  %2952 = vmax.xlane.f32.xlu1 %v7623_v31 }
 0xa7b   :  { %v2821_v9 = vpop.xlane.xlu1 %2820  ;;  %v7628_v17 = vsel %vm2882_vm3, -3.4028235e+38, %v7468_v1 }
 0xa7c   :  { %vm2883_vm10 = vcmp.eq.f32.partialorder %v7473_v57, %v2821_v9  ;;  %2946 = vmax.xlane.f32.xlu0 %v7628_v17 }
 0xa7d   :  { %v7633_v42 = vsel %vm2883_vm10, -3.4028235e+38, %v7473_v57 }
 0xa7e   :  { %2948 = vmax.xlane.f32.xlu1 %v7633_v42 }
 0xa85   :  { %v2831_v43 = vpop.xlane.xlu0 %2830 }
 0xa86   :  { %vm2888_vm8 = vcmp.eq.f32.partialorder %v7478_v52, %v2831_v43 }
 0xa87   :  { %v2833_v27 = vpop.xlane.xlu1 %2832  ;;  %v7638_v6 = vsel %vm2888_vm8, -3.4028235e+38, %v7478_v52 }
 0xa88   :  { %vm2889_vm0 = vcmp.eq.f32.partialorder %v7483_v41, %v2833_v27  ;;  %2958 = vmax.xlane.f32.xlu0 %v7638_v6 }
 0xa89   :  { %v2827_v1 = vpop.xlane.xlu0 %2826  ;;  %v7643_v46 = vsel %vm2889_vm0, -3.4028235e+38, %v7483_v41 }
 0xa8a   :  { %vm2886_vm1 = vcmp.eq.f32.partialorder %v7488_v2, %v2827_v1  ;;  %2960 = vmax.xlane.f32.xlu1 %v7643_v46 }
 0xa8b   :  { %v2829_v57 = vpop.xlane.xlu1 %2828  ;;  %v7648_v9 = vsel %vm2886_vm1, -3.4028235e+38, %v7488_v2 }
 0xa8c   :  { %vm2887_vm9 = vcmp.eq.f32.partialorder %v7493_v44, %v2829_v57  ;;  %2954 = vmax.xlane.f32.xlu0 %v7648_v9 }
 0xa8d   :  { %v7653_v52 = vsel %vm2887_vm9, -3.4028235e+38, %v7493_v44 }
 0xa8e   :  { %2956 = vmax.xlane.f32.xlu1 %v7653_v52 }
 0xa95   :  { %v2839_v43 = vpop.xlane.xlu0 %2838 }
 0xa96   :  { %vm2892_vm11 = vcmp.eq.f32.partialorder %v7498_v13, %v2839_v43 }
 0xa97   :  { %v2841_v41 = vpop.xlane.xlu1 %2840  ;;  %v7658_v27 = vsel %vm2892_vm11, -3.4028235e+38, %v7498_v13 }
 0xa98   :  { %vm2893_vm12 = vcmp.eq.f32.partialorder %v7503_v54, %v2841_v41  ;;  %2966 = vmax.xlane.f32.xlu0 %v7658_v27 }
 0xa99   :  { %v2835_v2 = vpop.xlane.xlu0 %2834  ;;  %v7663_v1 = vsel %vm2893_vm12, -3.4028235e+38, %v7503_v54 }
 0xa9a   :  { %vm2890_vm6 = vcmp.eq.f32.partialorder %v7508_v50, %v2835_v2  ;;  %2968 = vmax.xlane.f32.xlu1 %v7663_v1 }
 0xa9b   :  { %v2837_v44 = vpop.xlane.xlu1 %2836  ;;  %v7668_v57 = vsel %vm2890_vm6, -3.4028235e+38, %v7508_v50 }
 0xa9c   :  { %vm2891_vm7 = vcmp.eq.f32.partialorder %v7513_v55, %v2837_v44  ;;  %2962 = vmax.xlane.f32.xlu0 %v7668_v57 }
 0xa9d   :  { %v7673_v13 = vsel %vm2891_vm7, -3.4028235e+38, %v7513_v55 }
 0xa9e   :  { %2964 = vmax.xlane.f32.xlu1 %v7673_v13 }
 0xab5   :  { %v2855_v43 = vpop.xlane.xlu0 %2854 }
 0xab6   :  { %vm2900_vm13 = vcmp.eq.f32.partialorder %v7518_v3, %v2855_v43 }
 0xab7   :  { %v2857_v54 = vpop.xlane.xlu1 %2856  ;;  %v7678_v41 = vsel %vm2900_vm13, -3.4028235e+38, %v7518_v3 }
 0xab8   :  { %vm2901_vm4 = vcmp.eq.f32.partialorder %v7523_v24, %v2857_v54  ;;  %2982 = vmax.xlane.f32.xlu0 %v7678_v41 }
 0xab9   :  { %v2851_v50 = vpop.xlane.xlu0 %2850  ;;  %v7683_v2 = vsel %vm2901_vm4, -3.4028235e+38, %v7523_v24 }
 0xaba   :  { %vm2898_vm5 = vcmp.eq.f32.partialorder %v7528_v5, %v2851_v50  ;;  %2984 = vmax.xlane.f32.xlu1 %v7683_v2 }
 0xabb   :  { %v2853_v55 = vpop.xlane.xlu1 %2852  ;;  %v7688_v44 = vsel %vm2898_vm5, -3.4028235e+38, %v7528_v5 }
 0xabc   :  { %vm2899_vm14 = vcmp.eq.f32.partialorder %v7533_v63, %v2853_v55  ;;  %2978 = vmax.xlane.f32.xlu0 %v7688_v44 }
 0xabd   :  { %v7693_v3 = vsel %vm2899_vm14, -3.4028235e+38, %v7533_v63 }
 0xabe   :  { %2980 = vmax.xlane.f32.xlu1 %v7693_v3 }
 0xac5   :  { %v2863_v43 = vpop.xlane.xlu0 %2862 }
 0xac6   :  { %vm2904_vm15 = vcmp.eq.f32.partialorder %v7538_v36, %v2863_v43 }
 0xac7   :  { %v2865_v24 = vpop.xlane.xlu1 %2864  ;;  %v7698_v54 = vsel %vm2904_vm15, -3.4028235e+38, %v7538_v36 }
 0xac8   :  { %vm2905_vm2 = vcmp.eq.f32.partialorder %v7543_v48, %v2865_v24  ;;  %2990 = vmax.xlane.f32.xlu0 %v7698_v54 }
 0xac9   :  { %v2859_v5 = vpop.xlane.xlu0 %2858  ;;  %v7703_v50 = vsel %vm2905_vm2, -3.4028235e+38, %v7543_v48 }
 0xaca   :  { %vm2902_vm3 = vcmp.eq.f32.partialorder %v7548_v20, %v2859_v5  ;;  %2992 = vmax.xlane.f32.xlu1 %v7703_v50 }
 0xacb   :  { %v2861_v63 = vpop.xlane.xlu1 %2860  ;;  %v7708_v55 = vsel %vm2902_vm3, -3.4028235e+38, %v7548_v20 }
 0xacc   :  { %vm2903_vm10 = vcmp.eq.f32.partialorder %v7553_v40, %v2861_v63  ;;  %2986 = vmax.xlane.f32.xlu0 %v7708_v55 }
 0xacd   :  { %v7713_v36 = vsel %vm2903_vm10, -3.4028235e+38, %v7553_v40 }
 0xace   :  { %2988 = vmax.xlane.f32.xlu1 %v7713_v36 }
 0xad5   :  { %v2871_v43 = vpop.xlane.xlu0 %2870 }
 0xad6   :  { %vm2908_vm8 = vcmp.eq.f32.partialorder %v7558_v11, %v2871_v43 }
 0xad7   :  { %v2873_v48 = vpop.xlane.xlu1 %2872  ;;  %v7718_v24 = vsel %vm2908_vm8, -3.4028235e+38, %v7558_v11 }
 0xad8   :  { %vm2909_vm0 = vcmp.eq.f32.partialorder %v7563_v39, %v2873_v48  ;;  %2998 = vmax.xlane.f32.xlu0 %v7718_v24 }
 0xad9   :  { %v2867_v20 = vpop.xlane.xlu0 %2866  ;;  %v7723_v5 = vsel %vm2909_vm0, -3.4028235e+38, %v7563_v39 }
 0xada   :  { %vm2906_vm1 = vcmp.eq.f32.partialorder %v7568_v51, %v2867_v20  ;;  %3000 = vmax.xlane.f32.xlu1 %v7723_v5 }
 0xadb   :  { %v2869_v40 = vpop.xlane.xlu1 %2868  ;;  %v7728_v63 = vsel %vm2906_vm1, -3.4028235e+38, %v7568_v51 }
 0xadc   :  { %vm2907_vm9 = vcmp.eq.f32.partialorder %v7573_v35, %v2869_v40  ;;  %2994 = vmax.xlane.f32.xlu0 %v7728_v63 }
 0xadd   :  { %v2843_v11 = vpop.xlane.xlu0 %2842  ;;  %v7733_v43 = vsel %vm2907_vm9, -3.4028235e+38, %v7573_v35 }
 0xade   :  { %vm2894_vm11 = vcmp.eq.f32.partialorder %v7578_v22, %v2843_v11  ;;  %2996 = vmax.xlane.f32.xlu1 %v7733_v43 }
 0xadf   :  { %v2845_v39 = vpop.xlane.xlu1 %2844  ;;  %v7738_v48 = vsel %vm2894_vm11, -3.4028235e+38, %v7578_v22 }
 0xae0   :  { %vm2895_vm12 = vcmp.eq.f32.partialorder %v7583_v45, %v2845_v39  ;;  %2970 = vmax.xlane.f32.xlu0 %v7738_v48 }
 0xae1   :  { %v7743_v51 = vsel %vm2895_vm12, -3.4028235e+38, %v7583_v45 }
 0xae2   :  { %2972 = vmax.xlane.f32.xlu1 %v7743_v51 }
 0xae6   :  { %v2875_v20 = vpop.xlane.xlu0 %2874 }
 0xae7   :  { %vm2910_vm6 = vcmp.eq.f32.partialorder %v7588_v25, %v2875_v20 }
 0xae8   :  { %v2877_v35 = vpop.xlane.xlu1 %2876  ;;  %v7748_v40 = vsel %vm2910_vm6, -3.4028235e+38, %v7588_v25 }
 0xae9   :  { %vm2911_vm7 = vcmp.eq.f32.partialorder %v7593_v26, %v2877_v35  ;;  %3002 = vmax.xlane.f32.xlu0 %v7748_v40 }
 0xaea   :  { %v2879_v22 = vpop.xlane.xlu0 %2878  ;;  %v7753_v11 = vsel %vm2911_vm7, -3.4028235e+38, %v7593_v26 }
 0xaeb   :  { %vm2912_vm13 = vcmp.eq.f32.partialorder %v7598_v37, %v2879_v22  ;;  %3004 = vmax.xlane.f32.xlu1 %v7753_v11 }
 0xaec   :  { %v2881_v45 = vpop.xlane.xlu1 %2880  ;;  %v7758_v39 = vsel %vm2912_vm13, -3.4028235e+38, %v7598_v37 }
 0xaed   :  { %vm2913_vm4 = vcmp.eq.f32.partialorder %v7603_v34, %v2881_v45  ;;  %3006 = vmax.xlane.f32.xlu0 %v7758_v39 }
 0xaee   :  { %v2847_v25 = vpop.xlane.xlu0 %2846  ;;  %v7763_v20 = vsel %vm2913_vm4, -3.4028235e+38, %v7603_v34 }
 0xaef   :  { %vm2896_vm5 = vcmp.eq.f32.partialorder %v7608_v29, %v2847_v25  ;;  %3008 = vmax.xlane.f32.xlu1 %v7763_v20 }
 0xaf0   :  { %v2849_v26 = vpop.xlane.xlu1 %2848  ;;  %v7768_v35 = vsel %vm2896_vm5, -3.4028235e+38, %v7608_v29 }
 0xaf1   :  { %vm2897_vm14 = vcmp.eq.f32.partialorder %v7613_v19, %v2849_v26  ;;  %2974 = vmax.xlane.f32.xlu0 %v7768_v35 }
 0xaf2   :  { %v7773_v37 = vsel %vm2897_vm14, -3.4028235e+38, %v7613_v19 }
 0xaf3   :  { %2976 = vmax.xlane.f32.xlu1 %v7773_v37 }
 0xb05   :  { %v2951_v22 = vpop.xlane.xlu0 %2950 }
 0xb06   :  { %vm3012_vm15 = vcmp.eq.f32.partialorder %v7618_v61, %v2951_v22 }
 0xb07   :  { %v2953_v34 = vpop.xlane.xlu1 %2952  ;;  %v7778_v45 = vsel %vm3012_vm15, -3.4028235e+38, %v7618_v61 }
 0xb08   :  { %vm3013_vm2 = vcmp.eq.f32.partialorder %v7623_v31, %v2953_v34  ;;  %3078 = vmax.xlane.f32.xlu0 %v7778_v45 }
 0xb09   :  { %v2947_v29 = vpop.xlane.xlu0 %2946  ;;  %v7783_v25 = vsel %vm3013_vm2, -3.4028235e+38, %v7623_v31 }
 0xb0a   :  { %vm3010_vm3 = vcmp.eq.f32.partialorder %v7628_v17, %v2947_v29  ;;  %3080 = vmax.xlane.f32.xlu1 %v7783_v25 }
 0xb0b   :  { %v2949_v19 = vpop.xlane.xlu1 %2948  ;;  %v7788_v26 = vsel %vm3010_vm3, -3.4028235e+38, %v7628_v17 }
 0xb0c   :  { %vm3011_vm10 = vcmp.eq.f32.partialorder %v7633_v42, %v2949_v19  ;;  %3074 = vmax.xlane.f32.xlu0 %v7788_v26 }
 0xb0d   :  { %v7793_v61 = vsel %vm3011_vm10, -3.4028235e+38, %v7633_v42 }
 0xb0e   :  { %3076 = vmax.xlane.f32.xlu1 %v7793_v61 }
 0xb15   :  { %v2959_v22 = vpop.xlane.xlu0 %2958 }
 0xb16   :  { %vm3016_vm8 = vcmp.eq.f32.partialorder %v7638_v6, %v2959_v22 }
 0xb17   :  { %v2961_v31 = vpop.xlane.xlu1 %2960  ;;  %v7798_v34 = vsel %vm3016_vm8, -3.4028235e+38, %v7638_v6 }
 0xb18   :  { %vm3017_vm0 = vcmp.eq.f32.partialorder %v7643_v46, %v2961_v31  ;;  %3086 = vmax.xlane.f32.xlu0 %v7798_v34 }
 0xb19   :  { %v2955_v17 = vpop.xlane.xlu0 %2954  ;;  %v7803_v29 = vsel %vm3017_vm0, -3.4028235e+38, %v7643_v46 }
 0xb1a   :  { %vm3014_vm1 = vcmp.eq.f32.partialorder %v7648_v9, %v2955_v17  ;;  %3088 = vmax.xlane.f32.xlu1 %v7803_v29 }
 0xb1b   :  { %v2957_v42 = vpop.xlane.xlu1 %2956  ;;  %v7808_v19 = vsel %vm3014_vm1, -3.4028235e+38, %v7648_v9 }
 0xb1c   :  { %vm3015_vm9 = vcmp.eq.f32.partialorder %v7653_v52, %v2957_v42  ;;  %3082 = vmax.xlane.f32.xlu0 %v7808_v19 }
 0xb1d   :  { %v7813_v6 = vsel %vm3015_vm9, -3.4028235e+38, %v7653_v52 }
 0xb1e   :  { %3084 = vmax.xlane.f32.xlu1 %v7813_v6 }
 0xb25   :  { %v2967_v22 = vpop.xlane.xlu0 %2966 }
 0xb26   :  { %vm3020_vm11 = vcmp.eq.f32.partialorder %v7658_v27, %v2967_v22 }
 0xb27   :  { %v2969_v46 = vpop.xlane.xlu1 %2968  ;;  %v7818_v31 = vsel %vm3020_vm11, -3.4028235e+38, %v7658_v27 }
 0xb28   :  { %vm3021_vm12 = vcmp.eq.f32.partialorder %v7663_v1, %v2969_v46  ;;  %3094 = vmax.xlane.f32.xlu0 %v7818_v31 }
 0xb29   :  { %v2963_v9 = vpop.xlane.xlu0 %2962  ;;  %v7823_v17 = vsel %vm3021_vm12, -3.4028235e+38, %v7663_v1 }
 0xb2a   :  { %vm3018_vm6 = vcmp.eq.f32.partialorder %v7668_v57, %v2963_v9  ;;  %3096 = vmax.xlane.f32.xlu1 %v7823_v17 }
 0xb2b   :  { %v2965_v52 = vpop.xlane.xlu1 %2964  ;;  %v7828_v42 = vsel %vm3018_vm6, -3.4028235e+38, %v7668_v57 }
 0xb2c   :  { %vm3019_vm7 = vcmp.eq.f32.partialorder %v7673_v13, %v2965_v52  ;;  %3090 = vmax.xlane.f32.xlu0 %v7828_v42 }
 0xb2d   :  { %v7833_v27 = vsel %vm3019_vm7, -3.4028235e+38, %v7673_v13 }
 0xb2e   :  { %3092 = vmax.xlane.f32.xlu1 %v7833_v27 }
 0xb45   :  { %v2983_v22 = vpop.xlane.xlu0 %2982 }
 0xb46   :  { %vm3028_vm13 = vcmp.eq.f32.partialorder %v7678_v41, %v2983_v22 }
 0xb47   :  { %v2985_v1 = vpop.xlane.xlu1 %2984  ;;  %v7838_v46 = vsel %vm3028_vm13, -3.4028235e+38, %v7678_v41 }
 0xb48   :  { %vm3029_vm4 = vcmp.eq.f32.partialorder %v7683_v2, %v2985_v1  ;;  %3110 = vmax.xlane.f32.xlu0 %v7838_v46 }
 0xb49   :  { %v2979_v57 = vpop.xlane.xlu0 %2978  ;;  %v7843_v9 = vsel %vm3029_vm4, -3.4028235e+38, %v7683_v2 }
 0xb4a   :  { %vm3026_vm5 = vcmp.eq.f32.partialorder %v7688_v44, %v2979_v57  ;;  %3112 = vmax.xlane.f32.xlu1 %v7843_v9 }
 0xb4b   :  { %v2981_v13 = vpop.xlane.xlu1 %2980  ;;  %v7848_v52 = vsel %vm3026_vm5, -3.4028235e+38, %v7688_v44 }
 0xb4c   :  { %vm3027_vm14 = vcmp.eq.f32.partialorder %v7693_v3, %v2981_v13  ;;  %3106 = vmax.xlane.f32.xlu0 %v7848_v52 }
 0xb4d   :  { %v7853_v41 = vsel %vm3027_vm14, -3.4028235e+38, %v7693_v3 }
 0xb4e   :  { %3108 = vmax.xlane.f32.xlu1 %v7853_v41 }
 0xb55   :  { %v2991_v22 = vpop.xlane.xlu0 %2990 }
 0xb56   :  { %vm3032_vm15 = vcmp.eq.f32.partialorder %v7698_v54, %v2991_v22 }
 0xb57   :  { %v2993_v2 = vpop.xlane.xlu1 %2992  ;;  %v7858_v1 = vsel %vm3032_vm15, -3.4028235e+38, %v7698_v54 }
 0xb58   :  { %vm3033_vm2 = vcmp.eq.f32.partialorder %v7703_v50, %v2993_v2  ;;  %3118 = vmax.xlane.f32.xlu0 %v7858_v1 }
 0xb59   :  { %v2987_v44 = vpop.xlane.xlu0 %2986  ;;  %v7863_v57 = vsel %vm3033_vm2, -3.4028235e+38, %v7703_v50 }
 0xb5a   :  { %vm3030_vm3 = vcmp.eq.f32.partialorder %v7708_v55, %v2987_v44  ;;  %3120 = vmax.xlane.f32.xlu1 %v7863_v57 }
 0xb5b   :  { %v2989_v3 = vpop.xlane.xlu1 %2988  ;;  %v7868_v13 = vsel %vm3030_vm3, -3.4028235e+38, %v7708_v55 }
 0xb5c   :  { %vm3031_vm10 = vcmp.eq.f32.partialorder %v7713_v36, %v2989_v3  ;;  %3114 = vmax.xlane.f32.xlu0 %v7868_v13 }
 0xb5d   :  { %v7873_v54 = vsel %vm3031_vm10, -3.4028235e+38, %v7713_v36 }
 0xb5e   :  { %3116 = vmax.xlane.f32.xlu1 %v7873_v54 }
 0xb65   :  { %v2999_v22 = vpop.xlane.xlu0 %2998 }
 0xb66   :  { %vm3036_vm8 = vcmp.eq.f32.partialorder %v7718_v24, %v2999_v22 }
 0xb67   :  { %v3001_v50 = vpop.xlane.xlu1 %3000  ;;  %v7878_v2 = vsel %vm3036_vm8, -3.4028235e+38, %v7718_v24 }
 0xb68   :  { %vm3037_vm0 = vcmp.eq.f32.partialorder %v7723_v5, %v3001_v50  ;;  %3126 = vmax.xlane.f32.xlu0 %v7878_v2 }
 0xb69   :  { %v2995_v55 = vpop.xlane.xlu0 %2994  ;;  %v7883_v44 = vsel %vm3037_vm0, -3.4028235e+38, %v7723_v5 }
 0xb6a   :  { %vm3034_vm1 = vcmp.eq.f32.partialorder %v7728_v63, %v2995_v55  ;;  %3128 = vmax.xlane.f32.xlu1 %v7883_v44 }
 0xb6b   :  { %v2997_v36 = vpop.xlane.xlu1 %2996  ;;  %v7888_v3 = vsel %vm3034_vm1, -3.4028235e+38, %v7728_v63 }
 0xb6c   :  { %vm3035_vm9 = vcmp.eq.f32.partialorder %v7733_v43, %v2997_v36  ;;  %3122 = vmax.xlane.f32.xlu0 %v7888_v3 }
 0xb6d   :  { %v2971_v24 = vpop.xlane.xlu0 %2970  ;;  %v7893_v22 = vsel %vm3035_vm9, -3.4028235e+38, %v7733_v43 }
 0xb6e   :  { %vm3022_vm11 = vcmp.eq.f32.partialorder %v7738_v48, %v2971_v24  ;;  %3124 = vmax.xlane.f32.xlu1 %v7893_v22 }
 0xb6f   :  { %v2973_v5 = vpop.xlane.xlu1 %2972  ;;  %v7898_v50 = vsel %vm3022_vm11, -3.4028235e+38, %v7738_v48 }
 0xb70   :  { %vm3023_vm12 = vcmp.eq.f32.partialorder %v7743_v51, %v2973_v5  ;;  %3098 = vmax.xlane.f32.xlu0 %v7898_v50 }
 0xb71   :  { %v7903_v63 = vsel %vm3023_vm12, -3.4028235e+38, %v7743_v51 }
 0xb72   :  { %3100 = vmax.xlane.f32.xlu1 %v7903_v63 }
 0xb76   :  { %v3003_v55 = vpop.xlane.xlu0 %3002 }
 0xb77   :  { %vm3038_vm6 = vcmp.eq.f32.partialorder %v7748_v40, %v3003_v55 }
 0xb78   :  { %v3005_v43 = vpop.xlane.xlu1 %3004  ;;  %v7908_v36 = vsel %vm3038_vm6, -3.4028235e+38, %v7748_v40 }
 0xb79   :  { %vm3039_vm7 = vcmp.eq.f32.partialorder %v7753_v11, %v3005_v43  ;;  %3130 = vmax.xlane.f32.xlu0 %v7908_v36 }
 0xb7a   :  { %v3007_v48 = vpop.xlane.xlu0 %3006  ;;  %v7913_v24 = vsel %vm3039_vm7, -3.4028235e+38, %v7753_v11 }
 0xb7b   :  { %vm3040_vm13 = vcmp.eq.f32.partialorder %v7758_v39, %v3007_v48  ;;  %3132 = vmax.xlane.f32.xlu1 %v7913_v24 }
 0xb7c   :  { %v3009_v51 = vpop.xlane.xlu1 %3008  ;;  %v7918_v5 = vsel %vm3040_vm13, -3.4028235e+38, %v7758_v39 }
 0xb7d   :  { %vm3041_vm4 = vcmp.eq.f32.partialorder %v7763_v20, %v3009_v51  ;;  %3134 = vmax.xlane.f32.xlu0 %v7918_v5 }
 0xb7e   :  { %v2975_v40 = vpop.xlane.xlu0 %2974  ;;  %v7923_v55 = vsel %vm3041_vm4, -3.4028235e+38, %v7763_v20 }
 0xb7f   :  { %vm3024_vm5 = vcmp.eq.f32.partialorder %v7768_v35, %v2975_v40  ;;  %3136 = vmax.xlane.f32.xlu1 %v7923_v55 }
 0xb80   :  { %v2977_v11 = vpop.xlane.xlu1 %2976  ;;  %v7928_v43 = vsel %vm3024_vm5, -3.4028235e+38, %v7768_v35 }
 0xb81   :  { %vm3025_vm14 = vcmp.eq.f32.partialorder %v7773_v37, %v2977_v11  ;;  %3102 = vmax.xlane.f32.xlu0 %v7928_v43 }
 0xb82   :  { %v7933_v39 = vsel %vm3025_vm14, -3.4028235e+38, %v7773_v37 }
 0xb83   :  { %3104 = vmax.xlane.f32.xlu1 %v7933_v39 }
 0xb95   :  { %v3079_v48 = vpop.xlane.xlu0 %3078 }
 0xb96   :  { %vm3140_vm15 = vcmp.eq.f32.partialorder %v7778_v45, %v3079_v48 }
 0xb97   :  { %v3081_v20 = vpop.xlane.xlu1 %3080  ;;  %v7938_v51 = vsel %vm3140_vm15, -3.4028235e+38, %v7778_v45 }
 0xb98   :  { %vm3141_vm2 = vcmp.eq.f32.partialorder %v7783_v25, %v3081_v20  ;;  %3206 = vmax.xlane.f32.xlu0 %v7938_v51 }
 0xb99   :  { %v3075_v35 = vpop.xlane.xlu0 %3074  ;;  %v7943_v40 = vsel %vm3141_vm2, -3.4028235e+38, %v7783_v25 }
 0xb9a   :  { %vm3138_vm3 = vcmp.eq.f32.partialorder %v7788_v26, %v3075_v35  ;;  %3208 = vmax.xlane.f32.xlu1 %v7943_v40 }
 0xb9b   :  { %v3077_v37 = vpop.xlane.xlu1 %3076  ;;  %v7948_v11 = vsel %vm3138_vm3, -3.4028235e+38, %v7788_v26 }
 0xb9c   :  { %vm3139_vm10 = vcmp.eq.f32.partialorder %v7793_v61, %v3077_v37  ;;  %3202 = vmax.xlane.f32.xlu0 %v7948_v11 }
 0xb9d   :  { %v7953_v45 = vsel %vm3139_vm10, -3.4028235e+38, %v7793_v61 }
 0xb9e   :  { %3204 = vmax.xlane.f32.xlu1 %v7953_v45 }
 0xba5   :  { %v3087_v48 = vpop.xlane.xlu0 %3086 }
 0xba6   :  { %vm3144_vm8 = vcmp.eq.f32.partialorder %v7798_v34, %v3087_v48 }
 0xba7   :  { %v3089_v25 = vpop.xlane.xlu1 %3088  ;;  %v7958_v20 = vsel %vm3144_vm8, -3.4028235e+38, %v7798_v34 }
 0xba8   :  { %vm3145_vm0 = vcmp.eq.f32.partialorder %v7803_v29, %v3089_v25  ;;  %3214 = vmax.xlane.f32.xlu0 %v7958_v20 }
 0xba9   :  { %v3083_v26 = vpop.xlane.xlu0 %3082  ;;  %v7963_v35 = vsel %vm3145_vm0, -3.4028235e+38, %v7803_v29 }
 0xbaa   :  { %vm3142_vm1 = vcmp.eq.f32.partialorder %v7808_v19, %v3083_v26  ;;  %3216 = vmax.xlane.f32.xlu1 %v7963_v35 }
 0xbab   :  { %v3085_v61 = vpop.xlane.xlu1 %3084  ;;  %v7968_v37 = vsel %vm3142_vm1, -3.4028235e+38, %v7808_v19 }
 0xbac   :  { %vm3143_vm9 = vcmp.eq.f32.partialorder %v7813_v6, %v3085_v61  ;;  %3210 = vmax.xlane.f32.xlu0 %v7968_v37 }
 0xbad   :  { %v7973_v34 = vsel %vm3143_vm9, -3.4028235e+38, %v7813_v6 }
 0xbae   :  { %3212 = vmax.xlane.f32.xlu1 %v7973_v34 }
 0xbb5   :  { %v3095_v48 = vpop.xlane.xlu0 %3094 }
 0xbb6   :  { %vm3148_vm11 = vcmp.eq.f32.partialorder %v7818_v31, %v3095_v48 }
 0xbb7   :  { %v3097_v29 = vpop.xlane.xlu1 %3096  ;;  %v7978_v25 = vsel %vm3148_vm11, -3.4028235e+38, %v7818_v31 }
 0xbb8   :  { %vm3149_vm12 = vcmp.eq.f32.partialorder %v7823_v17, %v3097_v29  ;;  %3222 = vmax.xlane.f32.xlu0 %v7978_v25 }
 0xbb9   :  { %v3091_v19 = vpop.xlane.xlu0 %3090  ;;  %v7983_v26 = vsel %vm3149_vm12, -3.4028235e+38, %v7823_v17 }
 0xbba   :  { %vm3146_vm6 = vcmp.eq.f32.partialorder %v7828_v42, %v3091_v19  ;;  %3224 = vmax.xlane.f32.xlu1 %v7983_v26 }
 0xbbb   :  { %v3093_v6 = vpop.xlane.xlu1 %3092  ;;  %v7988_v61 = vsel %vm3146_vm6, -3.4028235e+38, %v7828_v42 }
 0xbbc   :  { %vm3147_vm7 = vcmp.eq.f32.partialorder %v7833_v27, %v3093_v6  ;;  %3218 = vmax.xlane.f32.xlu0 %v7988_v61 }
 0xbbd   :  { %v7993_v31 = vsel %vm3147_vm7, -3.4028235e+38, %v7833_v27 }
 0xbbe   :  { %3220 = vmax.xlane.f32.xlu1 %v7993_v31 }
 0xbd5   :  { %v3111_v48 = vpop.xlane.xlu0 %3110 }
 0xbd6   :  { %vm3156_vm13 = vcmp.eq.f32.partialorder %v7838_v46, %v3111_v48 }
 0xbd7   :  { %v3113_v17 = vpop.xlane.xlu1 %3112  ;;  %v7998_v29 = vsel %vm3156_vm13, -3.4028235e+38, %v7838_v46 }
 0xbd8   :  { %vm3157_vm4 = vcmp.eq.f32.partialorder %v7843_v9, %v3113_v17  ;;  %3238 = vmax.xlane.f32.xlu0 %v7998_v29 }
 0xbd9   :  { %v3107_v42 = vpop.xlane.xlu0 %3106  ;;  %v8003_v19 = vsel %vm3157_vm4, -3.4028235e+38, %v7843_v9 }
 0xbda   :  { %vm3154_vm5 = vcmp.eq.f32.partialorder %v7848_v52, %v3107_v42  ;;  %3240 = vmax.xlane.f32.xlu1 %v8003_v19 }
 0xbdb   :  { %v3109_v27 = vpop.xlane.xlu1 %3108  ;;  %v8008_v6 = vsel %vm3154_vm5, -3.4028235e+38, %v7848_v52 }
 0xbdc   :  { %vm3155_vm14 = vcmp.eq.f32.partialorder %v7853_v41, %v3109_v27  ;;  %3234 = vmax.xlane.f32.xlu0 %v8008_v6 }
 0xbdd   :  { %v8013_v46 = vsel %vm3155_vm14, -3.4028235e+38, %v7853_v41 }
 0xbde   :  { %3236 = vmax.xlane.f32.xlu1 %v8013_v46 }
 0xbe5   :  { %v3119_v48 = vpop.xlane.xlu0 %3118 }
 0xbe6   :  { %vm3160_vm15 = vcmp.eq.f32.partialorder %v7858_v1, %v3119_v48 }
 0xbe7   :  { %v3121_v9 = vpop.xlane.xlu1 %3120  ;;  %v8018_v17 = vsel %vm3160_vm15, -3.4028235e+38, %v7858_v1 }
 0xbe8   :  { %vm3161_vm2 = vcmp.eq.f32.partialorder %v7863_v57, %v3121_v9  ;;  %3246 = vmax.xlane.f32.xlu0 %v8018_v17 }
 0xbe9   :  { %v3115_v52 = vpop.xlane.xlu0 %3114  ;;  %v8023_v42 = vsel %vm3161_vm2, -3.4028235e+38, %v7863_v57 }
 0xbea   :  { %vm3158_vm3 = vcmp.eq.f32.partialorder %v7868_v13, %v3115_v52  ;;  %3248 = vmax.xlane.f32.xlu1 %v8023_v42 }
 0xbeb   :  { %v3117_v41 = vpop.xlane.xlu1 %3116  ;;  %v8028_v27 = vsel %vm3158_vm3, -3.4028235e+38, %v7868_v13 }
 0xbec   :  { %vm3159_vm10 = vcmp.eq.f32.partialorder %v7873_v54, %v3117_v41  ;;  %3242 = vmax.xlane.f32.xlu0 %v8028_v27 }
 0xbed   :  { %v8033_v1 = vsel %vm3159_vm10, -3.4028235e+38, %v7873_v54 }
 0xbee   :  { %3244 = vmax.xlane.f32.xlu1 %v8033_v1 }
 0xbf5   :  { %v3127_v48 = vpop.xlane.xlu0 %3126 }
 0xbf6   :  { %vm3164_vm8 = vcmp.eq.f32.partialorder %v7878_v2, %v3127_v48 }
 0xbf7   :  { %v3129_v57 = vpop.xlane.xlu1 %3128  ;;  %v8038_v9 = vsel %vm3164_vm8, -3.4028235e+38, %v7878_v2 }
 0xbf8   :  { %vm3165_vm0 = vcmp.eq.f32.partialorder %v7883_v44, %v3129_v57  ;;  %3254 = vmax.xlane.f32.xlu0 %v8038_v9 }
 0xbf9   :  { %v3123_v13 = vpop.xlane.xlu0 %3122  ;;  %v8043_v52 = vsel %vm3165_vm0, -3.4028235e+38, %v7883_v44 }
 0xbfa   :  { %vm3162_vm1 = vcmp.eq.f32.partialorder %v7888_v3, %v3123_v13  ;;  %3256 = vmax.xlane.f32.xlu1 %v8043_v52 }
 0xbfb   :  { %v3125_v54 = vpop.xlane.xlu1 %3124  ;;  %v8048_v41 = vsel %vm3162_vm1, -3.4028235e+38, %v7888_v3 }
 0xbfc   :  { %vm3163_vm9 = vcmp.eq.f32.partialorder %v7893_v22, %v3125_v54  ;;  %3250 = vmax.xlane.f32.xlu0 %v8048_v41 }
 0xbfd   :  { %v3099_v2 = vpop.xlane.xlu0 %3098  ;;  %v8053_v48 = vsel %vm3163_vm9, -3.4028235e+38, %v7893_v22 }
 0xbfe   :  { %vm3150_vm11 = vcmp.eq.f32.partialorder %v7898_v50, %v3099_v2  ;;  %3252 = vmax.xlane.f32.xlu1 %v8053_v48 }
 0xbff   :  { %v3101_v44 = vpop.xlane.xlu1 %3100  ;;  %v8058_v57 = vsel %vm3150_vm11, -3.4028235e+38, %v7898_v50 }
 0xc00   :  { %vm3151_vm12 = vcmp.eq.f32.partialorder %v7903_v63, %v3101_v44  ;;  %3226 = vmax.xlane.f32.xlu0 %v8058_v57 }
 0xc01   :  { %v8063_v3 = vsel %vm3151_vm12, -3.4028235e+38, %v7903_v63 }
 0xc02   :  { %3228 = vmax.xlane.f32.xlu1 %v8063_v3 }
 0xc06   :  { %v3131_v13 = vpop.xlane.xlu0 %3130 }
 0xc07   :  { %vm3166_vm6 = vcmp.eq.f32.partialorder %v7908_v36, %v3131_v13 }
 0xc08   :  { %v3133_v22 = vpop.xlane.xlu1 %3132  ;;  %v8068_v54 = vsel %vm3166_vm6, -3.4028235e+38, %v7908_v36 }
 0xc09   :  { %vm3167_vm7 = vcmp.eq.f32.partialorder %v7913_v24, %v3133_v22  ;;  %3258 = vmax.xlane.f32.xlu0 %v8068_v54 }
 0xc0a   :  { %v3135_v50 = vpop.xlane.xlu0 %3134  ;;  %v8073_v2 = vsel %vm3167_vm7, -3.4028235e+38, %v7913_v24 }
 0xc0b   :  { %vm3168_vm13 = vcmp.eq.f32.partialorder %v7918_v5, %v3135_v50  ;;  %3260 = vmax.xlane.f32.xlu1 %v8073_v2 }
 0xc0c   :  { %v3137_v63 = vpop.xlane.xlu1 %3136  ;;  %v8078_v44 = vsel %vm3168_vm13, -3.4028235e+38, %v7918_v5 }
 0xc0d   :  { %vm3169_vm4 = vcmp.eq.f32.partialorder %v7923_v55, %v3137_v63  ;;  %3262 = vmax.xlane.f32.xlu0 %v8078_v44 }
 0xc0e   :  { %v3103_v36 = vpop.xlane.xlu0 %3102  ;;  %v8083_v13 = vsel %vm3169_vm4, -3.4028235e+38, %v7923_v55 }
 0xc0f   :  { %vm3152_vm5 = vcmp.eq.f32.partialorder %v7928_v43, %v3103_v36  ;;  %3264 = vmax.xlane.f32.xlu1 %v8083_v13 }
 0xc10   :  { %v8088_v24 = vsel %vm3152_vm5, -3.4028235e+38, %v7928_v43  ;;  %v3105_v22 = vpop.xlane.xlu1 %3104 }
 0xc11   :  { %vm3153_vm14 = vcmp.eq.f32.partialorder %v7933_v39, %v3105_v22  ;;  %3230 = vmax.xlane.f32.xlu0 %v8088_v24 }
 0xc12   :  { %v8093_v5 = vsel %vm3153_vm14, -3.4028235e+38, %v7933_v39 }
 0xc13   :  { %3232 = vmax.xlane.f32.xlu1 %v8093_v5 }
 0xc25   :  { %v3207_v50 = vpop.xlane.xlu0 %3206 }
 0xc26   :  { %vm3268_vm15 = vcmp.eq.f32.partialorder %v7938_v51, %v3207_v50 }
 0xc27   :  { %v8098_v55 = vsel %vm3268_vm15, -3.4028235e+38, %v7938_v51  ;;  %v3209_v63 = vpop.xlane.xlu1 %3208 }
 0xc28   :  { %vm3269_vm2 = vcmp.eq.f32.partialorder %v7943_v40, %v3209_v63  ;;  %3334 = vmax.xlane.f32.xlu0 %v8098_v55 }
 0xc29   :  { %v8103_v43 = vsel %vm3269_vm2, -3.4028235e+38, %v7943_v40  ;;  %v3203_v36 = vpop.xlane.xlu0 %3202 }
 0xc2a   :  { %vm3266_vm3 = vcmp.eq.f32.partialorder %v7948_v11, %v3203_v36  ;;  %3336 = vmax.xlane.f32.xlu1 %v8103_v43 }
 0xc2b   :  { %v8108_v39 = vsel %vm3266_vm3, -3.4028235e+38, %v7948_v11  ;;  %v3205_v22 = vpop.xlane.xlu1 %3204 }
 0xc2c   :  { %vm3267_vm10 = vcmp.eq.f32.partialorder %v7953_v45, %v3205_v22  ;;  %3330 = vmax.xlane.f32.xlu0 %v8108_v39 }
 0xc2d   :  { %v8113_v51 = vsel %vm3267_vm10, -3.4028235e+38, %v7953_v45 }
 0xc2e   :  { %3332 = vmax.xlane.f32.xlu1 %v8113_v51 }
 0xc35   :  { %v3215_v40 = vpop.xlane.xlu0 %3214 }
 0xc36   :  { %vm3272_vm8 = vcmp.eq.f32.partialorder %v7958_v20, %v3215_v40 }
 0xc37   :  { %v8118_v50 = vsel %vm3272_vm8, -3.4028235e+38, %v7958_v20  ;;  %v3217_v63 = vpop.xlane.xlu1 %3216 }
 0xc38   :  { %vm3273_vm0 = vcmp.eq.f32.partialorder %v7963_v35, %v3217_v63  ;;  %3342 = vmax.xlane.f32.xlu0 %v8118_v50 }
 0xc39   :  { %v8123_v11 = vsel %vm3273_vm0, -3.4028235e+38, %v7963_v35  ;;  %v3211_v36 = vpop.xlane.xlu0 %3210 }
 0xc3a   :  { %vm3270_vm1 = vcmp.eq.f32.partialorder %v7968_v37, %v3211_v36  ;;  %3344 = vmax.xlane.f32.xlu1 %v8123_v11 }
 0xc3b   :  { %v8128_v45 = vsel %vm3270_vm1, -3.4028235e+38, %v7968_v37  ;;  %v3213_v22 = vpop.xlane.xlu1 %3212 }
 0xc3c   :  { %vm3271_vm9 = vcmp.eq.f32.partialorder %v7973_v34, %v3213_v22  ;;  %3338 = vmax.xlane.f32.xlu0 %v8128_v45 }
 0xc3d   :  { %v8133_v20 = vsel %vm3271_vm9, -3.4028235e+38, %v7973_v34 }
 0xc3e   :  { %3340 = vmax.xlane.f32.xlu1 %v8133_v20 }
 0xc45   :  { %v3223_v35 = vpop.xlane.xlu0 %3222 }
 0xc46   :  { %vm3276_vm11 = vcmp.eq.f32.partialorder %v7978_v25, %v3223_v35 }
 0xc47   :  { %v8138_v40 = vsel %vm3276_vm11, -3.4028235e+38, %v7978_v25  ;;  %v3225_v63 = vpop.xlane.xlu1 %3224 }
 0xc48   :  { %vm3277_vm12 = vcmp.eq.f32.partialorder %v7983_v26, %v3225_v63  ;;  %3350 = vmax.xlane.f32.xlu0 %v8138_v40 }
 0xc49   :  { %v8143_v37 = vsel %vm3277_vm12, -3.4028235e+38, %v7983_v26  ;;  %v3219_v36 = vpop.xlane.xlu0 %3218 }
 0xc4a   :  { %vm3274_vm6 = vcmp.eq.f32.partialorder %v7988_v61, %v3219_v36  ;;  %3352 = vmax.xlane.f32.xlu1 %v8143_v37 }
 0xc4b   :  { %v8148_v34 = vsel %vm3274_vm6, -3.4028235e+38, %v7988_v61  ;;  %v3221_v22 = vpop.xlane.xlu1 %3220 }
 0xc4c   :  { %vm3275_vm7 = vcmp.eq.f32.partialorder %v7993_v31, %v3221_v22  ;;  %3346 = vmax.xlane.f32.xlu0 %v8148_v34 }
 0xc4d   :  { %v8153_v25 = vsel %vm3275_vm7, -3.4028235e+38, %v7993_v31 }
 0xc4e   :  { %3348 = vmax.xlane.f32.xlu1 %v8153_v25 }
 0xc65   :  { %v3239_v26 = vpop.xlane.xlu0 %3238 }
 0xc66   :  { %vm3284_vm13 = vcmp.eq.f32.partialorder %v7998_v29, %v3239_v26 }
 0xc67   :  { %v8158_v35 = vsel %vm3284_vm13, -3.4028235e+38, %v7998_v29  ;;  %v3241_v63 = vpop.xlane.xlu1 %3240 }
 0xc68   :  { %vm3285_vm4 = vcmp.eq.f32.partialorder %v8003_v19, %v3241_v63  ;;  %3366 = vmax.xlane.f32.xlu0 %v8158_v35 }
 0xc69   :  { %v8163_v61 = vsel %vm3285_vm4, -3.4028235e+38, %v8003_v19  ;;  %v3235_v36 = vpop.xlane.xlu0 %3234 }
 0xc6a   :  { %vm3282_vm5 = vcmp.eq.f32.partialorder %v8008_v6, %v3235_v36  ;;  %3368 = vmax.xlane.f32.xlu1 %v8163_v61 }
 0xc6b   :  { %v8168_v31 = vsel %vm3282_vm5, -3.4028235e+38, %v8008_v6  ;;  %v3237_v22 = vpop.xlane.xlu1 %3236 }
 0xc6c   :  { %vm3283_vm14 = vcmp.eq.f32.partialorder %v8013_v46, %v3237_v22  ;;  %3362 = vmax.xlane.f32.xlu0 %v8168_v31 }
 0xc6d   :  { %v8173_v29 = vsel %vm3283_vm14, -3.4028235e+38, %v8013_v46 }
 0xc6e   :  { %3364 = vmax.xlane.f32.xlu1 %v8173_v29 }
 0xc75   :  { %v3247_v19 = vpop.xlane.xlu0 %3246 }
 0xc76   :  { %vm3288_vm15 = vcmp.eq.f32.partialorder %v8018_v17, %v3247_v19 }
 0xc77   :  { %v8178_v26 = vsel %vm3288_vm15, -3.4028235e+38, %v8018_v17  ;;  %v3249_v63 = vpop.xlane.xlu1 %3248 }
 0xc78   :  { %vm3289_vm2 = vcmp.eq.f32.partialorder %v8023_v42, %v3249_v63  ;;  %3374 = vmax.xlane.f32.xlu0 %v8178_v26 }
 0xc79   :  { %v8183_v6 = vsel %vm3289_vm2, -3.4028235e+38, %v8023_v42  ;;  %v3243_v36 = vpop.xlane.xlu0 %3242 }
 0xc7a   :  { %vm3286_vm3 = vcmp.eq.f32.partialorder %v8028_v27, %v3243_v36  ;;  %3376 = vmax.xlane.f32.xlu1 %v8183_v6 }
 0xc7b   :  { %v8188_v46 = vsel %vm3286_vm3, -3.4028235e+38, %v8028_v27  ;;  %v3245_v22 = vpop.xlane.xlu1 %3244 }
 0xc7c   :  { %vm3287_vm10 = vcmp.eq.f32.partialorder %v8033_v1, %v3245_v22  ;;  %3370 = vmax.xlane.f32.xlu0 %v8188_v46 }
 0xc7d   :  { %v8193_v17 = vsel %vm3287_vm10, -3.4028235e+38, %v8033_v1 }
 0xc7e   :  { %3372 = vmax.xlane.f32.xlu1 %v8193_v17 }
 0xc85   :  { %v3255_v42 = vpop.xlane.xlu0 %3254 }
 0xc86   :  { %vm3292_vm8 = vcmp.eq.f32.partialorder %v8038_v9, %v3255_v42 }
 0xc87   :  { %v8198_v19 = vsel %vm3292_vm8, -3.4028235e+38, %v8038_v9  ;;  %v3257_v63 = vpop.xlane.xlu1 %3256 }
 0xc88   :  { %vm3293_vm0 = vcmp.eq.f32.partialorder %v8043_v52, %v3257_v63  ;;  %3382 = vmax.xlane.f32.xlu0 %v8198_v19 }
 0xc89   :  { %v8203_v27 = vsel %vm3293_vm0, -3.4028235e+38, %v8043_v52  ;;  %v3251_v36 = vpop.xlane.xlu0 %3250 }
 0xc8a   :  { %vm3290_vm1 = vcmp.eq.f32.partialorder %v8048_v41, %v3251_v36  ;;  %3384 = vmax.xlane.f32.xlu1 %v8203_v27 }
 0xc8b   :  { %v8208_v1 = vsel %vm3290_vm1, -3.4028235e+38, %v8048_v41  ;;  %v3253_v22 = vpop.xlane.xlu1 %3252 }
 0xc8c   :  { %vm3291_vm9 = vcmp.eq.f32.partialorder %v8053_v48, %v3253_v22  ;;  %3378 = vmax.xlane.f32.xlu0 %v8208_v1 }
 0xc8d   :  { %v8213_v9 = vsel %vm3291_vm9, -3.4028235e+38, %v8053_v48  ;;  %v3227_v42 = vpop.xlane.xlu0 %3226 }
 0xc8e   :  { %vm3278_vm11 = vcmp.eq.f32.partialorder %v8058_v57, %v3227_v42  ;;  %3380 = vmax.xlane.f32.xlu1 %v8213_v9 }
 0xc8f   :  { %v8218_v52 = vsel %vm3278_vm11, -3.4028235e+38, %v8058_v57  ;;  %v3229_v63 = vpop.xlane.xlu1 %3228 }
 0xc90   :  { %vm3279_vm12 = vcmp.eq.f32.partialorder %v8063_v3, %v3229_v63  ;;  %3354 = vmax.xlane.f32.xlu0 %v8218_v52 }
 0xc91   :  { %v8223_v41 = vsel %vm3279_vm12, -3.4028235e+38, %v8063_v3 }
 0xc92   :  { %3356 = vmax.xlane.f32.xlu1 %v8223_v41 }
 0xc96   :  { %v3259_v48 = vpop.xlane.xlu0 %3258 }
 0xc97   :  { %vm3294_vm6 = vcmp.eq.f32.partialorder %v8068_v54, %v3259_v48 }
 0xc98   :  { %v8228_v36 = vsel %vm3294_vm6, -3.4028235e+38, %v8068_v54  ;;  %v3261_v22 = vpop.xlane.xlu1 %3260 }
 0xc99   :  { %vm3295_vm7 = vcmp.eq.f32.partialorder %v8073_v2, %v3261_v22  ;;  %3386 = vmax.xlane.f32.xlu0 %v8228_v36 }
 0xc9a   :  { %v8233_v57 = vsel %vm3295_vm7, -3.4028235e+38, %v8073_v2  ;;  %v3263_v42 = vpop.xlane.xlu0 %3262 }
 0xc9b   :  { %vm3296_vm13 = vcmp.eq.f32.partialorder %v8078_v44, %v3263_v42  ;;  %3388 = vmax.xlane.f32.xlu1 %v8233_v57 }
 0xc9c   :  { %v8238_v3 = vsel %vm3296_vm13, -3.4028235e+38, %v8078_v44  ;;  %v3265_v63 = vpop.xlane.xlu1 %3264 }
 0xc9d   :  { %vm3297_vm4 = vcmp.eq.f32.partialorder %v8083_v13, %v3265_v63  ;;  %3390 = vmax.xlane.f32.xlu0 %v8238_v3 }
 0xc9e   :  { %v8243_v54 = vsel %vm3297_vm4, -3.4028235e+38, %v8083_v13  ;;  %v3231_v48 = vpop.xlane.xlu0 %3230 }
 0xc9f   :  { %vm3280_vm5 = vcmp.eq.f32.partialorder %v8088_v24, %v3231_v48  ;;  %3392 = vmax.xlane.f32.xlu1 %v8243_v54 }
 0xca0   :  { %v8248_v2 = vsel %vm3280_vm5, -3.4028235e+38, %v8088_v24  ;;  %v3233_v22 = vpop.xlane.xlu1 %3232 }
 0xca1   :  { %vm3281_vm14 = vcmp.eq.f32.partialorder %v8093_v5, %v3233_v22  ;;  %3358 = vmax.xlane.f32.xlu0 %v8248_v2 }
 0xca2   :  { %v8253_v44 = vsel %vm3281_vm14, -3.4028235e+38, %v8093_v5 }
 0xca3   :  { %3360 = vmax.xlane.f32.xlu1 %v8253_v44 }
 0xcb5   :  { %v3335_v13 = vpop.xlane.xlu0 %3334 }
 0xcb6   :  { %vm3396_vm15 = vcmp.eq.f32.partialorder %v8098_v55, %v3335_v13 }
 0xcb7   :  { %v3428_v42 = vsel %vm3396_vm15, -3.4028235e+38, %v8098_v55  ;;  %v3337_v63 = vpop.xlane.xlu1 %3336 }
 0xcb8   :  { %vm3397_vm2 = vcmp.eq.f32.partialorder %v8103_v43, %v3337_v63  ;;  %3462 = vmax.xlane.f32.xlu0 %v3428_v42 }
 0xcb9   :  { %v3429_v24 = vsel %vm3397_vm2, -3.4028235e+38, %v8103_v43  ;;  %v3331_v48 = vpop.xlane.xlu0 %3330 }
 0xcba   :  { %vm3394_vm3 = vcmp.eq.f32.partialorder %v8108_v39, %v3331_v48  ;;  %3464 = vmax.xlane.f32.xlu1 %v3429_v24 }
 0xcbb   :  { %v3426_v5 = vsel %vm3394_vm3, -3.4028235e+38, %v8108_v39  ;;  %v3333_v22 = vpop.xlane.xlu1 %3332 }
 0xcbc   :  { %vm3395_vm10 = vcmp.eq.f32.partialorder %v8113_v51, %v3333_v22  ;;  %3458 = vmax.xlane.f32.xlu0 %v3426_v5 }
 0xcbd   :  { %v3427_v13 = vsel %vm3395_vm10, -3.4028235e+38, %v8113_v51 }
 0xcbe   :  { %3460 = vmax.xlane.f32.xlu1 %v3427_v13 }
 0xcc5   :  { %v3343_v55 = vpop.xlane.xlu0 %3342 }
 0xcc6   :  { %vm3400_vm8 = vcmp.eq.f32.partialorder %v8118_v50, %v3343_v55 }
 0xcc7   :  { %v3432_v42 = vsel %vm3400_vm8, -3.4028235e+38, %v8118_v50  ;;  %v3345_v63 = vpop.xlane.xlu1 %3344 }
 0xcc8   :  { %vm3401_vm0 = vcmp.eq.f32.partialorder %v8123_v11, %v3345_v63  ;;  %3470 = vmax.xlane.f32.xlu0 %v3432_v42 }
 0xcc9   :  { %v3433_v43 = vsel %vm3401_vm0, -3.4028235e+38, %v8123_v11  ;;  %v3339_v24 = vpop.xlane.xlu0 %3338 }
 0xcca   :  { %vm3398_vm1 = vcmp.eq.f32.partialorder %v8128_v45, %v3339_v24  ;;  %3472 = vmax.xlane.f32.xlu1 %v3433_v43 }
 0xccb   :  { %v3430_v39 = vsel %vm3398_vm1, -3.4028235e+38, %v8128_v45  ;;  %v3341_v48 = vpop.xlane.xlu1 %3340 }
 0xccc   :  { %vm3399_vm9 = vcmp.eq.f32.partialorder %v8133_v20, %v3341_v48  ;;  %3466 = vmax.xlane.f32.xlu0 %v3430_v39 }
 0xccd   :  { %v3431_v51 = vsel %vm3399_vm9, -3.4028235e+38, %v8133_v20 }
 0xcce   :  { %3468 = vmax.xlane.f32.xlu1 %v3431_v51 }
 0xcd5   :  { %v3351_v50 = vpop.xlane.xlu0 %3350 }
 0xcd6   :  { %vm3404_vm11 = vcmp.eq.f32.partialorder %v8138_v40, %v3351_v50 }
 0xcd7   :  { %v3436_v5 = vsel %vm3404_vm11, -3.4028235e+38, %v8138_v40  ;;  %v3353_v22 = vpop.xlane.xlu1 %3352 }
 0xcd8   :  { %vm3405_vm12 = vcmp.eq.f32.partialorder %v8143_v37, %v3353_v22  ;;  %3478 = vmax.xlane.f32.xlu0 %v3436_v5 }
 0xcd9   :  { %v3437_v11 = vsel %vm3405_vm12, -3.4028235e+38, %v8143_v37  ;;  %v3347_v13 = vpop.xlane.xlu0 %3346 }
 0xcda   :  { %vm3402_vm6 = vcmp.eq.f32.partialorder %v8148_v34, %v3347_v13  ;;  %3480 = vmax.xlane.f32.xlu1 %v3437_v11 }
 0xcdb   :  { %v3434_v45 = vsel %vm3402_vm6, -3.4028235e+38, %v8148_v34  ;;  %v3349_v55 = vpop.xlane.xlu1 %3348 }
 0xcdc   :  { %vm3403_vm7 = vcmp.eq.f32.partialorder %v8153_v25, %v3349_v55  ;;  %3474 = vmax.xlane.f32.xlu0 %v3434_v45 }
 0xcdd   :  { %v3435_v20 = vsel %vm3403_vm7, -3.4028235e+38, %v8153_v25 }
 0xcde   :  { %3476 = vmax.xlane.f32.xlu1 %v3435_v20 }
 0xcf5   :  { %v3367_v40 = vpop.xlane.xlu0 %3366 }
 0xcf6   :  { %vm3412_vm13 = vcmp.eq.f32.partialorder %v8158_v35, %v3367_v40 }
 0xcf7   :  { %v3444_v42 = vsel %vm3412_vm13, -3.4028235e+38, %v8158_v35  ;;  %v3369_v63 = vpop.xlane.xlu1 %3368 }
 0xcf8   :  { %vm3413_vm4 = vcmp.eq.f32.partialorder %v8163_v61, %v3369_v63  ;;  %3494 = vmax.xlane.f32.xlu0 %v3444_v42 }
 0xcf9   :  { %v3445_v37 = vsel %vm3413_vm4, -3.4028235e+38, %v8163_v61  ;;  %v3363_v43 = vpop.xlane.xlu0 %3362 }
 0xcfa   :  { %vm3410_vm5 = vcmp.eq.f32.partialorder %v8168_v31, %v3363_v43  ;;  %3496 = vmax.xlane.f32.xlu1 %v3445_v37 }
 0xcfb   :  { %v3442_v34 = vsel %vm3410_vm5, -3.4028235e+38, %v8168_v31  ;;  %v3365_v24 = vpop.xlane.xlu1 %3364 }
 0xcfc   :  { %vm3411_vm14 = vcmp.eq.f32.partialorder %v8173_v29, %v3365_v24  ;;  %3490 = vmax.xlane.f32.xlu0 %v3442_v34 }
 0xcfd   :  { %v3443_v25 = vsel %vm3411_vm14, -3.4028235e+38, %v8173_v29 }
 0xcfe   :  { %3492 = vmax.xlane.f32.xlu1 %v3443_v25 }
 0xd05   :  { %v3375_v35 = vpop.xlane.xlu0 %3374 }
 0xd06   :  { %vm3416_vm15 = vcmp.eq.f32.partialorder %v8178_v26, %v3375_v35 }
 0xd07   :  { %v3448_v39 = vsel %vm3416_vm15, -3.4028235e+38, %v8178_v26  ;;  %v3377_v48 = vpop.xlane.xlu1 %3376 }
 0xd08   :  { %vm3417_vm2 = vcmp.eq.f32.partialorder %v8183_v6, %v3377_v48  ;;  %3502 = vmax.xlane.f32.xlu0 %v3448_v39 }
 0xd09   :  { %v3449_v61 = vsel %vm3417_vm2, -3.4028235e+38, %v8183_v6  ;;  %v3371_v51 = vpop.xlane.xlu0 %3370 }
 0xd0a   :  { %vm3414_vm3 = vcmp.eq.f32.partialorder %v8188_v46, %v3371_v51  ;;  %3504 = vmax.xlane.f32.xlu1 %v3449_v61 }
 0xd0b   :  { %v3446_v31 = vsel %vm3414_vm3, -3.4028235e+38, %v8188_v46  ;;  %v3373_v50 = vpop.xlane.xlu1 %3372 }
 0xd0c   :  { %vm3415_vm10 = vcmp.eq.f32.partialorder %v8193_v17, %v3373_v50  ;;  %3498 = vmax.xlane.f32.xlu0 %v3446_v31 }
 0xd0d   :  { %v3447_v29 = vsel %vm3415_vm10, -3.4028235e+38, %v8193_v17 }
 0xd0e   :  { %3500 = vmax.xlane.f32.xlu1 %v3447_v29 }
 0xd15   :  { %v3383_v26 = vpop.xlane.xlu0 %3382 }
 0xd16   :  { %vm3420_vm8 = vcmp.eq.f32.partialorder %v8198_v19, %v3383_v26 }
 0xd17   :  { %v3452_v5 = vsel %vm3420_vm8, -3.4028235e+38, %v8198_v19  ;;  %v3385_v22 = vpop.xlane.xlu1 %3384 }
 0xd18   :  { %vm3421_vm0 = vcmp.eq.f32.partialorder %v8203_v27, %v3385_v22  ;;  %3510 = vmax.xlane.f32.xlu0 %v3452_v5 }
 0xd19   :  { %v3453_v6 = vsel %vm3421_vm0, -3.4028235e+38, %v8203_v27  ;;  %v3379_v11 = vpop.xlane.xlu0 %3378 }
 0xd1a   :  { %vm3418_vm1 = vcmp.eq.f32.partialorder %v8208_v1, %v3379_v11  ;;  %3512 = vmax.xlane.f32.xlu1 %v3453_v6 }
 0xd1b   :  { %v3450_v46 = vsel %vm3418_vm1, -3.4028235e+38, %v8208_v1  ;;  %v3381_v13 = vpop.xlane.xlu1 %3380 }
 0xd1c   :  { %vm3419_vm9 = vcmp.eq.f32.partialorder %v8213_v9, %v3381_v13  ;;  %3506 = vmax.xlane.f32.xlu0 %v3450_v46 }
 0xd1d   :  { %v3451_v17 = vsel %vm3419_vm9, -3.4028235e+38, %v8213_v9  ;;  %v3355_v45 = vpop.xlane.xlu0 %3354 }
 0xd1e   :  { %vm3406_vm11 = vcmp.eq.f32.partialorder %v8218_v52, %v3355_v45  ;;  %3508 = vmax.xlane.f32.xlu1 %v3451_v17 }
 0xd1f   :  { %v3438_v19 = vsel %vm3406_vm11, -3.4028235e+38, %v8218_v52  ;;  %v3357_v55 = vpop.xlane.xlu1 %3356 }
 0xd20   :  { %vm3407_vm12 = vcmp.eq.f32.partialorder %v8223_v41, %v3357_v55  ;;  %3482 = vmax.xlane.f32.xlu0 %v3438_v19 }
 0xd21   :  { %v3439_v27 = vsel %vm3407_vm12, -3.4028235e+38, %v8223_v41 }
 0xd22   :  { %3484 = vmax.xlane.f32.xlu1 %v3439_v27 }
 0xd26   :  { %v3387_v1 = vpop.xlane.xlu0 %3386 }
 0xd27   :  { %vm3422_vm6 = vcmp.eq.f32.partialorder %v8228_v36, %v3387_v1 }
 0xd28   :  { %v3454_v20 = vsel %vm3422_vm6, -3.4028235e+38, %v8228_v36  ;;  %v3389_v40 = vpop.xlane.xlu1 %3388 }
 0xd29   :  { %vm3423_vm7 = vcmp.eq.f32.partialorder %v8233_v57, %v3389_v40  ;;  %3514 = vmax.xlane.f32.xlu0 %v3454_v20 }
 0xd2a   :  { %v3455_v9 = vsel %vm3423_vm7, -3.4028235e+38, %v8233_v57  ;;  %v3391_v42 = vpop.xlane.xlu0 %3390 }
 0xd2b   :  { %vm3424_vm13 = vcmp.eq.f32.partialorder %v8238_v3, %v3391_v42  ;;  %3516 = vmax.xlane.f32.xlu1 %v3455_v9 }
 0xd2c   :  { %v3456_v52 = vsel %vm3424_vm13, -3.4028235e+38, %v8238_v3  ;;  %v3393_v63 = vpop.xlane.xlu1 %3392 }
 0xd2d   :  { %vm3425_vm4 = vcmp.eq.f32.partialorder %v8243_v54, %v3393_v63  ;;  %3518 = vmax.xlane.f32.xlu0 %v3456_v52  ;;  %v9101_v52 = vld [vmem:[#allocation39_spill] sm:$0xff]  ;;  %v9102_v63 = vld [vmem:[#allocation37_spill] sm:$0xff] }
 0xd2e   :  { %v3457_v41 = vsel %vm3425_vm4, -3.4028235e+38, %v8243_v54  ;;  %v3359_v37 = vpop.xlane.xlu0 %3358 }
 0xd2f   :  { %vm3408_vm5 = vcmp.eq.f32.partialorder %v8248_v2, %v3359_v37  ;;  %3520 = vmax.xlane.f32.xlu1 %v3457_v41  ;;  %v9103_v37 = vld [vmem:[#allocation41_spill] sm:$0xff] }
 0xd30   :  { %v3440_v36 = vsel %vm3408_vm5, -3.4028235e+38, %v8248_v2  ;;  %v3361_v43 = vpop.xlane.xlu1 %3360 }
 0xd31   :  { %vm3409_vm14 = vcmp.eq.f32.partialorder %v8253_v44, %v3361_v43  ;;  %3486 = vmax.xlane.f32.xlu0 %v3440_v36 }
 0xd32   :  { %v3441_v57 = vsel %vm3409_vm14, -3.4028235e+38, %v8253_v44 }
 0xd33   :  { %3488 = vmax.xlane.f32.xlu1 %v3441_v57 }
 0xd45   :  { %v8320_v3 = vpop.xlane.xlu0 %3462 }
 0xd46   :  { %vm3524_vm15 = vcmp.ge.f32.partialorder %v7039_v8, %v8320_v3 }
 0xd47   :  { %v8324_v34 = vpop.xlane.xlu1 %3464  ;;  %v3556_v54 = vsel %vm3524_vm15, %v7035_v23, 0.0 }
 0xd48   :  { %vm3525_vm2 = vcmp.ge.f32.partialorder %v7049_v56, %v8324_v34  ;;  %v9112_v56 = vld [vmem:[#allocation48_spill] sm:$0xff]  ;;  %v9113_v34 = vld [vmem:[#allocation54_spill] sm:$0xff] }
 0xd49   :  { %v3557_v2 = vsel %vm3525_vm2, %v7045_v14, 0.0  ;;  %v3459_v44 = vpop.xlane.xlu0 %3458 }
 0xd4a   :  { %v8336_v24 = vpack.c.bf16 %v3557_v2, %v3556_v54  ;;  %vm3522_vm3 = vcmp.ge.f32.partialorder %v7057_v38, %v3459_v44  ;;  %v9104_v54 = vld [vmem:[#allocation44_spill] sm:$0xff]  ;;  %v9108_v38 = vld [vmem:[#allocation46_spill] sm:$0xff] }
 0xd4b   :  { %v3461_v25 = vpop.xlane.xlu1 %3460  ;;  %v3554_v35 = vsel %vm3522_vm3, %v7042_v4, 0.0  ;;  %v9110_v44 = vld [vmem:[#allocation50_spill] sm:$0xff] }
 0xd4c   :  { %vm3523_vm10 = vcmp.ge.f32.partialorder %v7062_v58, %v3461_v25 }
 0xd4d   :  { %v3555_v39 = vsel %vm3523_vm10, %v7052_v60, 0.0 }
 0xd4e   :  { %v8346_v48 = vpack.c.bf16 %v3555_v39, %v3554_v35  ;;  %v9105_v35 = vld [vmem:[#allocation43_spill] sm:$0xff]  ;;  %v9106_v39 = vld [vmem:[#allocation40_spill] sm:$0xff] }
 0xd55   :  { %v8348_v61 = vpop.xlane.xlu0 %3470 }
 0xd56   :  { %vm3528_vm8 = vcmp.ge.f32.partialorder %v7071_v18, %v8348_v61 }
 0xd57   :  { %v8352_v51 = vpop.xlane.xlu1 %3472  ;;  %v3560_v31 = vsel %vm3528_vm8, %v7067_v33, 0.0 }
 0xd58   :  { %vm3529_vm0 = vcmp.ge.f32.partialorder %v7081_v30, %v8352_v51  ;;  %v9120_v30 = vld [vmem:[#allocation22_spill] sm:$0xff]  ;;  %v9121_v51 = vld [vmem:[#allocation47_spill] sm:$0xff] }
 0xd59   :  { %v3561_v50 = vsel %vm3529_vm0, %v7077_v15, 0.0  ;;  %v8364_v29 = vpop.xlane.xlu0 %3466 }
 0xd5a   :  { %v8366_v26 = vpack.c.bf16 %v3561_v50, %v3560_v31  ;;  %vm3526_vm1 = vcmp.ge.f32.partialorder %v7089_v47, %v8364_v29  ;;  %v4345_v31 = vpack.c.bf16 %v9106_v39, %v9105_v35  ;;  %v9107_v50 = vld [vmem:[#allocation42_spill] sm:$0xff]  ;;  %v9116_v47 = vld [vmem:[#allocation55_spill] sm:$0xff] }
 0xd5b   :  { %v3469_v5 = vpop.xlane.xlu1 %3468  ;;  %v3558_v22 = vsel %vm3526_vm1, %v7074_v32, 0.0  ;;  %v9117_v29 = vld [vmem:[#allocation58_spill] sm:$0xff] }
 0xd5c   :  { %vm3527_vm9 = vcmp.ge.f32.partialorder %v7094_v59, %v3469_v5  ;;  %v9118_v5 = vld [vmem:[#allocation56_spill] sm:$0xff] }
 0xd5d   :  { %v3559_v6 = vsel %vm3527_vm9, %v7084_v0, 0.0 }
 0xd5e   :  { %v8378_v11 = vpack.c.bf16 %v3559_v6, %v3558_v22  ;;  %v4321_v22 = vpack.c.bf16 %v7052_v60, %v7042_v4  ;;  %v4324_v4 = vpack.c.bf16 %v7045_v14, %v7035_v23 }
 0xd65   :  { %v8380_v46 = vpop.xlane.xlu0 %3478 }
 0xd66   :  { %vm8961_vm11 = vcmp.ge.f32.partialorder %v7103_v12, %v8380_v46 }
 0xd67   :  { %v8384_v13 = vpop.xlane.xlu1 %3480  ;;  %v3564_v17 = vsel %vm8961_vm11, %v7099_v7, 0.0  ;;  %vm4320_vm11 = vmpackc.low %vm3523_vm10, %vm3522_vm3 }
 0xd68   :  { %vm8960_vm12 = vcmp.ge.f32.partialorder %v7113_v49, %v8384_v13  ;;  %vm4323_vm3 = vmpackc.low %vm3525_vm2, %vm3524_vm15 }
 0xd69   :  { %v3565_v45 = vsel %vm8960_vm12, %v7109_v10, 0.0  ;;  %v8396_v19 = vpop.xlane.xlu0 %3474 }
 0xd6a   :  { %v8398_v55 = vpack.c.bf16 %v3565_v45, %v3564_v17  ;;  %vm3530_vm6 = vcmp.ge.f32.partialorder %v7121_v21, %v8396_v19  ;;  %v4348_v45 = vpack.c.bf16 %v9103_v37, %v9102_v63  ;;  %v4336_v21 = vpack.c.bf16 %v7109_v10, %v7099_v7  ;;  %v9131_v7 = vld [vmem:[#allocation66_spill] sm:$0xff] }
 0xd6b   :  { %v8402_v27 = vpop.xlane.xlu1 %3476  ;;  %v3562_v1 = vsel %vm3530_vm6, %v7106_v28, 0.0 }
 0xd6c   :  { %vm8962_vm7 = vcmp.ge.f32.partialorder %v7126_v62, %v8402_v27 }
 0xd6d   :  { %v3563_v20 = vsel %vm8962_vm7, %v7116_v16, 0.0 }
 0xd6e   :  { %v8414_v40 = vpack.c.bf16 %v3563_v20, %v3562_v1  ;;  %v9111_v20 = vld [vmem:[#allocation52_spill] sm:$0xff] }
 0xd85   :  { %v3495_v9 = vpop.xlane.xlu0 %3494 }
 0xd86   :  { %vm3540_vm13 = vcmp.ge.f32.partialorder %v7139_v53, %v3495_v9  ;;  %v9109_v53 = vld [vmem:[#allocation49_spill] sm:$0xff] }
 0xd87   :  { %v3497_v42 = vpop.xlane.xlu1 %3496  ;;  %v3572_v41 = vsel %vm3540_vm13, %v9102_v63, 0.0  ;;  %v9114_v9 = vld [vmem:[#allocation45_spill] sm:$0xff]  ;;  %v4327_v63 = vpack.c.bf16 %v7084_v0, %v7074_v32  ;;  %v4330_v32 = vpack.c.bf16 %v7077_v15, %v7067_v33 }
 0xd88   :  { %vm3541_vm4 = vcmp.ge.f32.partialorder %v9101_v52, %v3497_v42  ;;  %v4351_v42 = vpack.c.bf16 %v9114_v9, %v9113_v34  ;;  %v9115_v52 = vld [vmem:[#allocation53_spill] sm:$0xff] }
 0xd89   :  { %v3573_v36 = vsel %vm3541_vm4, %v9103_v37, 0.0  ;;  %v3491_v43 = vpop.xlane.xlu0 %3490  ;;  %vm4347_vm7 = vmpackc.low %vm3541_vm4, %vm3540_vm13 }
 0xd8a   :  { %v8424_v57 = vpack.c.bf16 %v3573_v36, %v3572_v41  ;;  %vm3538_vm5 = vcmp.ge.f32.partialorder %v9104_v54, %v3491_v43  ;;  %v4354_v36 = vpack.c.bf16 %v9111_v20, %v9110_v44 }
 0xd8b   :  { %v3493_v2 = vpop.xlane.xlu1 %3492  ;;  %v3570_v6 = vsel %vm3538_vm5, %v9105_v35, 0.0  ;;  %v9122_v35 = vld [vmem:[#allocation57_spill] sm:$0xff] }
 0xd8c   :  { %vm3539_vm14 = vcmp.ge.f32.partialorder %v9107_v50, %v3493_v2  ;;  %v9119_v2 = vld [vmem:[#allocation51_spill] sm:$0xff]  ;;  %v4333_v50 = vpack.c.bf16 %v7116_v16, %v7106_v28 }
 0xd8d   :  { %v3571_v17 = vsel %vm3539_vm14, %v9106_v39, 0.0  ;;  %vm4344_vm12 = vmpackc.low %vm3539_vm14, %vm3538_vm5  ;;  %v4357_v39 = vpack.c.bf16 %v9122_v35, %v9121_v51  ;;  %vm9124_vm14 = vcmp.ge.f32.partialorder %v7126_v62, %v8402_v27  ;;  %v9126_v16 = vld [vmem:[#allocation63_spill] sm:$0xff]  ;;  %v9127_v62 = vld [vmem:[#allocation21_spill] sm:$0xff] }
 0xd8e   :  { %v8440_v1 = vpack.c.bf16 %v3571_v17, %v3570_v6  ;;  %4562 = vmatprep.subr.msk.bf16.mxu1 %vm4344_vm12, %v4345_v31  ;;  %v9123_v31 = vld [vmem:[#allocation59_spill] sm:$0xff]  ;;  %v9128_v27 = vld [vmem:[#allocation60_spill] sm:$0xff] }
 0xd8f   :  { %4563 = vmatpush3.bf16.msk.msra.mxu1 %vm4320_vm11, %v4321_v22 }
 0xd90   :  { %4564 = vmatprep.subr.msk.bf16.mxu1 %vm4347_vm7, %v4348_v45  ;;  %vm4326_vm7 = vmpackc.low %vm3527_vm9, %vm3526_vm1  ;;  %v4360_v45 = vpack.c.bf16 %v9119_v2, %v9118_v5 }
 0xd91   :  { %vm4329_vm1 = vmpackc.low %vm3529_vm0, %vm3528_vm8 }
 0xd93   :  { %4565 = vmatpush3.bf16.msk.msra.mxu1 %vm4323_vm3, %v4324_v4  ;;  %vm4332_vm3 = vmpackc.low %vm9124_vm14, %vm3530_vm6  ;;  %vm9129_vm6 = vcmp.ge.f32.partialorder %v7103_v12, %v8380_v46 }
 0xd95   :  { %v3503_v60 = vpop.xlane.xlu0 %3502 }
 0xd96   :  { %vm3544_vm10 = vcmp.ge.f32.partialorder %v9108_v38, %v3503_v60  ;;  %v9125_v60 = vld [vmem:[#allocation62_spill] sm:$0xff] }
 0xd97   :  { %v3505_v58 = vpop.xlane.xlu1 %3504  ;;  %v3576_v25 = vsel %vm3544_vm10, %v9110_v44, 0.0  ;;  %v9132_v44 = vld [vmem:[#allocation64_spill] sm:$0xff] }
 0xd98   :  { %vm3545_vm12 = vcmp.ge.f32.partialorder %v9109_v53, %v3505_v58 }
 0xd99   :  { %v3577_v23 = vsel %vm3545_vm12, %v9111_v20, 0.0  ;;  %v3499_v8 = vpop.xlane.xlu0 %3498  ;;  %vm4353_vm13 = vmpackc.low %vm3545_vm12, %vm3544_vm10 }
 0xd9a   :  { %v8462_v14 = vpack.c.bf16 %v3577_v23, %v3576_v25  ;;  %vm3542_vm15 = vcmp.ge.f32.partialorder %v9112_v56, %v3499_v8  ;;  %v9133_v25 = vld [vmem:[#allocation67_spill] sm:$0xff]  ;;  %v9134_v23 = vld [vmem:[#allocation69_spill] sm:$0xff]  ;;  %v4339_v8 = vpack.c.bf16 %v9128_v27, %v9127_v62 }
 0xd9b   :  { %v3501_v3 = vpop.xlane.xlu1 %3500  ;;  %v3574_v41 = vsel %vm3542_vm15, %v9113_v34, 0.0  ;;  %v4363_v20 = vpack.c.bf16 %v9133_v25, %v9132_v44  ;;  %v9135_v56 = vld [vmem:[#allocation71_spill] sm:$0xff]  ;;  %v9136_v34 = vld [vmem:[#allocation65_spill] sm:$0xff] }
 0xd9c   :  { %vm3543_vm2 = vcmp.ge.f32.partialorder %v9115_v52, %v3501_v3  ;;  %v9138_v52 = vld [vmem:[#allocation73_spill] sm:$0xff] }
 0xd9d   :  { %v3575_v37 = vsel %vm3543_vm2, %v9114_v9, 0.0  ;;  %vm4350_vm11 = vmpackc.low %vm3543_vm2, %vm3542_vm15  ;;  %vm9130_vm2 = vcmp.ge.f32.partialorder %v7113_v49, %v8384_v13  ;;  %v9137_v9 = vld [vmem:[#allocation68_spill] sm:$0xff] }
 0xd9e   :  { %v8479_v43 = vpack.c.bf16 %v3575_v37, %v3574_v41  ;;  %4566 = vmatprep.subr.msk.bf16.mxu1 %vm4350_vm11, %v4351_v42  ;;  %vm4335_vm11 = vmpackc.low %vm9130_vm2, %vm9129_vm6  ;;  %v4366_v42 = vpack.c.bf16 %v9137_v9, %v9136_v34 }
 0xd9f   :  { %4567 = vmatpush3.bf16.msk.msra.mxu1 %vm4326_vm7, %v4327_v63 }
 0xda0   :  { %4568 = vmatprep.subr.msk.bf16.mxu1 %vm4353_vm13, %v4354_v36  ;;  %v4943_v36 = vld [vmem:[#allocation13] sm:$0xff]  }
 0xda1   :  { %4842 = vmatprep.subr.bf16.mxu0 %v4943_v36 }
 0xda2   :  { %4843 = vmatpush3.bf16.msra.mxu0 %v4943_v36 }
 0xda3   :  { %4569 = vmatpush3.bf16.msk.msra.mxu1 %vm4329_vm1, %v4330_v32  ;;  %v4944_v32 = vld [vmem:[#allocation13 + $0x8] sm:$0xff]  }
 0xda4   :  { %4844 = vmatprep.subr.bf16.mxu0 %v4944_v32 }
 0xda5   :  { %v3511_v0 = vpop.xlane.xlu0 %3510 }
 0xda6   :  { %vm3548_vm9 = vcmp.ge.f32.partialorder %v9116_v47, %v3511_v0  ;;  %v9139_v47 = vld [vmem:[#allocation74_spill] sm:$0xff]  ;;  %4845 = vmatpush3.bf16.msra.mxu0 %v4944_v32  ;;  %v9178_v32 = vld [vmem:[#allocation32_spill] sm:$0xff] }
 0xda7   :  { %v3513_v59 = vpop.xlane.xlu1 %3512  ;;  %v3580_v54 = vsel %vm3548_vm9, %v9118_v5, 0.0  ;;  %v9141_v5 = vld [vmem:[#allocation72_spill] sm:$0xff] }
 0xda8   :  { %vm3549_vm4 = vcmp.ge.f32.partialorder %v9117_v29, %v3513_v59  ;;  %v9140_v29 = vld [vmem:[#allocation70_spill] sm:$0xff] }
 0xda9   :  { %v3581_v33 = vsel %vm3549_vm4, %v9119_v2, 0.0  ;;  %v3507_v18 = vpop.xlane.xlu0 %3506  ;;  %vm4359_vm12 = vmpackc.low %vm3549_vm4, %vm3548_vm9  ;;  %v9142_v2 = vld [vmem:[#allocation75_spill] sm:$0xff] }
 0xdaa   :  { %v8501_v15 = vpack.c.bf16 %v3581_v33, %v3580_v54  ;;  %vm3546_vm8 = vcmp.ge.f32.partialorder %v9120_v30, %v3507_v18  ;;  %v4342_v54 = vpack.c.bf16 %v9141_v5, %v9140_v29  ;;  %v4945_v30 = vld [vmem:[#allocation13 + $0x10] sm:$0xff]  }
 0xdab   :  { %v3509_v61 = vpop.xlane.xlu1 %3508  ;;  %v3578_v22 = vsel %vm3546_vm8, %v9121_v51, 0.0  ;;  %v9143_v51 = vld [vmem:[#allocation24_spill] sm:$0xff]  ;;  %4846 = vmatprep.subr.bf16.mxu0 %v4945_v30 }
 0xdac   :  { %vm3547_vm0 = vcmp.ge.f32.partialorder %v9123_v31, %v3509_v61  ;;  %v9145_v31 = vld [vmem:[#allocation61_spill] sm:$0xff]  ;;  %4847 = vmatpush3.bf16.msra.mxu0 %v4945_v30 }
 0xdad   :  { %v3579_v6 = vsel %vm3547_vm0, %v9122_v35, 0.0  ;;  %vm4356_vm5 = vmpackc.low %vm3547_vm0, %vm3546_vm8  ;;  %v3483_v17 = vpop.xlane.xlu0 %3482  ;;  %v9144_v35 = vunpack.c.l.s8.bf16 %v9143_v51 }
 0xdae   :  { %v8519_v4 = vpack.c.bf16 %v3579_v6, %v3578_v22  ;;  %vm3534_vm10 = vcmp.ge.f32.partialorder %v9125_v60, %v3483_v17  ;;  %4570 = vmatprep.subr.msk.bf16.mxu1 %vm4356_vm5, %v4357_v39  ;;  %v4946_v39 = vld [vmem:[#allocation13 + $0x18] sm:$0xff]   ;;  %v9147_v22 = vunpack.c.h.s8.bf16 %v9143_v51  ;;  %v9148_v6 = vld [vmem:[#allocation27_spill] sm:$0xff]  ;;  %v9186_v51 = vld [vmem:[#allocation38_spill] sm:$0xff] }
 0xdaf   :  { %v3485_v28 = vpop.xlane.xlu1 %3484  ;;  %4571 = vmatpush3.bf16.msk.msra.mxu1 %vm4332_vm3, %v4333_v50  ;;  %v3566_v19 = vsel %vm3534_vm10, %v9127_v62, 0.0  ;;  %v9146_v50 = vunpack.c.h.s8.bf16 %v9145_v31  ;;  %4848 = vmatprep.subr.bf16.mxu0 %v4946_v39  ;;  %v9149_v17 = vunpack.c.l.s8.bf16 %v9148_v6  ;;  %v9189_v31 = vunpack.c.h.s8.bf16 %v9186_v51 }
 0xdb0   :  { %vm3535_vm15 = vcmp.ge.f32.partialorder %v9126_v16, %v3485_v28  ;;  %4572 = vmatprep.subr.msk.bf16.mxu1 %vm4359_vm12, %v4360_v45  ;;  %4849 = vmatpush3.bf16.msra.mxu0 %v4946_v39  ;;  %v9150_v45 = vld [vmem:[#allocation23_spill] sm:$0xff]  ;;  %v9152_v28 = vunpack.c.h.s8.bf16 %v9148_v6 }
 0xdb1   :  { %v3567_v38 = vsel %vm3535_vm15, %v9128_v27, 0.0  ;;  %vm4338_vm9 = vmpackc.low %vm3535_vm15, %vm3534_vm10  ;;  %v9151_v60 = vunpack.c.l.s8.bf16 %v9150_v45  ;;  %v9153_v16 = vunpack.c.h.s8.bf16 %v9150_v45  ;;  %v8637_v45 = vstv %s3796_s8 }
 0xdb2   :  { %v8541_v58 = vpack.c.bf16 %v3567_v38, %v3566_v19  ;;  %v9156_v19 = vld [vmem:[#allocation28_spill] sm:$0xff] }
 0xdb3   :  { %4573 = vmatpush3.bf16.msk.msra.mxu1 %vm4335_vm11, %v4336_v21  ;;  %v9154_v21 = vld [vmem:[#allocation26_spill] sm:$0xff]  ;;  %v9157_v27 = vunpack.c.l.s8.bf16 %v9156_v19 }
 0xdb4   :  { %v9155_v62 = vunpack.c.l.s8.bf16 %v9154_v21  ;;  %v9158_v38 = vunpack.c.h.s8.bf16 %v9154_v21 }
 0xdb6   :  { %v3515_v53 = vpop.xlane.xlu0 %3514 }
 0xdb7   :  { %vm3550_vm7 = vcmp.ge.f32.partialorder %v9131_v7, %v3515_v53  ;;  %v9159_v53 = vunpack.c.h.s8.bf16 %v9156_v19  ;;  %v9160_v7 = vld [vmem:[#allocation25_spill] sm:$0xff] }
 0xdb8   :  { %v3517_v10 = vpop.xlane.xlu1 %3516  ;;  %v3582_v12 = vsel %vm3550_vm7, %v9132_v44, 0.0  ;;  %v9162_v44 = vld [vmem:[#allocation29_spill] sm:$0xff] }
 0xdb9   :  { %vm3551_vm13 = vcmp.ge.f32.partialorder %v9134_v23, %v3517_v10  ;;  %v9161_v10 = vunpack.c.l.s8.bf16 %v9160_v7  ;;  %v9165_v23 = vunpack.c.h.s8.bf16 %v9162_v44 }
 0xdba   :  { %v3583_v49 = vsel %vm3551_vm13, %v9133_v25, 0.0  ;;  %vm4362_vm1 = vmpackc.low %vm3551_vm13, %vm3550_vm7  ;;  %v3519_v46 = vpop.xlane.xlu0 %3518  ;;  %v9163_v25 = vunpack.c.l.s8.bf16 %v9162_v44 }
 0xdbb   :  { %v8555_v13 = vpack.c.bf16 %v3583_v49, %v3582_v12  ;;  %vm3552_vm4 = vcmp.ge.f32.partialorder %v9135_v56, %v3519_v46  ;;  %4574 = vmatprep.subr.msk.bf16.mxu1 %vm4362_vm1, %v4363_v20  ;;  %v9164_v20 = vunpack.c.h.s8.bf16 %v9160_v7  ;;  %v9168_v49 = vld [vmem:[#allocation35_spill] sm:$0xff]  ;;  %v3800_v7 = vunpack.c.h.bf16 %v8336_v24 }
 0xdbc   :  { %v3521_v3 = vpop.xlane.xlu1 %3520  ;;  %4575 = vmatpush3.bf16.msk.msra.mxu1 %vm4338_vm9, %v4339_v8  ;;  %v3584_v63 = vsel %vm3552_vm4, %v9136_v34, 0.0  ;;  %v9166_v8 = vld [vmem:[#allocation30_spill] sm:$0xff]  ;;  %v9169_v46 = vunpack.c.l.s8.bf16 %v9168_v49  ;;  %v9172_v34 = vld [vmem:[#allocation33_spill] sm:$0xff] }
 0xdbd   :  { %vm3553_vm8 = vcmp.ge.f32.partialorder %v9138_v52, %v3521_v3  ;;  %v9167_v12 = vunpack.c.l.s8.bf16 %v9166_v8  ;;  %v9170_v56 = vunpack.c.h.s8.bf16 %v9166_v8  ;;  %v9171_v3 = vunpack.c.h.s8.bf16 %v9168_v49 }
 0xdbe   :  { %v3585_v41 = vsel %vm3553_vm8, %v9137_v9, 0.0  ;;  %vm4365_vm0 = vmpackc.low %vm3553_vm8, %vm3552_vm4  ;;  %v3487_v37 = vpop.xlane.xlu0 %3486  ;;  %v9173_v9 = vunpack.c.l.s8.bf16 %v9172_v34 }
 0xdbf   :  { %v8563_v0 = vpack.c.bf16 %v3585_v41, %v3584_v63  ;;  %vm3536_vm5 = vcmp.ge.f32.partialorder %v9139_v47, %v3487_v37  ;;  %4576 = vmatprep.subr.msk.bf16.mxu1 %vm4365_vm0, %v4366_v42  ;;  %v9174_v42 = vld [vmem:[#allocation31_spill] sm:$0xff]  ;;  %v9176_v63 = vunpack.c.h.s8.bf16 %v9172_v34  ;;  %v4947_v41 = vld [vmem:[#allocation13 + $0x20] sm:$0xff]   ;;  %v4948_v37 = vld [vmem:[#allocation13 + $0x28] sm:$0xff]   ;;  %v9179_v47 = vunpack.c.l.s8.bf16 %v9178_v32 }
 0xdc0   :  { %v3489_v59 = vpop.xlane.xlu1 %3488  ;;  %v3568_v33 = vsel %vm3536_vm5, %v9140_v29, 0.0  ;;  %v9175_v52 = vunpack.c.l.s8.bf16 %v9174_v42  ;;  %4850 = vmatprep.subr.bf16.mxu0 %v4947_v41  ;;  %v9177_v36 = vunpack.c.h.s8.bf16 %v9174_v42  ;;  %v4950_v29 = vld [vmem:[#allocation13 + $0x38] sm:$0xff]   ;;  %v3802_v34 = vunpack.c.h.bf16 %v8378_v11 }
 0xdc1   :  { %vm3537_vm14 = vcmp.ge.f32.partialorder %v9142_v2, %v3489_v59  ;;  %4851 = vmatpush3.bf16.msra.mxu0 %v4947_v41  ;;  %v4949_v59 = vld [vmem:[#allocation13 + $0x30] sm:$0xff]   ;;  %v9182_v2 = vunpack.c.h.s8.bf16 %v9178_v32 }
 0xdc2   :  { %v3569_v18 = vsel %vm3537_vm14, %v9141_v5, 0.0  ;;  %vm4341_vm3 = vmpackc.low %vm3537_vm14, %vm3536_vm5  ;;  %4852 = vmatprep.subr.bf16.mxu0 %v4948_v37  ;;  %v9180_v5 = vld [vmem:[#allocation36_spill] sm:$0xff] }
 0xdc3   :  { %v8571_v61 = vpack.c.bf16 %v3569_v18, %v3568_v33  ;;  %4577 = vmatpush3.bf16.msk.msra.mxu1 %vm4341_vm3, %v4342_v54  ;;  %v9181_v54 = vunpack.c.l.s8.bf16 %v9180_v5  ;;  %v9183_v33 = vunpack.c.h.s8.bf16 %v9180_v5  ;;  %v9184_v18 = vld [vmem:[#allocation34_spill] sm:$0xff]  ;;  %v3804_v5 = vunpack.c.h.bf16 %v8366_v26 }
 0xdc4   :  { %v9185_v30 = vunpack.c.l.s8.bf16 %v9184_v18  ;;  %v9188_v39 = vunpack.c.h.s8.bf16 %v9184_v18 }
 0xdc5   :  { %4853 = vmatpush3.bf16.msra.mxu0 %v4948_v37 }
 0xdc6   :  { %3667 = vmatmul.mubr.bf16.vlgmr.msra.gmra.mrb[64].mxu1 %v9144_v35  ;;  %4854 = vmatprep.subr.bf16.mxu0 %v4949_v59  ;;  %v9187_v35 = vunpack.c.l.s8.bf16 %v9186_v51 }
 0xdc7   :  { %3674 = vmatprep.mubr.bf16.mxu1 %v9146_v50  ;;  %v3797_v50 = vunpack.c.l.bf16 %v8346_v48 }
 0xdc9   :  { %4855 = vmatpush3.bf16.msra.mxu0 %v4949_v59  ;;  %v3803_v59 = vunpack.c.l.bf16 %v8366_v26 }
 0xdca   :  { %4856 = vmatprep.subr.bf16.mxu0 %v4950_v29 }
 0xdcb   :  { %v3836_v18 = vmul.f32 %v8637_v45, %v3803_v59 }
 0xdcd   :  { %4857 = vmatpush3.bf16.msra.mxu0 %v4950_v29 }
 0xdce   :  { %3675 = vmatmul.mubr.bf16.gmra.mrb[68].mxu1 %v9147_v22  ;;  %v3798_v22 = vunpack.c.h.bf16 %v8346_v48 }
 0xdcf   :  { %3682 = vmatprep.mubr.bf16.mxu1 %v9149_v17 }
 0xdd6   :  { %3683 = vmatmul.mubr.bf16.gmra.mrb[72].mxu1 %v9151_v60 }
 0xdd7   :  { %3690 = vmatprep.mubr.bf16.mxu1 %v9152_v28  ;;  %v3830_v28 = vmul.f32 %v8637_v45, %v3797_v50  ;;  %v3805_v50 = vunpack.c.l.bf16 %v8414_v40 }
 0xdde   :  { %3691 = vmatmul.mubr.bf16.gmra.mrb[76].mxu1 %v9153_v16 }
 0xddf   :  { %3698 = vmatprep.mubr.bf16.mxu1 %v9155_v62 }
 0xde6   :  { %3699 = vmatmul.mubr.bf16.gmra.mrb[80].mxu1 %v9157_v27  ;;  %v3831_v27 = vmul.f32 %v8637_v45, %v3798_v22 }
 0xde7   :  { %3706 = vmatprep.mubr.bf16.mxu1 %v9158_v38  ;;  %v3799_v38 = vunpack.c.l.bf16 %v8336_v24 }
 0xdee   :  { %3707 = vmatmul.mubr.bf16.gmra.mrb[84].mxu1 %v9159_v53 }
 0xdef   :  { %3714 = vmatprep.mubr.bf16.mxu1 %v9161_v10 }
 0xdf6   :  { %3715 = vmatmul.mubr.bf16.gmra.mrb[88].mxu1 %v9163_v25 }
 0xdf7   :  { %3722 = vmatprep.mubr.bf16.mxu1 %v9164_v20  ;;  %v3832_v20 = vmul.f32 %v8637_v45, %v3799_v38 }
 0xdfe   :  { %3723 = vmatmul.mubr.bf16.gmra.mrb[92].mxu1 %v9165_v23 }
 0xdff   :  { %3730 = vmatprep.mubr.bf16.mxu1 %v9167_v12 }
 0xe06   :  { %3731 = vmatmul.mubr.bf16.gmra.mrb[96].mxu1 %v9169_v46  ;;  %v3833_v46 = vmul.f32 %v8637_v45, %v3800_v7 }
 0xe07   :  { %3738 = vmatprep.mubr.bf16.mxu1 %v9170_v56  ;;  %v3801_v56 = vunpack.c.l.bf16 %v8378_v11 }
 0xe0e   :  { %3739 = vmatmul.mubr.bf16.gmra.mrb[100].mxu1 %v9171_v3 }
 0xe0f   :  { %3746 = vmatprep.mubr.bf16.mxu1 %v9173_v9 }
 0xe16   :  { %3747 = vmatmul.mubr.bf16.gmra.mrb[104].mxu1 %v9175_v52 }
 0xe17   :  { %3754 = vmatprep.mubr.bf16.mxu1 %v9176_v63  ;;  %v3834_v63 = vmul.f32 %v8637_v45, %v3801_v56  ;;  %v3809_v56 = vunpack.c.l.bf16 %v8541_v58 }
 0xe1e   :  { %3755 = vmatmul.mubr.bf16.gmra.mrb[108].mxu1 %v9177_v36 }
 0xe1f   :  { %3762 = vmatprep.mubr.bf16.mxu1 %v9179_v47  ;;  %v3835_v47 = vmul.f32 %v8637_v45, %v3802_v34  ;;  %v3810_v34 = vunpack.c.h.bf16 %v8541_v58 }
 0xe26   :  { %3763 = vmatmul.mubr.bf16.gmra.mrb[112].mxu1 %v9181_v54 }
 0xe27   :  { %3770 = vmatprep.mubr.bf16.mxu1 %v9182_v2 }
 0xe2e   :  { %3771 = vmatmul.mubr.bf16.gmra.mrb[116].mxu1 %v9183_v33 }
 0xe2f   :  { %3778 = vmatprep.mubr.bf16.mxu1 %v9185_v30 }
 0xe36   :  { %3779 = vmatmul.mubr.bf16.gmra.mrb[120].mxu1 %v9187_v35 }
 0xe37   :  { %3786 = vmatprep.mubr.bf16.mxu1 %v9188_v39 }
 0xe3e   :  { %3787 = vmatmul.mubr.bf16.gmra.mrb[124].mxu1 %v9189_v31  ;;  %v3837_v31 = vmul.f32 %v8637_v45, %v3804_v5 }
 0xe99   :  { %v4578_v6 = vpop.f32.mrb[64].mxu1 }
 0xe9a   :  { %v4579_v17 = vpop.f32.mrb[65].mxu1 }
 0xe9b   :  { %v4580_v60 = vadd.f32 %v4579_v17, %v4578_v6  ;;  %v4581_v16 = vpop.f32.mrb[66].mxu1  ;;  %v3806_v6 = vunpack.c.h.bf16 %v8414_v40 }
 0xe9c   :  { %v4582_v21 = vpop.f32.mrb[67].mxu1 }
 0xe9d   :  { %v3862_v62 = vadd.f32 %v4580_v60, %v3830_v28  ;;  %v4583_v19 = vadd.f32 %v4582_v21, %v4581_v16  ;;  %v3838_v16 = vmul.f32 %v8637_v45, %v3805_v50  ;;  %v3839_v38 = vmul.f32 %v8637_v45, %v3806_v6 }
 0xe9e   :  { %v3814_v50 = vunpack.c.h.bf16 %v8440_v1 }
 0xe9f   :  { %v3863_v53 = vadd.f32 %v4583_v19, %v3831_v27 }
 0xea1   :  { %v4584_v10 = vpop.f32.mrb[68].mxu1  ;;  %v3894_v48 = vpack.c.bf16 %v3863_v53, %v3862_v62  ;;  %v3807_v53 = vunpack.c.l.bf16 %v8398_v55 }
 0xea2   :  { %v4585_v44 = vpop.f32.mrb[69].mxu1 }
 0xea3   :  { %v4586_v25 = vadd.f32 %v4585_v44, %v4584_v10  ;;  %v4587_v23 = vpop.f32.mrb[70].mxu1  ;;  %4858 = vmatprep.mubr.bf16.mxu0 %v3894_v48  ;;  %v3808_v10 = vunpack.c.h.bf16 %v8398_v55 }
 0xea4   :  { %v4588_v8 = vpop.f32.mrb[71].mxu1 }
 0xea5   :  { %v3864_v12 = vadd.f32 %v4586_v25, %v3832_v20  ;;  %v4589_v49 = vadd.f32 %v4588_v8, %v4587_v23  ;;  %v3840_v20 = vmul.f32 %v8637_v45, %v3807_v53 }
 0xea7   :  { %v3865_v3 = vadd.f32 %v4589_v49, %v3833_v46  ;;  %v3841_v46 = vmul.f32 %v8637_v45, %v3808_v10 }
 0xea9   :  { %v3895_v9 = vpack.c.bf16 %v3865_v3, %v3864_v12  ;;  %v4590_v24 = vpop.f32.mrb[72].mxu1 }
 0xeaa   :  { %v4591_v42 = vpop.f32.mrb[73].mxu1 }
 0xeab   :  { %v4592_v52 = vadd.f32 %v4591_v42, %v4590_v24  ;;  %v4593_v41 = vpop.f32.mrb[74].mxu1  ;;  %4859 = vmatmul.mubr.bf16.vlgmr.msra.gmra.mrb[96].mxu0 %v3895_v9 }
 0xeac   :  { %v4594_v37 = vpop.f32.mrb[75].mxu1 }
 0xead   :  { %v3866_v36 = vadd.f32 %v4592_v52, %v3834_v63  ;;  %v4595_v32 = vadd.f32 %v4594_v37, %v4593_v41  ;;  %v3842_v52 = vmul.f32 %v8637_v45, %v3809_v56 }
 0xeaf   :  { %v3867_v29 = vadd.f32 %v4595_v32, %v3835_v47  ;;  %v3843_v32 = vmul.f32 %v8637_v45, %v3810_v34  ;;  %v3811_v47 = vunpack.c.l.bf16 %v8571_v61 }
 0xeb1   :  { %v4596_v54 = vpop.f32.mrb[76].mxu1  ;;  %v3896_v11 = vpack.c.bf16 %v3867_v29, %v3866_v36  ;;  %v3812_v29 = vunpack.c.h.bf16 %v8571_v61 }
 0xeb2   :  { %v4597_v2 = vpop.f32.mrb[77].mxu1 }
 0xeb3   :  { %v4598_v33 = vadd.f32 %v4597_v2, %v4596_v54  ;;  %v4599_v30 = vpop.f32.mrb[78].mxu1  ;;  %4862 = vmatprep.mubr.bf16.mxu0 %v3896_v11  ;;  %v3844_v2 = vmul.f32 %v8637_v45, %v3811_v47 }
 0xeb4   :  { %v4600_v51 = vpop.f32.mrb[79].mxu1 }
 0xeb5   :  { %v3868_v35 = vadd.f32 %v4598_v33, %v3836_v18  ;;  %v4601_v39 = vadd.f32 %v4600_v51, %v4599_v30 }
 0xeb7   :  { %v3869_v22 = vadd.f32 %v4601_v39, %v3837_v31  ;;  %v3813_v39 = vunpack.c.l.bf16 %v8440_v1 }
 0xeb9   :  { %v4602_v17 = vpop.f32.mrb[80].mxu1  ;;  %v3897_v26 = vpack.c.bf16 %v3869_v22, %v3868_v35  ;;  %v3845_v35 = vmul.f32 %v8637_v45, %v3812_v29 }
 0xeba   :  { %v4603_v60 = vpop.f32.mrb[81].mxu1 }
 0xebb   :  { %v4604_v28 = vadd.f32 %v4603_v60, %v4602_v17  ;;  %v4605_v21 = vpop.f32.mrb[82].mxu1  ;;  %4863 = vmatmul.mubr.bf16.gmra.mrb[100].mxu0 %v3897_v26  ;;  %v3846_v26 = vmul.f32 %v8637_v45, %v3813_v39 }
 0xebc   :  { %v4606_v62 = vpop.f32.mrb[83].mxu1 }
 0xebd   :  { %v3870_v19 = vadd.f32 %v4604_v28, %v3838_v16  ;;  %v4607_v27 = vadd.f32 %v4606_v62, %v4605_v21  ;;  %v3847_v62 = vmul.f32 %v8637_v45, %v3814_v50 }
 0xebf   :  { %v3871_v7 = vadd.f32 %v4607_v27, %v3839_v38  ;;  %v3816_v38 = vunpack.c.h.bf16 %v8424_v57 }
 0xec1   :  { %v4608_v48 = vpop.f32.mrb[84].mxu1  ;;  %v3898_v40 = vpack.c.bf16 %v3871_v7, %v3870_v19  ;;  %v3815_v19 = vunpack.c.l.bf16 %v8424_v57 }
 0xec2   :  { %v4609_v44 = vpop.f32.mrb[85].mxu1 }
 0xec3   :  { %v4610_v25 = vadd.f32 %v4609_v44, %v4608_v48  ;;  %v4611_v23 = vpop.f32.mrb[86].mxu1  ;;  %4866 = vmatprep.mubr.bf16.mxu0 %v3898_v40  ;;  %v3848_v48 = vmul.f32 %v8637_v45, %v3815_v19 }
 0xec4   :  { %v4612_v8 = vpop.f32.mrb[87].mxu1 }
 0xec5   :  { %v3872_v12 = vadd.f32 %v4610_v25, %v3840_v20  ;;  %v4613_v49 = vadd.f32 %v4612_v8, %v4611_v23  ;;  %v3849_v23 = vmul.f32 %v8637_v45, %v3816_v38  ;;  %v3817_v8 = vunpack.c.l.bf16 %v8479_v43 }
 0xec7   :  { %v3873_v3 = vadd.f32 %v4613_v49, %v3841_v46  ;;  %v3818_v49 = vunpack.c.h.bf16 %v8479_v43  ;;  %v3850_v34 = vmul.f32 %v8637_v45, %v3817_v8 }
 0xec9   :  { %v4614_v9 = vpop.f32.mrb[88].mxu1  ;;  %v3899_v55 = vpack.c.bf16 %v3873_v3, %v3872_v12 }
 0xeca   :  { %v4615_v24 = vpop.f32.mrb[89].mxu1 }
 0xecb   :  { %v4616_v42 = vadd.f32 %v4615_v24, %v4614_v9  ;;  %v4617_v63 = vpop.f32.mrb[90].mxu1  ;;  %4867 = vmatmul.mubr.bf16.gmra.mrb[104].mxu0 %v3899_v55 }
 0xecc   :  { %v4618_v41 = vpop.f32.mrb[91].mxu1 }
 0xecd   :  { %v3874_v37 = vadd.f32 %v4616_v42, %v3842_v52  ;;  %v4619_v36 = vadd.f32 %v4618_v41, %v4617_v63  ;;  %v3851_v52 = vmul.f32 %v8637_v45, %v3818_v49  ;;  %v3819_v63 = vunpack.c.l.bf16 %v8462_v14 }
 0xecf   :  { %v3875_v59 = vadd.f32 %v4619_v36, %v3843_v32 }
 0xed1   :  { %v4620_v5 = vpop.f32.mrb[92].mxu1  ;;  %v3900_v58 = vpack.c.bf16 %v3875_v59, %v3874_v37  ;;  %v3820_v37 = vunpack.c.h.bf16 %v8462_v14  ;;  %v3852_v59 = vmul.f32 %v8637_v45, %v3819_v63 }
 0xed2   :  { %v4621_v54 = vpop.f32.mrb[93].mxu1 }
 0xed3   :  { %v4622_v11 = vadd.f32 %v4621_v54, %v4620_v5  ;;  %v4623_v33 = vpop.f32.mrb[94].mxu1  ;;  %4870 = vmatprep.mubr.bf16.mxu0 %v3900_v58 }
 0xed4   :  { %v4624_v18 = vpop.f32.mrb[95].mxu1 }
 0xed5   :  { %v3876_v30 = vadd.f32 %v4622_v11, %v3844_v2  ;;  %v4625_v51 = vadd.f32 %v4624_v18, %v4623_v33  ;;  %v3853_v11 = vmul.f32 %v8637_v45, %v3820_v37  ;;  %v3821_v2 = vunpack.c.l.bf16 %v8519_v4 }
 0xed6   :  { %v3822_v18 = vunpack.c.h.bf16 %v8519_v4 }
 0xed7   :  { %v3877_v31 = vadd.f32 %v4625_v51, %v3845_v35  ;;  %v3854_v39 = vmul.f32 %v8637_v45, %v3821_v2 }
 0xed9   :  { %v4626_v22 = vpop.f32.mrb[96].mxu1  ;;  %v3901_v61 = vpack.c.bf16 %v3877_v31, %v3876_v30 }
 0xeda   :  { %v4627_v6 = vpop.f32.mrb[97].mxu1 }
 0xedb   :  { %v4628_v17 = vadd.f32 %v4627_v6, %v4626_v22  ;;  %v4629_v60 = vpop.f32.mrb[98].mxu1  ;;  %4871 = vmatmul.mubr.bf16.gmra.mrb[108].mxu0 %v3901_v61  ;;  %v3855_v6 = vmul.f32 %v8637_v45, %v3822_v18 }
 0xedc   :  { %v4630_v28 = vpop.f32.mrb[99].mxu1 }
 0xedd   :  { %v3878_v16 = vadd.f32 %v4628_v17, %v3846_v26  ;;  %v4631_v21 = vadd.f32 %v4630_v28, %v4629_v60  ;;  %v3823_v17 = vunpack.c.l.bf16 %v8501_v15  ;;  %v3824_v60 = vunpack.c.h.bf16 %v8501_v15 }
 0xedf   :  { %v3879_v27 = vadd.f32 %v4631_v21, %v3847_v62  ;;  %v3856_v62 = vmul.f32 %v8637_v45, %v3823_v17 }
 0xee1   :  { %v4632_v53 = vpop.f32.mrb[100].mxu1  ;;  %v3902_v1 = vpack.c.bf16 %v3879_v27, %v3878_v16 }
 0xee2   :  { %v4633_v7 = vpop.f32.mrb[101].mxu1 }
 0xee3   :  { %v4634_v10 = vadd.f32 %v4633_v7, %v4632_v53  ;;  %v4635_v40 = vpop.f32.mrb[102].mxu1  ;;  %4874 = vmatprep.mubr.bf16.mxu0 %v3902_v1  ;;  %v3857_v1 = vmul.f32 %v8637_v45, %v3824_v60  ;;  %v3825_v7 = vunpack.c.l.bf16 %v8555_v13 }
 0xee4   :  { %v4636_v44 = vpop.f32.mrb[103].mxu1 }
 0xee5   :  { %v3880_v25 = vadd.f32 %v4634_v10, %v3848_v48  ;;  %v4637_v20 = vadd.f32 %v4636_v44, %v4635_v40  ;;  %v3826_v48 = vunpack.c.h.bf16 %v8555_v13 }
 0xee7   :  { %v3881_v12 = vadd.f32 %v4637_v20, %v3849_v23  ;;  %v3858_v20 = vmul.f32 %v8637_v45, %v3825_v7 }
 0xee9   :  { %v4638_v46 = vpop.f32.mrb[104].mxu1  ;;  %v3903_v57 = vpack.c.bf16 %v3881_v12, %v3880_v25 }
 0xeea   :  { %v4639_v56 = vpop.f32.mrb[105].mxu1 }
 0xeeb   :  { %v4640_v3 = vadd.f32 %v4639_v56, %v4638_v46  ;;  %v4641_v9 = vpop.f32.mrb[106].mxu1  ;;  %4875 = vmatmul.mubr.bf16.gmra.mrb[112].mxu0 %v3903_v57  ;;  %v3859_v46 = vmul.f32 %v8637_v45, %v3826_v48  ;;  %v3827_v57 = vunpack.c.l.bf16 %v8563_v0 }
 0xeec   :  { %v4642_v55 = vpop.f32.mrb[107].mxu1 }
 0xeed   :  { %v3882_v24 = vadd.f32 %v4640_v3, %v3850_v34  ;;  %v4643_v42 = vadd.f32 %v4642_v55, %v4641_v9  ;;  %v3828_v3 = vunpack.c.h.bf16 %v8563_v0  ;;  %v8704_v0 = vld [vmem:[%s8757_s7] ss:$0 sm:$0xff]  ;;  %s5115_s7 = smov [#allocation15]  }
 0xeee   :  { %s4211_s27 = sshll.u32 %s5115_s7, 4  ;;  %s4212_s27 = int_to_ptr.vmem [resolvable:$true] %s4211_s27 }
 0xeef   :  { %v3883_v41 = vadd.f32 %v4643_v42, %v3851_v52  ;;  %v3861_v37 = vmul.f32 %v8637_v45, %v3828_v3  ;;  %s5073_s29 = scalar_lea.vmem %s4212_s27, 4096  ;;  %p5078_p4 = scmp.lt.s32.totalorder %s4212_s27, %s4212_s27 }
 0xef0   :  { %p5074_p3 = scmp.ne.s32.totalorder %s4212_s27, %s5073_s29  ;;  %p5079_p5 = scmp.lt.s32.totalorder %s5073_s29, %s5073_s29 }
 0xef1   :  { %v4644_v36 = vpop.f32.mrb[108].mxu1  ;;  %v3904_v43 = vpack.c.bf16 %v3883_v41, %v3882_v24  ;;  %v3860_v24 = vmul.f32 %v8637_v45, %v3827_v57 }
 0xef2   :  { %v4645_v32 = vpop.f32.mrb[109].mxu1  ;;  %p5080_p6 = por %p5079_p5, %p5078_p4 }
 0xef3   :  { %v4646_v47 = vadd.f32 %v4645_v32, %v4644_v36  ;;  %v4647_v29 = vpop.f32.mrb[110].mxu1  ;;  %4878 = vmatprep.mubr.bf16.mxu0 %v3904_v43 }
 0xef4   :  { %v4648_v5 = vpop.f32.mrb[111].mxu1  ;;  %p5081_p7 = pnand %p5080_p6, %p5074_p3 }
 0xef5   :  { %v3884_v58 = vadd.f32 %v4646_v47, %v3852_v59  ;;  %v4649_v54 = vadd.f32 %v4648_v5, %v4647_v29 }
 0xef7   :  { %v3885_v33 = vadd.f32 %v4649_v54, %v3853_v11 }
 0xef9   :  { %v4650_v30 = vpop.f32.mrb[112].mxu1  ;;  %v3905_v14 = vpack.c.bf16 %v3885_v33, %v3884_v58 }
 0xefa   :  { %v4651_v51 = vpop.f32.mrb[113].mxu1 }
 0xefb   :  { %v4652_v35 = vadd.f32 %v4651_v51, %v4650_v30  ;;  %v4653_v31 = vpop.f32.mrb[114].mxu1  ;;  %4879 = vmatmul.mubr.bf16.gmra.mrb[116].mxu0 %v3905_v14 }
 0xefc   :  { %v4654_v50 = vpop.f32.mrb[115].mxu1 }
 0xefd   :  { %v3886_v22 = vadd.f32 %v4652_v35, %v3854_v39  ;;  %v4655_v61 = vadd.f32 %v4654_v50, %v4653_v31 }
 0xeff   :  { %v3887_v26 = vadd.f32 %v4655_v61, %v3855_v6 }
 0xf01   :  { %v4656_v28 = vpop.f32.mrb[116].mxu1  ;;  %v3906_v4 = vpack.c.bf16 %v3887_v26, %v3886_v22 }
 0xf02   :  { %v4657_v16 = vpop.f32.mrb[117].mxu1 }
 0xf03   :  { %v4658_v21 = vadd.f32 %v4657_v16, %v4656_v28  ;;  %v4659_v19 = vpop.f32.mrb[118].mxu1  ;;  %4882 = vmatprep.mubr.bf16.mxu0 %v3906_v4 }
 0xf04   :  { %v4660_v27 = vpop.f32.mrb[119].mxu1 }
 0xf05   :  { %v3888_v38 = vadd.f32 %v4658_v21, %v3856_v62  ;;  %v4661_v53 = vadd.f32 %v4660_v27, %v4659_v19 }
 0xf07   :  { %v3889_v10 = vadd.f32 %v4661_v53, %v3857_v1 }
 0xf09   :  { %v4662_v40 = vpop.f32.mrb[120].mxu1  ;;  %v3907_v15 = vpack.c.bf16 %v3889_v10, %v3888_v38 }
 0xf0a   :  { %v4663_v44 = vpop.f32.mrb[121].mxu1 }
 0xf0b   :  { %v4664_v25 = vadd.f32 %v4663_v44, %v4662_v40  ;;  %v4665_v23 = vpop.f32.mrb[122].mxu1  ;;  %4883 = vmatmul.mubr.bf16.gmra.mrb[120].mxu0 %v3907_v15 }
 0xf0c   :  { %v4666_v8 = vpop.f32.mrb[123].mxu1 }
 0xf0d   :  { %v3890_v12 = vadd.f32 %v4664_v25, %v3858_v20  ;;  %v4667_v49 = vadd.f32 %v4666_v8, %v4665_v23 }
 0xf0f   :  { %v3891_v56 = vadd.f32 %v4667_v49, %v3859_v46 }
 0xf11   :  { %v4668_v34 = vpop.f32.mrb[124].mxu1  ;;  %v3908_v13 = vpack.c.bf16 %v3891_v56, %v3890_v12 }
 0xf12   :  { %v4669_v9 = vpop.f32.mrb[125].mxu1 }
 0xf13   :  { %v4670_v55 = vadd.f32 %v4669_v9, %v4668_v34  ;;  %v4671_v42 = vpop.f32.mrb[126].mxu1  ;;  %4886 = vmatprep.mubr.bf16.mxu0 %v3908_v13 }
 0xf14   :  { %v4672_v52 = vpop.f32.mrb[127].mxu1 }
 0xf15   :  { %v3892_v63 = vadd.f32 %v4670_v55, %v3860_v24  ;;  %v4673_v41 = vadd.f32 %v4672_v52, %v4671_v42 }
 0xf17   :  { %v3893_v36 = vadd.f32 %v4673_v41, %v3861_v37 }
 0xf19   :  { %v3909_v43 = vpack.c.bf16 %v3893_v36, %v3892_v63 }
 0xf1b   :  { %4887 = vmatmul.mubr.bf16.gmra.mrb[124].mxu0 %v3909_v43 }
 0xf7e   :  { %v4860_v32 = vpop.f32.mrb[96].mxu0 }
 0xf7f   :  { %v4056_v47 = vadd.f32 %v4860_v32, %v8704_v0  ;;  %v4047_v59 = vpop.f32.mrb[97].mxu0 }
 0xf80   :  { %v4048_v29 = vadd.f32 %v8704_v0, %v4047_v59  ;;  %v4861_v5 = vpop.f32.mrb[98].mxu0 }
 0xf81   :  { %4176 = vst [vmem:[#allocation15 + $0x10] sm:$0xff] %v4056_v47  ;;  %v4059_v58 = vadd.f32 %v4861_v5, %v8704_v0  ;;  %v4050_v54 = vpop.f32.mrb[99].mxu0 }
 0xf82   :  { %4174 = vst [vmem:[#allocation15] sm:$0xff] %v4048_v29  ;;  %v4051_v45 = vadd.f32 %v8704_v0, %v4050_v54 }
 0xf83   :  { %4177 = vst [vmem:[#allocation15 + $0x18] sm:$0xff] %v4059_v58 }
 0xf84   :  { %4175 = vst [vmem:[#allocation15 + $0x8] sm:$0xff] %v4051_v45 }
 0xf8e   :  { %v4864_v11 = vpop.f32.mrb[100].mxu0 }
 0xf8f   :  { %v4072_v2 = vadd.f32 %v4864_v11, %v8704_v0  ;;  %v4063_v33 = vpop.f32.mrb[101].mxu0 }
 0xf90   :  { %v4064_v18 = vadd.f32 %v8704_v0, %v4063_v33  ;;  %v4865_v30 = vpop.f32.mrb[102].mxu0 }
 0xf91   :  { %4180 = vst [vmem:[#allocation15 + $0x30] sm:$0xff] %v4072_v2  ;;  %v4075_v14 = vadd.f32 %v4865_v30, %v8704_v0  ;;  %v4066_v51 = vpop.f32.mrb[103].mxu0 }
 0xf92   :  { %4178 = vst [vmem:[#allocation15 + $0x20] sm:$0xff] %v4064_v18  ;;  %v4067_v35 = vadd.f32 %v8704_v0, %v4066_v51 }
 0xf93   :  { %4181 = vst [vmem:[#allocation15 + $0x38] sm:$0xff] %v4075_v14 }
 0xf94   :  { %4179 = vst [vmem:[#allocation15 + $0x28] sm:$0xff] %v4067_v35 }
 0xf9e   :  { %v4868_v39 = vpop.f32.mrb[104].mxu0 }
 0xf9f   :  { %v4088_v31 = vadd.f32 %v4868_v39, %v8704_v0  ;;  %v4079_v50 = vpop.f32.mrb[105].mxu0 }
 0xfa0   :  { %v4080_v22 = vadd.f32 %v8704_v0, %v4079_v50  ;;  %v4869_v61 = vpop.f32.mrb[106].mxu0 }
 0xfa1   :  { %4184 = vst [vmem:[#allocation15 + $0x50] sm:$0xff] %v4088_v31  ;;  %v4091_v6 = vadd.f32 %v4869_v61, %v8704_v0  ;;  %v4082_v17 = vpop.f32.mrb[107].mxu0 }
 0xfa2   :  { %4182 = vst [vmem:[#allocation15 + $0x40] sm:$0xff] %v4080_v22  ;;  %v4083_v26 = vadd.f32 %v8704_v0, %v4082_v17 }
 0xfa3   :  { %4185 = vst [vmem:[#allocation15 + $0x58] sm:$0xff] %v4091_v6 }
 0xfa4   :  { %4183 = vst [vmem:[#allocation15 + $0x48] sm:$0xff] %v4083_v26 }
 0xfae   :  { %v4872_v60 = vpop.f32.mrb[108].mxu0 }
 0xfaf   :  { %v4104_v28 = vadd.f32 %v4872_v60, %v8704_v0  ;;  %v4095_v4 = vpop.f32.mrb[109].mxu0 }
 0xfb0   :  { %v4096_v16 = vadd.f32 %v8704_v0, %v4095_v4  ;;  %v4873_v21 = vpop.f32.mrb[110].mxu0 }
 0xfb1   :  { %4188 = vst [vmem:[#allocation15 + $0x70] sm:$0xff] %v4104_v28  ;;  %v4107_v62 = vadd.f32 %v4873_v21, %v8704_v0  ;;  %v4098_v19 = vpop.f32.mrb[111].mxu0 }
 0xfb2   :  { %4186 = vst [vmem:[#allocation15 + $0x60] sm:$0xff] %v4096_v16  ;;  %v4099_v27 = vadd.f32 %v8704_v0, %v4098_v19 }
 0xfb3   :  { %4189 = vst [vmem:[#allocation15 + $0x78] sm:$0xff] %v4107_v62 }
 0xfb4   :  { %4187 = vst [vmem:[#allocation15 + $0x68] sm:$0xff] %v4099_v27 }
 0xfbe   :  { %v4876_v38 = vpop.f32.mrb[112].mxu0 }
 0xfbf   :  { %v4120_v53 = vadd.f32 %v4876_v38, %v8704_v0  ;;  %v4111_v1 = vpop.f32.mrb[113].mxu0 }
 0xfc0   :  { %v4112_v7 = vadd.f32 %v8704_v0, %v4111_v1  ;;  %v4877_v10 = vpop.f32.mrb[114].mxu0 }
 0xfc1   :  { %4192 = vst [vmem:[#allocation15 + $0x90] sm:$0xff] %v4120_v53  ;;  %v4123_v48 = vadd.f32 %v4877_v10, %v8704_v0  ;;  %v4114_v40 = vpop.f32.mrb[115].mxu0 }
 0xfc2   :  { %4190 = vst [vmem:[#allocation15 + $0x80] sm:$0xff] %v4112_v7  ;;  %v4115_v15 = vadd.f32 %v8704_v0, %v4114_v40 }
 0xfc3   :  { %4193 = vst [vmem:[#allocation15 + $0x98] sm:$0xff] %v4123_v48 }
 0xfc4   :  { %4191 = vst [vmem:[#allocation15 + $0x88] sm:$0xff] %v4115_v15 }
 0xfce   :  { %v4880_v44 = vpop.f32.mrb[116].mxu0 }
 0xfcf   :  { %v4136_v25 = vadd.f32 %v4880_v44, %v8704_v0  ;;  %v4127_v20 = vpop.f32.mrb[117].mxu0 }
 0xfd0   :  { %v4128_v23 = vadd.f32 %v8704_v0, %v4127_v20  ;;  %v4881_v8 = vpop.f32.mrb[118].mxu0 }
 0xfd1   :  { %4196 = vst [vmem:[#allocation15 + $0xb0] sm:$0xff] %v4136_v25  ;;  %v4139_v12 = vadd.f32 %v4881_v8, %v8704_v0  ;;  %v4130_v49 = vpop.f32.mrb[119].mxu0 }
 0xfd2   :  { %4194 = vst [vmem:[#allocation15 + $0xa0] sm:$0xff] %v4128_v23  ;;  %v4131_v46 = vadd.f32 %v8704_v0, %v4130_v49 }
 0xfd3   :  { %4197 = vst [vmem:[#allocation15 + $0xb8] sm:$0xff] %v4139_v12 }
 0xfd4   :  { %4195 = vst [vmem:[#allocation15 + $0xa8] sm:$0xff] %v4131_v46 }
 0xfde   :  { %v4884_v57 = vpop.f32.mrb[120].mxu0 }
 0xfdf   :  { %v4152_v56 = vadd.f32 %v4884_v57, %v8704_v0  ;;  %v4143_v3 = vpop.f32.mrb[121].mxu0 }
 0xfe0   :  { %v4144_v34 = vadd.f32 %v8704_v0, %v4143_v3  ;;  %v4885_v13 = vpop.f32.mrb[122].mxu0 }
 0xfe1   :  { %4200 = vst [vmem:[#allocation15 + $0xd0] sm:$0xff] %v4152_v56  ;;  %v4155_v9 = vadd.f32 %v4885_v13, %v8704_v0  ;;  %v4146_v55 = vpop.f32.mrb[123].mxu0 }
 0xfe2   :  { %4198 = vst [vmem:[#allocation15 + $0xc0] sm:$0xff] %v4144_v34  ;;  %v4147_v24 = vadd.f32 %v8704_v0, %v4146_v55 }
 0xfe3   :  { %4201 = vst [vmem:[#allocation15 + $0xd8] sm:$0xff] %v4155_v9 }
 0xfe4   :  { %4199 = vst [vmem:[#allocation15 + $0xc8] sm:$0xff] %v4147_v24 }
 0xfee   :  { %v4888_v42 = vpop.f32.mrb[124].mxu0 }
 0xfef   :  { %v4168_v52 = vadd.f32 %v4888_v42, %v8704_v0  ;;  %v4159_v63 = vpop.f32.mrb[125].mxu0 }
 0xff0   :  { %v4160_v41 = vadd.f32 %v8704_v0, %v4159_v63  ;;  %v4889_v37 = vpop.f32.mrb[126].mxu0 }
 0xff1   :  { %4204 = vst [vmem:[#allocation15 + $0xf0] sm:$0xff] %v4168_v52  ;;  %v4171_v36 = vadd.f32 %v4889_v37, %v8704_v0  ;;  %v4162_v43 = vpop.f32.mrb[127].mxu0 }
 0xff2   :  { %4202 = vst [vmem:[#allocation15 + $0xe0] sm:$0xff] %v4160_v41  ;;  %v4163_v32 = vadd.f32 %v8704_v0, %v4162_v43 }
 0xff3   :  { %4205 = vst [vmem:[#allocation15 + $0xf8] sm:$0xff] %v4171_v36 }
 0xff4   :  { %4203 = vst [vmem:[#allocation15 + $0xe8] sm:$0xff] %v4163_v32 }
 0xff5   :  { %5084 = shalt.err (!%p5081_p7)
}
 0xff6   :  { %s5085_s28 = scalar_lea.hbm %s8760_s10, 4096 }
 0xff7   :  { %p5086_p8 = scmp.ne.s32.totalorder %s8760_s10, %s5085_s28  ;;  %p5089_p9 = scmp.lt.u32.totalorder %s5085_s28, %s8760_s10 }
 0xff9   :  { %p5091_p10 = pnand %p5089_p9, %p5086_p8 }
 0xffb   :  { %5094 = shalt.err (!%p5091_p10)
}
 0xffc   :  { %s5116_s9 = smov 128   ;;  %s5117_s13 = smov 8  }
 0xffd   :  { %4217 = dma.vmem_to_hbm [thread:$0]  %s4212_s27, 4096, %s8760_s10, [#allocation6], %s5116_s9, %s5116_s9, %s5117_s13  }
 0xffe   :  { %5103 = dma.done.wait [#allocation6], 4096  }
 0xfff   :  { %5104 = vsyncadd [#allocation6], 4294963200 }
0x1000   :  { %4221 = vsyncpa [#allocation5], 1 }
0x1001   :  { %4222 = vsyncpa [#allocation9], 1 }
0x1002   :  { %4223 = vsyncpa [#allocation12], 1 }
0x1003   :  { %4224 = vsyncpa [#allocation6], 1 }
0x1004   :  { %4225 = vsyncpa [#allocation7], 1 }

</bundles_post_ra>
